<compile_context>
chip_gen: v7x
topology: tpu7x:2x2x1
jax: 0.10.0
libtpu: 0.0.40
codegen_flags: <defaults>
</compile_context>

<pallas_src>
import functools
import math

import jax
import jax.numpy as jnp
from jax import lax
from jax.experimental import pallas as pl
from jax.experimental.pallas import tpu as pltpu

_EPS = 1e-5
_VMEM_LIMIT = 32 * 1024 * 1024  # fits the scoped VMEM budget on v5e/v6e (128 MiB) and v7x (64 MiB)


# --------------------------------------------------------------------------- #
# small helpers (traceable inside kernels)
# --------------------------------------------------------------------------- #
def _pick_row_tile(n_rows: int, max_rows: int = 512) -> int:
    """Row tile that divides n_rows, is sublane (8) friendly, and gives >=2 grid
    steps when possible so work shards across v7x's 2 TensorCores."""
    if n_rows <= max_rows:
        if n_rows % 16 == 0:
            return n_rows // 2
        return n_rows
    for t in (max_rows, 256, 128, 64, 32, 16, 8):
        if n_rows % t == 0:
            return t
    return n_rows


def _pick_chan_tile(C: int, Hp: int, Wp: int, budget_bytes: int = 4 * 1024 * 1024) -> int:
    """Largest 128-multiple channel tile dividing C whose padded spatial block
    fits the budget (keeps blocks lane-dense and grid steps few)."""
    if C % 128 != 0:
        return C
    for ct in range(C, 0, -128):
        if C % ct == 0 and Hp * Wp * ct * 4 <= budget_bytes:
            return ct
    return 128


def _chan_ln(t, g, eps=_EPS):
    # ChanLayerNorm over the channel (last) axis; torch var(unbiased=False).
    mean = jnp.mean(t, axis=-1, keepdims=True)
    var = jnp.mean(jnp.square(t - mean), axis=-1, keepdims=True)
    return (t - mean) * lax.rsqrt(var + eps) * g


def _erf(x):
    # Abramowitz & Stegun 7.1.26 polynomial, |err| < 1.5e-7 (~f32 ulp).
    # TODO(synk): replace with lax.erf once its Mosaic lowering is guaranteed.
    p = 0.3275911
    a1, a2, a3, a4, a5 = 0.254829592, -0.284496736, 1.421413741, -1.453152027, 1.061405429
    ax = jnp.abs(x)
    t = 1.0 / (1.0 + p * ax)
    poly = ((((a5 * t + a4) * t + a3) * t + a2) * t + a1) * t
    y = 1.0 - poly * jnp.exp(-ax * ax)
    return jnp.where(x >= 0, y, -y)


def _gelu_exact(x):
    return 0.5 * x * (1.0 + _erf(x * (1.0 / math.sqrt(2.0))))


def _silu(x):
    return x * (1.0 / (1.0 + jnp.exp(-x)))


# --------------------------------------------------------------------------- #
# K1: ChanLayerNorm + fused q/k/v 1x1 projection
# --------------------------------------------------------------------------- #
def _norm_qkv_kernel(x_ref, g_ref, w_ref, o_ref):
    x = x_ref[...].astype(jnp.float32)
    xn = _chan_ln(x, g_ref[...].astype(jnp.float32))
    o_ref[...] = jnp.dot(xn, w_ref[...].astype(jnp.float32),
                         preferred_element_type=jnp.float32).astype(o_ref.dtype)


def _norm_qkv(x_rows, g, w_qkv, tile_rows):
    R, C = x_rows.shape
    C3 = w_qkv.shape[1]
    return pl.pallas_call(
        _norm_qkv_kernel,
        out_shape=jax.ShapeDtypeStruct((R, C3), x_rows.dtype),
        grid=(R // tile_rows,),
        in_specs=[
            pl.BlockSpec((tile_rows, C), lambda i: (i, 0)),
            pl.BlockSpec((1, C), lambda i: (0, 0)),       # resident (constant index_map)
            pl.BlockSpec((C, C3), lambda i: (0, 0)),      # resident
        ],
        out_specs=pl.BlockSpec((tile_rows, C3), lambda i: (i, 0)),  # lane-dense (C3 % 128 == 0)
        compiler_params=pltpu.CompilerParams(
            dimension_semantics=("parallel",), vmem_limit_bytes=_VMEM_LIMIT),
        cost_estimate=pl.CostEstimate(
            flops=2 * R * C * C3 + 8 * R * C,
            transcendentals=R,
            bytes_accessed=4 * (R * C + C * C3 + R * C3)),
    )(x_rows, g, w_qkv)


# --------------------------------------------------------------------------- #
# K2: depthwise 3x3 conv (padding=1), channels tiled lane-dense
# --------------------------------------------------------------------------- #
def _dwconv3x3_kernel(xp_ref, w_ref, o_ref):
    # xp_ref: (1, H+2, W+2, CT) zero-padded input tile
    # w_ref : (9, CT) per-channel taps, row-major (dy*3 + dx)
    # o_ref : (1, H, W, CT)
    Ho, Wo, CT = o_ref.shape[1], o_ref.shape[2], o_ref.shape[3]
    acc = jnp.zeros((Ho, Wo, CT), jnp.float32)
    for dy in range(3):
        for dx in range(3):
            tap = w_ref[dy * 3 + dx, :].astype(jnp.float32)          # (CT,) broadcast on lanes
            acc = acc + xp_ref[0, dy:dy + Ho, dx:dx + Wo, :].astype(jnp.float32) * tap
    o_ref[0] = acc.astype(o_ref.dtype)


def _dwconv3x3(x_pad, w_taps):
    B, Hp, Wp, C = x_pad.shape
    Ho, Wo = Hp - 2, Wp - 2
    ct = _pick_chan_tile(C, Hp, Wp)
    return pl.pallas_call(
        _dwconv3x3_kernel,
        out_shape=jax.ShapeDtypeStruct((B, Ho, Wo, C), x_pad.dtype),
        grid=(B, C // ct),
        in_specs=[
            pl.BlockSpec((1, Hp, Wp, ct), lambda b, c: (b, 0, 0, c)),
            pl.BlockSpec((9, ct), lambda b, c: (0, c)),
        ],
        out_specs=pl.BlockSpec((1, Ho, Wo, ct), lambda b, c: (b, 0, 0, c)),
        compiler_params=pltpu.CompilerParams(
            dimension_semantics=("parallel", "parallel"), vmem_limit_bytes=_VMEM_LIMIT),
        cost_estimate=pl.CostEstimate(
            flops=18 * B * Ho * Wo * C,
            transcendentals=0,
            bytes_accessed=4 * (B * Hp * Wp * C + 9 * C + B * Ho * Wo * C)),
    )(x_pad, w_taps)


# --------------------------------------------------------------------------- #
# K3: linear attention, one batch per grid step, all heads batched in-kernel
# --------------------------------------------------------------------------- #
def _linear_attn_kernel(q_ref, k_ref, v_ref, o_ref, *, scale):
    q = q_ref[0].astype(jnp.float32)   # (h, N, d)
    k = k_ref[0].astype(jnp.float32)
    v = v_ref[0].astype(jnp.float32)
    # q: softmax over feature dim, k: softmax over token dim; fold `scale` in.
    q = jnp.exp(q - jnp.max(q, axis=-1, keepdims=True))
    q = q * (scale / jnp.sum(q, axis=-1, keepdims=True))
    k = jnp.exp(k - jnp.max(k, axis=1, keepdims=True))
    k = k / jnp.sum(k, axis=1, keepdims=True)
    context = jnp.einsum("hnd,hne->hde", k, v, preferred_element_type=jnp.float32)  # (h, d, d)
    out = jnp.einsum("hnd,hde->hne", q, context, preferred_element_type=jnp.float32)  # (h, N, d)
    o_ref[0] = out.astype(o_ref.dtype)


def _linear_attention(q, k, v, scale):
    B, Hh, N, D = q.shape
    spec = pl.BlockSpec((1, Hh, N, D), lambda b: (b, 0, 0, 0))
    return pl.pallas_call(
        functools.partial(_linear_attn_kernel, scale=scale),
        out_shape=jax.ShapeDtypeStruct((B, Hh, N, D), q.dtype),
        grid=(B,),
        in_specs=[spec, spec, spec],
        out_specs=spec,
        compiler_params=pltpu.CompilerParams(
            dimension_semantics=("parallel",), vmem_limit_bytes=_VMEM_LIMIT),
        cost_estimate=pl.CostEstimate(
            flops=4 * B * Hh * N * D * D + 12 * B * Hh * N * D,
            transcendentals=2 * B * Hh * N * D,
            bytes_accessed=16 * B * Hh * N * D),
    )(q, k, v)


# --------------------------------------------------------------------------- #
# K4: SiLU + out-proj + ChanLayerNorm + residual, fused with ChanFeedForward
# --------------------------------------------------------------------------- #
def _post_ffn_kernel(attn_ref, res_ref, w_out_ref, g_out_ref,
                     g_f1_ref, w_f1_ref, g_f2_ref, w_f2_ref, o_ref):
    a = _silu(attn_ref[...].astype(jnp.float32))
    y = jnp.dot(a, w_out_ref[...].astype(jnp.float32), preferred_element_type=jnp.float32)
    y = _chan_ln(y, g_out_ref[...].astype(jnp.float32))
    y = y + res_ref[...].astype(jnp.float32)                       # attention residual
    t = _chan_ln(y, g_f1_ref[...].astype(jnp.float32))
    t = jnp.dot(t, w_f1_ref[...].astype(jnp.float32), preferred_element_type=jnp.float32)
    t = _gelu_exact(t)                                             # exact (erf) GELU
    t = _chan_ln(t, g_f2_ref[...].astype(jnp.float32))
    t = jnp.dot(t, w_f2_ref[...].astype(jnp.float32), preferred_element_type=jnp.float32)
    o_ref[...] = (t + y).astype(o_ref.dtype)                       # feed-forward residual


def _post_ffn(attn_rows, res_rows, w_out, g_out, g_f1, w_f1, g_f2, w_f2, tile_rows):
    R, IN = attn_rows.shape
    C = res_rows.shape[1]
    HID = w_f1.shape[1]
    return pl.pallas_call(
        _post_ffn_kernel,
        out_shape=jax.ShapeDtypeStruct((R, C), res_rows.dtype),
        grid=(R // tile_rows,),
        in_specs=[
            pl.BlockSpec((tile_rows, IN), lambda i: (i, 0)),   # lane-dense (IN % 128 == 0)
            pl.BlockSpec((tile_rows, C), lambda i: (i, 0)),
            pl.BlockSpec((IN, C), lambda i: (0, 0)),           # resident weights / gammas
            pl.BlockSpec((1, C), lambda i: (0, 0)),
            pl.BlockSpec((1, C), lambda i: (0, 0)),
            pl.BlockSpec((C, HID), lambda i: (0, 0)),
            pl.BlockSpec((1, HID), lambda i: (0, 0)),
            pl.BlockSpec((HID, C), lambda i: (0, 0)),
        ],
        out_specs=pl.BlockSpec((tile_rows, C), lambda i: (i, 0)),  # last dim = model dim
        compiler_params=pltpu.CompilerParams(
            dimension_semantics=("parallel",), vmem_limit_bytes=_VMEM_LIMIT),
        cost_estimate=pl.CostEstimate(
            flops=2 * R * (IN * C + 2 * C * HID) + 30 * R * (IN + C + HID),
            transcendentals=R * (IN + HID + 8),
            bytes_accessed=4 * (R * IN + 2 * R * C + IN * C + 2 * C * HID + 3 * C + HID)),
    )(attn_rows, res_rows, w_out, g_out, g_f1, w_f1, g_f2, w_f2)


# --------------------------------------------------------------------------- #
# full block forward
# --------------------------------------------------------------------------- #
def linear_attention_transformer_block(x, params, *, heads, dim_head):
    """x: (B, C, H, W) NCHW, as in the PyTorch module."""
    B, C, H, W = x.shape
    N = H * W
    R = B * N
    inner = heads * dim_head
    scale = dim_head ** -0.5

    # channels-last, row-flattened layout (one row per spatial position)
    x_rows = jnp.transpose(x, (0, 2, 3, 1)).reshape(R, C)
    tile_rows = _pick_row_tile(R)

    # ---- attention branch --------------------------------------------------
    # TODO(synk): nn.Dropout(p=0.05) in to_q/to_k/to_v is identity here (eval-mode forward).
    w_qkv = jnp.concatenate(
        [params["w_q1"].T, params["w_k1"].T, params["w_v1"].T], axis=1)     # (C, 3*inner)
    qkv = _norm_qkv(x_rows, params["g_norm"].reshape(1, C), w_qkv, tile_rows)

    w_dw = jnp.concatenate(
        [params["w_q_dw"], params["w_k_dw"], params["w_v_dw"]], axis=0)     # (3*inner, 3, 3)
    w_dw_taps = jnp.transpose(w_dw, (1, 2, 0)).reshape(9, 3 * inner)        # (9, 3*inner)
    qkv_pad = jnp.pad(qkv.reshape(B, H, W, 3 * inner), ((0, 0), (1, 1), (1, 1), (0, 0)))
    qkv_dw = _dwconv3x3(qkv_pad, w_dw_taps).reshape(B, N, 3 * inner)

    def split_heads(t):  # b n (h d) -> b h n d
        return t.reshape(B, N, heads, dim_head).transpose(0, 2, 1, 3)

    q = split_heads(qkv_dw[..., :inner])
    k = split_heads(qkv_dw[..., inner:2 * inner])
    v = split_heads(qkv_dw[..., 2 * inner:])

    attn = _linear_attention(q, k, v, scale)                                # (B, h, N, d)
    attn_rows = attn.transpose(0, 2, 1, 3).reshape(R, inner)

    # ---- SiLU + to_out + residual + ChanFeedForward + residual -------------
    out_rows = _post_ffn(
        attn_rows, x_rows,
        params["w_out"].T, params["g_out"].reshape(1, C),
        params["g_ff1"].reshape(1, C), params["w_ff1"].T,
        params["g_ff2"].reshape(1, -1), params["w_ff2"].T,
        tile_rows)

    return jnp.transpose(out_rows.reshape(B, H, W, C), (0, 3, 1, 2))


# --------------------------------------------------------------------------- #
# parameters + pure-JAX reference (mirrors the PyTorch forward in NCHW)
# --------------------------------------------------------------------------- #
def _init_params(key, dim, heads, dim_head, ff_mult):
    inner = heads * dim_head
    hidden = int(dim * ff_mult)
    ks = jax.random.split(key, 12)

    def w(k, shape, fan_in):
        return jax.random.normal(k, shape, jnp.float32) * (fan_in ** -0.5)

    return {
        "g_norm": 1.0 + 0.1 * jax.random.normal(ks[0], (dim,), jnp.float32),
        "w_q1": w(ks[1], (inner, dim), dim),
        "w_k1": w(ks[2], (inner, dim), dim),
        "w_v1": w(ks[3], (inner, dim), dim),
        "w_q_dw": w(ks[4], (inner, 3, 3), 9),
        "w_k_dw": w(ks[5], (inner, 3, 3), 9),
        "w_v_dw": w(ks[6], (inner, 3, 3), 9),
        "w_out": w(ks[7], (dim, inner), inner),
        "g_out": 1.0 + 0.1 * jax.random.normal(ks[8], (dim,), jnp.float32),
        "g_ff1": 1.0 + 0.1 * jax.random.normal(ks[9], (dim,), jnp.float32),
        "w_ff1": w(ks[10], (hidden, dim), dim),
        "g_ff2": jnp.ones((hidden,), jnp.float32),
        "w_ff2": w(ks[11], (dim, hidden), hidden),
    }


def _reference_forward(x, params, *, heads, dim_head, eps=_EPS):
    hi = jax.lax.Precision.HIGHEST

    def chan_ln(t, g):
        mean = jnp.mean(t, axis=1, keepdims=True)
        var = jnp.mean(jnp.square(t - mean), axis=1, keepdims=True)
        return (t - mean) / jnp.sqrt(var + eps) * g[None, :, None, None]

    def conv1x1(t, w):
        return jnp.einsum("bchw,oc->bohw", t, w, precision=hi)

    def dwconv3x3(t, w):
        Bb, Cc, Hh, Ww = t.shape
        tp = jnp.pad(t, ((0, 0), (0, 0), (1, 1), (1, 1)))
        out = jnp.zeros_like(t)
        for dy in range(3):
            for dx in range(3):
                out = out + tp[:, :, dy:dy + Hh, dx:dx + Ww] * w[None, :, dy, dx, None, None]
        return out

    B, C, H, W = x.shape
    N = H * W
    inner = heads * dim_head
    scale = dim_head ** -0.5

    fmap = chan_ln(x, params["g_norm"])
    q = dwconv3x3(conv1x1(fmap, params["w_q1"]), params["w_q_dw"])
    k = dwconv3x3(conv1x1(fmap, params["w_k1"]), params["w_k_dw"])
    v = dwconv3x3(conv1x1(fmap, params["w_v1"]), params["w_v_dw"])

    def split(t):  # b (h c) x y -> (b h) (x y) c
        return (t.reshape(B, heads, dim_head, N)
                 .transpose(0, 1, 3, 2)
                 .reshape(B * heads, N, dim_head))

    q, k, v = split(q), split(k), split(v)
    q = jax.nn.softmax(q, axis=-1)
    k = jax.nn.softmax(k, axis=-2)
    q = q * scale
    context = jnp.einsum("bnd,bne->bde", k, v, precision=hi)
    out = jnp.einsum("bnd,bde->bne", q, context, precision=hi)
    out = (out.reshape(B, heads, N, dim_head)
              .transpose(0, 1, 3, 2)
              .reshape(B, inner, H, W))
    out = jax.nn.silu(out)
    out = chan_ln(conv1x1(out, params["w_out"]), params["g_out"])
    x = out + x

    t = chan_ln(x, params["g_ff1"])
    t = conv1x1(t, params["w_ff1"])
    t = jax.nn.gelu(t, approximate=False)
    t = chan_ln(t, params["g_ff2"])
    t = conv1x1(t, params["w_ff2"])
    return t + x


if __name__ == "__main__":
    B, DIM, H, W = 2, 32, 8, 8
    HEADS, DIM_HEAD, FF_MULT = 8, 32, 2

    key = jax.random.PRNGKey(0)
    k_x, k_p = jax.random.split(key)
    x = jax.random.normal(k_x, (B, DIM, H, W), dtype=jnp.float32)
    params = _init_params(k_p, DIM, HEADS, DIM_HEAD, FF_MULT)

    fwd = jax.jit(functools.partial(
        linear_attention_transformer_block, heads=HEADS, dim_head=DIM_HEAD))
    y = jax.block_until_ready(fwd(x, params))

    y_ref = _reference_forward(x, params, heads=HEADS, dim_head=DIM_HEAD)
    assert y.shape == (B, DIM, H, W)
    assert jnp.allclose(y, y_ref, atol=1e-2, rtol=1e-2), float(jnp.max(jnp.abs(y - y_ref)))

    print("KERNEL_OK")
</pallas_src>

<mosaic_0001>
module attributes {stable_mosaic.version = 11 : i64} {
  func.func @_norm_qkv_kernel(%arg0: i32, %arg1: memref<64x32xf32, #tpu.memory_space<vmem>>, %arg2: memref<1x32xf32, #tpu.memory_space<vmem>>, %arg3: memref<32x768xf32, #tpu.memory_space<vmem>>, %arg4: memref<64x768xf32, #tpu.memory_space<vmem>>) attributes {dimension_semantics = [#tpu.dimension_semantics<parallel>], iteration_bounds = array<i64: 2>, scalar_prefetch = 0 : i64, scratch_operands = 0 : i64, tpu.core_type = #tpu.core_type<tc>, window_params = [{transform_indices = @transform_0, window_bounds = array<i64: 64, 32>}, {pipeline_mode = #tpu.pipeline_mode<synchronous>, transform_indices = @transform_1, window_bounds = array<i64: 1, 32>}, {pipeline_mode = #tpu.pipeline_mode<synchronous>, transform_indices = @transform_2, window_bounds = array<i64: 32, 768>}, {transform_indices = @transform_3, window_bounds = array<i64: 64, 768>}]} {
    %c0 = arith.constant 0 : index
    %c0_0 = arith.constant 0 : index
    %0 = vector.load %arg1[%c0, %c0_0] : memref<64x32xf32, #tpu.memory_space<vmem>>, vector<64x32xf32>
    %c0_1 = arith.constant 0 : index
    %c0_2 = arith.constant 0 : index
    %1 = vector.load %arg2[%c0_1, %c0_2] : memref<1x32xf32, #tpu.memory_space<vmem>>, vector<1x32xf32>
    %cst = arith.constant dense<0.000000e+00> : vector<64xf32>
    %2 = vector.multi_reduction <add>, %0, %cst [1] : vector<64x32xf32> to vector<64xf32>
    %3 = vector.shape_cast %2 : vector<64xf32> to vector<64x1xf32>
    %cst_3 = arith.constant 3.200000e+01 : f32
    %4 = vector.broadcast %cst_3 : f32 to vector<64x1xf32>
    %5 = arith.divf %3, %4 : vector<64x1xf32>
    %6 = vector.broadcast %5 : vector<64x1xf32> to vector<64x32xf32>
    %7 = arith.subf %0, %6 : vector<64x32xf32>
    %8 = arith.mulf %7, %7 : vector<64x32xf32>
    %cst_4 = arith.constant dense<0.000000e+00> : vector<64xf32>
    %9 = vector.multi_reduction <add>, %8, %cst_4 [1] : vector<64x32xf32> to vector<64xf32>
    %10 = vector.shape_cast %9 : vector<64xf32> to vector<64x1xf32>
    %cst_5 = arith.constant 3.200000e+01 : f32
    %11 = vector.broadcast %cst_5 : f32 to vector<64x1xf32>
    %12 = arith.divf %10, %11 : vector<64x1xf32>
    %13 = vector.broadcast %5 : vector<64x1xf32> to vector<64x32xf32>
    %14 = arith.subf %0, %13 : vector<64x32xf32>
    %cst_6 = arith.constant 9.99999974E-6 : f32
    %15 = vector.broadcast %cst_6 : f32 to vector<64x1xf32>
    %16 = arith.addf %12, %15 : vector<64x1xf32>
    %17 = math.rsqrt %16 : vector<64x1xf32>
    %18 = vector.broadcast %17 : vector<64x1xf32> to vector<64x32xf32>
    %19 = arith.mulf %14, %18 : vector<64x32xf32>
    %20 = vector.broadcast %1 : vector<1x32xf32> to vector<64x32xf32>
    %21 = arith.mulf %19, %20 : vector<64x32xf32>
    %c0_7 = arith.constant 0 : index
    %c0_8 = arith.constant 0 : index
    %22 = vector.load %arg3[%c0_7, %c0_8] : memref<32x768xf32, #tpu.memory_space<vmem>>, vector<32x768xf32>
    %cst_9 = arith.constant dense<0.000000e+00> : vector<64x768xf32>
    %23 = tpu.matmul %21, %22, %cst_9 {dimension_numbers = #tpu.dot_dimension_numbers<[1], [0], [0], [1], [0, 0, 1, 1], [], []>} : vector<64x32xf32>, vector<32x768xf32>, vector<64x768xf32> -> vector<64x768xf32>
    %c0_10 = arith.constant 0 : index
    %c0_11 = arith.constant 0 : index
    %24 = vector.load %arg4[%c0_10, %c0_11] : memref<64x768xf32, #tpu.memory_space<vmem>>, vector<64x768xf32>
    tpu.vector_store %arg4[%c0_10, %c0_11], %23 {strides = array<i32>} : memref<64x768xf32, #tpu.memory_space<vmem>>, vector<64x768xf32>,
    return
  }
  func.func @transform_0(%arg0: i32) -> (i32, i32) {
    %c0_i32 = arith.constant 0 : i32
    %c0_i32_0 = arith.constant 0 : i32
    return %arg0, %c0_i32 : i32, i32
  }
  func.func @transform_1(%arg0: i32) -> (i32, i32) {
    %c0_i32 = arith.constant 0 : i32
    %c0_i32_0 = arith.constant 0 : i32
    %c0_i32_1 = arith.constant 0 : i32
    return %c0_i32, %c0_i32_0 : i32, i32
  }
  func.func @transform_2(%arg0: i32) -> (i32, i32) {
    %c0_i32 = arith.constant 0 : i32
    %c0_i32_0 = arith.constant 0 : i32
    %c0_i32_1 = arith.constant 0 : i32
    return %c0_i32, %c0_i32_0 : i32, i32
  }
  func.func @transform_3(%arg0: i32) -> (i32, i32) {
    %c0_i32 = arith.constant 0 : i32
    %c0_i32_0 = arith.constant 0 : i32
    return %arg0, %c0_i32 : i32, i32
  }
}

module attributes {stable_mosaic.version = 11 : i64} {
  func.func @_dwconv3x3_kernel(%arg0: i32, %arg1: i32, %arg2: memref<1x10x10x768xf32, #tpu.memory_space<vmem>>, %arg3: memref<9x768xf32, #tpu.memory_space<vmem>>, %arg4: memref<1x8x8x768xf32, #tpu.memory_space<vmem>>) attributes {dimension_semantics = [#tpu.dimension_semantics<parallel>, #tpu.dimension_semantics<parallel>], iteration_bounds = array<i64: 2, 1>, scalar_prefetch = 0 : i64, scratch_operands = 0 : i64, tpu.core_type = #tpu.core_type<tc>, window_params = [{transform_indices = @transform_0, window_bounds = array<i64: 1, 10, 10, 768>}, {transform_indices = @transform_1, window_bounds = array<i64: 9, 768>}, {transform_indices = @transform_2, window_bounds = array<i64: 1, 8, 8, 768>}]} {
    %cst = arith.constant 0.000000e+00 : f32
    %0 = vector.broadcast %cst : f32 to vector<8x8x768xf32>
    %c0 = arith.constant 0 : index
    %c0_0 = arith.constant 0 : index
    %1 = vector.load %arg3[%c0, %c0_0] : memref<9x768xf32, #tpu.memory_space<vmem>>, vector<1x768xf32>
    %2 = vector.shape_cast %1 : vector<1x768xf32> to vector<768xf32>
    %c0_1 = arith.constant 0 : index
    %c0_2 = arith.constant 0 : index
    %c0_3 = arith.constant 0 : index
    %c0_4 = arith.constant 0 : index
    %3 = vector.load %arg2[%c0_1, %c0_2, %c0_3, %c0_4] : memref<1x10x10x768xf32, #tpu.memory_space<vmem>>, vector<1x8x8x768xf32>
    %4 = vector.shape_cast %3 : vector<1x8x8x768xf32> to vector<8x8x768xf32>
    %5 = vector.shape_cast %2 : vector<768xf32> to vector<1x1x768xf32>
    %6 = vector.broadcast %5 : vector<1x1x768xf32> to vector<8x8x768xf32>
    %7 = arith.mulf %4, %6 : vector<8x8x768xf32>
    %8 = arith.addf %0, %7 : vector<8x8x768xf32>
    %c1 = arith.constant 1 : index
    %c0_5 = arith.constant 0 : index
    %9 = vector.load %arg3[%c1, %c0_5] : memref<9x768xf32, #tpu.memory_space<vmem>>, vector<1x768xf32>
    %10 = vector.shape_cast %9 : vector<1x768xf32> to vector<768xf32>
    %c0_6 = arith.constant 0 : index
    %c0_7 = arith.constant 0 : index
    %c1_8 = arith.constant 1 : index
    %c0_9 = arith.constant 0 : index
    %11 = vector.load %arg2[%c0_6, %c0_7, %c1_8, %c0_9] : memref<1x10x10x768xf32, #tpu.memory_space<vmem>>, vector<1x8x8x768xf32>
    %12 = vector.shape_cast %11 : vector<1x8x8x768xf32> to vector<8x8x768xf32>
    %13 = vector.shape_cast %10 : vector<768xf32> to vector<1x1x768xf32>
    %14 = vector.broadcast %13 : vector<1x1x768xf32> to vector<8x8x768xf32>
    %15 = arith.mulf %12, %14 : vector<8x8x768xf32>
    %16 = arith.addf %8, %15 : vector<8x8x768xf32>
    %c2 = arith.constant 2 : index
    %c0_10 = arith.constant 0 : index
    %17 = vector.load %arg3[%c2, %c0_10] : memref<9x768xf32, #tpu.memory_space<vmem>>, vector<1x768xf32>
    %18 = vector.shape_cast %17 : vector<1x768xf32> to vector<768xf32>
    %c0_11 = arith.constant 0 : index
    %c0_12 = arith.constant 0 : index
    %c2_13 = arith.constant 2 : index
    %c0_14 = arith.constant 0 : index
    %19 = vector.load %arg2[%c0_11, %c0_12, %c2_13, %c0_14] : memref<1x10x10x768xf32, #tpu.memory_space<vmem>>, vector<1x8x8x768xf32>
    %20 = vector.shape_cast %19 : vector<1x8x8x768xf32> to vector<8x8x768xf32>
    %21 = vector.shape_cast %18 : vector<768xf32> to vector<1x1x768xf32>
    %22 = vector.broadcast %21 : vector<1x1x768xf32> to vector<8x8x768xf32>
    %23 = arith.mulf %20, %22 : vector<8x8x768xf32>
    %24 = arith.addf %16, %23 : vector<8x8x768xf32>
    %c3 = arith.constant 3 : index
    %c0_15 = arith.constant 0 : index
    %25 = vector.load %arg3[%c3, %c0_15] : memref<9x768xf32, #tpu.memory_space<vmem>>, vector<1x768xf32>
    %26 = vector.shape_cast %25 : vector<1x768xf32> to vector<768xf32>
    %c0_16 = arith.constant 0 : index
    %c1_17 = arith.constant 1 : index
    %c0_18 = arith.constant 0 : index
    %c0_19 = arith.constant 0 : index
    %27 = vector.load %arg2[%c0_16, %c1_17, %c0_18, %c0_19] : memref<1x10x10x768xf32, #tpu.memory_space<vmem>>, vector<1x8x8x768xf32>
    %28 = vector.shape_cast %27 : vector<1x8x8x768xf32> to vector<8x8x768xf32>
    %29 = vector.shape_cast %26 : vector<768xf32> to vector<1x1x768xf32>
    %30 = vector.broadcast %29 : vector<1x1x768xf32> to vector<8x8x768xf32>
    %31 = arith.mulf %28, %30 : vector<8x8x768xf32>
    %32 = arith.addf %24, %31 : vector<8x8x768xf32>
    %c4 = arith.constant 4 : index
    %c0_20 = arith.constant 0 : index
    %33 = vector.load %arg3[%c4, %c0_20] : memref<9x768xf32, #tpu.memory_space<vmem>>, vector<1x768xf32>
    %34 = vector.shape_cast %33 : vector<1x768xf32> to vector<768xf32>
    %c0_21 = arith.constant 0 : index
    %c1_22 = arith.constant 1 : index
    %c1_23 = arith.constant 1 : index
    %c0_24 = arith.constant 0 : index
    %35 = vector.load %arg2[%c0_21, %c1_22, %c1_23, %c0_24] : memref<1x10x10x768xf32, #tpu.memory_space<vmem>>, vector<1x8x8x768xf32>
    %36 = vector.shape_cast %35 : vector<1x8x8x768xf32> to vector<8x8x768xf32>
    %37 = vector.shape_cast %34 : vector<768xf32> to vector<1x1x768xf32>
    %38 = vector.broadcast %37 : vector<1x1x768xf32> to vector<8x8x768xf32>
    %39 = arith.mulf %36, %38 : vector<8x8x768xf32>
    %40 = arith.addf %32, %39 : vector<8x8x768xf32>
    %c5 = arith.constant 5 : index
    %c0_25 = arith.constant 0 : index
    %41 = vector.load %arg3[%c5, %c0_25] : memref<9x768xf32, #tpu.memory_space<vmem>>, vector<1x768xf32>
    %42 = vector.shape_cast %41 : vector<1x768xf32> to vector<768xf32>
    %c0_26 = arith.constant 0 : index
    %c1_27 = arith.constant 1 : index
    %c2_28 = arith.constant 2 : index
    %c0_29 = arith.constant 0 : index
    %43 = vector.load %arg2[%c0_26, %c1_27, %c2_28, %c0_29] : memref<1x10x10x768xf32, #tpu.memory_space<vmem>>, vector<1x8x8x768xf32>
    %44 = vector.shape_cast %43 : vector<1x8x8x768xf32> to vector<8x8x768xf32>
    %45 = vector.shape_cast %42 : vector<768xf32> to vector<1x1x768xf32>
    %46 = vector.broadcast %45 : vector<1x1x768xf32> to vector<8x8x768xf32>
    %47 = arith.mulf %44, %46 : vector<8x8x768xf32>
    %48 = arith.addf %40, %47 : vector<8x8x768xf32>
    %c6 = arith.constant 6 : index
    %c0_30 = arith.constant 0 : index
    %49 = vector.load %arg3[%c6, %c0_30] : memref<9x768xf32, #tpu.memory_space<vmem>>, vector<1x768xf32>
    %50 = vector.shape_cast %49 : vector<1x768xf32> to vector<768xf32>
    %c0_31 = arith.constant 0 : index
    %c2_32 = arith.constant 2 : index
    %c0_33 = arith.constant 0 : index
    %c0_34 = arith.constant 0 : index
    %51 = vector.load %arg2[%c0_31, %c2_32, %c0_33, %c0_34] : memref<1x10x10x768xf32, #tpu.memory_space<vmem>>, vector<1x8x8x768xf32>
    %52 = vector.shape_cast %51 : vector<1x8x8x768xf32> to vector<8x8x768xf32>
    %53 = vector.shape_cast %50 : vector<768xf32> to vector<1x1x768xf32>
    %54 = vector.broadcast %53 : vector<1x1x768xf32> to vector<8x8x768xf32>
    %55 = arith.mulf %52, %54 : vector<8x8x768xf32>
    %56 = arith.addf %48, %55 : vector<8x8x768xf32>
    %c7 = arith.constant 7 : index
    %c0_35 = arith.constant 0 : index
    %57 = vector.load %arg3[%c7, %c0_35] : memref<9x768xf32, #tpu.memory_space<vmem>>, vector<1x768xf32>
    %58 = vector.shape_cast %57 : vector<1x768xf32> to vector<768xf32>
    %c0_36 = arith.constant 0 : index
    %c2_37 = arith.constant 2 : index
    %c1_38 = arith.constant 1 : index
    %c0_39 = arith.constant 0 : index
    %59 = vector.load %arg2[%c0_36, %c2_37, %c1_38, %c0_39] : memref<1x10x10x768xf32, #tpu.memory_space<vmem>>, vector<1x8x8x768xf32>
    %60 = vector.shape_cast %59 : vector<1x8x8x768xf32> to vector<8x8x768xf32>
    %61 = vector.shape_cast %58 : vector<768xf32> to vector<1x1x768xf32>
    %62 = vector.broadcast %61 : vector<1x1x768xf32> to vector<8x8x768xf32>
    %63 = arith.mulf %60, %62 : vector<8x8x768xf32>
    %64 = arith.addf %56, %63 : vector<8x8x768xf32>
    %c8 = arith.constant 8 : index
    %c0_40 = arith.constant 0 : index
    %65 = vector.load %arg3[%c8, %c0_40] : memref<9x768xf32, #tpu.memory_space<vmem>>, vector<1x768xf32>
    %66 = vector.shape_cast %65 : vector<1x768xf32> to vector<768xf32>
    %c0_41 = arith.constant 0 : index
    %c2_42 = arith.constant 2 : index
    %c2_43 = arith.constant 2 : index
    %c0_44 = arith.constant 0 : index
    %67 = vector.load %arg2[%c0_41, %c2_42, %c2_43, %c0_44] : memref<1x10x10x768xf32, #tpu.memory_space<vmem>>, vector<1x8x8x768xf32>
    %68 = vector.shape_cast %67 : vector<1x8x8x768xf32> to vector<8x8x768xf32>
    %69 = vector.shape_cast %66 : vector<768xf32> to vector<1x1x768xf32>
    %70 = vector.broadcast %69 : vector<1x1x768xf32> to vector<8x8x768xf32>
    %71 = arith.mulf %68, %70 : vector<8x8x768xf32>
    %72 = arith.addf %64, %71 : vector<8x8x768xf32>
    %c0_45 = arith.constant 0 : index
    %c0_46 = arith.constant 0 : index
    %c0_47 = arith.constant 0 : index
    %c0_48 = arith.constant 0 : index
    %73 = vector.load %arg4[%c0_45, %c0_46, %c0_47, %c0_48] : memref<1x8x8x768xf32, #tpu.memory_space<vmem>>, vector<1x8x8x768xf32>
    %74 = vector.shape_cast %73 : vector<1x8x8x768xf32> to vector<8x8x768xf32>
    %75 = vector.shape_cast %72 : vector<8x8x768xf32> to vector<1x8x8x768xf32>
    tpu.vector_store %arg4[%c0_45, %c0_46, %c0_47, %c0_48], %75 {strides = array<i32>} : memref<1x8x8x768xf32, #tpu.memory_space<vmem>>, vector<1x8x8x768xf32>,
    return
  }
  func.func @transform_0(%arg0: i32, %arg1: i32) -> (i32, i32, i32, i32) {
    %c0_i32 = arith.constant 0 : i32
    %c0_i32_0 = arith.constant 0 : i32
    %c0_i32_1 = arith.constant 0 : i32
    return %arg0, %c0_i32, %c0_i32_0, %arg1 : i32, i32, i32, i32
  }
  func.func @transform_1(%arg0: i32, %arg1: i32) -> (i32, i32) {
    %c0_i32 = arith.constant 0 : i32
    %c0_i32_0 = arith.constant 0 : i32
    return %c0_i32, %arg1 : i32, i32
  }
  func.func @transform_2(%arg0: i32, %arg1: i32) -> (i32, i32, i32, i32) {
    %c0_i32 = arith.constant 0 : i32
    %c0_i32_0 = arith.constant 0 : i32
    %c0_i32_1 = arith.constant 0 : i32
    return %arg0, %c0_i32, %c0_i32_0, %arg1 : i32, i32, i32, i32
  }
}

module attributes {stable_mosaic.version = 11 : i64} {
  func.func @_linear_attn_kernel(%arg0: i32, %arg1: memref<1x8x64x32xf32, #tpu.memory_space<vmem>>, %arg2: memref<1x8x64x32xf32, #tpu.memory_space<vmem>>, %arg3: memref<1x8x64x32xf32, #tpu.memory_space<vmem>>, %arg4: memref<1x8x64x32xf32, #tpu.memory_space<vmem>>) attributes {dimension_semantics = [#tpu.dimension_semantics<parallel>], iteration_bounds = array<i64: 2>, scalar_prefetch = 0 : i64, scratch_operands = 0 : i64, tpu.core_type = #tpu.core_type<tc>, window_params = [{transform_indices = @transform_0, window_bounds = array<i64: 1, 8, 64, 32>}, {transform_indices = @transform_1, window_bounds = array<i64: 1, 8, 64, 32>}, {transform_indices = @transform_2, window_bounds = array<i64: 1, 8, 64, 32>}, {transform_indices = @transform_3, window_bounds = array<i64: 1, 8, 64, 32>}]} {
    %c0 = arith.constant 0 : index
    %c0_0 = arith.constant 0 : index
    %c0_1 = arith.constant 0 : index
    %c0_2 = arith.constant 0 : index
    %0 = vector.load %arg1[%c0, %c0_0, %c0_1, %c0_2] : memref<1x8x64x32xf32, #tpu.memory_space<vmem>>, vector<1x8x64x32xf32>
    %1 = vector.shape_cast %0 : vector<1x8x64x32xf32> to vector<8x64x32xf32>
    %c0_3 = arith.constant 0 : index
    %c0_4 = arith.constant 0 : index
    %c0_5 = arith.constant 0 : index
    %c0_6 = arith.constant 0 : index
    %2 = vector.load %arg2[%c0_3, %c0_4, %c0_5, %c0_6] : memref<1x8x64x32xf32, #tpu.memory_space<vmem>>, vector<1x8x64x32xf32>
    %3 = vector.shape_cast %2 : vector<1x8x64x32xf32> to vector<8x64x32xf32>
    %c0_7 = arith.constant 0 : index
    %c0_8 = arith.constant 0 : index
    %c0_9 = arith.constant 0 : index
    %c0_10 = arith.constant 0 : index
    %4 = vector.load %arg3[%c0_7, %c0_8, %c0_9, %c0_10] : memref<1x8x64x32xf32, #tpu.memory_space<vmem>>, vector<1x8x64x32xf32>
    %5 = vector.shape_cast %4 : vector<1x8x64x32xf32> to vector<8x64x32xf32>
    %cst = arith.constant dense<0xFF800000> : vector<8x64xf32>
    %6 = vector.multi_reduction <maximumf>, %1, %cst [2] : vector<8x64x32xf32> to vector<8x64xf32>
    %7 = vector.shape_cast %6 : vector<8x64xf32> to vector<8x64x1xf32>
    %8 = vector.broadcast %7 : vector<8x64x1xf32> to vector<8x64x32xf32>
    %9 = arith.subf %1, %8 : vector<8x64x32xf32>
    %10 = math.exp %9 : vector<8x64x32xf32>
    %cst_11 = arith.constant dense<0.000000e+00> : vector<8x64xf32>
    %11 = vector.multi_reduction <add>, %10, %cst_11 [2] : vector<8x64x32xf32> to vector<8x64xf32>
    %12 = vector.shape_cast %11 : vector<8x64xf32> to vector<8x64x1xf32>
    %cst_12 = arith.constant 0.176776692 : f32
    %13 = vector.broadcast %cst_12 : f32 to vector<8x64x1xf32>
    %14 = arith.divf %13, %12 : vector<8x64x1xf32>
    %15 = vector.broadcast %14 : vector<8x64x1xf32> to vector<8x64x32xf32>
    %16 = arith.mulf %10, %15 : vector<8x64x32xf32>
    %cst_13 = arith.constant dense<0xFF800000> : vector<8x32xf32>
    %17 = vector.multi_reduction <maximumf>, %3, %cst_13 [1] : vector<8x64x32xf32> to vector<8x32xf32>
    %18 = vector.shape_cast %17 : vector<8x32xf32> to vector<8x1x32xf32>
    %19 = vector.broadcast %18 : vector<8x1x32xf32> to vector<8x64x32xf32>
    %20 = arith.subf %3, %19 : vector<8x64x32xf32>
    %21 = math.exp %20 : vector<8x64x32xf32>
    %cst_14 = arith.constant dense<0.000000e+00> : vector<8x32xf32>
    %22 = vector.multi_reduction <add>, %21, %cst_14 [1] : vector<8x64x32xf32> to vector<8x32xf32>
    %23 = vector.shape_cast %22 : vector<8x32xf32> to vector<8x1x32xf32>
    %24 = vector.broadcast %23 : vector<8x1x32xf32> to vector<8x64x32xf32>
    %25 = arith.divf %21, %24 : vector<8x64x32xf32>
    "tpu.trace_start"() <{level = 10 : i32, message = "hnd,hne->hde"}> : () -> ()
    %cst_15 = arith.constant dense<0.000000e+00> : vector<8x32x32xf32>
    %26 = tpu.matmul %25, %5, %cst_15 {dimension_numbers = #tpu.dot_dimension_numbers<[1], [1], [2], [2], [0, 0, 0, 2, 1, 2], [0], [0]>} : vector<8x64x32xf32>, vector<8x64x32xf32>, vector<8x32x32xf32> -> vector<8x32x32xf32>
    "tpu.trace_stop"() : () -> ()
    "tpu.trace_start"() <{level = 10 : i32, message = "hnd,hde->hne"}> : () -> ()
    %cst_16 = arith.constant dense<0.000000e+00> : vector<8x64x32xf32>
    %27 = tpu.matmul %16, %26, %cst_16 {dimension_numbers = #tpu.dot_dimension_numbers<[2], [1], [1], [2], [0, 0, 0, 1, 1, 2], [0], [0]>} : vector<8x64x32xf32>, vector<8x32x32xf32>, vector<8x64x32xf32> -> vector<8x64x32xf32>
    "tpu.trace_stop"() : () -> ()
    %c0_17 = arith.constant 0 : index
    %c0_18 = arith.constant 0 : index
    %c0_19 = arith.constant 0 : index
    %c0_20 = arith.constant 0 : index
    %28 = vector.load %arg4[%c0_17, %c0_18, %c0_19, %c0_20] : memref<1x8x64x32xf32, #tpu.memory_space<vmem>>, vector<1x8x64x32xf32>
    %29 = vector.shape_cast %28 : vector<1x8x64x32xf32> to vector<8x64x32xf32>
    %30 = vector.shape_cast %27 : vector<8x64x32xf32> to vector<1x8x64x32xf32>
    tpu.vector_store %arg4[%c0_17, %c0_18, %c0_19, %c0_20], %30 {strides = array<i32>} : memref<1x8x64x32xf32, #tpu.memory_space<vmem>>, vector<1x8x64x32xf32>,
    return
  }
  func.func @transform_0(%arg0: i32) -> (i32, i32, i32, i32) {
    %c0_i32 = arith.constant 0 : i32
    %c0_i32_0 = arith.constant 0 : i32
    %c0_i32_1 = arith.constant 0 : i32
    %c0_i32_2 = arith.constant 0 : i32
    return %arg0, %c0_i32, %c0_i32_0, %c0_i32_1 : i32, i32, i32, i32
  }
  func.func @transform_1(%arg0: i32) -> (i32, i32, i32, i32) {
    %c0_i32 = arith.constant 0 : i32
    %c0_i32_0 = arith.constant 0 : i32
    %c0_i32_1 = arith.constant 0 : i32
    %c0_i32_2 = arith.constant 0 : i32
    return %arg0, %c0_i32, %c0_i32_0, %c0_i32_1 : i32, i32, i32, i32
  }
  func.func @transform_2(%arg0: i32) -> (i32, i32, i32, i32) {
    %c0_i32 = arith.constant 0 : i32
    %c0_i32_0 = arith.constant 0 : i32
    %c0_i32_1 = arith.constant 0 : i32
    %c0_i32_2 = arith.constant 0 : i32
    return %arg0, %c0_i32, %c0_i32_0, %c0_i32_1 : i32, i32, i32, i32
  }
  func.func @transform_3(%arg0: i32) -> (i32, i32, i32, i32) {
    %c0_i32 = arith.constant 0 : i32
    %c0_i32_0 = arith.constant 0 : i32
    %c0_i32_1 = arith.constant 0 : i32
    %c0_i32_2 = arith.constant 0 : i32
    return %arg0, %c0_i32, %c0_i32_0, %c0_i32_1 : i32, i32, i32, i32
  }
}

module attributes {stable_mosaic.version = 11 : i64} {
  func.func @_post_ffn_kernel(%arg0: i32, %arg1: memref<64x256xf32, #tpu.memory_space<vmem>>, %arg2: memref<64x32xf32, #tpu.memory_space<vmem>>, %arg3: memref<256x32xf32, #tpu.memory_space<vmem>>, %arg4: memref<1x32xf32, #tpu.memory_space<vmem>>, %arg5: memref<1x32xf32, #tpu.memory_space<vmem>>, %arg6: memref<32x64xf32, #tpu.memory_space<vmem>>, %arg7: memref<1x64xf32, #tpu.memory_space<vmem>>, %arg8: memref<64x32xf32, #tpu.memory_space<vmem>>, %arg9: memref<64x32xf32, #tpu.memory_space<vmem>>) attributes {dimension_semantics = [#tpu.dimension_semantics<parallel>], iteration_bounds = array<i64: 2>, scalar_prefetch = 0 : i64, scratch_operands = 0 : i64, tpu.core_type = #tpu.core_type<tc>, window_params = [{transform_indices = @transform_0, window_bounds = array<i64: 64, 256>}, {transform_indices = @transform_1, window_bounds = array<i64: 64, 32>}, {pipeline_mode = #tpu.pipeline_mode<synchronous>, transform_indices = @transform_2, window_bounds = array<i64: 256, 32>}, {pipeline_mode = #tpu.pipeline_mode<synchronous>, transform_indices = @transform_3, window_bounds = array<i64: 1, 32>}, {pipeline_mode = #tpu.pipeline_mode<synchronous>, transform_indices = @transform_4, window_bounds = array<i64: 1, 32>}, {pipeline_mode = #tpu.pipeline_mode<synchronous>, transform_indices = @transform_5, window_bounds = array<i64: 32, 64>}, {pipeline_mode = #tpu.pipeline_mode<synchronous>, transform_indices = @transform_6, window_bounds = array<i64: 1, 64>}, {pipeline_mode = #tpu.pipeline_mode<synchronous>, transform_indices = @transform_7, window_bounds = array<i64: 64, 32>}, {transform_indices = @transform_8, window_bounds = array<i64: 64, 32>}]} {
    %c0 = arith.constant 0 : index
    %c0_0 = arith.constant 0 : index
    %0 = vector.load %arg1[%c0, %c0_0] : memref<64x256xf32, #tpu.memory_space<vmem>>, vector<64x256xf32>
    %cst = arith.constant 0.000000e+00 : f32
    %1 = vector.broadcast %cst : f32 to vector<64x256xf32>
    %2 = arith.subf %1, %0 : vector<64x256xf32>
    %3 = math.exp %2 : vector<64x256xf32>
    %cst_1 = arith.constant 1.000000e+00 : f32
    %4 = vector.broadcast %cst_1 : f32 to vector<64x256xf32>
    %5 = arith.addf %4, %3 : vector<64x256xf32>
    %cst_2 = arith.constant 1.000000e+00 : f32
    %6 = vector.broadcast %cst_2 : f32 to vector<64x256xf32>
    %7 = arith.divf %6, %5 : vector<64x256xf32>
    %8 = arith.mulf %0, %7 : vector<64x256xf32>
    %c0_3 = arith.constant 0 : index
    %c0_4 = arith.constant 0 : index
    %9 = vector.load %arg3[%c0_3, %c0_4] : memref<256x32xf32, #tpu.memory_space<vmem>>, vector<256x32xf32>
    %cst_5 = arith.constant dense<0.000000e+00> : vector<64x32xf32>
    %10 = tpu.matmul %8, %9, %cst_5 {dimension_numbers = #tpu.dot_dimension_numbers<[1], [0], [0], [1], [0, 0, 1, 1], [], []>} : vector<64x256xf32>, vector<256x32xf32>, vector<64x32xf32> -> vector<64x32xf32>
    %c0_6 = arith.constant 0 : index
    %c0_7 = arith.constant 0 : index
    %11 = vector.load %arg4[%c0_6, %c0_7] : memref<1x32xf32, #tpu.memory_space<vmem>>, vector<1x32xf32>
    %cst_8 = arith.constant dense<0.000000e+00> : vector<64xf32>
    %12 = vector.multi_reduction <add>, %10, %cst_8 [1] : vector<64x32xf32> to vector<64xf32>
    %13 = vector.shape_cast %12 : vector<64xf32> to vector<64x1xf32>
    %cst_9 = arith.constant 3.200000e+01 : f32
    %14 = vector.broadcast %cst_9 : f32 to vector<64x1xf32>
    %15 = arith.divf %13, %14 : vector<64x1xf32>
    %16 = vector.broadcast %15 : vector<64x1xf32> to vector<64x32xf32>
    %17 = arith.subf %10, %16 : vector<64x32xf32>
    %18 = arith.mulf %17, %17 : vector<64x32xf32>
    %cst_10 = arith.constant dense<0.000000e+00> : vector<64xf32>
    %19 = vector.multi_reduction <add>, %18, %cst_10 [1] : vector<64x32xf32> to vector<64xf32>
    %20 = vector.shape_cast %19 : vector<64xf32> to vector<64x1xf32>
    %cst_11 = arith.constant 3.200000e+01 : f32
    %21 = vector.broadcast %cst_11 : f32 to vector<64x1xf32>
    %22 = arith.divf %20, %21 : vector<64x1xf32>
    %23 = vector.broadcast %15 : vector<64x1xf32> to vector<64x32xf32>
    %24 = arith.subf %10, %23 : vector<64x32xf32>
    %cst_12 = arith.constant 9.99999974E-6 : f32
    %25 = vector.broadcast %cst_12 : f32 to vector<64x1xf32>
    %26 = arith.addf %22, %25 : vector<64x1xf32>
    %27 = math.rsqrt %26 : vector<64x1xf32>
    %28 = vector.broadcast %27 : vector<64x1xf32> to vector<64x32xf32>
    %29 = arith.mulf %24, %28 : vector<64x32xf32>
    %30 = vector.broadcast %11 : vector<1x32xf32> to vector<64x32xf32>
    %31 = arith.mulf %29, %30 : vector<64x32xf32>
    %c0_13 = arith.constant 0 : index
    %c0_14 = arith.constant 0 : index
    %32 = vector.load %arg2[%c0_13, %c0_14] : memref<64x32xf32, #tpu.memory_space<vmem>>, vector<64x32xf32>
    %33 = arith.addf %31, %32 : vector<64x32xf32>
    %c0_15 = arith.constant 0 : index
    %c0_16 = arith.constant 0 : index
    %34 = vector.load %arg5[%c0_15, %c0_16] : memref<1x32xf32, #tpu.memory_space<vmem>>, vector<1x32xf32>
    %cst_17 = arith.constant dense<0.000000e+00> : vector<64xf32>
    %35 = vector.multi_reduction <add>, %33, %cst_17 [1] : vector<64x32xf32> to vector<64xf32>
    %36 = vector.shape_cast %35 : vector<64xf32> to vector<64x1xf32>
    %cst_18 = arith.constant 3.200000e+01 : f32
    %37 = vector.broadcast %cst_18 : f32 to vector<64x1xf32>
    %38 = arith.divf %36, %37 : vector<64x1xf32>
    %39 = vector.broadcast %38 : vector<64x1xf32> to vector<64x32xf32>
    %40 = arith.subf %33, %39 : vector<64x32xf32>
    %41 = arith.mulf %40, %40 : vector<64x32xf32>
    %cst_19 = arith.constant dense<0.000000e+00> : vector<64xf32>
    %42 = vector.multi_reduction <add>, %41, %cst_19 [1] : vector<64x32xf32> to vector<64xf32>
    %43 = vector.shape_cast %42 : vector<64xf32> to vector<64x1xf32>
    %cst_20 = arith.constant 3.200000e+01 : f32
    %44 = vector.broadcast %cst_20 : f32 to vector<64x1xf32>
    %45 = arith.divf %43, %44 : vector<64x1xf32>
    %46 = vector.broadcast %38 : vector<64x1xf32> to vector<64x32xf32>
    %47 = arith.subf %33, %46 : vector<64x32xf32>
    %cst_21 = arith.constant 9.99999974E-6 : f32
    %48 = vector.broadcast %cst_21 : f32 to vector<64x1xf32>
    %49 = arith.addf %45, %48 : vector<64x1xf32>
    %50 = math.rsqrt %49 : vector<64x1xf32>
    %51 = vector.broadcast %50 : vector<64x1xf32> to vector<64x32xf32>
    %52 = arith.mulf %47, %51 : vector<64x32xf32>
    %53 = vector.broadcast %34 : vector<1x32xf32> to vector<64x32xf32>
    %54 = arith.mulf %52, %53 : vector<64x32xf32>
    %c0_22 = arith.constant 0 : index
    %c0_23 = arith.constant 0 : index
    %55 = vector.load %arg6[%c0_22, %c0_23] : memref<32x64xf32, #tpu.memory_space<vmem>>, vector<32x64xf32>
    %cst_24 = arith.constant dense<0.000000e+00> : vector<64x64xf32>
    %56 = tpu.matmul %54, %55, %cst_24 {dimension_numbers = #tpu.dot_dimension_numbers<[1], [0], [0], [1], [0, 0, 1, 1], [], []>} : vector<64x32xf32>, vector<32x64xf32>, vector<64x64xf32> -> vector<64x64xf32>
    %cst_25 = arith.constant 5.000000e-01 : f32
    %57 = vector.broadcast %cst_25 : f32 to vector<64x64xf32>
    %58 = arith.mulf %57, %56 : vector<64x64xf32>
    %cst_26 = arith.constant 0.707106769 : f32
    %59 = vector.broadcast %cst_26 : f32 to vector<64x64xf32>
    %60 = arith.mulf %56, %59 : vector<64x64xf32>
    %61 = math.absf %60 : vector<64x64xf32>
    %cst_27 = arith.constant 0.327591091 : f32
    %62 = vector.broadcast %cst_27 : f32 to vector<64x64xf32>
    %63 = arith.mulf %62, %61 : vector<64x64xf32>
    %cst_28 = arith.constant 1.000000e+00 : f32
    %64 = vector.broadcast %cst_28 : f32 to vector<64x64xf32>
    %65 = arith.addf %64, %63 : vector<64x64xf32>
    %cst_29 = arith.constant 1.000000e+00 : f32
    %66 = vector.broadcast %cst_29 : f32 to vector<64x64xf32>
    %67 = arith.divf %66, %65 : vector<64x64xf32>
    %cst_30 = arith.constant 1.06140542 : f32
    %68 = vector.broadcast %cst_30 : f32 to vector<64x64xf32>
    %69 = arith.mulf %68, %67 : vector<64x64xf32>
    %cst_31 = arith.constant -1.45315206 : f32
    %70 = vector.broadcast %cst_31 : f32 to vector<64x64xf32>
    %71 = arith.addf %69, %70 : vector<64x64xf32>
    %72 = arith.mulf %71, %67 : vector<64x64xf32>
    %cst_32 = arith.constant 1.42141378 : f32
    %73 = vector.broadcast %cst_32 : f32 to vector<64x64xf32>
    %74 = arith.addf %72, %73 : vector<64x64xf32>
    %75 = arith.mulf %74, %67 : vector<64x64xf32>
    %cst_33 = arith.constant -0.284496725 : f32
    %76 = vector.broadcast %cst_33 : f32 to vector<64x64xf32>
    %77 = arith.addf %75, %76 : vector<64x64xf32>
    %78 = arith.mulf %77, %67 : vector<64x64xf32>
    %cst_34 = arith.constant 0.254829586 : f32
    %79 = vector.broadcast %cst_34 : f32 to vector<64x64xf32>
    %80 = arith.addf %78, %79 : vector<64x64xf32>
    %81 = arith.mulf %80, %67 : vector<64x64xf32>
    %cst_35 = arith.constant 0.000000e+00 : f32
    %82 = vector.broadcast %cst_35 : f32 to vector<64x64xf32>
    %83 = arith.subf %82, %61 : vector<64x64xf32>
    %84 = arith.mulf %83, %61 : vector<64x64xf32>
    %85 = math.exp %84 : vector<64x64xf32>
    %86 = arith.mulf %81, %85 : vector<64x64xf32>
    %cst_36 = arith.constant 1.000000e+00 : f32
    %87 = vector.broadcast %cst_36 : f32 to vector<64x64xf32>
    %88 = arith.subf %87, %86 : vector<64x64xf32>
    %cst_37 = arith.constant 0.000000e+00 : f32
    %89 = vector.broadcast %cst_37 : f32 to vector<64x64xf32>
    %90 = arith.cmpf oge, %60, %89 : vector<64x64xf32>
    %cst_38 = arith.constant 0.000000e+00 : f32
    %91 = vector.broadcast %cst_38 : f32 to vector<64x64xf32>
    %92 = arith.subf %91, %88 : vector<64x64xf32>
    %93 = arith.select %90, %88, %92 : vector<64x64xi1>, vector<64x64xf32>
    %cst_39 = arith.constant 1.000000e+00 : f32
    %94 = vector.broadcast %cst_39 : f32 to vector<64x64xf32>
    %95 = arith.addf %94, %93 : vector<64x64xf32>
    %96 = arith.mulf %58, %95 : vector<64x64xf32>
    %c0_40 = arith.constant 0 : index
    %c0_41 = arith.constant 0 : index
    %97 = vector.load %arg7[%c0_40, %c0_41] : memref<1x64xf32, #tpu.memory_space<vmem>>, vector<1x64xf32>
    %cst_42 = arith.constant dense<0.000000e+00> : vector<64xf32>
    %98 = vector.multi_reduction <add>, %96, %cst_42 [1] : vector<64x64xf32> to vector<64xf32>
    %99 = vector.shape_cast %98 : vector<64xf32> to vector<64x1xf32>
    %cst_43 = arith.constant 6.400000e+01 : f32
    %100 = vector.broadcast %cst_43 : f32 to vector<64x1xf32>
    %101 = arith.divf %99, %100 : vector<64x1xf32>
    %102 = vector.broadcast %101 : vector<64x1xf32> to vector<64x64xf32>
    %103 = arith.subf %96, %102 : vector<64x64xf32>
    %104 = arith.mulf %103, %103 : vector<64x64xf32>
    %cst_44 = arith.constant dense<0.000000e+00> : vector<64xf32>
    %105 = vector.multi_reduction <add>, %104, %cst_44 [1] : vector<64x64xf32> to vector<64xf32>
    %106 = vector.shape_cast %105 : vector<64xf32> to vector<64x1xf32>
    %cst_45 = arith.constant 6.400000e+01 : f32
    %107 = vector.broadcast %cst_45 : f32 to vector<64x1xf32>
    %108 = arith.divf %106, %107 : vector<64x1xf32>
    %109 = vector.broadcast %101 : vector<64x1xf32> to vector<64x64xf32>
    %110 = arith.subf %96, %109 : vector<64x64xf32>
    %cst_46 = arith.constant 9.99999974E-6 : f32
    %111 = vector.broadcast %cst_46 : f32 to vector<64x1xf32>
    %112 = arith.addf %108, %111 : vector<64x1xf32>
    %113 = math.rsqrt %112 : vector<64x1xf32>
    %114 = vector.broadcast %113 : vector<64x1xf32> to vector<64x64xf32>
    %115 = arith.mulf %110, %114 : vector<64x64xf32>
    %116 = vector.broadcast %97 : vector<1x64xf32> to vector<64x64xf32>
    %117 = arith.mulf %115, %116 : vector<64x64xf32>
    %c0_47 = arith.constant 0 : index
    %c0_48 = arith.constant 0 : index
    %118 = vector.load %arg8[%c0_47, %c0_48] : memref<64x32xf32, #tpu.memory_space<vmem>>, vector<64x32xf32>
    %cst_49 = arith.constant dense<0.000000e+00> : vector<64x32xf32>
    %119 = tpu.matmul %117, %118, %cst_49 {dimension_numbers = #tpu.dot_dimension_numbers<[1], [0], [0], [1], [0, 0, 1, 1], [], []>} : vector<64x64xf32>, vector<64x32xf32>, vector<64x32xf32> -> vector<64x32xf32>
    %120 = arith.addf %119, %33 : vector<64x32xf32>
    %c0_50 = arith.constant 0 : index
    %c0_51 = arith.constant 0 : index
    %121 = vector.load %arg9[%c0_50, %c0_51] : memref<64x32xf32, #tpu.memory_space<vmem>>, vector<64x32xf32>
    tpu.vector_store %arg9[%c0_50, %c0_51], %120 {strides = array<i32>} : memref<64x32xf32, #tpu.memory_space<vmem>>, vector<64x32xf32>,
    return
  }
  func.func @transform_0(%arg0: i32) -> (i32, i32) {
    %c0_i32 = arith.constant 0 : i32
    %c0_i32_0 = arith.constant 0 : i32
    return %arg0, %c0_i32 : i32, i32
  }
  func.func @transform_1(%arg0: i32) -> (i32, i32) {
    %c0_i32 = arith.constant 0 : i32
    %c0_i32_0 = arith.constant 0 : i32
    return %arg0, %c0_i32 : i32, i32
  }
  func.func @transform_2(%arg0: i32) -> (i32, i32) {
    %c0_i32 = arith.constant 0 : i32
    %c0_i32_0 = arith.constant 0 : i32
    %c0_i32_1 = arith.constant 0 : i32
    return %c0_i32, %c0_i32_0 : i32, i32
  }
  func.func @transform_3(%arg0: i32) -> (i32, i32) {
    %c0_i32 = arith.constant 0 : i32
    %c0_i32_0 = arith.constant 0 : i32
    %c0_i32_1 = arith.constant 0 : i32
    return %c0_i32, %c0_i32_0 : i32, i32
  }
  func.func @transform_4(%arg0: i32) -> (i32, i32) {
    %c0_i32 = arith.constant 0 : i32
    %c0_i32_0 = arith.constant 0 : i32
    %c0_i32_1 = arith.constant 0 : i32
    return %c0_i32, %c0_i32_0 : i32, i32
  }
  func.func @transform_5(%arg0: i32) -> (i32, i32) {
    %c0_i32 = arith.constant 0 : i32
    %c0_i32_0 = arith.constant 0 : i32
    %c0_i32_1 = arith.constant 0 : i32
    return %c0_i32, %c0_i32_0 : i32, i32
  }
  func.func @transform_6(%arg0: i32) -> (i32, i32) {
    %c0_i32 = arith.constant 0 : i32
    %c0_i32_0 = arith.constant 0 : i32
    %c0_i32_1 = arith.constant 0 : i32
    return %c0_i32, %c0_i32_0 : i32, i32
  }
  func.func @transform_7(%arg0: i32) -> (i32, i32) {
    %c0_i32 = arith.constant 0 : i32
    %c0_i32_0 = arith.constant 0 : i32
    %c0_i32_1 = arith.constant 0 : i32
    return %c0_i32, %c0_i32_0 : i32, i32
  }
  func.func @transform_8(%arg0: i32) -> (i32, i32) {
    %c0_i32 = arith.constant 0 : i32
    %c0_i32_0 = arith.constant 0 : i32
    return %arg0, %c0_i32 : i32, i32
  }
}

</mosaic_0001>

<bundles_post_ra>
// kernel: linear_attention_transformer_block.4
= control target key start
LH: loop header
LB: loop body
LE: loop exit
PB: predicated region body
PF: predicated region fallthrough
CT: control target
= control target key end

     0   :  { %s917_s12 = smov 0   ;;  %s1177_s0 = inlined_call_operand.vmem [shape: f32[128,32], index: 0, kind: input, shape index: {}]   ;;  %s1178_s1 = inlined_call_operand.vmem [shape: f32[1,32], index: 1, kind: input, shape index: {}]   ;;  %s1179_s2 = inlined_call_operand.vmem [shape: f32[32,768], index: 2, kind: input, shape index: {}]   ;;  %s1180_s3 = inlined_call_operand.vmem [shape: f32[128,768], index: 3, kind: output, shape index: {}]  }
   0x1 LB: > { %s798_s13 = sadd.s32 4294967295, %s894_s12   ;;  %p802_p0 = scmp.ge.s32.totalorder %s894_s12, 1  ;;  %s894_s12 = sphi %s917_s12, %s13_s12  }
   0x2   : > { %p138_p1 = scmp.lt.s32.totalorder %s894_s12, 3 }
   0x4   : > { %p139_p2 = pnand %p802_p0, %p138_p1 }
   0x5   : > { %s803_s14 = sshll.u32 (!%p139_p2), %s798_s13, 3  ;;  %vm185_vm0 = vcmask (!%p139_p2), 261120   ;;  %v306_v56 = vld [vmem:[%s1179_s2 + $0x8] sm:$0xff] (!%p139_p2)  ;;  %v312_v57 = vld [vmem:[%s1179_s2 + $0x38] sm:$0xff] (!%p139_p2)  ;;  %v305_v59 = vld [vmem:[%s1179_s2] sm:$0xff] (!%p139_p2) }
   0x6   : > { %142 = sbr.rel (%p139_p2) target bundleno = 590 (0x24e), region = 32  ;;  %p164_p3 = scmp.lt.s32.totalorder (!%p139_p2), %s803_s14, 15  ;;  %v834_v58 = vpack.c.bf16 (!%p139_p2), %v312_v57, %v306_v56  ;;  %v311_v60 = vld [vmem:[%s1179_s2 + $0x30] sm:$0xff] (!%p139_p2)  ;;  %v318_v62 = vld [vmem:[%s1179_s2 + $0x68] sm:$0xff] (!%p139_p2)  ;;  %v324_v63 = vld [vmem:[%s1179_s2 + $0x98] sm:$0xff] (!%p139_p2) }
   0x7   : > { %v836_v61 = vpack.c.bf16 (!%p139_p2), %v311_v60, %v305_v59  ;;  %v321_v59 = vld [vmem:[%s1179_s2 + $0x80] sm:$0xff] (!%p139_p2)  ;;  %v327_v60 = vld [vmem:[%s1179_s2 + $0xb0] sm:$0xff] (!%p139_p2) }
   0x8   : > { %835 = vmatprep.subr.bf16.mxu0 (!%p139_p2), %v834_v58  ;;  %858 = vmatprep.subr.bf16.mxu1 (!%p139_p2), %v834_v58  ;;  %v326_v58 = vld [vmem:[%s1179_s2 + $0xa8] sm:$0xff] (!%p139_p2) }
   0x9   : > { %837 = vmatpush1.bf16.msra.mxu0 (!%p139_p2), %v836_v61  ;;  %860 = vmatpush1.bf16.msra.mxu1 (!%p139_p2), %v836_v61 }
   0xd   : > { %s1182_s14 = smov (!%p164_p3, %s803_s14), 15 }
   0xe   : > { %s804_s15 = sshll.u32 %s1182_s14, 3  ;;  %s862_s19 = smul.u32 48, %s1182_s14 }
   0xf   : > { %s167_s18 = scalar_lea.vmem %s1177_s0, %s804_s15 }
  0x10   : > { %v176_v0 = vld [vmem:[%s167_s18] sm:$0xff]  ;;  %v177_v1 = vld [vmem:[%s167_s18 + $0x8] sm:$0xff]  ;;  %v178_v8 = vld [vmem:[%s167_s18 + $0x10] sm:$0xff]  ;;  %s1124_s22 = scalar_lea.vmem %s1180_s3, %s862_s19 }
  0x11   : > { %v180_v2 = vld [vmem:[%s167_s18 + $0x20] sm:$0xff]  ;;  %v186_v3 = vsel %vm185_vm0, %v176_v0, 0.0  ;;  %v189_v4 = vsel %vm185_vm0, %v177_v1, 0.0  ;;  %v181_v5 = vld [vmem:[%s167_s18 + $0x28] sm:$0xff]  ;;  %v182_v9 = vld [vmem:[%s167_s18 + $0x30] sm:$0xff]  ;;  %v192_v10 = vsel %vm185_vm0, %v178_v8, 0.0 }
  0x12   : > { %187 = vadd.xlane.f32.xlu0 %v186_v3  ;;  %190 = vadd.xlane.f32.xlu1 %v189_v4  ;;  %v198_v6 = vsel %vm185_vm0, %v180_v2, 0.0  ;;  %v201_v7 = vsel %vm185_vm0, %v181_v5, 0.0  ;;  %v204_v11 = vsel %vm185_vm0, %v182_v9, 0.0  ;;  %v179_v12 = vld [vmem:[%s167_s18 + $0x18] sm:$0xff]  ;;  %v896_v4 = vmov 0.0  }
  0x13   : > { %v183_v13 = vld [vmem:[%s167_s18 + $0x38] sm:$0xff]  ;;  %v195_v14 = vsel %vm185_vm0, %v179_v12, 0.0  ;;  %417 = vmatprep.mubr.f32.mxu0 %v896_v4  ;;  %441 = vmatprep.mubr.f32.mxu1 %v896_v4 }
  0x14   : > { %v207_v15 = vsel %vm185_vm0, %v183_v13, 0.0 }
  0x16   : > { %199 = vadd.xlane.f32.xlu0 %v198_v6  ;;  %202 = vadd.xlane.f32.xlu1 %v201_v7  ;;  %v314_v6 = vld [vmem:[%s1179_s2 + $0x48] sm:$0xff] }
  0x17   : > { %v310_v7 = vld [vmem:[%s1179_s2 + $0x28] sm:$0xff] }
  0x1a   : > { %193 = vadd.xlane.f32.xlu0 %v192_v10  ;;  %205 = vadd.xlane.f32.xlu1 %v204_v11 }
  0x1e   : > { %196 = vadd.xlane.f32.xlu0 %v195_v14  ;;  %208 = vadd.xlane.f32.xlu1 %v207_v15 }
  0x9f   : > { %v188_v16 = vpop.xlane.xlu0 %187  ;;  %v191_v17 = vpop.xlane.xlu1 %190 }
  0xa0   : > { %v211_v18 = vmul.f32 0.03125, %v188_v16  ;;  %v212_v19 = vmul.f32 0.03125, %v191_v17 }
  0xa2   : > { %v939_v20 = vsub.f32 %v176_v0, %v211_v18  ;;  %v941_v21 = vsub.f32 %v177_v1, %v212_v19  ;;  %v838_v0 = vpack.c.bf16 %v324_v63, %v318_v62  ;;  %v317_v1 = vld [vmem:[%s1179_s2 + $0x60] sm:$0xff] }
  0xa3   : > { %v200_v22 = vpop.xlane.xlu0 %199  ;;  %v203_v23 = vpop.xlane.xlu1 %202 }
  0xa4   : > { %v215_v24 = vmul.f32 0.03125, %v200_v22  ;;  %v216_v25 = vmul.f32 0.03125, %v203_v23  ;;  %v227_v26 = vmul.f32 %v939_v20, %v939_v20  ;;  %v228_v27 = vmul.f32 %v941_v21, %v941_v21  ;;  %839 = vmatprep.subr.bf16.mxu0 %v838_v0  ;;  %859 = vmatprep.subr.bf16.mxu1 %v838_v0 }
  0xa6   : > { %v947_v28 = vsub.f32 %v180_v2, %v215_v24  ;;  %v949_v29 = vsub.f32 %v181_v5, %v216_v25  ;;  %v235_v30 = vsel %vm185_vm0, %v227_v26, 0.0  ;;  %v238_v33 = vsel %vm185_vm0, %v228_v27, 0.0  ;;  %v323_v2 = vld [vmem:[%s1179_s2 + $0x90] sm:$0xff]  ;;  %v308_v5 = vld [vmem:[%s1179_s2 + $0x18] sm:$0xff] }
  0xa7   : > { %236 = vadd.xlane.f32.xlu0 %v235_v30  ;;  %v194_v31 = vpop.xlane.xlu0 %193  ;;  %v206_v32 = vpop.xlane.xlu1 %205  ;;  %v840_v3 = vpack.c.bf16 %v323_v2, %v317_v1  ;;  %v319_v2 = vld [vmem:[%s1179_s2 + $0x70] sm:$0xff] }
  0xa8   : > { %v213_v34 = vmul.f32 0.03125, %v194_v31  ;;  %v217_v35 = vmul.f32 0.03125, %v206_v32  ;;  %v231_v36 = vmul.f32 %v947_v28, %v947_v28  ;;  %v232_v37 = vmul.f32 %v949_v29, %v949_v29 }
  0xa9   : > { %841 = vmatpush1.bf16.msra.mxu0 %v840_v3  ;;  %861 = vmatpush1.bf16.msra.mxu1 %v840_v3  ;;  %v325_v3 = vld [vmem:[%s1179_s2 + $0xa0] sm:$0xff] }
  0xaa   : > { %v957_v38 = vsub.f32 %v178_v8, %v213_v34  ;;  %v959_v39 = vsub.f32 %v182_v9, %v217_v35  ;;  %v247_v40 = vsel %vm185_vm0, %v231_v36, 0.0  ;;  %v250_v43 = vsel %vm185_vm0, %v232_v37, 0.0  ;;  %v316_v9 = vld [vmem:[%s1179_s2 + $0x58] sm:$0xff]  ;;  %v1020_v34 = vld [vmem:[%s1178_s1] ss:$0 sm:$0xff]  ;;  %v315_v36 = vld [vmem:[%s1179_s2 + $0x50] sm:$0xff] }
  0xab   : > { %239 = vadd.xlane.f32.xlu0 %v238_v33  ;;  %248 = vadd.xlane.f32.xlu1 %v247_v40  ;;  %v197_v41 = vpop.xlane.xlu0 %196  ;;  %v209_v42 = vpop.xlane.xlu1 %208  ;;  %v842_v8 = vpack.c.bf16 %v314_v6, %v308_v5  ;;  %v850_v10 = vpack.c.bf16 %v316_v9, %v310_v7  ;;  %v309_v35 = vld [vmem:[%s1179_s2 + $0x20] sm:$0xff]  ;;  %v856_v5 = vpack.c.bf16 %v327_v60, %v321_v59 }
  0xac   : > { %v214_v44 = vmul.f32 0.03125, %v197_v41  ;;  %v218_v45 = vmul.f32 0.03125, %v209_v42  ;;  %v229_v46 = vmul.f32 %v957_v38, %v957_v38  ;;  %v233_v47 = vmul.f32 %v959_v39, %v959_v39  ;;  %v322_v42 = vld [vmem:[%s1179_s2 + $0x88] sm:$0xff] }
  0xad   : > { %843 = vmatprep.subr.bf16.mxu1 %v842_v8  ;;  %851 = vmatprep.subr.bf16.mxu0 %v850_v10  ;;  %v848_v9 = vpack.c.bf16 %v325_v3, %v319_v2 }
  0xae   : > { %v967_v48 = vsub.f32 %v179_v12, %v214_v44  ;;  %v969_v49 = vsub.f32 %v183_v13, %v218_v45  ;;  %v241_v50 = vsel %vm185_vm0, %v229_v46, 0.0  ;;  %v253_v51 = vsel %vm185_vm0, %v233_v47, 0.0 }
  0xaf   : > { %251 = vadd.xlane.f32.xlu1 %v250_v43  ;;  %242 = vadd.xlane.f32.xlu0 %v241_v50  ;;  %v328_v43 = vld [vmem:[%s1179_s2 + $0xb8] sm:$0xff]  ;;  %v852_v47 = vpack.c.bf16 %v315_v36, %v309_v35 }
  0xb0   : > { %v230_v52 = vmul.f32 %v967_v48, %v967_v48  ;;  %v234_v53 = vmul.f32 %v969_v49, %v969_v49 }
  0xb2   : > { %v244_v54 = vsel %vm185_vm0, %v230_v52, 0.0  ;;  %v256_v55 = vsel %vm185_vm0, %v234_v53, 0.0  ;;  %v313_v52 = vld [vmem:[%s1179_s2 + $0x40] sm:$0xff]  ;;  %v854_v53 = vpack.c.bf16 %v328_v43, %v322_v42 }
  0xb3   : > { %254 = vadd.xlane.f32.xlu1 %v253_v51  ;;  %245 = vadd.xlane.f32.xlu0 %v244_v54  ;;  %v307_v51 = vld [vmem:[%s1179_s2 + $0x10] sm:$0xff] }
  0xb4   : > { %v844_v62 = vpack.c.bf16 %v313_v52, %v307_v51 }
  0xb7   : > { %257 = vadd.xlane.f32.xlu1 %v256_v55 }
 0x134   : > { %v237_v11 = vpop.xlane.xlu0 %236 }
 0x135   : > { %v259_v12 = vmul.f32 0.03125, %v237_v11 }
 0x137   : > { %v267_v13 = vadd.f32 1e-05, %v259_v12 }
 0x138   : > { %v249_v14 = vpop.xlane.xlu1 %248  ;;  %v240_v15 = vpop.xlane.xlu0 %239 }
 0x139   : > { %872 = vrsqrt.f32 %v267_v13  ;;  %v263_v16 = vmul.f32 0.03125, %v249_v14  ;;  %v260_v17 = vmul.f32 0.03125, %v240_v15 }
 0x13b   : > { %v271_v18 = vadd.f32 1e-05, %v263_v16  ;;  %v268_v19 = vadd.f32 1e-05, %v260_v17 }
 0x13c   : > { %v252_v22 = vpop.xlane.xlu1 %251  ;;  %v243_v23 = vpop.xlane.xlu0 %242 }
 0x13d   : > { %874 = vrsqrt.f32 %v271_v18  ;;  %v264_v24 = vmul.f32 0.03125, %v252_v22  ;;  %v261_v25 = vmul.f32 0.03125, %v243_v23 }
 0x13e   : > { %876 = vrsqrt.f32 %v268_v19 }
 0x13f   : > { %v272_v26 = vadd.f32 1e-05, %v264_v24  ;;  %v269_v27 = vadd.f32 1e-05, %v261_v25 }
 0x140   : > { %v255_v30 = vpop.xlane.xlu1 %254  ;;  %v246_v31 = vpop.xlane.xlu0 %245 }
 0x141   : > { %878 = vrsqrt.f32 %v272_v26  ;;  %v265_v32 = vmul.f32 0.03125, %v255_v30  ;;  %v262_v33 = vmul.f32 0.03125, %v246_v31 }
 0x142   : > { %880 = vrsqrt.f32 %v269_v27 }
 0x143   : > { %v873_v37 = vpop.eup %872  ;;  %v273_v40 = vadd.f32 1e-05, %v265_v32  ;;  %v270_v41 = vadd.f32 1e-05, %v262_v33 }
 0x144   : > { %v258_v44 = vpop.xlane.xlu1 %257  ;;  %v283_v45 = vmul.f32 %v873_v37, %v939_v20  ;;  %v320_v20 = vld [vmem:[%s1179_s2 + $0x78] sm:$0xff] }
 0x145   : > { %882 = vrsqrt.f32 %v273_v40  ;;  %v266_v46 = vmul.f32 0.03125, %v258_v44  ;;  %v846_v1 = vpack.c.bf16 %v326_v58, %v320_v20 }
 0x146   : > { %884 = vrsqrt.f32 %v270_v41  ;;  %v297_v50 = vmul.f32 %v1020_v34, %v283_v45 }
 0x147   : > { %v875_v54 = vpop.eup %874  ;;  %v274_v55 = vadd.f32 1e-05, %v266_v46 }
 0x148   : > { %v877_v56 = vpop.eup %876  ;;  %808 = vmatmul.mubr.msk.f32.vlgmr.msra.gmra.mrb[0].mxu0 %vm185_vm0, %v297_v50  ;;  %v287_v57 = vmul.f32 %v875_v54, %v947_v28 }
 0x149   : > { %886 = vrsqrt.f32 %v274_v55  ;;  %423 = vmatprep.mubr.f32.mxu0 %v896_v4  ;;  %v284_v61 = vmul.f32 %v877_v56, %v941_v21  ;;  %853 = vmatpush1.bf16.msra.mxu0 %v852_v47 }
 0x14a   : > { %v301_v28 = vmul.f32 %v1020_v34, %v287_v57  ;;  %855 = vmatprep.subr.bf16.mxu0 %v854_v53 }
 0x14b   : > { %v879_v63 = vpop.eup %878  ;;  %v298_v0 = vmul.f32 %v1020_v34, %v284_v61 }
 0x14c   : > { %v881_v6 = vpop.eup %880  ;;  %812 = vmatmul.mubr.msk.f32.vlgmr.msra.gmra.mrb[0].mxu1 %vm185_vm0, %v301_v28  ;;  %v288_v21 = vmul.f32 %v879_v63, %v949_v29 }
 0x14d   : > { %809 = vmatmul.mubr.msk.f32.gmra.mrb[2].mxu0 %vm185_vm0, %v298_v0  ;;  %845 = vmatpush1.bf16.msra.mxu1 %v844_v62  ;;  %v285_v7 = vmul.f32 %v881_v6, %v957_v38 }
 0x14e   : > { %429 = vmatprep.mubr.f32.mxu0 %v896_v4  ;;  %447 = vmatprep.mubr.f32.mxu1 %v896_v4  ;;  %v302_v8 = vmul.f32 %v1020_v34, %v288_v21 }
 0x14f   : > { %v883_v10 = vpop.eup %882  ;;  %v299_v11 = vmul.f32 %v1020_v34, %v285_v7  ;;  %847 = vmatprep.subr.bf16.mxu1 %v846_v1  ;;  %857 = vmatpush1.bf16.msra.mxu0 %v856_v5 }
 0x150   : > { %v885_v12 = vpop.eup %884  ;;  %813 = vmatmul.mubr.msk.f32.gmra.mrb[2].mxu1 %vm185_vm0, %v302_v8  ;;  %v289_v29 = vmul.f32 %v883_v10, %v959_v39 }
 0x151   : > { %810 = vmatmul.mubr.msk.f32.gmra.mrb[4].mxu0 %vm185_vm0, %v299_v11  ;;  %453 = vmatprep.mubr.f32.mxu1 %v896_v4  ;;  %v286_v38 = vmul.f32 %v885_v12, %v967_v48 }
 0x152   : > { %435 = vmatprep.mubr.f32.mxu0 %v896_v4  ;;  %v303_v13 = vmul.f32 %v1020_v34, %v289_v29  ;;  %849 = vmatpush1.bf16.msra.mxu1 %v848_v9 }
 0x153   : > { %v887_v14 = vpop.eup %886  ;;  %v300_v15 = vmul.f32 %v1020_v34, %v286_v38 }
 0x154   : > { %814 = vmatmul.mubr.msk.f32.gmra.mrb[4].mxu1 %vm185_vm0, %v303_v13  ;;  %v290_v16 = vmul.f32 %v887_v14, %v969_v49 }
 0x155   : > { %811 = vmatmul.mubr.msk.f32.gmra.mrb[6].mxu0 %vm185_vm0, %v300_v15  ;;  %459 = vmatprep.mubr.f32.mxu1 %v896_v4 }
 0x156   : > { %643 = vmatprep.mubr.f32.mxu0 %v896_v4  ;;  %v304_v39 = vmul.f32 %v1020_v34, %v290_v16 }
 0x158   : > { %815 = vmatmul.mubr.msk.f32.gmra.mrb[6].mxu1 %vm185_vm0, %v304_v39 }
 0x159   : > { %824 = vmatmul.mubr.msk.f32.vlgmr.msra.gmra.mrb[8].mxu0 %vm185_vm0, %v297_v50  ;;  %530 = vmatprep.mubr.f32.mxu1 %v896_v4 }
 0x15a   : > { %649 = vmatprep.mubr.f32.mxu0 %v896_v4 }
 0x15c   : > { %816 = vmatmul.mubr.msk.f32.vlgmr.msra.gmra.mrb[8].mxu1 %vm185_vm0, %v297_v50 }
 0x15d   : > { %825 = vmatmul.mubr.msk.f32.gmra.mrb[10].mxu0 %vm185_vm0, %v298_v0  ;;  %536 = vmatprep.mubr.f32.mxu1 %v896_v4 }
 0x15e   : > { %655 = vmatprep.mubr.f32.mxu0 %v896_v4 }
 0x160   : > { %817 = vmatmul.mubr.msk.f32.gmra.mrb[10].mxu1 %vm185_vm0, %v298_v0 }
 0x161   : > { %826 = vmatmul.mubr.msk.f32.gmra.mrb[12].mxu0 %vm185_vm0, %v299_v11  ;;  %542 = vmatprep.mubr.f32.mxu1 %v896_v4 }
 0x162   : > { %661 = vmatprep.mubr.f32.mxu0 %v896_v4 }
 0x164   : > { %818 = vmatmul.mubr.msk.f32.gmra.mrb[12].mxu1 %vm185_vm0, %v299_v11 }
 0x165   : > { %827 = vmatmul.mubr.msk.f32.gmra.mrb[14].mxu0 %vm185_vm0, %v300_v15  ;;  %548 = vmatprep.mubr.f32.mxu1 %v896_v4 }
 0x166   : > { %667 = vmatprep.mubr.f32.mxu0 %v896_v4 }
 0x168   : > { %819 = vmatmul.mubr.msk.f32.gmra.mrb[14].mxu1 %vm185_vm0, %v300_v15 }
 0x169   : > { %828 = vmatmul.mubr.msk.f32.gmra.mrb[16].mxu0 %vm185_vm0, %v301_v28  ;;  %554 = vmatprep.mubr.f32.mxu1 %v896_v4 }
 0x16a   : > { %673 = vmatprep.mubr.f32.mxu0 %v896_v4 }
 0x16c   : > { %820 = vmatmul.mubr.msk.f32.gmra.mrb[16].mxu1 %vm185_vm0, %v301_v28 }
 0x16d   : > { %829 = vmatmul.mubr.msk.f32.gmra.mrb[18].mxu0 %vm185_vm0, %v302_v8  ;;  %560 = vmatprep.mubr.f32.mxu1 %v896_v4 }
 0x16e   : > { %679 = vmatprep.mubr.f32.mxu0 %v896_v4 }
 0x170   : > { %821 = vmatmul.mubr.msk.f32.gmra.mrb[18].mxu1 %vm185_vm0, %v302_v8 }
 0x171   : > { %830 = vmatmul.mubr.msk.f32.gmra.mrb[20].mxu0 %vm185_vm0, %v303_v13  ;;  %566 = vmatprep.mubr.f32.mxu1 %v896_v4 }
 0x172   : > { %685 = vmatprep.mubr.f32.mxu0 %v896_v4 }
 0x174   : > { %822 = vmatmul.mubr.msk.f32.gmra.mrb[20].mxu1 %vm185_vm0, %v303_v13 }
 0x175   : > { %831 = vmatmul.mubr.msk.f32.gmra.mrb[22].mxu0 %vm185_vm0, %v304_v39  ;;  %572 = vmatprep.mubr.f32.mxu1 %v896_v4 }
 0x178   : > { %823 = vmatmul.mubr.msk.f32.gmra.mrb[22].mxu1 %vm185_vm0, %v304_v39 }
 0x21b   : > { %v419_v48 = vpop.f32.mrb[0].mxu0 }
 0x21c   : > { %692 = vst [vmem:[%s1124_s22] sm:$0xff] %v419_v48  ;;  %v421_v49 = vpop.f32.mrb[1].mxu0 }
 0x21d   : > { %693 = vst [vmem:[%s1124_s22 + $0x8] sm:$0xff] %v421_v49 }
 0x21f   : > { %v443_v4 = vpop.f32.mrb[0].mxu1 }
 0x220   : > { %v425_v17 = vpop.f32.mrb[2].mxu0  ;;  %716 = vst [vmem:[%s1124_s22 + $0xc0] sm:$0xff] %v443_v4  ;;  %v445_v18 = vpop.f32.mrb[1].mxu1 }
 0x221   : > { %698 = vst [vmem:[%s1124_s22 + $0x30] sm:$0xff] %v425_v17  ;;  %v427_v19 = vpop.f32.mrb[3].mxu0  ;;  %717 = vst [vmem:[%s1124_s22 + $0xc8] sm:$0xff] %v445_v18 }
 0x222   : > { %699 = vst [vmem:[%s1124_s22 + $0x38] sm:$0xff] %v427_v19 }
 0x223   : > { %v449_v22 = vpop.f32.mrb[2].mxu1 }
 0x224   : > { %v431_v23 = vpop.f32.mrb[4].mxu0  ;;  %722 = vst [vmem:[%s1124_s22 + $0xf0] sm:$0xff] %v449_v22  ;;  %v451_v24 = vpop.f32.mrb[3].mxu1 }
 0x225   : > { %704 = vst [vmem:[%s1124_s22 + $0x60] sm:$0xff] %v431_v23  ;;  %v433_v25 = vpop.f32.mrb[5].mxu0  ;;  %723 = vst [vmem:[%s1124_s22 + $0xf8] sm:$0xff] %v451_v24 }
 0x226   : > { %705 = vst [vmem:[%s1124_s22 + $0x68] sm:$0xff] %v433_v25 }
 0x227   : > { %v455_v26 = vpop.f32.mrb[4].mxu1 }
 0x228   : > { %v437_v27 = vpop.f32.mrb[6].mxu0  ;;  %728 = vst [vmem:[%s1124_s22 + $0x120] sm:$0xff] %v455_v26  ;;  %v457_v30 = vpop.f32.mrb[5].mxu1 }
 0x229   : > { %710 = vst [vmem:[%s1124_s22 + $0x90] sm:$0xff] %v437_v27  ;;  %v439_v31 = vpop.f32.mrb[7].mxu0  ;;  %729 = vst [vmem:[%s1124_s22 + $0x128] sm:$0xff] %v457_v30 }
 0x22a   : > { %711 = vst [vmem:[%s1124_s22 + $0x98] sm:$0xff] %v439_v31 }
 0x22b   : > { %v461_v32 = vpop.f32.mrb[6].mxu1 }
 0x22c   : > { %734 = vst [vmem:[%s1124_s22 + $0x150] sm:$0xff] %v461_v32  ;;  %v645_v33 = vpop.f32.mrb[8].mxu0  ;;  %v463_v34 = vpop.f32.mrb[7].mxu1 }
 0x22d   : > { %696 = vst [vmem:[%s1124_s22 + $0x20] sm:$0xff] %v645_v33  ;;  %735 = vst [vmem:[%s1124_s22 + $0x158] sm:$0xff] %v463_v34  ;;  %v647_v35 = vpop.f32.mrb[9].mxu0 }
 0x22e   : > { %697 = vst [vmem:[%s1124_s22 + $0x28] sm:$0xff] %v647_v35 }
 0x22f   : > { %v532_v36 = vpop.f32.mrb[8].mxu1 }
 0x230   : > { %694 = vst [vmem:[%s1124_s22 + $0x10] sm:$0xff] %v532_v36  ;;  %v651_v37 = vpop.f32.mrb[10].mxu0  ;;  %v534_v40 = vpop.f32.mrb[9].mxu1 }
 0x231   : > { %702 = vst [vmem:[%s1124_s22 + $0x50] sm:$0xff] %v651_v37  ;;  %695 = vst [vmem:[%s1124_s22 + $0x18] sm:$0xff] %v534_v40  ;;  %v653_v41 = vpop.f32.mrb[11].mxu0 }
 0x232   : > { %703 = vst [vmem:[%s1124_s22 + $0x58] sm:$0xff] %v653_v41 }
 0x233   : > { %v538_v42 = vpop.f32.mrb[10].mxu1 }
 0x234   : > { %700 = vst [vmem:[%s1124_s22 + $0x40] sm:$0xff] %v538_v42  ;;  %v657_v43 = vpop.f32.mrb[12].mxu0  ;;  %v540_v44 = vpop.f32.mrb[11].mxu1 }
 0x235   : > { %708 = vst [vmem:[%s1124_s22 + $0x80] sm:$0xff] %v657_v43  ;;  %701 = vst [vmem:[%s1124_s22 + $0x48] sm:$0xff] %v540_v44  ;;  %v659_v45 = vpop.f32.mrb[13].mxu0 }
 0x236   : > { %709 = vst [vmem:[%s1124_s22 + $0x88] sm:$0xff] %v659_v45 }
 0x237   : > { %v544_v46 = vpop.f32.mrb[12].mxu1 }
 0x238   : > { %706 = vst [vmem:[%s1124_s22 + $0x70] sm:$0xff] %v544_v46  ;;  %v663_v47 = vpop.f32.mrb[14].mxu0  ;;  %v546_v50 = vpop.f32.mrb[13].mxu1 }
 0x239   : > { %714 = vst [vmem:[%s1124_s22 + $0xb0] sm:$0xff] %v663_v47  ;;  %707 = vst [vmem:[%s1124_s22 + $0x78] sm:$0xff] %v546_v50  ;;  %v665_v51 = vpop.f32.mrb[15].mxu0 }
 0x23a   : > { %715 = vst [vmem:[%s1124_s22 + $0xb8] sm:$0xff] %v665_v51 }
 0x23b   : > { %v550_v52 = vpop.f32.mrb[14].mxu1 }
 0x23c   : > { %712 = vst [vmem:[%s1124_s22 + $0xa0] sm:$0xff] %v550_v52  ;;  %v669_v53 = vpop.f32.mrb[16].mxu0  ;;  %v552_v54 = vpop.f32.mrb[15].mxu1 }
 0x23d   : > { %720 = vst [vmem:[%s1124_s22 + $0xe0] sm:$0xff] %v669_v53  ;;  %713 = vst [vmem:[%s1124_s22 + $0xa8] sm:$0xff] %v552_v54  ;;  %v671_v55 = vpop.f32.mrb[17].mxu0 }
 0x23e   : > { %721 = vst [vmem:[%s1124_s22 + $0xe8] sm:$0xff] %v671_v55 }
 0x23f   : > { %v556_v20 = vpop.f32.mrb[16].mxu1 }
 0x240   : > { %718 = vst [vmem:[%s1124_s22 + $0xd0] sm:$0xff] %v556_v20  ;;  %v675_v56 = vpop.f32.mrb[18].mxu0  ;;  %v558_v57 = vpop.f32.mrb[17].mxu1 }
 0x241   : > { %726 = vst [vmem:[%s1124_s22 + $0x110] sm:$0xff] %v675_v56  ;;  %719 = vst [vmem:[%s1124_s22 + $0xd8] sm:$0xff] %v558_v57  ;;  %v677_v58 = vpop.f32.mrb[19].mxu0 }
 0x242   : > { %727 = vst [vmem:[%s1124_s22 + $0x118] sm:$0xff] %v677_v58 }
 0x243   : > { %v562_v59 = vpop.f32.mrb[18].mxu1 }
 0x244   : > { %724 = vst [vmem:[%s1124_s22 + $0x100] sm:$0xff] %v562_v59  ;;  %v681_v60 = vpop.f32.mrb[20].mxu0  ;;  %v564_v61 = vpop.f32.mrb[19].mxu1 }
 0x245   : > { %732 = vst [vmem:[%s1124_s22 + $0x140] sm:$0xff] %v681_v60  ;;  %725 = vst [vmem:[%s1124_s22 + $0x108] sm:$0xff] %v564_v61  ;;  %v683_v62 = vpop.f32.mrb[21].mxu0 }
 0x246   : > { %733 = vst [vmem:[%s1124_s22 + $0x148] sm:$0xff] %v683_v62 }
 0x247   : > { %v568_v28 = vpop.f32.mrb[20].mxu1 }
 0x248   : > { %730 = vst [vmem:[%s1124_s22 + $0x130] sm:$0xff] %v568_v28  ;;  %v687_v63 = vpop.f32.mrb[22].mxu0  ;;  %v570_v0 = vpop.f32.mrb[21].mxu1 }
 0x249   : > { %738 = vst [vmem:[%s1124_s22 + $0x170] sm:$0xff] %v687_v63  ;;  %731 = vst [vmem:[%s1124_s22 + $0x138] sm:$0xff] %v570_v0  ;;  %v689_v1 = vpop.f32.mrb[23].mxu0 }
 0x24a   : > { %739 = vst [vmem:[%s1124_s22 + $0x178] sm:$0xff] %v689_v1 }
 0x24b   : > { %v574_v2 = vpop.f32.mrb[22].mxu1 }
 0x24c   : > { %736 = vst [vmem:[%s1124_s22 + $0x160] sm:$0xff] %v574_v2  ;;  %v576_v3 = vpop.f32.mrb[23].mxu1 }
 0x24d   : > { %737 = vst [vmem:[%s1124_s22 + $0x168] sm:$0xff] %v576_v3 }
 0x24e PF: > { %s13_s12 = sadd.s32 1, %s894_s12  }
 0x24f   : > { %p10_p4 = scmp.ge.s32.totalorder %s13_s12, 4  }
 0x251   :  { %12 = sbr.rel (!%p10_p4) target bundleno = 1 (0x1), region = 62 }

// kernel: linear_attention_transformer_block.7
= control target key start
LH: loop header
LB: loop body
LE: loop exit
PB: predicated region body
PF: predicated region fallthrough
CT: control target
= control target key end

     0   :  { %13 = vsyncpa [#allocation3], 0  ;;  %s2804_s0 = inlined_call_operand.vmem [shape: f32[128,256], index: 0, kind: input, shape index: {}]   ;;  %s2805_s1 = inlined_call_operand.vmem [shape: f32[128,32], index: 1, kind: input, shape index: {}]   ;;  %s2806_s2 = inlined_call_operand.vmem [shape: f32[256,32], index: 2, kind: input, shape index: {}]   ;;  %s2807_s3 = inlined_call_operand.vmem [shape: f32[1,32], index: 3, kind: input, shape index: {}]   ;;  %s2808_s4 = inlined_call_operand.vmem [shape: f32[1,32], index: 4, kind: input, shape index: {}]   ;;  %s2809_s5 = inlined_call_operand.vmem [shape: f32[32,64], index: 5, kind: input, shape index: {}]   ;;  %s2810_s6 = inlined_call_operand.vmem [shape: f32[1,64], index: 6, kind: input, shape index: {}]   ;;  %s2811_s7 = inlined_call_operand.vmem [shape: f32[64,32], index: 7, kind: input, shape index: {}]   ;;  %s2812_s8 = inlined_call_operand.hbm [shape: f32[128,32], index: 8, kind: output, shape index: {}]  }
   0x1   :  { %15 = vsyncpa [#allocation3 + $0x1], 0  ;;  %s2077_s27 = smov 0   ;;  %s2079_s28 = smov 0  }
   0x2   :  { %s2081_s29 = smov 0   ;;  %s2083_s30 = smov 0  }
   0x3 LB: > { %s2098_s9 = sadd.s32 4294967295, %s2027_s30   ;;  %s1556_s10 = sadd.s32 4294967294, %s2027_s30   ;;  %s2027_s30 = sphi %s2083_s30, %s2818_s30   ;;  %s2023_s29 = sphi %s2081_s29, %s2817_s29   ;;  %s2019_s28 = sphi %s2079_s28, %s2816_s28   ;;  %s2015_s27 = sphi %s2077_s27, %s2815_s27  }
   0x4   : > { %s2102_s11 = sadd.s32 1, %s2027_s30   ;;  %s206_s12 = sadd.s32 1, %s2023_s29 }
   0x5   : > { %s203_s13 = ssub.s32 %s2027_s30, %s2102_s11  ;;  %p216_p0 = scmp.ne.s32.totalorder %s2023_s29, %s2019_s28 }
   0x6   : > { %p204_p1 = scmp.eq.s32.totalorder %s203_s13, 0  ;;  %p217_p2 = scmp.eq.s32.totalorder %s2098_s9, 1 }
   0x7   : > { %p222_p3 = scmp.ne.s32.totalorder %s2019_s28, %s2015_s27  ;;  %p223_p4 = scmp.eq.s32.totalorder %s1556_s10, 1 }
   0x8   : > { %s2113_s14 = scalar_select %p204_p1, %s2023_s29, %s206_s12  }
   0x9   : > { %p2115_p5 = por %p217_p2, %p216_p0  ;;  %p2119_p6 = por %p223_p4, %p222_p3 }
   0xa   : > { %p1559_p7 = scmp.ge.s32.totalorder %s2027_s30, 1  ;;  %p278_p8 = scmp.lt.s32.totalorder %s2027_s30, 3 }
   0xc   : > { %p279_p9 = pnand %p1559_p7, %p278_p8 }
   0xd   : > { %v476_v0 = vld [vmem:[%s2806_s2 + $0x80] sm:$0xff] (!%p279_p9)  ;;  %v477_v1 = vld [vmem:[%s2806_s2 + $0x88] sm:$0xff] (!%p279_p9)  ;;  %s1561_s23 = sshll.u32 (!%p279_p9), %s2098_s9, 3  ;;  %v478_v5 = vld [vmem:[%s2806_s2 + $0x90] sm:$0xff] (!%p279_p9)  ;;  %vm598_vm0 = vcmask (!%p279_p9), 261120   ;;  %vm1203_vm3 = vcmask (!%p279_p9), 523264  }
   0xe   : > { %282 = sbr.rel (%p279_p9) target bundleno = 1728 (0x6c0), region = 52  ;;  %v460_v2 = vld [vmem:[%s2806_s2] sm:$0xff] (!%p279_p9)  ;;  %v1724_v3 = vpack.c.bf16 (!%p279_p9), %v477_v1, %v476_v0  ;;  %v461_v4 = vld [vmem:[%s2806_s2 + $0x8] sm:$0xff] (!%p279_p9)  ;;  %v479_v6 = vld [vmem:[%s2806_s2 + $0x98] sm:$0xff] (!%p279_p9)  ;;  %p319_p10 = scmp.lt.s32.totalorder (!%p279_p9), %s1561_s23, 15 }
   0xf   : > { %v1726_v7 = vpack.c.bf16 (!%p279_p9), %v461_v4, %v460_v2  ;;  %v1728_v8 = vpack.c.bf16 (!%p279_p9), %v479_v6, %v478_v5  ;;  %v462_v9 = vld [vmem:[%s2806_s2 + $0x10] sm:$0xff] (!%p279_p9)  ;;  %v463_v10 = vld [vmem:[%s2806_s2 + $0x18] sm:$0xff] (!%p279_p9)  ;;  %v480_v11 = vld [vmem:[%s2806_s2 + $0xa0] sm:$0xff] (!%p279_p9)  ;;  %s315_s22 = sand.u32 (!%p279_p9), 1, %s2019_s28   ;;  %s1591_s10 = sshll.u32 (!%p279_p9), %s2098_s9, 10 }
  0x10   : > { %1725 = vmatprep.subr.bf16.mxu0 (!%p279_p9), %v1724_v3  ;;  %v481_v12 = vld [vmem:[%s2806_s2 + $0xa8] sm:$0xff] (!%p279_p9)  ;;  %v1730_v13 = vpack.c.bf16 (!%p279_p9), %v463_v10, %v462_v9  ;;  %v464_v15 = vld [vmem:[%s2806_s2 + $0x20] sm:$0xff] (!%p279_p9)  ;;  %v482_v17 = vld [vmem:[%s2806_s2 + $0xb0] sm:$0xff] (!%p279_p9)  ;;  %s1560_s24 = sshll.u32 (!%p279_p9), %s315_s22, 6  ;;  %s2754_s18 = scalar_lea.hbm (!%p279_p9), %s2812_s8, %s1591_s10 }
  0x11   : > { %1727 = vmatpush3.bf16.msra.mxu0 (!%p279_p9), %v1726_v7  ;;  %v1732_v14 = vpack.c.bf16 (!%p279_p9), %v481_v12, %v480_v11  ;;  %v465_v16 = vld [vmem:[%s2806_s2 + $0x28] sm:$0xff] (!%p279_p9)  ;;  %v483_v18 = vld [vmem:[%s2806_s2 + $0xb8] sm:$0xff] (!%p279_p9)  ;;  %v466_v20 = vld [vmem:[%s2806_s2 + $0x30] sm:$0xff] (!%p279_p9)  ;;  %s317_s26 = scalar_lea.vmem (!%p279_p9), [#allocation2], %s1560_s24  ;;  %s2763_s9 = scalar_lea.sflag (!%p279_p9), [#allocation3], %s315_s22 }
  0x12   : > { %1729 = vmatprep.subr.bf16.mxu0 (!%p279_p9), %v1728_v8  ;;  %v1734_v19 = vpack.c.bf16 (!%p279_p9), %v465_v16, %v464_v15  ;;  %v467_v21 = vld [vmem:[%s2806_s2 + $0x38] sm:$0xff] (!%p279_p9)  ;;  %v1736_v22 = vpack.c.bf16 (!%p279_p9), %v483_v18, %v482_v17  ;;  %v484_v23 = vld [vmem:[%s2806_s2 + $0xc0] sm:$0xff] (!%p279_p9)  ;;  %v485_v24 = vld [vmem:[%s2806_s2 + $0xc8] sm:$0xff] (!%p279_p9)  ;;  %s1482_s12 = sshll.u32 (!%p279_p9), %s317_s26, 4  ;;  %s2756_s12 = int_to_ptr.vmem [resolvable:$true] %s1482_s12 }
  0x13   : > { %v468_v25 = vld [vmem:[%s2806_s2 + $0x40] sm:$0xff] (!%p279_p9)  ;;  %v469_v26 = vld [vmem:[%s2806_s2 + $0x48] sm:$0xff] (!%p279_p9)  ;;  %v1738_v28 = vpack.c.bf16 (!%p279_p9), %v467_v21, %v466_v20  ;;  %v486_v29 = vld [vmem:[%s2806_s2 + $0xd0] sm:$0xff] (!%p279_p9)  ;;  %v1740_v35 = vpack.c.bf16 (!%p279_p9), %v485_v24, %v484_v23 }
  0x14   : > { %v487_v30 = vld [vmem:[%s2806_s2 + $0xd8] sm:$0xff] (!%p279_p9)  ;;  %v1742_v50 = vpack.c.bf16 (!%p279_p9), %v469_v26, %v468_v25  ;;  %v470_v51 = vld [vmem:[%s2806_s2 + $0x50] sm:$0xff] (!%p279_p9)  ;;  %v488_v2 = vld [vmem:[%s2806_s2 + $0xe0] sm:$0xff] (!%p279_p9) }
  0x15   : > { %s2820_s23 = smov (!%p319_p10, %s1561_s23), 15  ;;  %1731 = vmatpush3.bf16.msra.mxu0 %v1730_v13  ;;  %v1744_v54 = vpack.c.bf16 %v487_v30, %v486_v29  ;;  %v471_v60 = vld [vmem:[%s2806_s2 + $0x58] sm:$0xff]  ;;  %v489_v3 = vld [vmem:[%s2806_s2 + $0xe8] sm:$0xff]  ;;  %v472_v11 = vld [vmem:[%s2806_s2 + $0x60] sm:$0xff] }
  0x16   : > { %s1590_s17 = sshll.u32 %s2820_s23, 4  ;;  %1733 = vmatprep.subr.bf16.mxu0 %v1732_v14  ;;  %v1746_v8 = vpack.c.bf16 %v471_v60, %v470_v51  ;;  %v1748_v10 = vpack.c.bf16 %v489_v3, %v488_v2  ;;  %v473_v12 = vld [vmem:[%s2806_s2 + $0x68] sm:$0xff]  ;;  %v490_v14 = vld [vmem:[%s2806_s2 + $0xf0] sm:$0xff]  ;;  %v491_v15 = vld [vmem:[%s2806_s2 + $0xf8] sm:$0xff] }
  0x17   : > { %s2174_s25 = scalar_lea.vmem %s2804_s0, %s1590_s17  ;;  %v1750_v18 = vpack.c.bf16 %v473_v12, %v472_v11  ;;  %v1752_v20 = vpack.c.bf16 %v491_v15, %v490_v14  ;;  %v474_v21 = vld [vmem:[%s2806_s2 + $0x70] sm:$0xff]  ;;  %s2029_s17 = smov [#allocation2]  }
  0x18   : > { %v2195_v27 = vld [vmem:[%s2174_s25 + $0x8] sm:$0xff]  ;;  %v2205_v32 = vld [vmem:[%s2174_s25] sm:$0xff]  ;;  %v2208_v33 = vld [vmem:[%s2174_s25 + $0x18] sm:$0xff]  ;;  %s1969_s20 = sshll.u32 %s2029_s17, 4  ;;  %s1970_s20 = int_to_ptr.vmem [resolvable:$false] %s1969_s20 }
  0x19   : > { %v349_v31 = vsub.f32 0.0, %v2195_v27  ;;  %v2211_v34 = vld [vmem:[%s2174_s25 + $0x10] sm:$0xff]  ;;  %1735 = vmatpush3.bf16.msra.mxu0 %v1734_v19  ;;  %v348_v36 = vsub.f32 0.0, %v2205_v32  ;;  %v351_v37 = vsub.f32 0.0, %v2208_v33  ;;  %v2217_v39 = vld [vmem:[%s2174_s25 + $0x28] sm:$0xff]  ;;  %v2220_v40 = vld [vmem:[%s2174_s25 + $0x20] sm:$0xff]  ;;  %p1972_p0 = scmp.lt.s32.totalorder %s2756_s12, %s1970_s20 }
  0x1a   : > { %v350_v38 = vsub.f32 0.0, %v2211_v34  ;;  %v2223_v41 = vld [vmem:[%s2174_s25 + $0x38] sm:$0xff]  ;;  %1737 = vmatprep.subr.bf16.mxu0 %v1736_v22  ;;  %v353_v43 = vsub.f32 0.0, %v2217_v39  ;;  %v352_v44 = vsub.f32 0.0, %v2220_v40  ;;  %v2229_v46 = vld [vmem:[%s2174_s25 + $0x30] sm:$0xff]  ;;  %v2236_v57 = vld [vmem:[%s2174_s25 + $0x48] sm:$0xff] }
  0x1b   : > { %v366_v42 = vmul.f32 1.442695, %v349_v31  ;;  %v355_v45 = vsub.f32 0.0, %v2223_v41  ;;  %v364_v47 = vmul.f32 1.442695, %v348_v36  ;;  %v354_v56 = vsub.f32 0.0, %v2229_v46 }
  0x1c   : > { %v370_v48 = vmul.f32 1.442695, %v351_v37  ;;  %v368_v49 = vmul.f32 1.442695, %v350_v38  ;;  %v374_v52 = vmul.f32 1.442695, %v353_v43 }
  0x1d   : > { %1821 = vpow2.f32 %v366_v42  ;;  %v372_v53 = vmul.f32 1.442695, %v352_v44  ;;  %1739 = vmatpush3.bf16.msra.mxu0 %v1738_v28  ;;  %v378_v55 = vmul.f32 1.442695, %v355_v45  ;;  %v2239_v58 = vld [vmem:[%s2174_s25 + $0x40] sm:$0xff]  ;;  %v2242_v59 = vld [vmem:[%s2174_s25 + $0x58] sm:$0xff] }
  0x1e   : > { %1823 = vpow2.f32 %v364_v47  ;;  %1741 = vmatprep.subr.bf16.mxu0 %v1740_v35  ;;  %v357_v61 = vsub.f32 0.0, %v2236_v57  ;;  %v356_v62 = vsub.f32 0.0, %v2239_v58  ;;  %v359_v63 = vsub.f32 0.0, %v2242_v59  ;;  %v2251_v0 = vld [vmem:[%s2174_s25 + $0x50] sm:$0xff]  ;;  %v2254_v1 = vld [vmem:[%s2174_s25 + $0x68] sm:$0xff]  ;;  %v475_v22 = vld [vmem:[%s2806_s2 + $0x78] sm:$0xff] }
  0x1f   : > { %1825 = vpow2.f32 %v370_v48  ;;  %v376_v4 = vmul.f32 1.442695, %v354_v56  ;;  %v358_v5 = vsub.f32 0.0, %v2251_v0  ;;  %v361_v7 = vsub.f32 0.0, %v2254_v1  ;;  %v2283_v38 = vld [vmem:[%s2174_s25 + $0x60] sm:$0xff]  ;;  %v2286_v44 = vld [vmem:[%s2174_s25 + $0x78] sm:$0xff] }
  0x20   : > { %1827 = vpow2.f32 %v368_v49  ;;  %v382_v6 = vmul.f32 1.442695, %v357_v61  ;;  %v380_v9 = vmul.f32 1.442695, %v356_v62  ;;  %v386_v13 = vmul.f32 1.442695, %v359_v63 }
  0x21   : > { %1829 = vpow2.f32 %v374_v52  ;;  %1743 = vmatpush3.bf16.msra.mxu0 %v1742_v50  ;;  %v384_v16 = vmul.f32 1.442695, %v358_v5  ;;  %v390_v17 = vmul.f32 1.442695, %v361_v7  ;;  %v1754_v29 = vpack.c.bf16 %v475_v22, %v474_v21  ;;  %v2289_v48 = vld [vmem:[%s2174_s25 + $0x70] sm:$0xff]  ;;  %s1565_s25 = sshll.u32 %s2820_s23, 3 }
  0x22   : > { %1831 = vpow2.f32 %v372_v53  ;;  %1745 = vmatprep.subr.bf16.mxu0 %v1744_v54  ;;  %v360_v51 = vsub.f32 0.0, %v2283_v38  ;;  %v363_v54 = vsub.f32 0.0, %v2286_v44  ;;  %v362_v60 = vsub.f32 0.0, %v2289_v48  ;;  %s2362_s19 = scalar_lea.vmem %s2805_s1, %s1565_s25  ;;  %s1971_s23 = scalar_lea.vmem %s1970_s20, 2048 }
  0x23   : > { %1833 = vpow2.f32 %v378_v55 }
  0x24   : > { %1835 = vpow2.f32 %v376_v4  ;;  %v388_v2 = vmul.f32 1.442695, %v360_v51  ;;  %v394_v4 = vmul.f32 1.442695, %v363_v54  ;;  %v392_v7 = vmul.f32 1.442695, %v362_v60 }
  0x25   : > { %1837 = vpow2.f32 %v382_v6  ;;  %1747 = vmatpush3.bf16.msra.mxu0 %v1746_v8 }
  0x26   : > { %1839 = vpow2.f32 %v380_v9  ;;  %1749 = vmatprep.subr.bf16.mxu0 %v1748_v10 }
  0x27   : > { %v1822_v19 = vpop.eup %1821  ;;  %1841 = vpow2.f32 %v386_v13 }
  0x28   : > { %v1824_v23 = vpop.eup %1823  ;;  %v397_v24 = vadd.f32 1.0, %v1822_v19  ;;  %1843 = vpow2.f32 %v384_v16 }
  0x29   : > { %v1826_v25 = vpop.eup %1825  ;;  %v396_v26 = vadd.f32 1.0, %v1824_v23  ;;  %1845 = vpow2.f32 %v390_v17  ;;  %1751 = vmatpush3.bf16.msra.mxu0 %v1750_v18 }
  0x2a   : > { %v1828_v28 = vpop.eup %1827  ;;  %1847 = vrcp.f32 %v397_v24  ;;  %v399_v30 = vadd.f32 1.0, %v1826_v25  ;;  %1753 = vmatprep.subr.bf16.mxu0 %v1752_v20 }
  0x2b   : > { %v1830_v31 = vpop.eup %1829  ;;  %1849 = vrcp.f32 %v396_v26  ;;  %v398_v35 = vadd.f32 1.0, %v1828_v28 }
  0x2c   : > { %v1832_v36 = vpop.eup %1831  ;;  %1851 = vrcp.f32 %v399_v30  ;;  %v401_v37 = vadd.f32 1.0, %v1830_v31 }
  0x2d   : > { %v1834_v42 = vpop.eup %1833  ;;  %1853 = vrcp.f32 %v398_v35  ;;  %v400_v43 = vadd.f32 1.0, %v1832_v36  ;;  %1755 = vmatpush3.bf16.msra.mxu0 %v1754_v29 }
  0x2e   : > { %v1836_v45 = vpop.eup %1835  ;;  %1855 = vrcp.f32 %v401_v37  ;;  %v403_v47 = vadd.f32 1.0, %v1834_v42 }
  0x2f   : > { %v1838_v49 = vpop.eup %1837  ;;  %1857 = vrcp.f32 %v400_v43  ;;  %v402_v50 = vadd.f32 1.0, %v1836_v45 }
  0x30   : > { %v1840_v52 = vpop.eup %1839  ;;  %1859 = vrcp.f32 %v403_v47  ;;  %v405_v53 = vadd.f32 1.0, %v1838_v49 }
  0x31   : > { %v1842_v55 = vpop.eup %1841  ;;  %v404_v56 = vadd.f32 1.0, %v1840_v52  ;;  %1861 = vrcp.f32 %v402_v50 }
  0x32   : > { %v1844_v61 = vpop.eup %1843  ;;  %v407_v62 = vadd.f32 1.0, %v1842_v55  ;;  %1863 = vrcp.f32 %v405_v53 }
  0x33   : > { %v1846_v63 = vpop.eup %1845  ;;  %1865 = vrcp.f32 %v404_v56  ;;  %v406_v12 = vadd.f32 1.0, %v1844_v61 }
  0x34   : > { %v1848_v3 = vpop.eup %1847  ;;  %1867 = vrcp.f32 %v407_v62  ;;  %v409_v15 = vadd.f32 1.0, %v1846_v63 }
  0x35   : > { %v1850_v5 = vpop.eup %1849  ;;  %v445_v6 = vmul.f32 %v1848_v3, %v2195_v27  ;;  %1869 = vpow2.f32 %v388_v2 }
  0x36   : > { %v1852_v8 = vpop.eup %1851  ;;  %v444_v9 = vmul.f32 %v1850_v5, %v2205_v32  ;;  %1871 = vpow2.f32 %v394_v4 }
  0x37   : > { %v1854_v10 = vpop.eup %1853  ;;  %556 = vmatprep.mubr.f32.mxu0 %v445_v6  ;;  %v447_v11 = vmul.f32 %v1852_v8, %v2208_v33  ;;  %1873 = vpow2.f32 %v392_v7 }
  0x38   : > { %v1856_v13 = vpop.eup %1855  ;;  %557 = vmatmul.mubr.f32.vlgmr.msra.gmra.mrb[0].mxu0 %v444_v9  ;;  %v446_v14 = vmul.f32 %v1854_v10, %v2211_v34  ;;  %1875 = vrcp.f32 %v406_v12 }
  0x39   : > { %v1858_v16 = vpop.eup %1857  ;;  %561 = vmatprep.mubr.f32.mxu0 %v447_v11  ;;  %v449_v27 = vmul.f32 %v1856_v13, %v2217_v39  ;;  %1877 = vrcp.f32 %v409_v15 }
  0x3a   : > { %v1860_v17 = vpop.eup %1859  ;;  %v448_v32 = vmul.f32 %v1858_v16, %v2220_v40 }
  0x3b   : > { %v1862_v33 = vpop.eup %1861  ;;  %v451_v18 = vmul.f32 %v1860_v17, %v2223_v41 }
  0x3c   : > { %562 = vmatmul.mubr.f32.gmra.mrb[2].mxu0 %v446_v14  ;;  %v1864_v19 = vpop.eup %1863  ;;  %v450_v21 = vmul.f32 %v1862_v33, %v2229_v46 }
  0x3d   : > { %566 = vmatprep.mubr.f32.mxu0 %v449_v27  ;;  %v1866_v20 = vpop.eup %1865  ;;  %v453_v39 = vmul.f32 %v1864_v19, %v2236_v57 }
  0x3e   : > { %v1868_v34 = vpop.eup %1867  ;;  %v452_v40 = vmul.f32 %v1866_v20, %v2239_v58 }
  0x3f   : > { %v1870_v22 = vpop.eup %1869  ;;  %v455_v29 = vmul.f32 %v1868_v34, %v2242_v59 }
  0x40   : > { %567 = vmatmul.mubr.f32.gmra.mrb[4].mxu0 %v448_v32  ;;  %v1872_v23 = vpop.eup %1871  ;;  %v408_v24 = vadd.f32 1.0, %v1870_v22 }
  0x41   : > { %571 = vmatprep.mubr.f32.mxu0 %v451_v18  ;;  %v1874_v25 = vpop.eup %1873  ;;  %v411_v26 = vadd.f32 1.0, %v1872_v23 }
  0x42   : > { %1879 = vrcp.f32 %v408_v24  ;;  %v410_v28 = vadd.f32 1.0, %v1874_v25  ;;  %v1876_v41 = vpop.eup %1875 }
  0x43   : > { %1881 = vrcp.f32 %v411_v26  ;;  %v1878_v30 = vpop.eup %1877  ;;  %v454_v46 = vmul.f32 %v1876_v41, %v2251_v0 }
  0x44   : > { %572 = vmatmul.mubr.f32.gmra.mrb[6].mxu0 %v450_v21  ;;  %1883 = vrcp.f32 %v410_v28  ;;  %v457_v57 = vmul.f32 %v1878_v30, %v2254_v1 }
  0x45   : > { %576 = vmatprep.mubr.f32.mxu0 %v453_v39 }
  0x48   : > { %577 = vmatmul.mubr.f32.gmra.mrb[8].mxu0 %v452_v40 }
  0x49   : > { %581 = vmatprep.mubr.f32.mxu0 %v455_v29 }
  0x4c   : > { %582 = vmatmul.mubr.f32.gmra.mrb[10].mxu0 %v454_v46  ;;  %v1880_v31 = vpop.eup %1879 }
  0x4d   : > { %586 = vmatprep.mubr.f32.mxu0 %v457_v57  ;;  %v1882_v35 = vpop.eup %1881  ;;  %v456_v58 = vmul.f32 %v1880_v31, %v2283_v38 }
  0x4e   : > { %v1884_v36 = vpop.eup %1883  ;;  %v459_v37 = vmul.f32 %v1882_v35, %v2286_v44 }
  0x4f   : > { %v458_v59 = vmul.f32 %v1884_v36, %v2289_v48 }
  0x50   : > { %587 = vmatmul.mubr.f32.gmra.mrb[12].mxu0 %v456_v58 }
  0x51   : > { %591 = vmatprep.mubr.f32.mxu0 %v459_v37 }
  0x54   : > { %592 = vmatmul.mubr.f32.gmra.mrb[14].mxu0 %v458_v59 }
 0x10b   : > { %v1624_v42 = vpop.f32.mrb[0].mxu0 }
 0x10c   : > { %v1625_v43 = vpop.f32.mrb[1].mxu0 }
 0x10d   : > { %v1626_v0 = vadd.f32 %v1625_v43, %v1624_v42 }
 0x10f   : > { %v1627_v45 = vpop.f32.mrb[2].mxu0  ;;  %v599_v1 = vsel %vm598_vm0, %v1626_v0, 0.0 }
 0x110   : > { %v1628_v47 = vpop.f32.mrb[3].mxu0  ;;  %600 = vadd.xlane.f32.xlu0 %v599_v1 }
 0x111   : > { %v1629_v49 = vadd.f32 %v1628_v47, %v1627_v45 }
 0x113   : > { %v1630_v50 = vpop.f32.mrb[4].mxu0  ;;  %v602_v38 = vsel %vm598_vm0, %v1629_v49, 0.0 }
 0x114   : > { %v1631_v51 = vpop.f32.mrb[5].mxu0  ;;  %603 = vadd.xlane.f32.xlu0 %v602_v38 }
 0x115   : > { %v1632_v44 = vadd.f32 %v1631_v51, %v1630_v50 }
 0x117   : > { %v1633_v52 = vpop.f32.mrb[6].mxu0  ;;  %v605_v48 = vsel %vm598_vm0, %v1632_v44, 0.0 }
 0x118   : > { %v1634_v53 = vpop.f32.mrb[7].mxu0  ;;  %606 = vadd.xlane.f32.xlu1 %v605_v48 }
 0x119   : > { %v1635_v54 = vadd.f32 %v1634_v53, %v1633_v52 }
 0x11b   : > { %v1636_v55 = vpop.f32.mrb[8].mxu0  ;;  %v608_v56 = vsel %vm598_vm0, %v1635_v54, 0.0 }
 0x11c   : > { %v1637_v60 = vpop.f32.mrb[9].mxu0  ;;  %609 = vadd.xlane.f32.xlu1 %v608_v56 }
 0x11d   : > { %v1638_v61 = vadd.f32 %v1637_v60, %v1636_v55 }
 0x11f   : > { %v1639_v62 = vpop.f32.mrb[10].mxu0  ;;  %v611_v63 = vsel %vm598_vm0, %v1638_v61, 0.0 }
 0x120   : > { %v1640_v2 = vpop.f32.mrb[11].mxu0  ;;  %612 = vadd.xlane.f32.xlu0 %v611_v63 }
 0x121   : > { %v1641_v3 = vadd.f32 %v1640_v2, %v1639_v62  ;;  %v2367_v2 = vld [vmem:[%s2807_s3] ss:$0 sm:$0xff] }
 0x123   : > { %v614_v4 = vsel %vm598_vm0, %v1641_v3, 0.0  ;;  %v1642_v5 = vpop.f32.mrb[12].mxu0 }
 0x124   : > { %615 = vadd.xlane.f32.xlu1 %v614_v4  ;;  %v1643_v6 = vpop.f32.mrb[13].mxu0 }
 0x125   : > { %v1644_v7 = vadd.f32 %v1643_v6, %v1642_v5  ;;  %v718_v6 = vld [vmem:[%s2362_s19] sm:$0xff] }
 0x127   : > { %v1645_v8 = vpop.f32.mrb[14].mxu0  ;;  %v617_v9 = vsel %vm598_vm0, %v1644_v7, 0.0 }
 0x128   : > { %v1646_v10 = vpop.f32.mrb[15].mxu0  ;;  %618 = vadd.xlane.f32.xlu0 %v617_v9 }
 0x129   : > { %v1647_v11 = vadd.f32 %v1646_v10, %v1645_v8 }
 0x12b   : > { %v620_v12 = vsel %vm598_vm0, %v1647_v11, 0.0 }
 0x12c   : > { %621 = vadd.xlane.f32.xlu1 %v620_v12 }
 0x19d   : > { %v601_v13 = vpop.xlane.xlu0 %600 }
 0x19e   : > { %v624_v14 = vmul.f32 0.03125, %v601_v13 }
 0x1a0   : > { %v2318_v15 = vsub.f32 %v1626_v0, %v624_v14  ;;  %v719_v14 = vld [vmem:[%s2362_s19 + $0x8] sm:$0xff] }
 0x1a1   : > { %v604_v16 = vpop.xlane.xlu0 %603 }
 0x1a2   : > { %v625_v27 = vmul.f32 0.03125, %v604_v16  ;;  %v640_v17 = vmul.f32 %v2318_v15, %v2318_v15 }
 0x1a4   : > { %v2322_v32 = vsub.f32 %v1629_v49, %v625_v27  ;;  %v648_v33 = vsel %vm598_vm0, %v640_v17, 0.0 }
 0x1a5   : > { %v607_v18 = vpop.xlane.xlu1 %606  ;;  %649 = vadd.xlane.f32.xlu0 %v648_v33 }
 0x1a6   : > { %v626_v19 = vmul.f32 0.03125, %v607_v18  ;;  %v641_v20 = vmul.f32 %v2322_v32, %v2322_v32 }
 0x1a8   : > { %v2327_v34 = vsub.f32 %v1632_v44, %v626_v19  ;;  %v651_v21 = vsel %vm598_vm0, %v641_v20, 0.0  ;;  %v720_v20 = vld [vmem:[%s2362_s19 + $0x10] sm:$0xff] }
 0x1a9   : > { %v610_v22 = vpop.xlane.xlu1 %609  ;;  %652 = vadd.xlane.f32.xlu1 %v651_v21 }
 0x1aa   : > { %v627_v39 = vmul.f32 0.03125, %v610_v22  ;;  %v642_v23 = vmul.f32 %v2327_v34, %v2327_v34 }
 0x1ac   : > { %v2332_v24 = vsub.f32 %v1635_v54, %v627_v39  ;;  %v654_v25 = vsel %vm598_vm0, %v642_v23, 0.0 }
 0x1ad   : > { %655 = vadd.xlane.f32.xlu0 %v654_v25  ;;  %v613_v26 = vpop.xlane.xlu0 %612 }
 0x1ae   : > { %v628_v40 = vmul.f32 0.03125, %v613_v26  ;;  %v643_v28 = vmul.f32 %v2332_v24, %v2332_v24 }
 0x1b0   : > { %v2337_v41 = vsub.f32 %v1638_v61, %v628_v40  ;;  %v657_v29 = vsel %vm598_vm0, %v643_v28, 0.0  ;;  %v721_v28 = vld [vmem:[%s2362_s19 + $0x18] sm:$0xff] }
 0x1b1   : > { %v616_v30 = vpop.xlane.xlu1 %615  ;;  %658 = vadd.xlane.f32.xlu1 %v657_v29 }
 0x1b2   : > { %v629_v46 = vmul.f32 0.03125, %v616_v30  ;;  %v644_v57 = vmul.f32 %v2337_v41, %v2337_v41 }
 0x1b4   : > { %v2342_v31 = vsub.f32 %v1641_v3, %v629_v46  ;;  %v660_v35 = vsel %vm598_vm0, %v644_v57, 0.0 }
 0x1b5   : > { %661 = vadd.xlane.f32.xlu0 %v660_v35  ;;  %v619_v58 = vpop.xlane.xlu0 %618 }
 0x1b6   : > { %v645_v36 = vmul.f32 %v2342_v31, %v2342_v31  ;;  %v630_v37 = vmul.f32 0.03125, %v619_v58 }
 0x1b8   : > { %v663_v59 = vsel %vm598_vm0, %v645_v36, 0.0  ;;  %v2348_v42 = vsub.f32 %v1644_v7, %v630_v37  ;;  %v722_v36 = vld [vmem:[%s2362_s19 + $0x20] sm:$0xff] }
 0x1b9   : > { %664 = vadd.xlane.f32.xlu1 %v663_v59  ;;  %v622_v43 = vpop.xlane.xlu1 %621 }
 0x1ba   : > { %v631_v0 = vmul.f32 0.03125, %v622_v43  ;;  %v646_v45 = vmul.f32 %v2348_v42, %v2348_v42 }
 0x1bc   : > { %v2352_v1 = vsub.f32 %v1647_v11, %v631_v0  ;;  %v666_v47 = vsel %vm598_vm0, %v646_v45, 0.0  ;;  %v723_v45 = vld [vmem:[%s2362_s19 + $0x28] sm:$0xff] }
 0x1bd   : > { %667 = vadd.xlane.f32.xlu0 %v666_v47 }
 0x1be   : > { %v647_v49 = vmul.f32 %v2352_v1, %v2352_v1 }
 0x1c0   : > { %v669_v50 = vsel %vm598_vm0, %v647_v49, 0.0 }
 0x1c1   : > { %670 = vadd.xlane.f32.xlu1 %v669_v50 }
 0x232   : > { %v650_v38 = vpop.xlane.xlu0 %649 }
 0x233   : > { %v672_v51 = vmul.f32 0.03125, %v650_v38 }
 0x235   : > { %v680_v44 = vadd.f32 1e-05, %v672_v51 }
 0x236   : > { %v653_v52 = vpop.xlane.xlu1 %652 }
 0x237   : > { %1885 = vrsqrt.f32 %v680_v44  ;;  %v673_v48 = vmul.f32 0.03125, %v653_v52  ;;  %v724_v44 = vld [vmem:[%s2362_s19 + $0x30] sm:$0xff] }
 0x239   : > { %v681_v53 = vadd.f32 1e-05, %v673_v48 }
 0x23a   : > { %v656_v54 = vpop.xlane.xlu0 %655 }
 0x23b   : > { %1887 = vrsqrt.f32 %v681_v53  ;;  %v674_v55 = vmul.f32 0.03125, %v656_v54  ;;  %v725_v54 = vld [vmem:[%s2362_s19 + $0x38] sm:$0xff]  ;;  %s1965_s19 = scalar_lea.vmem %s2756_s12, 1024 }
 0x23c   : > { %p1966_p11 = scmp.ne.s32.totalorder %s2756_s12, %s1965_s19  ;;  %p1973_p1 = scmp.lt.s32.totalorder %s1971_s23, %s1965_s19 }
 0x23d   : > { %v682_v56 = vadd.f32 1e-05, %v674_v55 }
 0x23e   : > { %v659_v60 = vpop.xlane.xlu1 %658  ;;  %p1967_p12 = pnand %p1966_p11, %p2115_p5  ;;  %p1974_p2 = por %p1973_p1, %p1972_p0 }
 0x23f   : > { %1889 = vrsqrt.f32 %v682_v56  ;;  %v675_v61 = vmul.f32 0.03125, %v659_v60 }
 0x240   : > { %p1968_p13 = pneg %p1967_p12 }
 0x241   : > { %v1886_v62 = vpop.eup %1885  ;;  %v683_v63 = vadd.f32 1e-05, %v675_v61 }
 0x242   : > { %v662_v3 = vpop.xlane.xlu0 %661  ;;  %v696_v4 = vmul.f32 %v1886_v62, %v2318_v15  ;;  %p1975_p3 = pnand %p1974_p2, %p1968_p13 }
 0x243   : > { %1891 = vrsqrt.f32 %v683_v63  ;;  %v676_v5 = vmul.f32 0.03125, %v662_v3 }
 0x244   : > { %v710_v7 = vmul.f32 %v2367_v2, %v696_v4 }
 0x245   : > { %v1888_v8 = vpop.eup %1887  ;;  %v684_v9 = vadd.f32 1e-05, %v676_v5 }
 0x246   : > { %v665_v10 = vpop.xlane.xlu1 %664  ;;  %v2372_v11 = vadd.f32 %v718_v6, %v710_v7  ;;  %v697_v12 = vmul.f32 %v1888_v8, %v2322_v32 }
 0x247   : > { %1893 = vrsqrt.f32 %v684_v9  ;;  %v677_v13 = vmul.f32 0.03125, %v665_v10 }
 0x248   : > { %v735_v16 = vsel %vm598_vm0, %v2372_v11, 0.0  ;;  %v711_v15 = vmul.f32 %v2367_v2, %v697_v12 }
 0x249   : > { %v1890_v27 = vpop.eup %1889  ;;  %v685_v17 = vadd.f32 1e-05, %v677_v13  ;;  %736 = vadd.xlane.f32.xlu0 %v735_v16 }
 0x24a   : > { %v2379_v33 = vadd.f32 %v719_v14, %v711_v15  ;;  %v698_v18 = vmul.f32 %v1890_v27, %v2327_v34  ;;  %v668_v19 = vpop.xlane.xlu0 %667 }
 0x24b   : > { %1895 = vrsqrt.f32 %v685_v17  ;;  %v678_v32 = vmul.f32 0.03125, %v668_v19 }
 0x24c   : > { %v738_v21 = vsel %vm598_vm0, %v2379_v33, 0.0  ;;  %v712_v22 = vmul.f32 %v2367_v2, %v698_v18 }
 0x24d   : > { %v1892_v39 = vpop.eup %1891  ;;  %739 = vadd.xlane.f32.xlu1 %v738_v21  ;;  %v686_v23 = vadd.f32 1e-05, %v678_v32 }
 0x24e   : > { %v2386_v25 = vadd.f32 %v720_v20, %v712_v22  ;;  %v699_v26 = vmul.f32 %v1892_v39, %v2332_v24  ;;  %v671_v40 = vpop.xlane.xlu1 %670 }
 0x24f   : > { %1897 = vrsqrt.f32 %v686_v23  ;;  %v679_v34 = vmul.f32 0.03125, %v671_v40 }
 0x250   : > { %v741_v29 = vsel %vm598_vm0, %v2386_v25, 0.0  ;;  %v713_v30 = vmul.f32 %v2367_v2, %v699_v26 }
 0x251   : > { %v1894_v46 = vpop.eup %1893  ;;  %742 = vadd.xlane.f32.xlu0 %v741_v29  ;;  %v687_v57 = vadd.f32 1e-05, %v679_v34 }
 0x252   : > { %v2393_v35 = vadd.f32 %v721_v28, %v713_v30  ;;  %v700_v58 = vmul.f32 %v1894_v46, %v2337_v41 }
 0x253   : > { %1899 = vrsqrt.f32 %v687_v57 }
 0x254   : > { %v744_v24 = vsel %vm598_vm0, %v2393_v35, 0.0  ;;  %v714_v37 = vmul.f32 %v2367_v2, %v700_v58 }
 0x255   : > { %v1896_v59 = vpop.eup %1895  ;;  %745 = vadd.xlane.f32.xlu1 %v744_v24 }
 0x256   : > { %v2400_v43 = vadd.f32 %v722_v36, %v714_v37  ;;  %v701_v0 = vmul.f32 %v1896_v59, %v2342_v31  ;;  %v853_v37 = vld [vmem:[%s2809_s5] sm:$0xff]  ;;  %v854_v59 = vld [vmem:[%s2809_s5 + $0x8] sm:$0xff] }
 0x258   : > { %v747_v47 = vsel %vm598_vm0, %v2400_v43, 0.0  ;;  %v715_v41 = vmul.f32 %v2367_v2, %v701_v0 }
 0x259   : > { %748 = vadd.xlane.f32.xlu0 %v747_v47  ;;  %v1898_v49 = vpop.eup %1897  ;;  %v855_v47 = vld [vmem:[%s2809_s5 + $0x10] sm:$0xff] }
 0x25a   : > { %v2407_v50 = vadd.f32 %v723_v45, %v715_v41  ;;  %v702_v38 = vmul.f32 %v1898_v49, %v2348_v42  ;;  %v1756_v45 = vpack.c.bf16 %v854_v59, %v853_v37  ;;  %v856_v41 = vld [vmem:[%s2809_s5 + $0x18] sm:$0xff] }
 0x25b   : > { %v1760_v49 = vpack.c.bf16 %v856_v41, %v855_v47 }
 0x25c   : > { %v750_v51 = vsel %vm598_vm0, %v2407_v50, 0.0  ;;  %v716_v52 = vmul.f32 %v2367_v2, %v702_v38  ;;  %1757 = vmatprep.subr.bf16.mxu1 %v1756_v45 }
 0x25d   : > { %751 = vadd.xlane.f32.xlu1 %v750_v51  ;;  %v1900_v31 = vpop.eup %1899  ;;  %1759 = vmatpush3.bf16.msra.mxu1 %v1756_v45 }
 0x25e   : > { %v2414_v48 = vadd.f32 %v724_v44, %v716_v52  ;;  %v703_v53 = vmul.f32 %v1900_v31, %v2352_v1  ;;  %1761 = vmatprep.subr.bf16.mxu1 %v1760_v49 }
 0x260   : > { %v753_v55 = vsel %vm598_vm0, %v2414_v48, 0.0  ;;  %v717_v56 = vmul.f32 %v2367_v2, %v703_v53 }
 0x261   : > { %754 = vadd.xlane.f32.xlu0 %v753_v55  ;;  %1763 = vmatpush3.bf16.msra.mxu1 %v1760_v49 }
 0x262   : > { %v2421_v42 = vadd.f32 %v725_v54, %v717_v56 }
 0x264   : > { %v756_v60 = vsel %vm598_vm0, %v2421_v42, 0.0 }
 0x265   : > { %757 = vadd.xlane.f32.xlu1 %v756_v60 }
 0x2d6   : > { %v737_v61 = vpop.xlane.xlu0 %736 }
 0x2d7   : > { %v759_v62 = vmul.f32 0.03125, %v737_v61 }
 0x2d9   : > { %v2426_v63 = vsub.f32 %v2372_v11, %v759_v62 }
 0x2da   : > { %v740_v3 = vpop.xlane.xlu1 %739 }
 0x2db   : > { %v760_v1 = vmul.f32 0.03125, %v740_v3  ;;  %v775_v4 = vmul.f32 %v2426_v63, %v2426_v63 }
 0x2dd   : > { %v2431_v5 = vsub.f32 %v2379_v33, %v760_v1  ;;  %v783_v2 = vsel %vm598_vm0, %v775_v4, 0.0  ;;  %v1567_v1 = vld [vmem:[%s2808_s4] ss:$0 sm:$0xff] }
 0x2de   : > { %784 = vadd.xlane.f32.xlu0 %v783_v2  ;;  %v743_v6 = vpop.xlane.xlu0 %742 }
 0x2df   : > { %v761_v7 = vmul.f32 0.03125, %v743_v6  ;;  %v776_v8 = vmul.f32 %v2431_v5, %v2431_v5 }
 0x2e1   : > { %v2437_v9 = vsub.f32 %v2386_v25, %v761_v7  ;;  %v786_v10 = vsel %vm598_vm0, %v776_v8, 0.0 }
 0x2e2   : > { %787 = vadd.xlane.f32.xlu1 %v786_v10  ;;  %v746_v12 = vpop.xlane.xlu1 %745 }
 0x2e3   : > { %v762_v13 = vmul.f32 0.03125, %v746_v12  ;;  %v777_v14 = vmul.f32 %v2437_v9, %v2437_v9 }
 0x2e5   : > { %v2443_v16 = vsub.f32 %v2393_v35, %v762_v13  ;;  %v789_v15 = vsel %vm598_vm0, %v777_v14, 0.0 }
 0x2e6   : > { %790 = vadd.xlane.f32.xlu0 %v789_v15  ;;  %v749_v27 = vpop.xlane.xlu0 %748 }
 0x2e7   : > { %v763_v17 = vmul.f32 0.03125, %v749_v27  ;;  %v778_v18 = vmul.f32 %v2443_v16, %v2443_v16 }
 0x2e9   : > { %v2449_v19 = vsub.f32 %v2400_v43, %v763_v17  ;;  %v792_v20 = vsel %vm598_vm0, %v778_v18, 0.0 }
 0x2ea   : > { %793 = vadd.xlane.f32.xlu1 %v792_v20  ;;  %v752_v32 = vpop.xlane.xlu1 %751 }
 0x2eb   : > { %v764_v21 = vmul.f32 0.03125, %v752_v32  ;;  %v779_v22 = vmul.f32 %v2449_v19, %v2449_v19 }
 0x2ed   : > { %v2455_v39 = vsub.f32 %v2407_v50, %v764_v21  ;;  %v795_v23 = vsel %vm598_vm0, %v779_v22, 0.0 }
 0x2ee   : > { %796 = vadd.xlane.f32.xlu0 %v795_v23  ;;  %v755_v26 = vpop.xlane.xlu0 %754 }
 0x2ef   : > { %v780_v40 = vmul.f32 %v2455_v39, %v2455_v39  ;;  %v765_v28 = vmul.f32 0.03125, %v755_v26 }
 0x2f1   : > { %v798_v34 = vsel %vm598_vm0, %v780_v40, 0.0  ;;  %v2462_v29 = vsub.f32 %v2414_v48, %v765_v28 }
 0x2f2   : > { %799 = vadd.xlane.f32.xlu1 %v798_v34  ;;  %v758_v30 = vpop.xlane.xlu1 %757 }
 0x2f3   : > { %v766_v46 = vmul.f32 0.03125, %v758_v30  ;;  %v781_v57 = vmul.f32 %v2462_v29, %v2462_v29 }
 0x2f5   : > { %v2467_v58 = vsub.f32 %v2421_v42, %v766_v46  ;;  %v801_v36 = vsel %vm598_vm0, %v781_v57, 0.0 }
 0x2f6   : > { %802 = vadd.xlane.f32.xlu0 %v801_v36 }
 0x2f7   : > { %v782_v24 = vmul.f32 %v2467_v58, %v2467_v58 }
 0x2f9   : > { %v804_v0 = vsel %vm598_vm0, %v782_v24, 0.0 }
 0x2fa   : > { %805 = vadd.xlane.f32.xlu1 %v804_v0 }
 0x36b   : > { %v785_v38 = vpop.xlane.xlu0 %784 }
 0x36c   : > { %v807_v51 = vmul.f32 0.03125, %v785_v38 }
 0x36e   : > { %v815_v44 = vadd.f32 1e-05, %v807_v51 }
 0x36f   : > { %v788_v52 = vpop.xlane.xlu1 %787 }
 0x370   : > { %1901 = vrsqrt.f32 %v815_v44  ;;  %v808_v31 = vmul.f32 0.03125, %v788_v52 }
 0x372   : > { %v816_v53 = vadd.f32 1e-05, %v808_v31 }
 0x373   : > { %v791_v54 = vpop.xlane.xlu0 %790 }
 0x374   : > { %1903 = vrsqrt.f32 %v816_v53  ;;  %v809_v55 = vmul.f32 0.03125, %v791_v54 }
 0x376   : > { %v817_v56 = vadd.f32 1e-05, %v809_v55 }
 0x377   : > { %v794_v60 = vpop.xlane.xlu1 %793 }
 0x378   : > { %1905 = vrsqrt.f32 %v817_v56  ;;  %v810_v61 = vmul.f32 0.03125, %v794_v60 }
 0x37a   : > { %v1902_v62 = vpop.eup %1901  ;;  %v818_v3 = vadd.f32 1e-05, %v810_v61 }
 0x37b   : > { %v797_v4 = vpop.xlane.xlu0 %796  ;;  %v831_v2 = vmul.f32 %v1902_v62, %v2426_v63 }
 0x37c   : > { %1907 = vrsqrt.f32 %v818_v3  ;;  %v811_v6 = vmul.f32 0.03125, %v797_v4 }
 0x37d   : > { %v845_v7 = vmul.f32 %v1567_v1, %v831_v2 }
 0x37e   : > { %v1904_v8 = vpop.eup %1903  ;;  %v819_v10 = vadd.f32 1e-05, %v811_v6 }
 0x37f   : > { %v800_v12 = vpop.xlane.xlu1 %799  ;;  %1684 = vmatprep.mubr.msk.f32.mxu1 %vm598_vm0, %v845_v7  ;;  %v832_v13 = vmul.f32 %v1904_v8, %v2431_v5 }
 0x380   : > { %1909 = vrsqrt.f32 %v819_v10  ;;  %v812_v14 = vmul.f32 0.03125, %v800_v12 }
 0x381   : > { %v846_v15 = vmul.f32 %v1567_v1, %v832_v13 }
 0x382   : > { %v1906_v27 = vpop.eup %1905  ;;  %v820_v17 = vadd.f32 1e-05, %v812_v14 }
 0x383   : > { %1685 = vmatmul.mubr.msk.f32.vlgmr.msra.gmra.mrb[0].mxu1 %vm598_vm0, %v846_v15  ;;  %v833_v18 = vmul.f32 %v1906_v27, %v2437_v9  ;;  %v803_v63 = vpop.xlane.xlu0 %802 }
 0x384   : > { %1911 = vrsqrt.f32 %v820_v17  ;;  %v813_v20 = vmul.f32 0.03125, %v803_v63 }
 0x385   : > { %v847_v32 = vmul.f32 %v1567_v1, %v833_v18 }
 0x386   : > { %v1908_v21 = vpop.eup %1907  ;;  %v821_v22 = vadd.f32 1e-05, %v813_v20 }
 0x387   : > { %1687 = vmatprep.mubr.msk.f32.mxu1 %vm598_vm0, %v847_v32  ;;  %v834_v23 = vmul.f32 %v1908_v21, %v2443_v16  ;;  %v806_v5 = vpop.xlane.xlu1 %805 }
 0x388   : > { %1913 = vrsqrt.f32 %v821_v22  ;;  %v814_v26 = vmul.f32 0.03125, %v806_v5 }
 0x389   : > { %v848_v40 = vmul.f32 %v1567_v1, %v834_v23 }
 0x38a   : > { %v1910_v28 = vpop.eup %1909  ;;  %v822_v34 = vadd.f32 1e-05, %v814_v26 }
 0x38b   : > { %1688 = vmatmul.mubr.msk.f32.gmra.mrb[2].mxu1 %vm598_vm0, %v848_v40  ;;  %v835_v9 = vmul.f32 %v1910_v28, %v2449_v19 }
 0x38c   : > { %1915 = vrsqrt.f32 %v822_v34 }
 0x38d   : > { %v849_v30 = vmul.f32 %v1567_v1, %v835_v9 }
 0x38e   : > { %v1912_v46 = vpop.eup %1911 }
 0x38f   : > { %1690 = vmatprep.mubr.msk.f32.mxu1 %vm598_vm0, %v849_v30  ;;  %v836_v57 = vmul.f32 %v1912_v46, %v2455_v39 }
 0x391   : > { %v850_v36 = vmul.f32 %v1567_v1, %v836_v57 }
 0x392   : > { %v1914_v24 = vpop.eup %1913 }
 0x393   : > { %1691 = vmatmul.mubr.msk.f32.gmra.mrb[4].mxu1 %vm598_vm0, %v850_v36  ;;  %v837_v16 = vmul.f32 %v1914_v24, %v2462_v29 }
 0x395   : > { %v851_v37 = vmul.f32 %v1567_v1, %v837_v16 }
 0x396   : > { %v1916_v59 = vpop.eup %1915 }
 0x397   : > { %1693 = vmatprep.mubr.msk.f32.mxu1 %vm598_vm0, %v851_v37  ;;  %v838_v0 = vmul.f32 %v1916_v59, %v2467_v58 }
 0x399   : > { %v852_v19 = vmul.f32 %v1567_v1, %v838_v0 }
 0x39b   : > { %1694 = vmatmul.mubr.msk.f32.gmra.mrb[6].mxu1 %vm598_vm0, %v852_v19 }
 0x456   : > { %v1686_v45 = vpop.f32.mrb[0].mxu1 }
 0x457   : > { %v2504_v47 = vmul.f32 0.70710677, %v1686_v45  ;;  %v947_v41 = vpop.f32.mrb[1].mxu1  ;;  %v2541_v57 = vmul.f32 0.5, %v1686_v45 }
 0x458   : > { %v2506_v39 = vmul.f32 0.70710677, %v947_v41  ;;  %v2543_v36 = vmul.f32 0.5, %v947_v41 }
 0x459   : > { %v1003_v49 = vand.u32 2147483647, %v2504_v47  ;;  %vm1163_vm1 = vcmp.ge.f32.partialorder %v2504_v47, 0.0 }
 0x45a   : > { %v1002_v38 = vand.u32 2147483647, %v2506_v39  ;;  %vm1162_vm2 = vcmp.ge.f32.partialorder %v2506_v39, 0.0 }
 0x45b   : > { %v1011_v29 = vmul.f32 0.3275911, %v1003_v49  ;;  %v1115_v56 = vsub.f32 0.0, %v1003_v49 }
 0x45c   : > { %v1010_v51 = vmul.f32 0.3275911, %v1002_v38  ;;  %v1114_v4 = vsub.f32 0.0, %v1002_v38 }
 0x45d   : > { %v1019_v44 = vadd.f32 1.0, %v1011_v29  ;;  %v1123_v1 = vmul.f32 %v1115_v56, %v1003_v49 }
 0x45e   : > { %v1018_v52 = vadd.f32 1.0, %v1010_v51  ;;  %v1689_v31 = vpop.f32.mrb[2].mxu1  ;;  %v1122_v17 = vmul.f32 %v1114_v4, %v1002_v38 }
 0x45f   : > { %1917 = vrcp.f32 %v1019_v44  ;;  %v2510_v58 = vmul.f32 0.70710677, %v1689_v31  ;;  %v2512_v53 = vpop.f32.mrb[3].mxu1  ;;  %v1132_v27 = vmul.f32 1.442695, %v1123_v1  ;;  %v2561_v56 = vmul.f32 0.5, %v1689_v31 }
 0x460   : > { %1919 = vrcp.f32 %v1018_v52  ;;  %v2515_v54 = vmul.f32 0.70710677, %v2512_v53  ;;  %v1130_v28 = vmul.f32 1.442695, %v1122_v17 }
 0x461   : > { %v1005_v55 = vand.u32 2147483647, %v2510_v58  ;;  %vm1165_vm4 = vcmp.ge.f32.partialorder %v2510_v58, 0.0 }
 0x462   : > { %v1004_v60 = vand.u32 2147483647, %v2515_v54  ;;  %vm1164_vm5 = vcmp.ge.f32.partialorder %v2515_v54, 0.0 }
 0x463   : > { %v1013_v61 = vmul.f32 0.3275911, %v1005_v55  ;;  %v1117_v13 = vsub.f32 0.0, %v1005_v55 }
 0x464   : > { %v1012_v62 = vmul.f32 0.3275911, %v1004_v60  ;;  %v1116_v5 = vsub.f32 0.0, %v1004_v60 }
 0x465   : > { %v1021_v3 = vadd.f32 1.0, %v1013_v61  ;;  %v1125_v23 = vmul.f32 %v1117_v13, %v1005_v55 }
 0x466   : > { %v1020_v2 = vadd.f32 1.0, %v1012_v62  ;;  %v2519_v6 = vpop.f32.mrb[4].mxu1  ;;  %v1124_v0 = vmul.f32 %v1116_v5, %v1004_v60 }
 0x467   : > { %1921 = vrcp.f32 %v1021_v3  ;;  %v2522_v7 = vmul.f32 0.70710677, %v2519_v6  ;;  %v2524_v8 = vpop.f32.mrb[5].mxu1  ;;  %v1136_v59 = vmul.f32 1.442695, %v1125_v23 }
 0x468   : > { %1923 = vrcp.f32 %v1020_v2  ;;  %v2527_v10 = vmul.f32 0.70710677, %v2524_v8  ;;  %v1134_v3 = vmul.f32 1.442695, %v1124_v0 }
 0x469   : > { %v2529_v12 = vpop.eup %1917  ;;  %v1007_v14 = vand.u32 2147483647, %v2522_v7  ;;  %1925 = vpow2.f32 %v1132_v27  ;;  %vm1167_vm6 = vcmp.ge.f32.partialorder %v2522_v7, 0.0 }
 0x46a   : > { %v2532_v15 = vpop.eup %1919  ;;  %v1006_v18 = vand.u32 2147483647, %v2527_v10  ;;  %v1043_v63 = vmul.f32 1.0614054, %v2529_v12  ;;  %vm1166_vm7 = vcmp.ge.f32.partialorder %v2527_v10, 0.0 }
 0x46b   : > { %v1015_v20 = vmul.f32 0.3275911, %v1007_v14  ;;  %v1042_v32 = vmul.f32 1.0614054, %v2532_v15  ;;  %v1119_v45 = vsub.f32 0.0, %v1007_v14 }
 0x46c   : > { %v1014_v21 = vmul.f32 0.3275911, %v1006_v18  ;;  %v1051_v22 = vadd.f32 -1.4531521, %v1043_v63  ;;  %v1118_v51 = vsub.f32 0.0, %v1006_v18 }
 0x46d   : > { %v1023_v26 = vadd.f32 1.0, %v1015_v20  ;;  %v1050_v40 = vadd.f32 -1.4531521, %v1042_v32  ;;  %v1127_v2 = vmul.f32 %v1119_v45, %v1007_v14 }
 0x46e   : > { %v1022_v34 = vadd.f32 1.0, %v1014_v21  ;;  %v1059_v9 = vmul.f32 %v2529_v12, %v1051_v22  ;;  %v2538_v30 = vpop.f32.mrb[6].mxu1  ;;  %v1126_v63 = vmul.f32 %v1118_v51, %v1006_v18 }
 0x46f   : > { %1927 = vrcp.f32 %v1023_v26  ;;  %v1058_v46 = vmul.f32 %v2532_v15, %v1050_v40  ;;  %v2546_v24 = vmul.f32 0.70710677, %v2538_v30  ;;  %v2548_v16 = vpop.f32.mrb[7].mxu1 }
 0x470   : > { %1929 = vrcp.f32 %v1022_v34  ;;  %v2553_v19 = vmul.f32 0.70710677, %v2548_v16  ;;  %v1067_v49 = vadd.f32 1.4214138, %v1059_v9  ;;  %v1138_v51 = vmul.f32 1.442695, %v1126_v63 }
 0x471   : > { %v2550_v37 = vpop.eup %1921  ;;  %1931 = vpow2.f32 %v1130_v28  ;;  %v1009_v41 = vand.u32 2147483647, %v2546_v24  ;;  %v1066_v29 = vadd.f32 1.4214138, %v1058_v46  ;;  %vm1169_vm8 = vcmp.ge.f32.partialorder %v2546_v24, 0.0 }
 0x472   : > { %v2555_v38 = vpop.eup %1923  ;;  %v1008_v44 = vand.u32 2147483647, %v2553_v19  ;;  %v1075_v52 = vmul.f32 %v2529_v12, %v1067_v49  ;;  %v1045_v55 = vmul.f32 1.0614054, %v2550_v37  ;;  %1933 = vpow2.f32 %v1136_v59 }
 0x473   : > { %v1017_v60 = vmul.f32 0.3275911, %v1009_v41  ;;  %v1074_v61 = vmul.f32 %v2532_v15, %v1066_v29  ;;  %v1044_v62 = vmul.f32 1.0614054, %v2555_v38  ;;  %v1926_v31 = vpop.eup %1925  ;;  %v1121_v22 = vsub.f32 0.0, %v1009_v41 }
 0x474   : > { %v1016_v1 = vmul.f32 0.3275911, %v1008_v44  ;;  %v1083_v4 = vadd.f32 -0.28449672, %v1075_v52  ;;  %v1053_v17 = vadd.f32 -1.4531521, %v1045_v55 }
 0x475   : > { %v1025_v13 = vadd.f32 1.0, %v1017_v60  ;;  %v1082_v27 = vadd.f32 -0.28449672, %v1074_v61  ;;  %v1052_v21 = vadd.f32 -1.4531521, %v1044_v62  ;;  %v1120_v40 = vsub.f32 0.0, %v1008_v44 }
 0x476   : > { %v1024_v20 = vadd.f32 1.0, %v1016_v1  ;;  %v1091_v32 = vmul.f32 %v2529_v12, %v1083_v4  ;;  %v1061_v5 = vmul.f32 %v2550_v37, %v1053_v17  ;;  %v1140_v59 = vmul.f32 1.442695, %v1127_v2 }
 0x477   : > { %1935 = vrcp.f32 %v1025_v13  ;;  %v1090_v23 = vmul.f32 %v2532_v15, %v1082_v27  ;;  %v1060_v28 = vmul.f32 %v2555_v38, %v1052_v21  ;;  %v1129_v61 = vmul.f32 %v1121_v22, %v1009_v41 }
 0x478   : > { %1937 = vrcp.f32 %v1024_v20  ;;  %v1099_v14 = vadd.f32 0.2548296, %v1091_v32  ;;  %v1069_v9 = vadd.f32 1.4214138, %v1061_v5  ;;  %v1128_v4 = vmul.f32 %v1120_v40, %v1008_v44 }
 0x479   : > { %v2568_v26 = vpop.eup %1927  ;;  %1939 = vpow2.f32 %v1134_v3  ;;  %v1098_v18 = vadd.f32 0.2548296, %v1090_v23  ;;  %v1068_v49 = vadd.f32 1.4214138, %v1060_v28  ;;  %v1144_v21 = vmul.f32 1.442695, %v1129_v61 }
 0x47a   : > { %v2571_v34 = vpop.eup %1929  ;;  %v1047_v46 = vmul.f32 1.0614054, %v2568_v26  ;;  %v1107_v0 = vmul.f32 %v2529_v12, %v1099_v14  ;;  %v1077_v55 = vmul.f32 %v2550_v37, %v1069_v9  ;;  %1941 = vpow2.f32 %v1140_v59 }
 0x47b   : > { %v1046_v45 = vmul.f32 1.0614054, %v2571_v34  ;;  %v1932_v29 = vpop.eup %1931  ;;  %v1106_v52 = vmul.f32 %v2532_v15, %v1098_v18  ;;  %v1076_v3 = vmul.f32 %v2555_v38, %v1068_v49  ;;  %1943 = vpow2.f32 %v1138_v51 }
 0x47c   : > { %v1055_v60 = vadd.f32 -1.4531521, %v1047_v46  ;;  %v1147_v62 = vmul.f32 %v1926_v31, %v1107_v0  ;;  %v1085_v13 = vadd.f32 -0.28449672, %v1077_v55  ;;  %v1934_v27 = vpop.eup %1933  ;;  %v1142_v5 = vmul.f32 1.442695, %v1128_v4 }
 0x47d   : > { %v1054_v1 = vadd.f32 -1.4531521, %v1046_v45  ;;  %v1146_v2 = vmul.f32 %v1932_v29, %v1106_v52  ;;  %v1084_v63 = vadd.f32 -0.28449672, %v1076_v3  ;;  %1945 = vpow2.f32 %v1144_v21 }
 0x47e   : > { %v1063_v12 = vmul.f32 %v2568_v26, %v1055_v60  ;;  %v1155_v17 = vsub.f32 1.0, %v1147_v62  ;;  %v1093_v41 = vmul.f32 %v2550_v37, %v1085_v13  ;;  %1947 = vpow2.f32 %v1142_v5 }
 0x47f   : > { %v1062_v15 = vmul.f32 %v2571_v34, %v1054_v1  ;;  %v1154_v20 = vsub.f32 1.0, %v1146_v2  ;;  %v1092_v22 = vmul.f32 %v2555_v38, %v1084_v63  ;;  %vm1168_vm9 = vcmp.ge.f32.partialorder %v2553_v19, 0.0 }
 0x480   : > { %v1071_v32 = vadd.f32 1.4214138, %v1063_v12  ;;  %v1171_v31 = vsub.f32 0.0, %v1155_v17  ;;  %v1101_v14 = vadd.f32 0.2548296, %v1093_v41 }
 0x481   : > { %v1070_v44 = vadd.f32 1.4214138, %v1062_v15  ;;  %v2585_v23 = vpop.eup %1935  ;;  %v1170_v40 = vsub.f32 0.0, %v1154_v20  ;;  %v1100_v46 = vadd.f32 0.2548296, %v1092_v22 }
 0x482   : > { %v1079_v28 = vmul.f32 %v2568_v26, %v1071_v32  ;;  %v2588_v18 = vpop.eup %1937  ;;  %v1179_v9 = vsel %vm1163_vm1, %v1155_v17, %v1171_v31  ;;  %v1049_v0 = vmul.f32 1.0614054, %v2585_v23  ;;  %v1109_v51 = vmul.f32 %v2550_v37, %v1101_v14 }
 0x483   : > { %v1078_v59 = vmul.f32 %v2571_v34, %v1070_v44  ;;  %v1940_v49 = vpop.eup %1939  ;;  %v1187_v45 = vadd.f32 1.0, %v1179_v9  ;;  %v1178_v29 = vsel %vm1162_vm2, %v1154_v20, %v1170_v40  ;;  %v1108_v60 = vmul.f32 %v2555_v38, %v1100_v46 }
 0x484   : > { %v1087_v52 = vadd.f32 -0.28449672, %v1079_v28  ;;  %v1186_v55 = vadd.f32 1.0, %v1178_v29  ;;  %v1057_v62 = vadd.f32 -1.4531521, %v1049_v0  ;;  %v1149_v3 = vmul.f32 %v1934_v27, %v1109_v51  ;;  %v1942_v63 = vpop.eup %1941 }
 0x485   : > { %v1086_v61 = vadd.f32 -0.28449672, %v1078_v59  ;;  %v2600_v47 = vmul.f32 %v1187_v45, %v2541_v57  ;;  %v1048_v4 = vmul.f32 1.0614054, %v2588_v18  ;;  %v1148_v39 = vmul.f32 %v1940_v49, %v1108_v60  ;;  %v1944_v41 = vpop.eup %1943 }
 0x486   : > { %v1095_v1 = vmul.f32 %v2568_v26, %v1087_v52  ;;  %v2605_v2 = vmul.f32 %v1186_v55, %v2543_v36  ;;  %v1065_v13 = vmul.f32 %v2585_v23, %v1057_v62  ;;  %v1157_v12 = vsub.f32 1.0, %v1149_v3 }
 0x487   : > { %v1094_v37 = vmul.f32 %v2571_v34, %v1086_v61  ;;  %v1207_v38 = vsel %vm1203_vm3, %v2600_v47, 0.0  ;;  %v1056_v57 = vadd.f32 -1.4531521, %v1048_v4  ;;  %v1156_v15 = vsub.f32 1.0, %v1148_v39 }
 0x488   : > { %v1103_v17 = vadd.f32 0.2548296, %v1095_v1  ;;  %1208 = vadd.xlane.f32.xlu1 %v1207_v38  ;;  %v1204_v27 = vsel %vm1203_vm3, %v2605_v2, 0.0  ;;  %v1073_v36 = vadd.f32 1.4214138, %v1065_v13  ;;  %v1173_v32 = vsub.f32 0.0, %v1157_v12 }
 0x489   : > { %v1102_v20 = vadd.f32 0.2548296, %v1094_v37  ;;  %1205 = vadd.xlane.f32.xlu0 %v1204_v27  ;;  %v1064_v22 = vmul.f32 %v2588_v18, %v1056_v57  ;;  %v1172_v44 = vsub.f32 0.0, %v1156_v15  ;;  %v991_v1 = vmul.f32 0.5, %v2519_v6  ;;  %v1946_v37 = vpop.eup %1945 }
 0x48a   : > { %v1111_v31 = vmul.f32 %v2568_v26, %v1103_v17  ;;  %v1081_v14 = vmul.f32 %v2585_v23, %v1073_v36  ;;  %v1181_v28 = vsel %vm1165_vm4, %v1157_v12, %v1173_v32  ;;  %v988_v26 = vmul.f32 0.5, %v2512_v53  ;;  %v1948_v57 = vpop.eup %1947 }
 0x48b   : > { %v1110_v40 = vmul.f32 %v2571_v34, %v1102_v20  ;;  %v1072_v46 = vadd.f32 1.4214138, %v1064_v22  ;;  %v1189_v21 = vadd.f32 1.0, %v1181_v28  ;;  %v1180_v59 = vsel %vm1164_vm5, %v1156_v15, %v1172_v44 }
 0x48c   : > { %v1151_v9 = vmul.f32 %v1942_v63, %v1111_v31  ;;  %v1089_v49 = vadd.f32 -0.28449672, %v1081_v14  ;;  %v1188_v45 = vadd.f32 1.0, %v1180_v59  ;;  %v990_v13 = vmul.f32 0.5, %v2524_v8 }
 0x48d   : > { %v1150_v0 = vmul.f32 %v1944_v41, %v1110_v40  ;;  %v1080_v54 = vmul.f32 %v2588_v18, %v1072_v46  ;;  %v2623_v34 = vmul.f32 %v1189_v21, %v2561_v56  ;;  %v993_v32 = vmul.f32 0.5, %v2538_v30 }
 0x48e   : > { %v1159_v29 = vsub.f32 1.0, %v1151_v9  ;;  %v1097_v5 = vmul.f32 %v2585_v23, %v1089_v49  ;;  %v2626_v58 = vmul.f32 %v1188_v45, %v988_v26  ;;  %v992_v40 = vmul.f32 0.5, %v2548_v16 }
 0x48f   : > { %v1158_v51 = vsub.f32 1.0, %v1150_v0  ;;  %v1088_v55 = vadd.f32 -0.28449672, %v1080_v54  ;;  %v1213_v60 = vsel %vm1203_vm3, %v2623_v34, 0.0 }
 0x490   : > { %v1175_v52 = vsub.f32 0.0, %v1159_v29  ;;  %v1105_v61 = vadd.f32 0.2548296, %v1097_v5  ;;  %1214 = vadd.xlane.f32.xlu1 %v1213_v60  ;;  %v1210_v56 = vsel %vm1203_vm3, %v2626_v58, 0.0 }
 0x491   : > { %v1174_v53 = vsub.f32 0.0, %v1158_v51  ;;  %v1096_v3 = vmul.f32 %v2588_v18, %v1088_v55  ;;  %1211 = vadd.xlane.f32.xlu0 %v1210_v56 }
 0x492   : > { %v1183_v62 = vsel %vm1167_vm6, %v1159_v29, %v1175_v52  ;;  %v1113_v7 = vmul.f32 %v2585_v23, %v1105_v61 }
 0x493   : > { %v1191_v4 = vadd.f32 1.0, %v1183_v62  ;;  %v1182_v39 = vsel %vm1166_vm7, %v1158_v51, %v1174_v53  ;;  %v1104_v12 = vadd.f32 0.2548296, %v1096_v3 }
 0x494   : > { %v1190_v38 = vadd.f32 1.0, %v1182_v39  ;;  %v1153_v17 = vmul.f32 %v1946_v37, %v1113_v7 }
 0x495   : > { %v1199_v10 = vmul.f32 %v1191_v4, %v991_v1  ;;  %v1112_v27 = vmul.f32 %v2588_v18, %v1104_v12  ;;  %v1324_v12 = vld [vmem:[%s2811_s7 + $0x8] sm:$0xff] }
 0x496   : > { %v1198_v63 = vmul.f32 %v1190_v38, %v990_v13  ;;  %v1161_v20 = vsub.f32 1.0, %v1153_v17  ;;  %v1323_v38 = vld [vmem:[%s2811_s7] sm:$0xff] }
 0x497   : > { %v1219_v15 = vsel %vm1203_vm3, %v1199_v10, 0.0  ;;  %v1152_v36 = vmul.f32 %v1948_v57, %v1112_v27  ;;  %v1764_v57 = vpack.c.bf16 %v1324_v12, %v1323_v38 }
 0x498   : > { %1220 = vadd.xlane.f32.xlu1 %v1219_v15  ;;  %v1216_v6 = vsel %vm1203_vm3, %v1198_v63, 0.0  ;;  %v1177_v23 = vsub.f32 0.0, %v1161_v20 }
 0x499   : > { %1217 = vadd.xlane.f32.xlu0 %v1216_v6  ;;  %v1160_v8 = vsub.f32 1.0, %v1152_v36  ;;  %1765 = vmatprep.subr.bf16.mxu1 %v1764_v57  ;;  %v1326_v6 = vld [vmem:[%s2811_s7 + $0x18] sm:$0xff] }
 0x49a   : > { %v1185_v41 = vsel %vm1169_vm8, %v1161_v20, %v1177_v23  ;;  %1767 = vmatpush3.bf16.msra.mxu1 %v1764_v57  ;;  %v1325_v20 = vld [vmem:[%s2811_s7 + $0x10] sm:$0xff] }
 0x49b   : > { %v1193_v31 = vadd.f32 1.0, %v1185_v41  ;;  %v1176_v22 = vsub.f32 0.0, %v1160_v8  ;;  %v1768_v23 = vpack.c.bf16 %v1326_v6, %v1325_v20 }
 0x49d   : > { %v1201_v18 = vmul.f32 %v1193_v31, %v993_v32  ;;  %v1184_v44 = vsel %vm1168_vm9, %v1160_v8, %v1176_v22  ;;  %1769 = vmatprep.subr.bf16.mxu1 %v1768_v23  ;;  %v1327_v32 = vld [vmem:[%s2811_s7 + $0x20] sm:$0xff]  ;;  %v1328_v31 = vld [vmem:[%s2811_s7 + $0x28] sm:$0xff] }
 0x49e   : > { %v1192_v14 = vadd.f32 1.0, %v1184_v44  ;;  %1771 = vmatpush3.bf16.msra.mxu1 %v1768_v23  ;;  %v1772_v22 = vpack.c.bf16 %v1328_v31, %v1327_v32  ;;  %v1330_v44 = vld [vmem:[%s2811_s7 + $0x38] sm:$0xff] }
 0x49f   : > { %v1225_v28 = vsel %vm1203_vm3, %v1201_v18, 0.0 }
 0x4a0   : > { %1226 = vadd.xlane.f32.xlu1 %v1225_v28  ;;  %v1200_v9 = vmul.f32 %v1192_v14, %v992_v40  ;;  %1773 = vmatprep.subr.bf16.mxu1 %v1772_v22 }
 0x4a2   : > { %v1222_v46 = vsel %vm1203_vm3, %v1200_v9, 0.0  ;;  %1775 = vmatpush3.bf16.msra.mxu1 %v1772_v22 }
 0x4a3   : > { %1223 = vadd.xlane.f32.xlu0 %v1222_v46 }
 0x515   : > { %v1209_v24 = vpop.xlane.xlu1 %1208 }
 0x516   : > { %v1230_v21 = vmul.f32 0.015625, %v1209_v24  ;;  %v1206_v59 = vpop.xlane.xlu0 %1205 }
 0x517   : > { %v1229_v30 = vmul.f32 0.015625, %v1206_v59 }
 0x518   : > { %v2648_v0 = vsub.f32 %v2600_v47, %v1230_v21 }
 0x519   : > { %v2651_v19 = vsub.f32 %v2605_v2, %v1229_v30 }
 0x51a   : > { %v1246_v16 = vmul.f32 %v2648_v0, %v2648_v0 }
 0x51b   : > { %v1245_v49 = vmul.f32 %v2651_v19, %v2651_v19 }
 0x51c   : > { %v1256_v26 = vsel %vm1203_vm3, %v1246_v16, 0.0 }
 0x51d   : > { %1257 = vadd.xlane.f32.xlu1 %v1256_v26  ;;  %v1253_v45 = vsel %vm1203_vm3, %v1245_v49, 0.0  ;;  %v1215_v29 = vpop.xlane.xlu1 %1214 }
 0x51e   : > { %1254 = vadd.xlane.f32.xlu0 %v1253_v45  ;;  %v1232_v54 = vmul.f32 0.015625, %v1215_v29  ;;  %v1212_v51 = vpop.xlane.xlu0 %1211 }
 0x51f   : > { %v1231_v47 = vmul.f32 0.015625, %v1212_v51 }
 0x520   : > { %v2660_v5 = vsub.f32 %v2623_v34, %v1232_v54 }
 0x521   : > { %v2663_v2 = vsub.f32 %v2626_v58, %v1231_v47  ;;  %v1576_v47 = vld [vmem:[%s2810_s6] ss:$0 sm:$0xff] }
 0x522   : > { %v1248_v52 = vmul.f32 %v2660_v5, %v2660_v5 }
 0x523   : > { %v1247_v60 = vmul.f32 %v2663_v2, %v2663_v2 }
 0x524   : > { %v1262_v61 = vsel %vm1203_vm3, %v1248_v52, 0.0 }
 0x525   : > { %v1221_v55 = vpop.xlane.xlu1 %1220  ;;  %1263 = vadd.xlane.f32.xlu1 %v1262_v61  ;;  %v1259_v62 = vsel %vm1203_vm3, %v1247_v60, 0.0 }
 0x526   : > { %v1234_v53 = vmul.f32 0.015625, %v1221_v55  ;;  %v1218_v56 = vpop.xlane.xlu0 %1217  ;;  %1260 = vadd.xlane.f32.xlu0 %v1259_v62 }
 0x527   : > { %v1233_v3 = vmul.f32 0.015625, %v1218_v56 }
 0x528   : > { %v2671_v34 = vsub.f32 %v1199_v10, %v1234_v53 }
 0x529   : > { %v2673_v58 = vsub.f32 %v1198_v63, %v1233_v3 }
 0x52a   : > { %v1250_v1 = vmul.f32 %v2671_v34, %v2671_v34 }
 0x52b   : > { %v1249_v4 = vmul.f32 %v2673_v58, %v2673_v58 }
 0x52c   : > { %v1268_v39 = vsel %vm1203_vm3, %v1250_v1, 0.0 }
 0x52d   : > { %1269 = vadd.xlane.f32.xlu1 %v1268_v39  ;;  %v1265_v7 = vsel %vm1203_vm3, %v1249_v4, 0.0  ;;  %v1227_v37 = vpop.xlane.xlu1 %1226 }
 0x52e   : > { %1266 = vadd.xlane.f32.xlu0 %v1265_v7  ;;  %v1236_v13 = vmul.f32 0.015625, %v1227_v37 }
 0x530   : > { %v2687_v10 = vsub.f32 %v1201_v18, %v1236_v13  ;;  %v1224_v17 = vpop.xlane.xlu0 %1223  ;;  %v1329_v18 = vld [vmem:[%s2811_s7 + $0x30] sm:$0xff] }
 0x531   : > { %v1235_v63 = vmul.f32 0.015625, %v1224_v17  ;;  %v1776_v40 = vpack.c.bf16 %v1330_v44, %v1329_v18 }
 0x532   : > { %v1252_v27 = vmul.f32 %v2687_v10, %v2687_v10 }
 0x533   : > { %v2691_v15 = vsub.f32 %v1200_v9, %v1235_v63  ;;  %1777 = vmatprep.subr.bf16.mxu1 %v1776_v40 }
 0x534   : > { %v1274_v36 = vsel %vm1203_vm3, %v1252_v27, 0.0  ;;  %1779 = vmatpush3.bf16.msra.mxu1 %v1776_v40 }
 0x535   : > { %1275 = vadd.xlane.f32.xlu1 %v1274_v36  ;;  %v1251_v8 = vmul.f32 %v2691_v15, %v2691_v15 }
 0x537   : > { %v1271_v41 = vsel %vm1203_vm3, %v1251_v8, 0.0 }
 0x538   : > { %1272 = vadd.xlane.f32.xlu0 %v1271_v41 }
 0x5aa   : > { %v1258_v14 = vpop.xlane.xlu1 %1257 }
 0x5ab   : > { %v1278_v28 = vmul.f32 0.015625, %v1258_v14  ;;  %v1255_v9 = vpop.xlane.xlu0 %1254 }
 0x5ac   : > { %v1277_v46 = vmul.f32 0.015625, %v1255_v9 }
 0x5ad   : > { %v1286_v24 = vadd.f32 1e-05, %v1278_v28 }
 0x5ae   : > { %v1285_v21 = vadd.f32 1e-05, %v1277_v46 }
 0x5af   : > { %1949 = vrsqrt.f32 %v1286_v24 }
 0x5b0   : > { %1951 = vrsqrt.f32 %v1285_v21 }
 0x5b2   : > { %v1264_v59 = vpop.xlane.xlu1 %1263 }
 0x5b3   : > { %v1280_v30 = vmul.f32 0.015625, %v1264_v59  ;;  %v1261_v16 = vpop.xlane.xlu0 %1260 }
 0x5b4   : > { %v1279_v49 = vmul.f32 0.015625, %v1261_v16 }
 0x5b5   : > { %v1288_v26 = vadd.f32 1e-05, %v1280_v30 }
 0x5b6   : > { %v1287_v45 = vadd.f32 1e-05, %v1279_v49 }
 0x5b7   : > { %1953 = vrsqrt.f32 %v1288_v26 }
 0x5b8   : > { %1955 = vrsqrt.f32 %v1287_v45 }
 0x5b9   : > { %v1950_v29 = vpop.eup %1949 }
 0x5ba   : > { %v1270_v54 = vpop.xlane.xlu1 %1269  ;;  %v1952_v51 = vpop.eup %1951  ;;  %v1302_v52 = vmul.f32 %v1950_v29, %v2648_v0 }
 0x5bb   : > { %v1282_v55 = vmul.f32 0.015625, %v1270_v54  ;;  %v1267_v60 = vpop.xlane.xlu0 %1266  ;;  %v1301_v61 = vmul.f32 %v1952_v51, %v2651_v19 }
 0x5bc   : > { %v1281_v53 = vmul.f32 0.015625, %v1267_v60  ;;  %v1316_v1 = vmul.f32 %v1576_v47, %v1302_v52 }
 0x5bd   : > { %v1290_v56 = vadd.f32 1e-05, %v1282_v55  ;;  %v1315_v3 = vmul.f32 %v1576_v47, %v1301_v61 }
 0x5be   : > { %v1289_v62 = vadd.f32 1e-05, %v1281_v53 }
 0x5bf   : > { %1957 = vrsqrt.f32 %v1290_v56  ;;  %1712 = vmatprep.mubr.msk.f32.mxu1 %vm1203_vm3, %v1315_v3 }
 0x5c0   : > { %1959 = vrsqrt.f32 %v1289_v62  ;;  %1713 = vmatmul.mubr.msk.f32.vlgmr.msra.gmra.mrb[8].mxu1 %vm1203_vm3, %v1316_v1 }
 0x5c1   : > { %v1954_v4 = vpop.eup %1953 }
 0x5c2   : > { %v1276_v39 = vpop.xlane.xlu1 %1275  ;;  %v1956_v7 = vpop.eup %1955  ;;  %v1304_v0 = vmul.f32 %v1954_v4, %v2660_v5 }
 0x5c3   : > { %v1284_v37 = vmul.f32 0.015625, %v1276_v39  ;;  %v1303_v13 = vmul.f32 %v1956_v7, %v2663_v2 }
 0x5c4   : > { %v1318_v57 = vmul.f32 %v1576_v47, %v1304_v0 }
 0x5c5   : > { %v1292_v38 = vadd.f32 1e-05, %v1284_v37  ;;  %v1273_v19 = vpop.xlane.xlu0 %1272  ;;  %v1317_v17 = vmul.f32 %v1576_v47, %v1303_v13 }
 0x5c6   : > { %v1283_v12 = vmul.f32 0.015625, %v1273_v19 }
 0x5c7   : > { %1961 = vrsqrt.f32 %v1292_v38  ;;  %1715 = vmatprep.mubr.msk.f32.mxu1 %vm1203_vm3, %v1317_v17 }
 0x5c8   : > { %v1291_v27 = vadd.f32 1e-05, %v1283_v12  ;;  %1716 = vmatmul.mubr.msk.f32.gmra.mrb[10].mxu1 %vm1203_vm3, %v1318_v57 }
 0x5c9   : > { %v1958_v63 = vpop.eup %1957 }
 0x5ca   : > { %v1960_v20 = vpop.eup %1959  ;;  %v1306_v6 = vmul.f32 %v1958_v63, %v2671_v34  ;;  %1963 = vrsqrt.f32 %v1291_v27 }
 0x5cb   : > { %v1305_v5 = vmul.f32 %v1960_v20, %v2673_v58 }
 0x5cc   : > { %v1320_v36 = vmul.f32 %v1576_v47, %v1306_v6 }
 0x5cd   : > { %v1319_v2 = vmul.f32 %v1576_v47, %v1305_v5 }
 0x5cf   : > { %1718 = vmatprep.mubr.msk.f32.mxu1 %vm1203_vm3, %v1319_v2 }
 0x5d0   : > { %1719 = vmatmul.mubr.msk.f32.gmra.mrb[12].mxu1 %vm1203_vm3, %v1320_v36 }
 0x5d1   : > { %v1962_v23 = vpop.eup %1961 }
 0x5d2   : > { %v1308_v41 = vmul.f32 %v1962_v23, %v2687_v10 }
 0x5d4   : > { %v1964_v8 = vpop.eup %1963  ;;  %v1322_v22 = vmul.f32 %v1576_v47, %v1308_v41 }
 0x5d5   : > { %v1307_v32 = vmul.f32 %v1964_v8, %v2691_v15 }
 0x5d7   : > { %v1321_v31 = vmul.f32 %v1576_v47, %v1307_v32 }
 0x5d9   : > { %1721 = vmatprep.mubr.msk.f32.mxu1 %vm1203_vm3, %v1321_v31 }
 0x5da   : > { %1722 = vmatmul.mubr.msk.f32.gmra.mrb[14].mxu1 %vm1203_vm3, %v1322_v22 }
 0x693   : > { %v1714_v34 = vpop.f32.mrb[8].mxu1 }
 0x694   : > { %v1427_v58 = vadd.f32 %v1714_v34, %v2379_v33  ;;  %v1421_v18 = vpop.f32.mrb[9].mxu1 }
 0x695   : > { %v1422_v44 = vadd.f32 %v1421_v18, %v2372_v11 }
 0x696   : > { %1461 = vst.msk [vmem:[%s317_s26 + $0x8] sm:$0xff] %vm598_vm0, %v1427_v58 }
 0x697   : > { %1460 = vst.msk [vmem:[%s317_s26] sm:$0xff] %vm598_vm0, %v1422_v44 }
 0x69b   : > { %v1717_v10 = vpop.f32.mrb[10].mxu1 }
 0x69c   : > { %v1437_v15 = vadd.f32 %v1717_v10, %v2393_v35  ;;  %v1431_v40 = vpop.f32.mrb[11].mxu1 }
 0x69d   : > { %v1432_v14 = vadd.f32 %v1431_v40, %v2386_v25 }
 0x69e   : > { %1463 = vst.msk [vmem:[%s317_s26 + $0x18] sm:$0xff] %vm598_vm0, %v1437_v15 }
 0x69f   : > { %1462 = vst.msk [vmem:[%s317_s26 + $0x10] sm:$0xff] %vm598_vm0, %v1432_v14 }
 0x6a3   : > { %v1720_v33 = vpop.f32.mrb[12].mxu1 }
 0x6a4   : > { %v1447_v11 = vadd.f32 %v1720_v33, %v2407_v50  ;;  %v1441_v28 = vpop.f32.mrb[13].mxu1 }
 0x6a5   : > { %v1442_v9 = vadd.f32 %v1441_v28, %v2400_v43 }
 0x6a6   : > { %1465 = vst.msk [vmem:[%s317_s26 + $0x28] sm:$0xff] %vm598_vm0, %v1447_v11 }
 0x6a7   : > { %1464 = vst.msk [vmem:[%s317_s26 + $0x20] sm:$0xff] %vm598_vm0, %v1442_v9 }
 0x6ad   : > { %v1723_v35 = vpop.f32.mrb[14].mxu1 }
 0x6ae   : > { %v1457_v25 = vadd.f32 %v1723_v35, %v2421_v42  ;;  %v1451_v46 = vpop.f32.mrb[15].mxu1 }
 0x6af   : > { %v1452_v43 = vadd.f32 %v1451_v46, %v2414_v48 }
 0x6b0   : > { %1467 = vst.msk [vmem:[%s317_s26 + $0x38] sm:$0xff] %vm598_vm0, %v1457_v25 }
 0x6b1   : > { %1466 = vst.msk [vmem:[%s317_s26 + $0x30] sm:$0xff] %vm598_vm0, %v1452_v43 }
 0x6b2   : > { %1978 = shalt.err (!%p1975_p3)
}
 0x6b3   : > { %s1979_s21 = scalar_lea.hbm %s2754_s18, 1024  ;;  %s1983_s26 = scalar_lea.hbm %s2812_s8, 2048 }
 0x6b4   : > { %p1980_p4 = scmp.ne.s32.totalorder %s2754_s18, %s1979_s21  ;;  %p1984_p9 = scmp.lt.u32.totalorder %s2754_s18, %s2812_s8 }
 0x6b5   : > { %p1985_p10 = scmp.lt.u32.totalorder %s1983_s26, %s1979_s21  ;;  %p1987_p12 = scmp.lt.u32.totalorder %s1979_s21, %s2754_s18 }
 0x6b6   : > { %p1981_p7 = pnand %p1980_p4, %p2115_p5 }
 0x6b7   : > { %p1986_p11 = por %p1985_p10, %p1984_p9 }
 0x6b8   : > { %p1982_p8 = pneg %p1981_p7 }
 0x6b9   : > { %p1988_p13 = por %p1987_p12, %p1986_p11 }
 0x6bb   : > { %p1989_p0 = pnand %p1988_p13, %p1982_p8 }
 0x6bd   : > { %1992 = shalt.err (!%p1989_p0)
}
 0x6be   : > { %s2030_s13 = smov 128   ;;  %s2031_s19 = smov 8  }
 0x6bf   : > { %1780 = dma.vmem_to_hbm [thread:$0]  (%p2115_p5), %s2756_s12, 1024, %s2754_s18, %s2763_s9, %s2030_s13, %s2030_s13, %s2031_s19  }
 0x6c0 PF: > { %p1786_p1 = scmp.ge.s32.totalorder %s2027_s30, 2  ;;  %s1497_s17 = sand.u32 1, %s2015_s27  }
 0x6c1   : > { %s1498_s20 = scalar_lea.sflag [#allocation3], %s1497_s17 }
 0x6c2   : > { %p1783_p2 = pnand %p1786_p1, %p2119_p6 }
 0x6c4   : > { %2010 = dma.done.wait (!%p1783_p2), %s1498_s20, 1024  }
 0x6c5   : > { %2012 = vsyncadd (!%p1783_p2), %s1498_s20, 4294966272  ;;  %p18_p3 = scmp.ge.s32.totalorder %s2102_s11, 4   ;;  %s2815_s27 = smov %s2019_s28 }
 0x6c6   : > { %s2816_s28 = smov %s2023_s29  ;;  %s2817_s29 = smov %s2113_s14 }
 0x6c7   : > { %s2818_s30 = smov %s2102_s11  ;;  %20 = sbr.rel (!%p18_p3) target bundleno = 3 (0x3), region = 90 }
 0x6ce   :  { %1503 = vsyncpa [#allocation3], 1 }
 0x6cf   :  { %1505 = vsyncpa [#allocation3 + $0x1], 1 }

// kernel: linear_attention_transformer_block.6
= control target key start
LH: loop header
LB: loop body
LE: loop exit
PB: predicated region body
PF: predicated region fallthrough
CT: control target
= control target key end

     0   :  { %s5252_s12 = smov 0   ;;  %s7170_s0 = inlined_call_operand.vmem [shape: f32[2,8,64,32], index: 0, kind: input, shape index: {}]   ;;  %s7171_s1 = inlined_call_operand.vmem [shape: f32[2,8,64,32], index: 1, kind: input, shape index: {}]   ;;  %s7172_s2 = inlined_call_operand.vmem [shape: f32[2,8,64,32], index: 2, kind: input, shape index: {}]   ;;  %s7173_s3 = inlined_call_operand.vmem [shape: f32[2,8,64,32], index: 3, kind: output, shape index: {}]  }
   0x1 LB: > { %s3980_s13 = sadd.s32 4294967295, %s5230_s12   ;;  %p3984_p0 = scmp.ge.s32.totalorder %s5230_s12, 1  ;;  %s5230_s12 = sphi %s5252_s12, %s13_s12  }
   0x2   : > { %p157_p1 = scmp.lt.s32.totalorder %s5230_s12, 3 }
   0x4   : > { %p158_p2 = pnand %p3984_p0, %p157_p1 }
   0x6   : > { %161 = sbr.rel (%p158_p2) target bundleno = 935 (0x3a7), region = 32 }
   0xd   : > { %p191_p3 = scmp.lt.s32.totalorder %s3980_s13, 1  ;;  %vm403_vm0 = vcmask 261120   ;;  %vm1804_vm1 = vcmask 523264  }
   0xf   : > { %s7346_s13 = smov (!%p191_p3, %s3980_s13), 1 }
  0x10   : > { %s5260_s14 = sshll.u32 %s7346_s13, 9 }
  0x11   : > { %s5266_s17 = scalar_lea.vmem %s7171_s1, %s5260_s14  ;;  %s6087_s20 = scalar_lea.vmem %s7172_s2, %s5260_s14 }
  0x12   : > { %v5269_v0 = vld [vmem:[%s5266_s17 + $0x40] sm:$0xff]  ;;  %v5272_v1 = vld [vmem:[%s5266_s17 + $0x48] sm:$0xff]  ;;  %v5275_v2 = vld [vmem:[%s5266_s17 + $0x50] sm:$0xff]  ;;  %s6159_s23 = scalar_lea.vmem %s7170_s0, %s5260_s14  ;;  %s7037_s26 = scalar_lea.vmem %s7173_s3, %s5260_s14 }
  0x13   : > { %v5278_v3 = vld [vmem:[%s5266_s17 + $0x58] sm:$0xff]  ;;  %v5281_v4 = vld [vmem:[%s5266_s17 + $0x60] sm:$0xff]  ;;  %v5284_v5 = vld [vmem:[%s5266_s17 + $0x68] sm:$0xff]  ;;  %v1193_v6 = vsel %vm403_vm0, %v5269_v0, -inf  ;;  %v1194_v7 = vsel %vm403_vm0, %v5272_v1, -inf  ;;  %v1196_v8 = vsel %vm403_vm0, %v5275_v2, -inf }
  0x14   : > { %v5293_v9 = vld [vmem:[%s5266_s17 + $0x70] sm:$0xff]  ;;  %v5296_v10 = vld [vmem:[%s5266_s17 + $0x78] sm:$0xff]  ;;  %v1195_v11 = vmax.f32 %v1193_v6, %v1194_v7  ;;  %v5299_v12 = vld [vmem:[%s5266_s17] sm:$0xff]  ;;  %v1198_v13 = vsel %vm403_vm0, %v5278_v3, -inf  ;;  %v1200_v19 = vsel %vm403_vm0, %v5281_v4, -inf  ;;  %v1202_v24 = vsel %vm403_vm0, %v5284_v5, -inf }
  0x15   : > { %v5304_v14 = vld [vmem:[%s5266_s17 + $0x8] sm:$0xff]  ;;  %v5307_v15 = vld [vmem:[%s5266_s17 + $0x10] sm:$0xff]  ;;  %v5310_v16 = vld [vmem:[%s5266_s17 + $0x18] sm:$0xff]  ;;  %v1172_v17 = vsel %vm403_vm0, %v5299_v12, -inf  ;;  %v1204_v25 = vsel %vm403_vm0, %v5293_v9, -inf  ;;  %v1206_v26 = vsel %vm403_vm0, %v5296_v10, -inf }
  0x16   : > { %v1197_v18 = vmax.f32 %v1195_v11, %v1196_v8  ;;  %v5317_v20 = vld [vmem:[%s5266_s17 + $0x20] sm:$0xff]  ;;  %v5320_v21 = vld [vmem:[%s5266_s17 + $0x28] sm:$0xff]  ;;  %v1173_v22 = vsel %vm403_vm0, %v5304_v14, -inf  ;;  %v1175_v23 = vsel %vm403_vm0, %v5307_v15, -inf  ;;  %v5333_v27 = vld [vmem:[%s5266_s17 + $0x30] sm:$0xff]  ;;  %v1177_v33 = vsel %vm403_vm0, %v5310_v16, -inf }
  0x17   : > { %v1174_v28 = vmax.f32 %v1172_v17, %v1173_v22  ;;  %v5336_v29 = vld [vmem:[%s5266_s17 + $0xc0] sm:$0xff]  ;;  %v5339_v30 = vld [vmem:[%s5266_s17 + $0xc8] sm:$0xff]  ;;  %v5342_v32 = vld [vmem:[%s5266_s17 + $0x38] sm:$0xff]  ;;  %v1179_v39 = vsel %vm403_vm0, %v5317_v20, -inf  ;;  %v1181_v45 = vsel %vm403_vm0, %v5320_v21, -inf  ;;  %v1183_v46 = vsel %vm403_vm0, %v5333_v27, -inf }
  0x18   : > { %v1199_v31 = vmax.f32 %v1197_v18, %v1198_v13  ;;  %v5347_v34 = vld [vmem:[%s5266_s17 + $0xd0] sm:$0xff]  ;;  %v5350_v35 = vld [vmem:[%s5266_s17 + $0xd8] sm:$0xff]  ;;  %v1235_v36 = vsel %vm403_vm0, %v5336_v29, -inf  ;;  %v1236_v37 = vsel %vm403_vm0, %v5339_v30, -inf  ;;  %v5359_v40 = vld [vmem:[%s5266_s17 + $0xe0] sm:$0xff]  ;;  %v1185_v52 = vsel %vm403_vm0, %v5342_v32, -inf }
  0x19   : > { %v1176_v38 = vmax.f32 %v1174_v28, %v1175_v23  ;;  %v5362_v41 = vld [vmem:[%s5266_s17 + $0xe8] sm:$0xff]  ;;  %v1237_v42 = vmax.f32 %v1235_v36, %v1236_v37  ;;  %v1238_v43 = vsel %vm403_vm0, %v5347_v34, -inf  ;;  %v1240_v47 = vsel %vm403_vm0, %v5350_v35, -inf  ;;  %v5373_v48 = vld [vmem:[%s5266_s17 + $0x80] sm:$0xff]  ;;  %v5379_v50 = vld [vmem:[%s5266_s17 + $0x90] sm:$0xff] }
  0x1a   : > { %v1201_v44 = vmax.f32 %v1199_v31, %v1200_v19  ;;  %v5376_v49 = vld [vmem:[%s5266_s17 + $0x88] sm:$0xff]  ;;  %v5384_v53 = vld [vmem:[%s5266_s17 + $0xf0] sm:$0xff]  ;;  %v5387_v54 = vld [vmem:[%s5266_s17 + $0xf8] sm:$0xff]  ;;  %v1214_v57 = vsel %vm403_vm0, %v5373_v48, -inf  ;;  %v1242_v59 = vsel %vm403_vm0, %v5359_v40, -inf  ;;  %v1217_v61 = vsel %vm403_vm0, %v5379_v50, -inf }
  0x1b   : > { %v1178_v51 = vmax.f32 %v1176_v38, %v1177_v33  ;;  %v1239_v55 = vmax.f32 %v1237_v42, %v1238_v43  ;;  %v5390_v56 = vld [vmem:[%s5266_s17 + $0x98] sm:$0xff]  ;;  %v1215_v60 = vsel %vm403_vm0, %v5376_v49, -inf  ;;  %v5401_v62 = vld [vmem:[%s5266_s17 + $0x140] sm:$0xff]  ;;  %v1244_v7 = vsel %vm403_vm0, %v5362_v41, -inf  ;;  %v5409_v13 = vld [vmem:[%s5266_s17 + $0x148] sm:$0xff] }
  0x1c   : > { %v1203_v58 = vmax.f32 %v1201_v44, %v1202_v24  ;;  %v5406_v8 = vld [vmem:[%s5266_s17 + $0xa0] sm:$0xff]  ;;  %v1216_v11 = vmax.f32 %v1214_v57, %v1215_v60  ;;  %v5412_v17 = vld [vmem:[%s5266_s17 + $0x150] sm:$0xff]  ;;  %v1246_v19 = vsel %vm403_vm0, %v5384_v53, -inf  ;;  %v1248_v22 = vsel %vm403_vm0, %v5387_v54, -inf  ;;  %v5421_v31 = vld [vmem:[%s5266_s17 + $0xa8] sm:$0xff] }
  0x1d   : > { %v1180_v63 = vmax.f32 %v1178_v51, %v1179_v39  ;;  %v1241_v6 = vmax.f32 %v1239_v55, %v1240_v47  ;;  %v1219_v23 = vsel %vm403_vm0, %v5390_v56, -inf  ;;  %v5424_v33 = vld [vmem:[%s5266_s17 + $0xb0] sm:$0xff]  ;;  %v1277_v37 = vsel %vm403_vm0, %v5401_v62, -inf  ;;  %v5438_v51 = vld [vmem:[%s5266_s17 + $0x160] sm:$0xff] }
  0x1e   : > { %v1205_v18 = vmax.f32 %v1203_v58, %v1204_v25  ;;  %v1218_v36 = vmax.f32 %v1216_v11, %v1217_v61  ;;  %v5427_v25 = vld [vmem:[%s5266_s17 + $0x158] sm:$0xff]  ;;  %v1221_v39 = vsel %vm403_vm0, %v5406_v8, -inf  ;;  %v1278_v42 = vsel %vm403_vm0, %v5409_v13, -inf  ;;  %7231 = vst [vmem:[#allocation2_spill] sm:$0xff] %v5438_v51  ;;  %v5441_v57 = vld [vmem:[%s5266_s17 + $0x100] sm:$0xff] }
  0x1f   : > { %v1182_v24 = vmax.f32 %v1180_v63, %v1181_v45  ;;  %v1243_v28 = vmax.f32 %v1241_v6, %v1242_v59  ;;  %v1280_v43 = vsel %vm403_vm0, %v5412_v17, -inf  ;;  %v1279_v55 = vmax.f32 %v1277_v37, %v1278_v42  ;;  %7232 = vst [vmem:[#allocation3_spill] sm:$0xff] %v5441_v57  ;;  %v5453_v6 = vld [vmem:[%s5266_s17 + $0xb8] sm:$0xff] }
  0x20   : > { %v1207_v38 = vmax.f32 %v1205_v18, %v1206_v26  ;;  %v1220_v47 = vmax.f32 %v1218_v36, %v1219_v23  ;;  %v5444_v26 = vld [vmem:[%s5266_s17 + $0x108] sm:$0xff]  ;;  %v1223_v59 = vsel %vm403_vm0, %v5421_v31, -inf  ;;  %v1225_v60 = vsel %vm403_vm0, %v5424_v33, -inf  ;;  %v5456_v18 = vld [vmem:[%s5266_s17 + $0x110] sm:$0xff] }
  0x21   : > { %v1184_v44 = vmax.f32 %v1182_v24, %v1183_v46  ;;  %v1245_v45 = vmax.f32 %v1243_v28, %v1244_v7  ;;  %7233 = vst [vmem:[#allocation4_spill] sm:$0xff] %v5444_v26  ;;  %v1282_v46 = vsel %vm403_vm0, %v5427_v25, -inf  ;;  %v1281_v11 = vmax.f32 %v1279_v55, %v1280_v43  ;;  %7234 = vst [vmem:[#allocation5_spill] sm:$0xff] %v5456_v18 }
  0x22   : > { %v1208_v58 = vrot.slane %v1207_v38, 4  ;;  %v1222_v7 = vmax.f32 %v1220_v47, %v1221_v39  ;;  %v1284_v24 = vsel %vm403_vm0, %v5438_v51, -inf  ;;  %v1256_v28 = vsel %vm403_vm0, %v5441_v57, -inf  ;;  %v5465_v39 = vld [vmem:[%s5266_s17 + $0x168] sm:$0xff] }
  0x23   : > { %v1186_v61 = vmax.f32 %v1184_v44, %v1185_v52  ;;  %v1247_v63 = vmax.f32 %v1245_v45, %v1246_v19  ;;  %v1257_v36 = vsel %vm403_vm0, %v5444_v26, -inf  ;;  %7235 = vst [vmem:[#allocation6_spill] sm:$0xff] %v5465_v39  ;;  %v1283_v42 = vmax.f32 %v1281_v11, %v1282_v46  ;;  %v5470_v44 = vld [vmem:[%s5266_s17 + $0x118] sm:$0xff]  ;;  %v5483_v26 = vld [vmem:[%s5266_s17 + $0x120] sm:$0xff] }
  0x24   : > { %v1209_v23 = vmax.f32 %v1207_v38, %v1208_v58  ;;  %v1224_v37 = vmax.f32 %v1222_v7, %v1223_v59  ;;  %v1227_v38 = vsel %vm403_vm0, %v5453_v6, -inf  ;;  %7236 = vst [vmem:[#allocation7_spill] sm:$0xff] %v5470_v44  ;;  %v1258_v45 = vmax.f32 %v1256_v28, %v1257_v36  ;;  %v5478_v7 = vld [vmem:[%s5266_s17 + $0x178] sm:$0xff]  ;;  %7239 = vst [vmem:[#allocation10_spill] sm:$0xff] %v5483_v26 }
  0x25   : > { %v1187_v52 = vrot.slane %v1186_v61, 4  ;;  %v1249_v19 = vmax.f32 %v1247_v63, %v1248_v22  ;;  %v1259_v47 = vsel %vm403_vm0, %v5456_v18, -inf  ;;  %v5475_v63 = vld [vmem:[%s5266_s17 + $0x170] sm:$0xff]  ;;  %7238 = vst [vmem:[#allocation9_spill] sm:$0xff] %v5478_v7  ;;  %v1285_v46 = vmax.f32 %v1283_v42, %v1284_v24  ;;  %v5486_v18 = vld [vmem:[%s5266_s17 + $0x128] sm:$0xff] }
  0x26   : > { %v1210_v43 = vrot.slane %v1209_v23, 2  ;;  %v1226_v22 = vmax.f32 %v1224_v37, %v1225_v60  ;;  %7237 = vst [vmem:[#allocation8_spill] sm:$0xff] %v5475_v63  ;;  %v1286_v11 = vsel %vm403_vm0, %v5465_v39, -inf  ;;  %v1260_v57 = vmax.f32 %v1258_v45, %v1259_v47  ;;  %7240 = vst [vmem:[#allocation11_spill] sm:$0xff] %v5486_v18 }
  0x27   : > { %v1188_v55 = vmax.f32 %v1186_v61, %v1187_v52  ;;  %v1250_v58 = vrot.slane %v1249_v19, 4  ;;  %v1261_v60 = vsel %vm403_vm0, %v5470_v44, -inf  ;;  %v1288_v24 = vsel %vm403_vm0, %v5475_v63, -inf }
  0x28   : > { %v1211_v59 = vmax.f32 %v1209_v23, %v1210_v43  ;;  %v1228_v51 = vmax.f32 %v1226_v22, %v1227_v38  ;;  %v5491_v23 = vld [vmem:[%s5266_s17 + $0x130] sm:$0xff]  ;;  %v1290_v37 = vsel %vm403_vm0, %v5478_v7, -inf  ;;  %v1287_v43 = vmax.f32 %v1285_v46, %v1286_v11 }
  0x29   : > { %v1189_v28 = vrot.slane %v1188_v55, 2  ;;  %v1251_v36 = vmax.f32 %v1249_v19, %v1250_v58  ;;  %7241 = vst [vmem:[#allocation12_spill] sm:$0xff] %v5491_v23  ;;  %v1263_v19 = vsel %vm403_vm0, %v5483_v26, -inf  ;;  %v1262_v38 = vmax.f32 %v1260_v57, %v1261_v60 }
  0x2a   : > { %v1212_v61 = vrot.slane %v1211_v59, 1  ;;  %v1265_v45 = vsel %vm403_vm0, %v5486_v18, -inf  ;;  %v1229_v22 = vrot.slane %v1228_v51, 4 }
  0x2b   : > { %v1190_v52 = vmax.f32 %v1188_v55, %v1189_v28  ;;  %v1252_v58 = vrot.slane %v1251_v36, 2  ;;  %v1267_v55 = vsel %vm403_vm0, %v5491_v23, -inf  ;;  %v1264_v39 = vmax.f32 %v1262_v38, %v1263_v19 }
  0x2c   : > { %v1213_v42 = vmax.f32 %v1211_v59, %v1212_v61  ;;  %v5508_v59 = vld [vmem:[%s5266_s17 + $0x138] sm:$0xff] }
  0x2d   : > { %v1191_v47 = vrot.slane %v1190_v52, 1 }
  0x2e   : > { %v1348_v28 = vsub.f32 %v5269_v0, %v1213_v42  ;;  %v1349_v44 = vsub.f32 %v5272_v1, %v1213_v42  ;;  %v1350_v7 = vsub.f32 %v5275_v2, %v1213_v42  ;;  %v1351_v26 = vsub.f32 %v5278_v3, %v1213_v42 }
  0x2f   : > { %v1352_v57 = vsub.f32 %v5281_v4, %v1213_v42  ;;  %v1353_v46 = vsub.f32 %v5284_v5, %v1213_v42  ;;  %v1354_v11 = vsub.f32 %v5293_v9, %v1213_v42  ;;  %v1355_v60 = vsub.f32 %v5296_v10, %v1213_v42 }
  0x30   : > { %v1420_v61 = vmul.f32 1.442695, %v1348_v28  ;;  %v1422_v23 = vmul.f32 1.442695, %v1349_v44  ;;  %v1424_v18 = vmul.f32 1.442695, %v1350_v7  ;;  %v1192_v0 = vmax.f32 %v1190_v52, %v1191_v47 }
  0x31   : > { %v1426_v63 = vmul.f32 1.442695, %v1351_v26  ;;  %v1289_v1 = vmax.f32 %v1287_v43, %v1288_v24  ;;  %v5516_v2 = vsel %vm403_vm0, %v5508_v59, -inf  ;;  %v1428_v3 = vmul.f32 1.442695, %v1352_v57 }
  0x32   : > { %4824 = vpow2.f32 %v1420_v61  ;;  %v1340_v4 = vsub.f32 %v5299_v12, %v1192_v0  ;;  %v1253_v5 = vmax.f32 %v1251_v36, %v1252_v58  ;;  %v1430_v9 = vmul.f32 1.442695, %v1353_v46 }
  0x33   : > { %4826 = vpow2.f32 %v1422_v23  ;;  %v1341_v10 = vsub.f32 %v5304_v14, %v1192_v0  ;;  %v1230_v42 = vmax.f32 %v1228_v51, %v1229_v22  ;;  %v1432_v44 = vmul.f32 1.442695, %v1354_v11 }
  0x34   : > { %4828 = vpow2.f32 %v1424_v18  ;;  %v1434_v7 = vmul.f32 1.442695, %v1355_v60  ;;  %v1342_v26 = vsub.f32 %v5307_v15, %v1192_v0  ;;  %v1343_v52 = vsub.f32 %v5310_v16, %v1192_v0 }
  0x35   : > { %4830 = vpow2.f32 %v1426_v63  ;;  %v1344_v24 = vsub.f32 %v5317_v20, %v1192_v0  ;;  %v1345_v19 = vsub.f32 %v5320_v21, %v1192_v0  ;;  %v1346_v12 = vsub.f32 %v5333_v27, %v1192_v0 }
  0x36   : > { %4832 = vpow2.f32 %v1428_v3  ;;  %v1347_v36 = vsub.f32 %v5342_v32, %v1192_v0  ;;  %v1404_v23 = vmul.f32 1.442695, %v1340_v4  ;;  %v1406_v14 = vmul.f32 1.442695, %v1341_v10 }
  0x37   : > { %4834 = vpow2.f32 %v1430_v9  ;;  %v1291_v51 = vmax.f32 %v1289_v1, %v1290_v37  ;;  %v1266_v18 = vmax.f32 %v1264_v39, %v1265_v45  ;;  %v1408_v43 = vmul.f32 1.442695, %v1342_v26 }
  0x38   : > { %4836 = vpow2.f32 %v1432_v44  ;;  %v1254_v15 = vrot.slane %v1253_v5, 1  ;;  %v1231_v63 = vrot.slane %v1230_v42, 2  ;;  %v1410_v16 = vmul.f32 1.442695, %v1343_v52 }
  0x39   : > { %4838 = vpow2.f32 %v1434_v7  ;;  %v1412_v38 = vmul.f32 1.442695, %v1344_v24  ;;  %v1414_v20 = vmul.f32 1.442695, %v1345_v19  ;;  %v1416_v21 = vmul.f32 1.442695, %v1346_v12 }
  0x3a   : > { %4840 = vpow2.f32 %v1404_v23  ;;  %v1418_v47 = vmul.f32 1.442695, %v1347_v36  ;;  %v1255_v58 = vmax.f32 %v1253_v5, %v1254_v15  ;;  %v5526_v27 = vmax.f32 %v1230_v42, %v1231_v63 }
  0x3b   : > { %4842 = vpow2.f32 %v1406_v14  ;;  %v1292_v32 = vrot.slane %v1291_v51, 4  ;;  %v1268_v22 = vmax.f32 %v1266_v18, %v1267_v55 }
  0x3c   : > { %v5528_v28 = vpop.eup %4824  ;;  %4844 = vpow2.f32 %v1408_v43  ;;  %v1364_v39 = vsub.f32 %v5336_v29, %v1255_v58  ;;  %v1365_v37 = vsub.f32 %v5339_v30, %v1255_v58  ;;  %v1366_v45 = vsub.f32 %v5347_v34, %v1255_v58 }
  0x3d   : > { %v5533_v57 = vpop.eup %4826  ;;  %v1553_v46 = vsel %vm403_vm0, %v5528_v28, 0.0  ;;  %4846 = vpow2.f32 %v1410_v16  ;;  %v1367_v11 = vsub.f32 %v5350_v35, %v1255_v58  ;;  %v1368_v60 = vsub.f32 %v5359_v40, %v1255_v58 }
  0x3e   : > { %v5539_v55 = vpop.eup %4828  ;;  %v1554_v61 = vsel %vm403_vm0, %v5533_v57, 0.0  ;;  %4848 = vpow2.f32 %v1412_v38  ;;  %v1369_v29 = vsub.f32 %v5362_v41, %v1255_v58  ;;  %v1370_v30 = vsub.f32 %v5384_v53, %v1255_v58 }
  0x3f   : > { %v5545_v34 = vpop.eup %4830  ;;  %v1555_v0 = vadd.f32 %v1554_v61, %v1553_v46  ;;  %v1556_v1 = vsel %vm403_vm0, %v5539_v55, 0.0  ;;  %4850 = vpow2.f32 %v1414_v20  ;;  %v1371_v35 = vsub.f32 %v5387_v54, %v1255_v58  ;;  %v5581_v20 = vld [vmem:[%s5266_s17 + $0x1c0] sm:$0xff] }
  0x40   : > { %v5550_v40 = vpop.eup %4832  ;;  %v1558_v3 = vsel %vm403_vm0, %v5545_v34, 0.0  ;;  %4852 = vpow2.f32 %v1416_v21  ;;  %v1452_v4 = vmul.f32 1.442695, %v1364_v39  ;;  %v1454_v5 = vmul.f32 1.442695, %v1365_v37 }
  0x41   : > { %v5554_v41 = vpop.eup %4834  ;;  %v1557_v53 = vadd.f32 %v1556_v1, %v1555_v0  ;;  %4854 = vpow2.f32 %v1418_v47  ;;  %v1456_v9 = vmul.f32 1.442695, %v1366_v45  ;;  %v1293_v10 = vmax.f32 %v1291_v51, %v1292_v32 }
  0x42   : > { %v5556_v42 = vpop.eup %4836  ;;  %v1560_v44 = vsel %vm403_vm0, %v5550_v40, 0.0  ;;  %4856 = vpow2.f32 %v1452_v4  ;;  %v1458_v54 = vmul.f32 1.442695, %v1367_v11  ;;  %v1460_v7 = vmul.f32 1.442695, %v1368_v60 }
  0x43   : > { %v5560_v26 = vpop.eup %4838  ;;  %v1559_v52 = vadd.f32 %v1558_v3, %v1557_v53  ;;  %4858 = vpow2.f32 %v1454_v5  ;;  %v1462_v24 = vmul.f32 1.442695, %v1369_v29  ;;  %v5563_v19 = vmax.f32 %v1268_v22, %v5516_v2 }
  0x44   : > { %v5565_v12 = vpop.eup %4840  ;;  %v1562_v36 = vsel %vm403_vm0, %v5554_v41, 0.0  ;;  %4860 = vpow2.f32 %v1456_v9  ;;  %v1464_v23 = vmul.f32 1.442695, %v1370_v30  ;;  %v1466_v14 = vmul.f32 1.442695, %v1371_v35 }
  0x45   : > { %v5569_v51 = vpop.eup %4842  ;;  %v1561_v18 = vadd.f32 %v1560_v44, %v1559_v52  ;;  %v1532_v43 = vsel %vm403_vm0, %v5565_v12, 0.0  ;;  %4862 = vpow2.f32 %v1458_v54  ;;  %v1233_v15 = vrot.slane %v5526_v27, 1 }
  0x46   : > { %v5574_v2 = vpop.eup %4844  ;;  %v1564_v63 = vsel %vm403_vm0, %v5556_v42, 0.0  ;;  %v1533_v16 = vsel %vm403_vm0, %v5569_v51, 0.0  ;;  %4864 = vpow2.f32 %v1460_v7  ;;  %v1294_v38 = vrot.slane %v1293_v10, 2 }
  0x47   : > { %v5583_v21 = vpop.eup %4846  ;;  %v1563_v47 = vadd.f32 %v1562_v36, %v1561_v18  ;;  %v1534_v58 = vadd.f32 %v1533_v16, %v1532_v43  ;;  %v1535_v32 = vsel %vm403_vm0, %v5574_v2, 0.0  ;;  %4866 = vpow2.f32 %v1462_v24 }
  0x48   : > { %v5587_v22 = vpop.eup %4848  ;;  %v1566_v39 = vsel %vm403_vm0, %v5560_v26, 0.0  ;;  %v1537_v37 = vsel %vm403_vm0, %v5583_v21, 0.0  ;;  %4868 = vpow2.f32 %v1464_v23  ;;  %v5594_v45 = vmax.f32 %v5526_v27, %v1233_v15 }
  0x49   : > { %v5596_v46 = vpop.eup %4850  ;;  %v1565_v11 = vadd.f32 %v1564_v63, %v1563_v47  ;;  %v1536_v60 = vadd.f32 %v1535_v32, %v1534_v58  ;;  %4870 = vpow2.f32 %v1466_v14  ;;  %v5600_v61 = vsel %vm403_vm0, %v5581_v20, -inf }
  0x4a   : > { %v5602_v29 = vpop.eup %4852  ;;  %v1539_v30 = vsel %vm403_vm0, %v5587_v22, 0.0  ;;  %v1356_v0 = vsub.f32 %v5373_v48, %v5594_v45  ;;  %v1357_v27 = vsub.f32 %v5376_v49, %v5594_v45  ;;  %v1271_v1 = vrot.slane %v5563_v19, 4 }
  0x4b   : > { %v5611_v35 = vpop.eup %4854  ;;  %v1567_v3 = vadd.f32 %v1566_v39, %v1565_v11  ;;  %v1538_v4 = vadd.f32 %v1537_v37, %v1536_v60  ;;  %v1541_v5 = vsel %vm403_vm0, %v5596_v46, 0.0  ;;  %v1295_v53 = vmax.f32 %v1293_v10, %v1294_v38 }
  0x4c   : > { %v5615_v9 = vpop.eup %4856  ;;  %v1543_v44 = vsel %vm403_vm0, %v5602_v29, 0.0  ;;  %v1545_v48 = vsel %vm403_vm0, %v5611_v35, 0.0  ;;  %v1358_v49 = vsub.f32 %v5379_v50, %v5594_v45  ;;  %v1359_v54 = vsub.f32 %v5390_v56, %v5594_v45 }
  0x4d   : > { %v5625_v7 = vpop.eup %4858  ;;  %v1568_v52 = vrot.slane %v1567_v3, 4  ;;  %v1540_v24 = vadd.f32 %v1539_v30, %v1538_v4  ;;  %v1595_v10 = vsel %vm403_vm0, %v5615_v9, 0.0  ;;  %v1360_v36 = vsub.f32 %v5406_v8, %v5594_v45 }
  0x4e   : > { %v5631_v23 = vpop.eup %4860  ;;  %v1596_v14 = vsel %vm403_vm0, %v5625_v7, 0.0  ;;  %v1361_v50 = vsub.f32 %v5421_v31, %v5594_v45  ;;  %v1436_v18 = vmul.f32 1.442695, %v1356_v0  ;;  %v1438_v56 = vmul.f32 1.442695, %v1357_v27 }
  0x4f   : > { %v5637_v43 = vpop.eup %4862  ;;  %v1569_v15 = vadd.f32 %v1568_v52, %v1567_v3  ;;  %v1542_v63 = vadd.f32 %v1541_v5, %v1540_v24  ;;  %v1597_v16 = vadd.f32 %v1596_v14, %v1595_v10  ;;  %v1598_v38 = vsel %vm403_vm0, %v5631_v23, 0.0 }
  0x50   : > { %v5641_v47 = vpop.eup %4864  ;;  %v1600_v8 = vsel %vm403_vm0, %v5637_v43, 0.0  ;;  %v1362_v58 = vsub.f32 %v5424_v33, %v5594_v45  ;;  %4872 = vpow2.f32 %v1436_v18  ;;  %v1440_v31 = vmul.f32 1.442695, %v1358_v49 }
  0x51   : > { %v5647_v32 = vpop.eup %4866  ;;  %v1570_v39 = vrot.slane %v1569_v15, 2  ;;  %v1544_v37 = vadd.f32 %v1543_v44, %v1542_v63  ;;  %v1599_v11 = vadd.f32 %v1598_v38, %v1597_v16  ;;  %v1442_v60 = vmul.f32 1.442695, %v1359_v54 }
  0x52   : > { %v5649_v30 = vpop.eup %4868  ;;  %v1602_v0 = vsel %vm403_vm0, %v5641_v47, 0.0  ;;  %4874 = vpow2.f32 %v1438_v56  ;;  %v1444_v27 = vmul.f32 1.442695, %v1360_v36  ;;  %v1296_v3 = vrot.slane %v1295_v53, 1 }
  0x53   : > { %v5653_v4 = vpop.eup %4870  ;;  %v1571_v5 = vadd.f32 %v1570_v39, %v1569_v15  ;;  %v1546_v33 = vadd.f32 %v1545_v48, %v1544_v37  ;;  %v1601_v49 = vadd.f32 %v1600_v8, %v1599_v11  ;;  %v1363_v52 = vsub.f32 %v5453_v6, %v5594_v45  ;;  %v5666_v6 = vld [vmem:[%s5266_s17 + $0x1c8] sm:$0xff] }
  0x54   : > { %v1604_v44 = vsel %vm403_vm0, %v5647_v32, 0.0  ;;  %v1606_v54 = vsel %vm403_vm0, %v5649_v30, 0.0  ;;  %4876 = vpow2.f32 %v1440_v31  ;;  %v1446_v24 = vmul.f32 1.442695, %v1361_v50 }
  0x55   : > { %v1572_v10 = vrot.slane %v1571_v5, 1  ;;  %v1547_v36 = vrot.slane %v1546_v33, 4  ;;  %v1603_v14 = vadd.f32 %v1602_v0, %v1601_v49  ;;  %4878 = vpow2.f32 %v1442_v60 }
  0x56   : > { %v1608_v18 = vsel %vm403_vm0, %v5653_v4, 0.0  ;;  %4880 = vpow2.f32 %v1444_v27  ;;  %v1448_v48 = vmul.f32 1.442695, %v1362_v58  ;;  %v5663_v56 = vmax.f32 %v1295_v53, %v1296_v3  ;;  %v7243_v3 = vld [vmem:[#allocation6_spill] sm:$0xff] }
  0x57   : > { %v1573_v45 = vadd.f32 %v1572_v10, %v1571_v5  ;;  %v1548_v15 = vadd.f32 %v1547_v36, %v1546_v33  ;;  %v1605_v63 = vadd.f32 %v1604_v44, %v1603_v14  ;;  %v1450_v16 = vmul.f32 1.442695, %v1363_v52 }
  0x58   : > { %4882 = vpow2.f32 %v1446_v24  ;;  %v1380_v50 = vsub.f32 %v5401_v62, %v5663_v56  ;;  %v1381_v38 = vsub.f32 %v5409_v13, %v5663_v56  ;;  %v1382_v8 = vsub.f32 %v5412_v17, %v5663_v56  ;;  %v7242_v62 = vld [vmem:[#allocation2_spill] sm:$0xff] }
  0x59   : > { %4884 = vrcp.f32 %v1573_v45  ;;  %v1549_v58 = vrot.slane %v1548_v15, 2  ;;  %v1607_v53 = vadd.f32 %v1606_v54, %v1605_v63  ;;  %v1320_v31 = vsel %vm403_vm0, %v5666_v6, -inf }
  0x5a   : > { %v5676_v39 = vpop.eup %4872  ;;  %4886 = vpow2.f32 %v1448_v48  ;;  %v1383_v37 = vsub.f32 %v5427_v25, %v5663_v56  ;;  %v1384_v11 = vsub.f32 %v7242_v62, %v5663_v56  ;;  %v1272_v13 = vmax.f32 %v5563_v19, %v1271_v1  ;;  %v7244_v1 = vld [vmem:[#allocation8_spill] sm:$0xff] }
  0x5b   : > { %v1550_v17 = vadd.f32 %v1549_v58, %v1548_v15  ;;  %v1609_v60 = vadd.f32 %v1608_v18, %v1607_v53  ;;  %4888 = vpow2.f32 %v1450_v16  ;;  %v1574_v0 = vsel %vm403_vm0, %v5676_v39, 0.0  ;;  %v5698_v18 = vld [vmem:[%s5266_s17 + $0x1d0] sm:$0xff]  ;;  %v7245_v53 = vld [vmem:[#allocation9_spill] sm:$0xff] }
  0x5c   : > { %v5687_v27 = vpop.eup %4874  ;;  %v1385_v5 = vsub.f32 %v7243_v3, %v5663_v56  ;;  %v1484_v25 = vmul.f32 1.442695, %v1380_v50  ;;  %v1486_v33 = vmul.f32 1.442695, %v1381_v38  ;;  %v1488_v49 = vmul.f32 1.442695, %v1382_v8 }
  0x5d   : > { %v1551_v52 = vrot.slane %v1550_v17, 1  ;;  %v1610_v44 = vrot.slane %v1609_v60, 4  ;;  %v1575_v19 = vsel %vm403_vm0, %v5687_v27, 0.0  ;;  %v1386_v54 = vsub.f32 %v7244_v1, %v5663_v56  ;;  %v5731_v1 = vld [vmem:[%s5266_s17 + $0x1e0] sm:$0xff] }
  0x5e   : > { %v5695_v24 = vpop.eup %4876  ;;  %v1576_v10 = vadd.f32 %v1575_v19, %v1574_v0  ;;  %4890 = vpow2.f32 %v1484_v25  ;;  %v1490_v36 = vmul.f32 1.442695, %v1383_v37  ;;  %v1492_v14 = vmul.f32 1.442695, %v1384_v11  ;;  %v5716_v0 = vld [vmem:[%s5266_s17 + $0x1d8] sm:$0xff] }
  0x5f   : > { %v5700_v48 = vpop.eup %4878  ;;  %v1552_v45 = vadd.f32 %v1551_v52, %v1550_v17  ;;  %v1611_v15 = vadd.f32 %v1610_v44, %v1609_v60  ;;  %v1577_v63 = vsel %vm403_vm0, %v5695_v24, 0.0  ;;  %4892 = vpow2.f32 %v1486_v33 }
  0x60   : > { %v5704_v16 = vpop.eup %4880  ;;  %v1578_v50 = vadd.f32 %v1577_v63, %v1576_v10  ;;  %v1579_v38 = vsel %vm403_vm0, %v5700_v48, 0.0  ;;  %4894 = vpow2.f32 %v1488_v49  ;;  %v1321_v8 = vmax.f32 %v5600_v61, %v1320_v31 }
  0x61   : > { %4896 = vrcp.f32 %v1552_v45  ;;  %v1612_v58 = vrot.slane %v1611_v15, 2  ;;  %v1387_v37 = vsub.f32 %v7245_v53, %v5663_v56  ;;  %v1322_v62 = vsel %vm403_vm0, %v5698_v18, -inf }
  0x62   : > { %v5713_v11 = vpop.eup %4882  ;;  %v1580_v17 = vadd.f32 %v1579_v38, %v1578_v50  ;;  %4898 = vpow2.f32 %v1490_v36  ;;  %v1494_v60 = vmul.f32 1.442695, %v1385_v5  ;;  %v1581_v61 = vsel %vm403_vm0, %v5704_v16, 0.0 }
  0x63   : > { %v5718_v3 = vpop.eup %4884  ;;  %4900 = vpow2.f32 %v1492_v14  ;;  %v1496_v31 = vmul.f32 1.442695, %v1386_v54  ;;  %v1273_v25 = vrot.slane %v1272_v13, 2  ;;  %v1323_v49 = vmax.f32 %v1321_v8, %v1322_v62 }
  0x64   : > { %v5722_v56 = vpop.eup %4886  ;;  %v1710_v33 = vmul.f32 %v5718_v3, %v5528_v28  ;;  %v1613_v44 = vadd.f32 %v1612_v58, %v1611_v15  ;;  %v1583_v5 = vsel %vm403_vm0, %v5713_v11, 0.0  ;;  %v1498_v19 = vmul.f32 1.442695, %v1387_v37 }
  0x65   : > { %v5726_v52 = vpop.eup %4888  ;;  %v1324_v10 = vsel %vm403_vm0, %v5716_v0, -inf  ;;  %v1711_v54 = vmul.f32 %v5718_v3, %v5533_v57  ;;  %v1582_v36 = vadd.f32 %v1581_v61, %v1580_v17  ;;  %4902 = vpow2.f32 %v1494_v60  ;;  %v5760_v60 = vld [vmem:[%s5266_s17 + $0x1e8] sm:$0xff]  ;;  %v5763_v61 = vld [vmem:[%s5266_s17 + $0x1f0] sm:$0xff] }
  0x66   : > { %7246 = vst [vmem:[#allocation2_spill] sm:$0xff] %v5726_v52  ;;  %1902 = vxpose.xlu1.b32.start [1/8] (short) (narrow) %v1710_v33, 32  ;;  %v1585_v28 = vsel %vm403_vm0, %v5722_v56, 0.0  ;;  %4904 = vpow2.f32 %v1496_v31  ;;  %v1274_v14 = vmax.f32 %v1272_v13, %v1273_v25  ;;  %v1712_v15 = vmul.f32 %v5718_v3, %v5539_v55 }
  0x67   : > { %v1584_v63 = vadd.f32 %v1583_v5, %v1582_v36  ;;  %v1325_v50 = vmax.f32 %v1323_v49, %v1324_v10  ;;  %v1326_v38 = vsel %vm403_vm0, %v5731_v1, -inf  ;;  %v1614_v8 = vrot.slane %v1613_v44, 1 }
  0x68   : > { %v5739_v45 = vpop.eup %4890  ;;  %4906 = vpow2.f32 %v1498_v19  ;;  %v1275_v13 = vrot.slane %v1274_v14, 1  ;;  %v1713_v55 = vmul.f32 %v5718_v3, %v5545_v34  ;;  %v5755_v37 = vmul.f32 %v5718_v3, %v5550_v40 }
  0x69   : > { %7247 = vst [vmem:[#allocation6_spill] sm:$0xff] %v5739_v45  ;;  %v5745_v57 = vpop.eup %4892  ;;  %v1637_v58 = vsel %vm403_vm0, %v5739_v45, 0.0  ;;  %v1586_v62 = vadd.f32 %v1585_v28, %v1584_v63  ;;  %v1587_v25 = vsel %vm403_vm0, %v5726_v52, 0.0  ;;  %v5779_v19 = vmul.f32 %v5718_v3, %v5554_v41  ;;  %v5820_v52 = vld [vmem:[%s5266_s17 + $0x1f8] sm:$0xff] }
  0x6a   : > { %7248 = vst [vmem:[#allocation8_spill] sm:$0xff] %v5745_v57  ;;  %v5749_v53 = vpop.eup %4894  ;;  %1903 = vxpose.xlu1.b32.cont [2/8] (short) (narrow) %v1711_v54, 32  ;;  %v1638_v17 = vsel %vm403_vm0, %v5745_v57, 0.0  ;;  %v5771_v49 = vmax.f32 %v1274_v14, %v1275_v13  ;;  %v5783_v10 = vmul.f32 %v5718_v3, %v5556_v42  ;;  %v1327_v54 = vmax.f32 %v1325_v50, %v1326_v38  ;;  %v7252_v38 = vld [vmem:[#allocation3_spill] sm:$0xff]  ;;  %v7254_v13 = vld [vmem:[#allocation5_spill] sm:$0xff] }
  0x6b   : > { %7249 = vst [vmem:[#allocation9_spill] sm:$0xff] %v5749_v53  ;;  %v5765_v31 = vpop.eup %4896  ;;  %v1639_v33 = vadd.f32 %v1638_v17, %v1637_v58  ;;  %v1640_v34 = vsel %vm403_vm0, %v5749_v53, 0.0  ;;  %v1615_v14 = vadd.f32 %v1614_v8, %v1613_v44  ;;  %v1328_v63 = vsel %vm403_vm0, %v5760_v60, -inf  ;;  %v7253_v44 = vld [vmem:[#allocation4_spill] sm:$0xff] }
  0x6c   : > { %v5773_v40 = vpop.eup %4898  ;;  %v1701_v5 = vmul.f32 %v5765_v31, %v5565_v12  ;;  %v1702_v28 = vmul.f32 %v5765_v31, %v5569_v51  ;;  %v1330_v12 = vsel %vm403_vm0, %v5763_v61, -inf  ;;  %v1588_v41 = vadd.f32 %v1587_v25, %v1586_v62 }
  0x6d   : > { %7250 = vst [vmem:[#allocation13_spill] sm:$0xff] %v5773_v40  ;;  %v5785_v36 = vpop.eup %4900  ;;  %v1641_v58 = vadd.f32 %v1640_v34, %v1639_v33  ;;  %v1642_v42 = vsel %vm403_vm0, %v5773_v40, 0.0  ;;  %v1372_v51 = vsub.f32 %v7252_v38, %v5771_v49  ;;  %v1373_v8 = vsub.f32 %v7253_v44, %v5771_v49  ;;  %v7257_v34 = vld [vmem:[#allocation10_spill] sm:$0xff] }
  0x6e   : > { %7251 = vst [vmem:[#allocation14_spill] sm:$0xff] %v5785_v36  ;;  %1772 = vxpose.xlu0.b32.start [1/8] (short) (narrow) %v1701_v5, 32  ;;  %1904 = vxpose.xlu1.b32.cont [3/8] (short) (narrow) %v1712_v15, 32  ;;  %v1644_v50 = vsel %vm403_vm0, %v5785_v36, 0.0  ;;  %v1374_v17 = vsub.f32 %v7254_v13, %v5771_v49  ;;  %v7255_v5 = vld [vmem:[#allocation7_spill] sm:$0xff]  ;;  %v1589_v25 = vrot.slane %v1588_v41, 4  ;;  %v1376_v36 = vsub.f32 %v7257_v34, %v5771_v49 }
  0x6f   : > { %v1375_v15 = vsub.f32 %v7255_v5, %v5771_v49  ;;  %v5805_v62 = vpop.eup %4902  ;;  %v1643_v33 = vadd.f32 %v1642_v42, %v1641_v58  ;;  %v1329_v40 = vmax.f32 %v1327_v54, %v1328_v63  ;;  %v1703_v38 = vmul.f32 %v5765_v31, %v5574_v2  ;;  %v7258_v13 = vld [vmem:[#allocation11_spill] sm:$0xff]  ;;  %v7259_v34 = vld [vmem:[#allocation12_spill] sm:$0xff] }
  0x70   : > { %7256 = vst [vmem:[#allocation3_spill] sm:$0xff] %v5805_v62  ;;  %v5809_v53 = vpop.eup %4904  ;;  %v1646_v44 = vsel %vm403_vm0, %v5805_v62, 0.0  ;;  %v1377_v5 = vsub.f32 %v7258_v13, %v5771_v49  ;;  %v1468_v57 = vmul.f32 1.442695, %v1372_v51  ;;  %v1590_v58 = vadd.f32 %v1589_v25, %v1588_v41  ;;  %v5827_v41 = vld [vmem:[%s5266_s17 + $0x180] sm:$0xff] }
  0x71   : > { %v1645_v42 = vadd.f32 %v1644_v50, %v1643_v33  ;;  %v1378_v54 = vsub.f32 %v7259_v34, %v5771_v49  ;;  %v1470_v63 = vmul.f32 1.442695, %v1373_v8  ;;  %v1648_v2 = vsel %vm403_vm0, %v5809_v53, 0.0  ;;  %v5849_v33 = vld [vmem:[%s5266_s17 + $0x198] sm:$0xff] }
  0x72   : > { %1773 = vxpose.xlu0.b32.cont [2/8] (short) (narrow) %v1702_v28, 32  ;;  %1905 = vxpose.xlu1.b32.cont [4/8] (short) (narrow) %v1713_v55, 32  ;;  %v5822_v45 = vpop.eup %4906  ;;  %4908 = vpow2.f32 %v1468_v57  ;;  %v1472_v62 = vmul.f32 1.442695, %v1374_v17  ;;  %v1474_v13 = vmul.f32 1.442695, %v1375_v15  ;;  %v1379_v50 = vsub.f32 %v5508_v59, %v5771_v49 }
  0x73   : > { %v1591_v28 = vrot.slane %v1590_v58, 2  ;;  %v1647_v51 = vadd.f32 %v1646_v44, %v1645_v42  ;;  %4910 = vpow2.f32 %v1470_v63  ;;  %v1476_v55 = vmul.f32 1.442695, %v1376_v36  ;;  %v5855_v42 = vld [vmem:[%s5266_s17 + $0x1a0] sm:$0xff] }
  0x74   : > { %4912 = vrcp.f32 %v1615_v14  ;;  %v1331_v8 = vmax.f32 %v1329_v40, %v1330_v12  ;;  %v1332_v25 = vsel %vm403_vm0, %v5820_v52, -inf  ;;  %v1704_v57 = vmul.f32 %v5765_v31, %v5583_v21  ;;  %v5839_v14 = vld [vmem:[%s5266_s17 + $0x188] sm:$0xff]  ;;  %v5844_v40 = vld [vmem:[%s5266_s17 + $0x190] sm:$0xff] }
  0x75   : > { %v1592_v17 = vadd.f32 %v1591_v28, %v1590_v58  ;;  %v1650_v36 = vsel %vm403_vm0, %v5822_v45, 0.0  ;;  %4914 = vpow2.f32 %v1472_v62  ;;  %v1705_v59 = vmul.f32 %v5765_v31, %v5587_v22 }
  0x76   : > { %1774 = vxpose.xlu0.b32.cont [3/8] (short) (narrow) %v1703_v38, 32  ;;  %1906 = vxpose.xlu1.b32.cont [5/8] (short) (narrow) %v5755_v37, 32  ;;  %v1649_v49 = vadd.f32 %v1648_v2, %v1647_v51  ;;  %4916 = vpow2.f32 %v1474_v13  ;;  %v1298_v21 = vsel %vm403_vm0, %v5827_v41, -inf  ;;  %v1478_v37 = vmul.f32 1.442695, %v1377_v5  ;;  %v5862_v13 = vld [vmem:[%s5266_s17 + $0x1a8] sm:$0xff] }
  0x77   : > { %v1593_v12 = vrot.slane %v1592_v17, 1  ;;  %4918 = vpow2.f32 %v1476_v55  ;;  %v1480_v15 = vmul.f32 1.442695, %v1378_v54  ;;  %v1482_v38 = vmul.f32 1.442695, %v1379_v50 }
  0x78   : > { %v1651_v62 = vadd.f32 %v1650_v36, %v1649_v49  ;;  %v1333_v44 = vmax.f32 %v1331_v8, %v1332_v25  ;;  %v1299_v22 = vsel %vm403_vm0, %v5839_v14, -inf  ;;  %4920 = vpow2.f32 %v1478_v37  ;;  %v5878_v36 = vld [vmem:[%s5266_s17 + $0x1b0] sm:$0xff] }
  0x79   : > { %v1594_v58 = vadd.f32 %v1593_v12, %v1592_v17  ;;  %v1300_v34 = vmax.f32 %v1298_v21, %v1299_v22  ;;  %v1301_v5 = vsel %vm403_vm0, %v5844_v40, -inf  ;;  %4922 = vpow2.f32 %v1480_v15  ;;  %v5891_v15 = vld [vmem:[%s5266_s17 + $0x1b8] sm:$0xff] }
  0x7a   : > { %1775 = vxpose.xlu0.b32.cont [4/8] (short) (narrow) %v1704_v57, 32  ;;  %1907 = vxpose.xlu1.b32.cont [6/8] (short) (narrow) %v5779_v19, 32  ;;  %v1652_v54 = vrot.slane %v1651_v62, 4  ;;  %v1334_v63 = vrot.slane %v1333_v44, 4  ;;  %v1303_v2 = vsel %vm403_vm0, %v5849_v33, -inf  ;;  %v1305_v50 = vsel %vm403_vm0, %v5855_v42, -inf }
  0x7b   : > { %4924 = vrcp.f32 %v1594_v58  ;;  %v1302_v28 = vmax.f32 %v1300_v34, %v1301_v5  ;;  %v1706_v25 = vmul.f32 %v5765_v31, %v5596_v46  ;;  %v1717_v57 = vmul.f32 %v5718_v3, %v5560_v26 }
  0x7c   : > { %v5864_v19 = vpop.eup %4908  ;;  %v1653_v51 = vadd.f32 %v1652_v54, %v1651_v62  ;;  %4926 = vpow2.f32 %v1482_v38  ;;  %v1335_v55 = vmax.f32 %v1333_v44, %v1334_v63  ;;  %v1307_v46 = vsel %vm403_vm0, %v5862_v13, -inf }
  0x7d   : > { %v5868_v8 = vpop.eup %4910  ;;  %v1616_v17 = vsel %vm403_vm0, %v5864_v19, 0.0  ;;  %v1304_v49 = vmax.f32 %v1302_v28, %v1303_v2  ;;  %v1707_v26 = vmul.f32 %v5765_v31, %v5602_v29  ;;  %v1309_v34 = vsel %vm403_vm0, %v5878_v36, -inf }
  0x7e   : > { %1776 = vxpose.xlu0.b32.cont [5/8] (short) (narrow) %v1705_v59, 32  ;;  %1908 = vxpose.xlu1.b32.cont [7/8] (short) (narrow) %v5783_v10, 32  ;;  %v5880_v21 = vpop.eup %4912  ;;  %v1654_v12 = vrot.slane %v1653_v51, 2  ;;  %v1617_v59 = vsel %vm403_vm0, %v5868_v8, 0.0  ;;  %v1336_v37 = vrot.slane %v1335_v55, 2 }
  0x7f   : > { %v5886_v10 = vpop.eup %4914  ;;  %v1618_v3 = vadd.f32 %v1617_v59, %v1616_v17  ;;  %v1306_v62 = vmax.f32 %v1304_v49, %v1305_v50  ;;  %v1728_v29 = vmul.f32 %v5880_v21, %v5615_v9  ;;  %v1311_v50 = vsel %vm403_vm0, %v5891_v15, -inf }
  0x80   : > { %v5893_v38 = vpop.eup %4916  ;;  %v1655_v44 = vadd.f32 %v1654_v12, %v1653_v51  ;;  %v1619_v22 = vsel %vm403_vm0, %v5886_v10, 0.0  ;;  %v1337_v58 = vmax.f32 %v1335_v55, %v1336_v37  ;;  %v1708_v9 = vmul.f32 %v5765_v31, %v5611_v35 }
  0x81   : > { %v5899_v5 = vpop.eup %4918  ;;  %v1620_v54 = vadd.f32 %v1619_v22, %v1618_v3  ;;  %v1621_v63 = vsel %vm403_vm0, %v5893_v38, 0.0  ;;  %v1308_v2 = vmax.f32 %v1306_v62, %v1307_v46  ;;  %v1729_v37 = vmul.f32 %v5880_v21, %v5625_v7 }
  0x82   : > { %1777 = vxpose.xlu0.b32.cont [6/8] (short) (narrow) %v1706_v25, 32  ;;  %1909 = vxpose.xlu1.b32.end [8/8] (short) (narrow) %v1717_v57, 32  ;;  %v1656_v28 = vrot.slane %v1655_v44, 1  ;;  %v1623_v51 = vsel %vm403_vm0, %v5899_v5, 0.0  ;;  %v1338_v55 = vrot.slane %v1337_v58, 1  ;;  %v5909_v17 = vpop.eup %4920 }
  0x83   : > { %v1622_v25 = vadd.f32 %v1621_v63, %v1620_v54  ;;  %v1310_v57 = vmax.f32 %v1308_v2, %v1309_v34  ;;  %v5911_v49 = vpop.eup %4922  ;;  %v1625_v3 = vsel %vm403_vm0, %v5909_v17, 0.0  ;;  %v1730_v54 = vmul.f32 %v5880_v21, %v5631_v23 }
  0x84   : > { %v1339_v12 = vmax.f32 %v1337_v58, %v1338_v55  ;;  %v1657_v34 = vadd.f32 %v1656_v28, %v1655_v44  ;;  %v1627_v35 = vsel %vm403_vm0, %v5911_v49, 0.0 }
  0x85   : > { %v5915_v59 = vpop.eup %4924  ;;  %v1624_v46 = vadd.f32 %v1623_v51, %v1622_v25  ;;  %v1312_v62 = vmax.f32 %v1310_v57, %v1311_v50 }
  0x86   : > { %1778 = vxpose.xlu0.b32.cont [7/8] (short) (narrow) %v1707_v26, 32  ;;  %2160 = vxpose.xlu1.b32.start [1/8] (short) (narrow) %v1728_v29, 32  ;;  %v5921_v22 = vpop.eup %4926  ;;  %v1719_v31 = vmul.f32 %v5915_v59, %v5676_v39  ;;  %v1396_v58 = vsub.f32 %v5581_v20, %v1339_v12  ;;  %v1397_v29 = vsub.f32 %v5666_v6, %v1339_v12  ;;  %4928 = vrcp.f32 %v1657_v34 }
  0x87   : > { %v1626_v26 = vadd.f32 %v1625_v3, %v1624_v46  ;;  %v1629_v7 = vsel %vm403_vm0, %v5921_v22, 0.0  ;;  %v1398_v44 = vsub.f32 %v5698_v18, %v1339_v12  ;;  %v1399_v23 = vsub.f32 %v5716_v0, %v1339_v12 }
  0x88   : > { %v1313_v63 = vrot.slane %v1312_v62, 4  ;;  %v1400_v28 = vsub.f32 %v5731_v1, %v1339_v12  ;;  %v1401_v39 = vsub.f32 %v5760_v60, %v1339_v12  ;;  %v1516_v51 = vmul.f32 1.442695, %v1396_v58 }
  0x89   : > { %v1628_v2 = vadd.f32 %v1627_v35, %v1626_v26  ;;  %v1518_v55 = vmul.f32 1.442695, %v1397_v29  ;;  %v1520_v50 = vmul.f32 1.442695, %v1398_v44  ;;  %v1720_v20 = vmul.f32 %v5915_v59, %v5687_v27 }
  0x8a   : > { %1779 = vxpose.xlu0.b32.end [8/8] (short) (narrow) %v1708_v9, 32  ;;  %2161 = vxpose.xlu1.b32.cont [2/8] (short) (narrow) %v1729_v37, 32  ;;  %v1731_v6 = vmul.f32 %v5880_v21, %v5637_v43  ;;  %v1522_v18 = vmul.f32 1.442695, %v1399_v23  ;;  %v1402_v0 = vsub.f32 %v5763_v61, %v1339_v12  ;;  %4930 = vpow2.f32 %v1516_v51 }
  0x8b   : > { %v1630_v25 = vadd.f32 %v1629_v7, %v1628_v2  ;;  %v1524_v57 = vmul.f32 1.442695, %v1400_v28  ;;  %v1314_v1 = vmax.f32 %v1312_v62, %v1313_v63  ;;  %4932 = vpow2.f32 %v1518_v55 }
  0x8c   : > { %v1526_v60 = vmul.f32 1.442695, %v1401_v39  ;;  %v1403_v37 = vsub.f32 %v5820_v52, %v1339_v12  ;;  %4934 = vpow2.f32 %v1520_v50  ;;  %v1732_v27 = vmul.f32 %v5880_v21, %v5641_v47 }
  0x8d   : > { %v1631_v9 = vrot.slane %v1630_v25, 4  ;;  %v1315_v46 = vrot.slane %v1314_v1, 2  ;;  %4936 = vpow2.f32 %v1522_v18  ;;  %v1721_v3 = vmul.f32 %v5915_v59, %v5695_v24 }
  0x8e   : > { %2031 = vxpose.xlu0.b32.start [1/8] (short) (narrow) %v1719_v31, 32  ;;  %2162 = vxpose.xlu1.b32.cont [3/8] (short) (narrow) %v1730_v54, 32  ;;  %4938 = vpow2.f32 %v1524_v57  ;;  %v1528_v61 = vmul.f32 1.442695, %v1402_v0  ;;  %v1530_v54 = vmul.f32 1.442695, %v1403_v37  ;;  %v1733_v52 = vmul.f32 %v5880_v21, %v5647_v32 }
  0x8f   : > { %v1632_v43 = vadd.f32 %v1631_v9, %v1630_v25  ;;  %v1316_v62 = vmax.f32 %v1314_v1, %v1315_v46  ;;  %4940 = vpow2.f32 %v1526_v60  ;;  %v1722_v47 = vmul.f32 %v5915_v59, %v5700_v48 }
  0x90   : > { %v5947_v35 = vpop.eup %4928  ;;  %4942 = vpow2.f32 %v1528_v61  ;;  %v1734_v32 = vmul.f32 %v5880_v21, %v5649_v30  ;;  %v1724_v18 = vmul.f32 %v5915_v59, %v5713_v11  ;;  %v1725_v46 = vmul.f32 %v5915_v59, %v5722_v56 }
  0x91   : > { %v1633_v34 = vrot.slane %v1632_v43, 2  ;;  %v5955_v24 = vmul.f32 %v5947_v35, %v5822_v45  ;;  %v1317_v31 = vrot.slane %v1316_v62, 1  ;;  %4944 = vpow2.f32 %v1530_v54 }
  0x92   : > { %2032 = vxpose.xlu0.b32.cont [2/8] (short) (narrow) %v1720_v20, 32  ;;  %2163 = vxpose.xlu1.b32.cont [4/8] (short) (narrow) %v1731_v6, 32  ;;  %v1723_v45 = vmul.f32 %v5915_v59, %v5704_v16  ;;  %v1735_v16 = vmul.f32 %v5880_v21, %v5653_v4 }
  0x93   : > { %v1634_v12 = vadd.f32 %v1633_v34, %v1632_v43  ;;  %v1318_v58 = vmax.f32 %v1316_v62, %v1317_v31 }
  0x94   : > { %v5957_v7 = vpop.eup %4930 }
  0x95   : > { %v1635_v26 = vrot.slane %v1634_v12, 1  ;;  %v5959_v29 = vpop.eup %4932  ;;  %v1679_v48 = vsel %vm403_vm0, %v5957_v7, 0.0  ;;  %v1388_v2 = vsub.f32 %v5827_v41, %v1318_v58  ;;  %v1389_v28 = vsub.f32 %v5839_v14, %v1318_v58 }
  0x96   : > { %2033 = vxpose.xlu0.b32.cont [3/8] (short) (narrow) %v1721_v3, 32  ;;  %2164 = vxpose.xlu1.b32.cont [5/8] (short) (narrow) %v1732_v27, 32  ;;  %v5965_v23 = vpop.eup %4934  ;;  %v1680_v63 = vsel %vm403_vm0, %v5959_v29, 0.0  ;;  %v1390_v55 = vsub.f32 %v5844_v40, %v1318_v58  ;;  %v1391_v50 = vsub.f32 %v5849_v33, %v1318_v58  ;;  %v1392_v14 = vsub.f32 %v5855_v42, %v1318_v58 }
  0x97   : > { %v1636_v44 = vadd.f32 %v1635_v26, %v1634_v12  ;;  %v5973_v39 = vpop.eup %4936  ;;  %v1681_v30 = vadd.f32 %v1680_v63, %v1679_v48  ;;  %v1682_v51 = vsel %vm403_vm0, %v5965_v23, 0.0  ;;  %v1393_v6 = vsub.f32 %v5862_v13, %v1318_v58 }
  0x98   : > { %v5979_v20 = vpop.eup %4938  ;;  %v1684_v41 = vsel %vm403_vm0, %v5973_v39, 0.0  ;;  %v1500_v33 = vmul.f32 1.442695, %v1388_v2  ;;  %v1394_v21 = vsub.f32 %v5878_v36, %v1318_v58  ;;  %v1395_v0 = vsub.f32 %v5891_v15, %v1318_v58  ;;  %v7260_v15 = vld [vmem:[#allocation6_spill] sm:$0xff] }
  0x99   : > { %v5987_v25 = vpop.eup %4940  ;;  %4946 = vrcp.f32 %v1636_v44  ;;  %v1683_v40 = vadd.f32 %v1682_v51, %v1681_v30  ;;  %v1686_v4 = vsel %vm403_vm0, %v5979_v20, 0.0  ;;  %v1502_v42 = vmul.f32 1.442695, %v1389_v28 }
  0x9a   : > { %2034 = vxpose.xlu0.b32.cont [4/8] (short) (narrow) %v1722_v47, 32  ;;  %2165 = vxpose.xlu1.b32.cont [6/8] (short) (narrow) %v1733_v52, 32  ;;  %4948 = vpow2.f32 %v1500_v33  ;;  %v1504_v13 = vmul.f32 1.442695, %v1390_v55  ;;  %v1506_v1 = vmul.f32 1.442695, %v1391_v50  ;;  %v5995_v9 = vpop.eup %4942  ;;  %v1746_v43 = vmul.f32 %v5947_v35, %v7260_v15 }
  0x9b   : > { %v1685_v57 = vadd.f32 %v1684_v41, %v1683_v40  ;;  %v1688_v11 = vsel %vm403_vm0, %v5987_v25, 0.0  ;;  %4950 = vpow2.f32 %v1502_v42  ;;  %v1508_v60 = vmul.f32 1.442695, %v1392_v14  ;;  %v6001_v36 = vpop.eup %4944  ;;  %v7261_v52 = vld [vmem:[#allocation2_spill] sm:$0xff]  ;;  %v7262_v47 = vld [vmem:[#allocation8_spill] sm:$0xff] }
  0x9c   : > { %v1510_v37 = vmul.f32 1.442695, %v1393_v6  ;;  %4952 = vpow2.f32 %v1504_v13  ;;  %v1690_v3 = vsel %vm403_vm0, %v5995_v9, 0.0  ;;  %v1512_v61 = vmul.f32 1.442695, %v1394_v21 }
  0x9d   : > { %v1687_v27 = vadd.f32 %v1686_v4, %v1685_v57  ;;  %4954 = vpow2.f32 %v1506_v1  ;;  %v1514_v34 = vmul.f32 1.442695, %v1395_v0  ;;  %v1692_v56 = vsel %vm403_vm0, %v6001_v36, 0.0 }
  0x9e   : > { %2035 = vxpose.xlu0.b32.cont [5/8] (short) (narrow) %v1723_v45, 32  ;;  %2166 = vxpose.xlu1.b32.cont [7/8] (short) (narrow) %v1734_v32, 32  ;;  %4956 = vpow2.f32 %v1508_v60  ;;  %v1726_v12 = vmul.f32 %v5915_v59, %v7261_v52  ;;  %v1747_v31 = vmul.f32 %v5947_v35, %v7262_v47  ;;  %v7263_v45 = vld [vmem:[#allocation9_spill] sm:$0xff]  ;;  %v1752_v52 = vmul.f32 %v5947_v35, %v5809_v53 }
  0x9f   : > { %v1689_v62 = vadd.f32 %v1688_v11, %v1687_v27  ;;  %4958 = vpow2.f32 %v1510_v37  ;;  %v1748_v63 = vmul.f32 %v5947_v35, %v7263_v45  ;;  %v7265_v11 = vld [vmem:[#allocation14_spill] sm:$0xff] }
  0xa0   : > { %4960 = vpow2.f32 %v1512_v61  ;;  %v1750_v60 = vmul.f32 %v5947_v35, %v7265_v11  ;;  %v346_v11 = vld [vmem:[%s6087_s20 + $0x38] sm:$0xff] }
  0xa1   : > { %v1691_v54 = vadd.f32 %v1690_v3, %v1689_v62  ;;  %4962 = vpow2.f32 %v1514_v34  ;;  %v7266_v62 = vld [vmem:[#allocation3_spill] sm:$0xff] }
  0xa2   : > { %2036 = vxpose.xlu0.b32.cont [6/8] (short) (narrow) %v1724_v18, 32  ;;  %2167 = vxpose.xlu1.b32.end [8/8] (short) (narrow) %v1735_v16, 32  ;;  %v7264_v18 = vld [vmem:[#allocation13_spill] sm:$0xff] }
  0xa3   : > { %v6013_v26 = vpop.eup %4946  ;;  %v1693_v32 = vadd.f32 %v1692_v56, %v1691_v54  ;;  %v1749_v40 = vmul.f32 %v5947_v35, %v7264_v18 }
  0xa4   : > { %v6017_v58 = vmul.f32 %v6013_v26, %v5921_v22  ;;  %v6019_v44 = vpop.eup %4948  ;;  %v1737_v59 = vmul.f32 %v6013_v26, %v5864_v19  ;;  %v1738_v6 = vmul.f32 %v6013_v26, %v5868_v8  ;;  %v1739_v8 = vmul.f32 %v6013_v26, %v5886_v10 }
  0xa5   : > { %v6021_v48 = vpop.eup %4950  ;;  %v1694_v2 = vrot.slane %v1693_v32, 4  ;;  %v1658_v28 = vsel %vm403_vm0, %v6019_v44, 0.0  ;;  %v1740_v61 = vmul.f32 %v6013_v26, %v5893_v38  ;;  %v1751_v10 = vmul.f32 %v5947_v35, %v7266_v62 }
  0xa6   : > { %2037 = vxpose.xlu0.b32.cont [7/8] (short) (narrow) %v1725_v46, 32  ;;  %2418 = vxpose.xlu1.b32.start [1/8] (short) (narrow) %v1746_v43, 32  ;;  %v6029_v22 = vpop.eup %4952  ;;  %v1659_v30 = vsel %vm403_vm0, %v6021_v48, 0.0  ;;  %v1741_v56 = vmul.f32 %v6013_v26, %v5899_v5  ;;  %v1742_v38 = vmul.f32 %v6013_v26, %v5909_v17  ;;  %v1743_v45 = vmul.f32 %v6013_v26, %v5911_v49 }
  0xa7   : > { %v6033_v51 = vpop.eup %4954  ;;  %v1695_v55 = vadd.f32 %v1694_v2, %v1693_v32  ;;  %v1660_v50 = vadd.f32 %v1659_v30, %v1658_v28  ;;  %v1661_v19 = vsel %vm403_vm0, %v6029_v22, 0.0  ;;  %v339_v28 = vld [vmem:[%s6087_s20] sm:$0xff]  ;;  %v340_v30 = vld [vmem:[%s6087_s20 + $0x8] sm:$0xff] }
  0xa8   : > { %v6037_v16 = vpop.eup %4956  ;;  %v1663_v41 = vsel %vm403_vm0, %v6033_v51, 0.0 }
  0xa9   : > { %v6041_v14 = vpop.eup %4958  ;;  %v1696_v33 = vrot.slane %v1695_v55, 2  ;;  %v1662_v4 = vadd.f32 %v1661_v19, %v1660_v50  ;;  %v1665_v21 = vsel %vm403_vm0, %v6037_v16, 0.0  ;;  %v350_v50 = vld [vmem:[%s6087_s20 + $0x58] sm:$0xff] }
  0xaa   : > { %2038 = vxpose.xlu0.b32.end [8/8] (short) (narrow) %v1726_v12, 32  ;;  %2419 = vxpose.xlu1.b32.cont [2/8] (short) (narrow) %v1747_v31, 32  ;;  %v6049_v0 = vpop.eup %4960  ;;  %v1667_v13 = vsel %vm403_vm0, %v6041_v14, 0.0 }
  0xab   : > { %v1697_v42 = vadd.f32 %v1696_v33, %v1695_v55  ;;  %v1664_v57 = vadd.f32 %v1663_v41, %v1662_v4  ;;  %v4963_v1 = vpop.eup %4962  ;;  %v1669_v27 = vsel %vm403_vm0, %v6049_v0, 0.0  ;;  %v349_v55 = vld [vmem:[%s6087_s20 + $0x50] sm:$0xff]  ;;  %v352_v33 = vld [vmem:[%s6087_s20 + $0x68] sm:$0xff] }
  0xac   : > { %v1671_v3 = vsel %vm403_vm0, %v4963_v1, 0.0  ;;  %v4643_v19 = vpack.c.bf16 %v350_v50, %v349_v55  ;;  %v341_v41 = vld [vmem:[%s6087_s20 + $0x10] sm:$0xff] }
  0xad   : > { %v1698_v37 = vrot.slane %v1697_v42, 1  ;;  %v1666_v46 = vadd.f32 %v1665_v21, %v1664_v57  ;;  %v343_v21 = vld [vmem:[%s6087_s20 + $0x20] sm:$0xff] }
  0xae   : > { %2289 = vxpose.xlu0.b32.start [1/8] (short) (narrow) %v1737_v59, 32  ;;  %2420 = vxpose.xlu1.b32.cont [3/8] (short) (narrow) %v1748_v63, 32 }
  0xaf   : > { %v1699_v15 = vadd.f32 %v1698_v37, %v1697_v42  ;;  %v1668_v43 = vadd.f32 %v1667_v13, %v1666_v46  ;;  %v344_v42 = vld [vmem:[%s6087_s20 + $0x28] sm:$0xff]  ;;  %v353_v13 = vld [vmem:[%s6087_s20 + $0x70] sm:$0xff] }
  0xb0   : > { %v4631_v57 = vpack.c.bf16 %v344_v42, %v343_v21  ;;  %v364_v46 = vld [vmem:[%s6087_s20 + $0xc8] sm:$0xff] }
  0xb1   : > { %4964 = vrcp.f32 %v1699_v15  ;;  %v1670_v34 = vadd.f32 %v1669_v27, %v1668_v43 }
  0xb2   : > { %2290 = vxpose.xlu0.b32.cont [2/8] (short) (narrow) %v1738_v6, 32  ;;  %2421 = vxpose.xlu1.b32.cont [4/8] (short) (narrow) %v1749_v40, 32  ;;  %v342_v6 = vld [vmem:[%s6087_s20 + $0x18] sm:$0xff]  ;;  %v351_v40 = vld [vmem:[%s6087_s20 + $0x60] sm:$0xff] }
  0xb3   : > { %v1672_v54 = vadd.f32 %v1671_v3, %v1670_v34  ;;  %v4627_v18 = vpack.c.bf16 %v342_v6, %v341_v41  ;;  %v4647_v4 = vpack.c.bf16 %v352_v33, %v351_v40  ;;  %v355_v3 = vld [vmem:[%s6087_s20 + $0x80] sm:$0xff]  ;;  %v384_v33 = vld [vmem:[%s6087_s20 + $0x168] sm:$0xff] }
  0xb4   : > { %v383_v40 = vld [vmem:[%s6087_s20 + $0x160] sm:$0xff] }
  0xb5   : > { %v1673_v12 = vrot.slane %v1672_v54, 4 }
  0xb6   : > { %2291 = vxpose.xlu0.b32.cont [3/8] (short) (narrow) %v1739_v8, 32  ;;  %2422 = vxpose.xlu1.b32.cont [5/8] (short) (narrow) %v1750_v60, 32 }
  0xb7   : > { %v1674_v47 = vadd.f32 %v1673_v12, %v1672_v54 }
  0xb9   : > { %v1675_v31 = vrot.slane %v1674_v47, 2 }
  0xba   : > { %2292 = vxpose.xlu0.b32.cont [4/8] (short) (narrow) %v1740_v61, 32  ;;  %2423 = vxpose.xlu1.b32.cont [6/8] (short) (narrow) %v1751_v10, 32  ;;  %v365_v61 = vld [vmem:[%s6087_s20 + $0xd0] sm:$0xff]  ;;  %v366_v10 = vld [vmem:[%s6087_s20 + $0xd8] sm:$0xff] }
  0xbb   : > { %v4965_v32 = vpop.eup %4964  ;;  %v1676_v59 = vadd.f32 %v1675_v31, %v1674_v47  ;;  %v4675_v54 = vpack.c.bf16 %v366_v10, %v365_v61  ;;  %v357_v47 = vld [vmem:[%s6087_s20 + $0x90] sm:$0xff]  ;;  %v6203_v61 = vld [vmem:[%s6159_s23] sm:$0xff] }
  0xbc   : > { %v1764_v5 = vmul.f32 %v4965_v32, %v5957_v7  ;;  %v6075_v35 = vmul.f32 %v4965_v32, %v6001_v36  ;;  %v1765_v17 = vmul.f32 %v4965_v32, %v5959_v29  ;;  %v1766_v49 = vmul.f32 %v4965_v32, %v5965_v23  ;;  %v347_v29 = vld [vmem:[%s6087_s20 + $0x40] sm:$0xff]  ;;  %v348_v23 = vld [vmem:[%s6087_s20 + $0x48] sm:$0xff] }
  0xbd   : > { %v1677_v53 = vrot.slane %v1676_v59, 1  ;;  %v4639_v2 = vpack.c.bf16 %v348_v23, %v347_v29  ;;  %v361_v29 = vld [vmem:[%s6087_s20 + $0xb0] sm:$0xff]  ;;  %v362_v23 = vld [vmem:[%s6087_s20 + $0xb8] sm:$0xff] }
  0xbe   : > { %2293 = vxpose.xlu0.b32.cont [5/8] (short) (narrow) %v1741_v56, 32  ;;  %2424 = vxpose.xlu1.b32.cont [7/8] (short) (narrow) %v1752_v52, 32  ;;  %v368_v56 = vld [vmem:[%s6087_s20 + $0xe8] sm:$0xff] }
  0xbf   : > { %v1678_v63 = vadd.f32 %v1677_v53, %v1676_v59  ;;  %4640 = vmatprep.subr.bf16.mxu1 %v4639_v2 }
  0xc0   : > { %4642 = vmatpush3.bf16.msra.mxu1 %v4639_v2  ;;  %v371_v2 = vld [vmem:[%s6087_s20 + $0x100] sm:$0xff] }
  0xc1   : > { %4966 = vrcp.f32 %v1678_v63  ;;  %4644 = vmatprep.subr.bf16.mxu1 %v4643_v19  ;;  %v360_v63 = vld [vmem:[%s6087_s20 + $0xa8] sm:$0xff] }
  0xc2   : > { %2294 = vxpose.xlu0.b32.cont [6/8] (short) (narrow) %v1742_v38, 32  ;;  %2425 = vxpose.xlu1.b32.end [8/8] (short) (narrow) %v5955_v24, 32  ;;  %v1767_v24 = vmul.f32 %v4965_v32, %v5973_v39  ;;  %v1768_v39 = vmul.f32 %v4965_v32, %v5979_v20  ;;  %v1769_v20 = vmul.f32 %v4965_v32, %v5987_v25  ;;  %v358_v38 = vld [vmem:[%s6087_s20 + $0x98] sm:$0xff] }
  0xc3   : > { %v1770_v25 = vmul.f32 %v4965_v32, %v5995_v9  ;;  %v369_v32 = vld [vmem:[%s6087_s20 + $0xf0] sm:$0xff]  ;;  %v4659_v59 = vpack.c.bf16 %v358_v38, %v357_v47 }
  0xc4   : > { %4646 = vmatpush3.bf16.msra.mxu1 %v4643_v19  ;;  %v382_v19 = vld [vmem:[%s6087_s20 + $0x158] sm:$0xff]  ;;  %v6216_v47 = vld [vmem:[%s6159_s23 + $0x10] sm:$0xff] }
  0xc5   : > { %4648 = vmatprep.subr.bf16.mxu1 %v4647_v4 }
  0xc6   : > { %2295 = vxpose.xlu0.b32.cont [7/8] (short) (narrow) %v1743_v45, 32  ;;  %2676 = vxpose.xlu1.b32.start [1/8] (short) (narrow) %v1764_v5, 32  ;;  %v370_v45 = vld [vmem:[%s6087_s20 + $0xf8] sm:$0xff] }
  0xc8   : > { %4650 = vmatpush3.bf16.msra.mxu1 %v4647_v4  ;;  %v4711_v4 = vpack.c.bf16 %v384_v33, %v383_v40 }
  0xca   : > { %2296 = vxpose.xlu0.b32.end [8/8] (short) (narrow) %v6017_v58, 32  ;;  %2677 = vxpose.xlu1.b32.cont [2/8] (short) (narrow) %v1765_v17, 32  ;;  %v4683_v17 = vpack.c.bf16 %v370_v45, %v369_v32  ;;  %v387_v32 = vld [vmem:[%s6087_s20 + $0x180] sm:$0xff]  ;;  %v6223_v45 = vld [vmem:[%s6159_s23 + $0x68] sm:$0xff] }
  0xcb   : > { %v6081_v26 = vpop.eup %4966 }
  0xcc   : > { %v1755_v7 = vmul.f32 %v6081_v26, %v6019_v44  ;;  %v6095_v36 = vmul.f32 %v6081_v26, %v4963_v1  ;;  %v1756_v58 = vmul.f32 %v6081_v26, %v6021_v48  ;;  %v4623_v44 = vpack.c.bf16 %v340_v30, %v339_v28  ;;  %v354_v1 = vld [vmem:[%s6087_s20 + $0x78] sm:$0xff]  ;;  %v372_v28 = vld [vmem:[%s6087_s20 + $0x108] sm:$0xff] }
  0xcd   : > { %v1757_v48 = vmul.f32 %v6081_v26, %v6029_v22  ;;  %v1758_v22 = vmul.f32 %v6081_v26, %v6033_v51  ;;  %v4651_v8 = vpack.c.bf16 %v354_v1, %v353_v13  ;;  %v1759_v9 = vmul.f32 %v6081_v26, %v6037_v16  ;;  %v345_v51 = vld [vmem:[%s6087_s20 + $0x30] sm:$0xff]  ;;  %v363_v16 = vld [vmem:[%s6087_s20 + $0xc0] sm:$0xff]  ;;  %v374_v13 = vld [vmem:[%s6087_s20 + $0x118] sm:$0xff] }
  0xce   : > { %2678 = vxpose.xlu1.b32.cont [3/8] (short) (narrow) %v1766_v49, 32  ;;  %2547 = vxpose.xlu0.b32.start [1/8] (short) (narrow) %v1755_v7, 32  ;;  %v4635_v60 = vpack.c.bf16 %v346_v11, %v345_v51  ;;  %v1760_v37 = vmul.f32 %v6081_v26, %v6041_v14  ;;  %v4671_v27 = vpack.c.bf16 %v364_v46, %v363_v16  ;;  %v356_v14 = vld [vmem:[%s6087_s20 + $0x88] sm:$0xff]  ;;  %v379_v49 = vld [vmem:[%s6087_s20 + $0x140] sm:$0xff]  ;;  %v6185_v1 = vld [vmem:[%s6159_s23 + $0x50] sm:$0xff] }
  0xcf   : > { %4624 = vmatprep.subr.bf16.mxu0 %v4623_v44  ;;  %4652 = vmatprep.subr.bf16.mxu1 %v4651_v8  ;;  %v1761_v43 = vmul.f32 %v6081_v26, %v6049_v0  ;;  %v4655_v62 = vpack.c.bf16 %v356_v14, %v355_v3  ;;  %v367_v0 = vld [vmem:[%s6087_s20 + $0xe0] sm:$0xff]  ;;  %v380_v26 = vld [vmem:[%s6087_s20 + $0x148] sm:$0xff]  ;;  %v4687_v30 = vpack.c.bf16 %v372_v28, %v371_v2  ;;  %v434_v11 = vsel %vm403_vm0, %v6185_v1, -inf  ;;  %v398_v2 = vld [vmem:[%s6087_s20 + $0x1d8] sm:$0xff] }
  0xd0   : > { %4626 = vmatpush3.bf16.msra.mxu0 %v4623_v44  ;;  %4654 = vmatpush3.bf16.msra.mxu1 %v4651_v8  ;;  %v4679_v31 = vpack.c.bf16 %v368_v56, %v367_v0  ;;  %v6162_v44 = vld [vmem:[%s6159_s23 + $0x40] sm:$0xff]  ;;  %v385_v8 = vld [vmem:[%s6087_s20 + $0x170] sm:$0xff]  ;;  %v376_v46 = vld [vmem:[%s6087_s20 + $0x128] sm:$0xff] }
  0xd1   : > { %4628 = vmatprep.subr.bf16.mxu0 %v4627_v18  ;;  %4672 = vmatprep.subr.bf16.mxu1 %v4671_v27  ;;  %v428_v55 = vsel %vm403_vm0, %v6162_v44, -inf  ;;  %v375_v16 = vld [vmem:[%s6087_s20 + $0x120] sm:$0xff]  ;;  %v396_v3 = vld [vmem:[%s6087_s20 + $0x1c8] sm:$0xff] }
  0xd2   : > { %2679 = vxpose.xlu1.b32.cont [4/8] (short) (narrow) %v1767_v24, 32  ;;  %2548 = vxpose.xlu0.b32.cont [2/8] (short) (narrow) %v1756_v58, 32  ;;  %v4695_v14 = vpack.c.bf16 %v376_v46, %v375_v16  ;;  %v6210_v56 = vld [vmem:[%s6159_s23 + $0x60] sm:$0xff] }
  0xd3   : > { %v440_v38 = vsel %vm403_vm0, %v6210_v56, -inf  ;;  %v6259_v28 = vld [vmem:[%s6159_s23 + $0xc0] sm:$0xff] }
  0xd4   : > { %4630 = vmatpush3.bf16.msra.mxu0 %v4627_v18 }
  0xd5   : > { %4632 = vmatprep.subr.bf16.mxu0 %v4631_v57 }
  0xd6   : > { %2680 = vxpose.xlu1.b32.cont [5/8] (short) (narrow) %v1768_v39, 32  ;;  %2549 = vxpose.xlu0.b32.cont [3/8] (short) (narrow) %v1757_v48, 32  ;;  %v4703_v39 = vpack.c.bf16 %v380_v26, %v379_v49  ;;  %v6169_v48 = vld [vmem:[%s6159_s23 + $0x8] sm:$0xff] }
  0xd7   : > { %v407_v6 = vsel %vm403_vm0, %v6169_v48, -inf }
  0xd8   : > { %4634 = vmatpush3.bf16.msra.mxu0 %v4631_v57  ;;  %v373_v57 = vld [vmem:[%s6087_s20 + $0x110] sm:$0xff] }
  0xd9   : > { %4636 = vmatprep.subr.bf16.mxu0 %v4635_v60  ;;  %v4691_v51 = vpack.c.bf16 %v374_v13, %v373_v57  ;;  %v389_v57 = vld [vmem:[%s6087_s20 + $0x190] sm:$0xff]  ;;  %v390_v13 = vld [vmem:[%s6087_s20 + $0x198] sm:$0xff] }
  0xda   : > { %2681 = vxpose.xlu1.b32.cont [6/8] (short) (narrow) %v1769_v20, 32  ;;  %2550 = vxpose.xlu0.b32.cont [4/8] (short) (narrow) %v1758_v22, 32  ;;  %v381_v20 = vld [vmem:[%s6087_s20 + $0x150] sm:$0xff] }
  0xdb   : > { %v4707_v41 = vpack.c.bf16 %v382_v19, %v381_v20  ;;  %v476_v20 = vsel %vm403_vm0, %v6259_v28, -inf }
  0xdc   : > { %4638 = vmatpush3.bf16.msra.mxu0 %v4635_v60 }
  0xdd   : > { %4656 = vmatprep.subr.bf16.mxu0 %v4655_v62 }
  0xde   : > { %2682 = vxpose.xlu1.b32.cont [7/8] (short) (narrow) %v1770_v25, 32  ;;  %2551 = vxpose.xlu0.b32.cont [5/8] (short) (narrow) %v1759_v9, 32  ;;  %v6177_v25 = vld [vmem:[%s6159_s23 + $0x48] sm:$0xff]  ;;  %v386_v9 = vld [vmem:[%s6087_s20 + $0x178] sm:$0xff] }
  0xdf   : > { %v431_v22 = vsel %vm403_vm0, %v6177_v25, -inf }
  0xe2   : > { %2683 = vxpose.xlu1.b32.end [8/8] (short) (narrow) %v6075_v35, 32  ;;  %2552 = vxpose.xlu0.b32.cont [6/8] (short) (narrow) %v1760_v37, 32  ;;  %v359_v35 = vld [vmem:[%s6087_s20 + $0xa0] sm:$0xff] }
  0xe3   : > { %v4663_v24 = vpack.c.bf16 %v360_v63, %v359_v35  ;;  %v6231_v35 = vld [vmem:[%s6159_s23 + $0x18] sm:$0xff]  ;;  %v443_v63 = vsel %vm403_vm0, %v6223_v45, -inf }
  0xe4   : > { %v413_v49 = vsel %vm403_vm0, %v6231_v35, -inf }
  0xe6   : > { %v1918_v15 = vpop.trf.xlu1  ;;  %2553 = vxpose.xlu0.b32.cont [7/8] (short) (narrow) %v1761_v43, 32  ;;  %v395_v43 = vld [vmem:[%s6087_s20 + $0x1c0] sm:$0xff] }
  0xe7   : > { %4325 = vmatprep.mubr.msk.f32.mxu1 %vm1804_vm1, %v1918_v15  ;;  %v6196_v15 = vld [vmem:[%s6159_s23 + $0x58] sm:$0xff]  ;;  %v4735_v0 = vpack.c.bf16 %v396_v3, %v395_v43  ;;  %v391_v43 = vld [vmem:[%s6087_s20 + $0x1a0] sm:$0xff]  ;;  %v392_v3 = vld [vmem:[%s6087_s20 + $0x1a8] sm:$0xff] }
  0xea   : > { %v1919_v34 = vpop.trf.xlu1  ;;  %2554 = vxpose.xlu0.b32.end [8/8] (short) (narrow) %v6095_v36, 32  ;;  %v4667_v36 = vpack.c.bf16 %v362_v23, %v361_v29  ;;  %v6252_v23 = vld [vmem:[%s6159_s23 + $0x28] sm:$0xff] }
  0xeb   : > { %4326 = vmatmul.mubr.msk.f32.vlgmr.msra.gmra.mrb[0].mxu1 %vm1804_vm1, %v1919_v34  ;;  %v377_v34 = vld [vmem:[%s6087_s20 + $0x130] sm:$0xff] }
  0xec   : > { %4674 = vmatpush3.bf16.msra.mxu1 %v4671_v27  ;;  %v4715_v27 = vpack.c.bf16 %v386_v9, %v385_v8  ;;  %v6285_v8 = vld [vmem:[%s6159_s23 + $0xd0] sm:$0xff] }
  0xed   : > { %4676 = vmatprep.subr.bf16.mxu1 %v4675_v54  ;;  %v401_v9 = vld [vmem:[%s6087_s20 + $0x1f0] sm:$0xff]  ;;  %v482_v16 = vsel %vm403_vm0, %v6285_v8, -inf }
  0xee   : > { %v1788_v52 = vpop.trf.xlu0  ;;  %v1920_v12 = vpop.trf.xlu1 }
  0xef   : > { %4303 = vmatprep.mubr.msk.f32.mxu0 %vm1804_vm1, %v1788_v52  ;;  %4328 = vmatprep.mubr.msk.f32.mxu1 %vm1804_vm1, %v1920_v12  ;;  %v404_v52 = vsel %vm403_vm0, %v6203_v61, -inf }
  0xf0   : > { %4678 = vmatpush3.bf16.msra.mxu1 %v4675_v54  ;;  %v378_v54 = vld [vmem:[%s6087_s20 + $0x138] sm:$0xff] }
  0xf1   : > { %4680 = vmatprep.subr.bf16.mxu1 %v4679_v31  ;;  %v4699_v12 = vpack.c.bf16 %v378_v54, %v377_v34  ;;  %v4727_v34 = vpack.c.bf16 %v392_v3, %v391_v43  ;;  %v6309_v54 = vld [vmem:[%s6159_s23 + $0x88] sm:$0xff]  ;;  %v6391_v3 = vld [vmem:[%s6159_s23 + $0x158] sm:$0xff] }
  0xf2   : > { %v1789_v5 = vpop.trf.xlu0  ;;  %v1921_v53 = vpop.trf.xlu1 }
  0xf3   : > { %4304 = vmatmul.mubr.msk.f32.vlgmr.msra.gmra.mrb[0].mxu0 %vm1804_vm1, %v1789_v5  ;;  %4329 = vmatmul.mubr.msk.f32.gmra.mrb[2].mxu1 %vm1804_vm1, %v1921_v53  ;;  %v410_v5 = vsel %vm403_vm0, %v6216_v47, -inf }
  0xf4   : > { %4658 = vmatpush3.bf16.msra.mxu0 %v4655_v62  ;;  %4682 = vmatpush3.bf16.msra.mxu1 %v4679_v31  ;;  %v437_v62 = vsel %vm403_vm0, %v6196_v15, -inf }
  0xf5   : > { %4660 = vmatprep.subr.bf16.mxu0 %v4659_v59  ;;  %4684 = vmatprep.subr.bf16.mxu1 %v4683_v17 }
  0xf6   : > { %v1790_v7 = vpop.trf.xlu0 }
  0xf7   : > { %4306 = vmatprep.mubr.msk.f32.mxu0 %vm1804_vm1, %v1790_v7  ;;  %v6247_v7 = vld [vmem:[%s6159_s23 + $0x78] sm:$0xff] }
  0xf8   : > { %4662 = vmatpush3.bf16.msra.mxu0 %v4659_v59  ;;  %4686 = vmatpush3.bf16.msra.mxu1 %v4683_v17  ;;  %v388_v59 = vld [vmem:[%s6087_s20 + $0x188] sm:$0xff]  ;;  %v6236_v17 = vld [vmem:[%s6159_s23 + $0x70] sm:$0xff] }
  0xf9   : > { %4664 = vmatprep.subr.bf16.mxu0 %v4663_v24  ;;  %4704 = vmatprep.subr.bf16.mxu1 %v4703_v39  ;;  %v6228_v53 = vpack.c.bf16 %v388_v59, %v387_v32  ;;  %v446_v26 = vsel %vm403_vm0, %v6236_v17, -inf  ;;  %v455_v32 = vsel %vm403_vm0, %v6309_v54, -inf }
  0xfa   : > { %v1791_v58 = vpop.trf.xlu0 }
  0xfb   : > { %4307 = vmatmul.mubr.msk.f32.gmra.mrb[2].mxu0 %vm1804_vm1, %v1791_v58  ;;  %v397_v58 = vld [vmem:[%s6087_s20 + $0x1d0] sm:$0xff] }
  0xfc   : > { %4666 = vmatpush3.bf16.msra.mxu0 %v4663_v24  ;;  %v6242_v24 = vld [vmem:[%s6159_s23 + $0x20] sm:$0xff] }
  0xfd   : > { %4668 = vmatprep.subr.bf16.mxu0 %v4667_v36  ;;  %v416_v29 = vsel %vm403_vm0, %v6242_v24, -inf }
 0x100   : > { %4670 = vmatpush3.bf16.msra.mxu0 %v4667_v36 }
 0x101   : > { %4688 = vmatprep.subr.bf16.mxu0 %v4687_v30 }
 0x106   : > { %v2176_v50 = vpop.trf.xlu1 }
 0x107   : > { %4369 = vmatprep.mubr.msk.f32.mxu1 %vm1804_vm1, %v2176_v50  ;;  %v6265_v50 = vld [vmem:[%s6159_s23 + $0x30] sm:$0xff] }
 0x108   : > { %v422_v40 = vsel %vm403_vm0, %v6265_v50, -inf }
 0x109   : > { %429 = vmax.xlane.f32.xlu1 %v428_v55  ;;  %v4739_v55 = vpack.c.bf16 %v398_v2, %v397_v58  ;;  %v6343_v2 = vld [vmem:[%s6159_s23 + $0xa0] sm:$0xff] }
 0x10a   : > { %v2177_v18 = vpop.trf.xlu1 }
 0x10b   : > { %4370 = vmatmul.mubr.msk.f32.vlgmr.msra.gmra.mrb[4].mxu1 %vm1804_vm1, %v2177_v18  ;;  %v6272_v18 = vld [vmem:[%s6159_s23 + $0xc8] sm:$0xff] }
 0x10c   : > { %4706 = vmatpush3.bf16.msra.mxu1 %v4703_v39  ;;  %v449_v39 = vsel %vm403_vm0, %v6247_v7, -inf }
 0x10d   : > { %408 = vmax.xlane.f32.xlu1 %v407_v6  ;;  %4708 = vmatprep.subr.bf16.mxu1 %v4707_v41  ;;  %v400_v6 = vld [vmem:[%s6087_s20 + $0x1e8] sm:$0xff] }
 0x10e   : > { %v2047_v21 = vpop.trf.xlu0  ;;  %v2178_v42 = vpop.trf.xlu1 }
 0x10f   : > { %4347 = vmatprep.mubr.msk.f32.mxu0 %vm1804_vm1, %v2047_v21  ;;  %4372 = vmatprep.mubr.msk.f32.mxu1 %vm1804_vm1, %v2178_v42 }
 0x110   : > { %4710 = vmatpush3.bf16.msra.mxu1 %v4707_v41  ;;  %v399_v41 = vld [vmem:[%s6087_s20 + $0x1e0] sm:$0xff] }
 0x111   : > { %432 = vmax.xlane.f32.xlu1 %v431_v22  ;;  %4712 = vmatprep.subr.bf16.mxu1 %v4711_v4  ;;  %v4743_v33 = vpack.c.bf16 %v400_v6, %v399_v41  ;;  %v479_v22 = vsel %vm403_vm0, %v6272_v18, -inf }
 0x112   : > { %v2048_v60 = vpop.trf.xlu0  ;;  %v2179_v37 = vpop.trf.xlu1 }
 0x113   : > { %4348 = vmatmul.mubr.msk.f32.vlgmr.msra.gmra.mrb[4].mxu0 %vm1804_vm1, %v2048_v60  ;;  %4373 = vmatmul.mubr.msk.f32.gmra.mrb[6].mxu1 %vm1804_vm1, %v2179_v37  ;;  %v4723_v60 = vpack.c.bf16 %v390_v13, %v389_v57  ;;  %v6294_v37 = vld [vmem:[%s6159_s23 + $0x80] sm:$0xff]  ;;  %v6369_v57 = vld [vmem:[%s6159_s23 + $0x148] sm:$0xff] }
 0x114   : > { %4690 = vmatpush3.bf16.msra.mxu0 %v4687_v30  ;;  %4714 = vmatpush3.bf16.msra.mxu1 %v4711_v4  ;;  %v419_v30 = vsel %vm403_vm0, %v6252_v23, -inf  ;;  %v6278_v4 = vld [vmem:[%s6159_s23 + $0x38] sm:$0xff] }
 0x115   : > { %435 = vmax.xlane.f32.xlu1 %v434_v11  ;;  %4692 = vmatprep.subr.bf16.mxu0 %v4691_v51  ;;  %v425_v11 = vsel %vm403_vm0, %v6278_v4, -inf }
 0x116   : > { %v2049_v10 = vpop.trf.xlu0  ;;  %4716 = vmatprep.subr.bf16.mxu1 %v4715_v27 }
 0x117   : > { %4350 = vmatprep.mubr.msk.f32.mxu0 %vm1804_vm1, %v2049_v10  ;;  %405 = vmax.xlane.f32.xlu0 %v404_v52  ;;  %v452_v10 = vsel %vm403_vm0, %v6294_v37, -inf }
 0x118   : > { %4694 = vmatpush3.bf16.msra.mxu0 %v4691_v51  ;;  %4718 = vmatpush3.bf16.msra.mxu1 %v4715_v27  ;;  %v402_v51 = vld [vmem:[%s6087_s20 + $0x1f8] sm:$0xff] }
 0x119   : > { %438 = vmax.xlane.f32.xlu1 %v437_v62  ;;  %4696 = vmatprep.subr.bf16.mxu0 %v4695_v14  ;;  %v4747_v62 = vpack.c.bf16 %v402_v51, %v401_v9  ;;  %v6375_v9 = vld [vmem:[%s6159_s23 + $0xb8] sm:$0xff]  ;;  %v527_v51 = vsel %vm403_vm0, %v6369_v57, -inf }
 0x11a   : > { %v2050_v31 = vpop.trf.xlu0  ;;  %4736 = vmatprep.subr.bf16.mxu1 %v4735_v0 }
 0x11b   : > { %4351 = vmatmul.mubr.msk.f32.gmra.mrb[6].mxu0 %vm1804_vm1, %v2050_v31  ;;  %411 = vmax.xlane.f32.xlu0 %v410_v5  ;;  %v6316_v31 = vld [vmem:[%s6159_s23 + $0xe0] sm:$0xff]  ;;  %v6322_v5 = vld [vmem:[%s6159_s23 + $0x90] sm:$0xff] }
 0x11c   : > { %4698 = vmatpush3.bf16.msra.mxu0 %v4695_v14  ;;  %v6301_v14 = vld [vmem:[%s6159_s23 + $0xd8] sm:$0xff] }
 0x11d   : > { %441 = vmax.xlane.f32.xlu1 %v440_v38  ;;  %4700 = vmatprep.subr.bf16.mxu0 %v4699_v12  ;;  %v394_v38 = vld [vmem:[%s6087_s20 + $0x1b8] sm:$0xff] }
 0x11f   : > { %414 = vmax.xlane.f32.xlu0 %v413_v49  ;;  %v6327_v49 = vld [vmem:[%s6159_s23 + $0xe8] sm:$0xff] }
 0x120   : > { %4702 = vmatpush3.bf16.msra.mxu0 %v4699_v12  ;;  %v393_v12 = vld [vmem:[%s6087_s20 + $0x1b0] sm:$0xff] }
 0x121   : > { %444 = vmax.xlane.f32.xlu1 %v443_v63  ;;  %4720 = vmatprep.subr.bf16.mxu0 %v6228_v53  ;;  %v4731_v59 = vpack.c.bf16 %v394_v38, %v393_v12 }
 0x123   : > { %417 = vmax.xlane.f32.xlu0 %v416_v29  ;;  %v6333_v29 = vld [vmem:[%s6159_s23 + $0x98] sm:$0xff] }
 0x124   : > { %v461_v58 = vsel %vm403_vm0, %v6333_v29, -inf }
 0x125   : > { %447 = vmax.xlane.f32.xlu1 %v446_v26  ;;  %v458_v26 = vsel %vm403_vm0, %v6322_v5, -inf }
 0x126   : > { %v2434_v36 = vpop.trf.xlu1 }
 0x127   : > { %4413 = vmatprep.mubr.msk.f32.mxu1 %vm1804_vm1, %v2434_v36  ;;  %420 = vmax.xlane.f32.xlu0 %v419_v30  ;;  %v6338_v36 = vld [vmem:[%s6159_s23 + $0xf0] sm:$0xff] }
 0x128   : > { %v494_v30 = vsel %vm403_vm0, %v6338_v36, -inf }
 0x129   : > { %450 = vmax.xlane.f32.xlu1 %v449_v39  ;;  %v491_v39 = vsel %vm403_vm0, %v6327_v49, -inf }
 0x12a   : > { %v2435_v19 = vpop.trf.xlu1 }
 0x12b   : > { %4414 = vmatmul.mubr.msk.f32.vlgmr.msra.gmra.mrb[8].mxu1 %vm1804_vm1, %v2435_v19  ;;  %423 = vmax.xlane.f32.xlu0 %v422_v40  ;;  %v6353_v19 = vld [vmem:[%s6159_s23 + $0xa8] sm:$0xff]  ;;  %v6358_v40 = vld [vmem:[%s6159_s23 + $0x140] sm:$0xff] }
 0x12c   : > { %4738 = vmatpush3.bf16.msra.mxu1 %v4735_v0  ;;  %v485_v0 = vsel %vm403_vm0, %v6301_v14, -inf }
 0x12d   : > { %477 = vmax.xlane.f32.xlu1 %v476_v20  ;;  %4740 = vmatprep.subr.bf16.mxu1 %v4739_v55  ;;  %v464_v20 = vsel %vm403_vm0, %v6343_v2, -inf }
 0x12e   : > { %v2305_v21 = vpop.trf.xlu0  ;;  %v2436_v42 = vpop.trf.xlu1 }
 0x12f   : > { %4391 = vmatprep.mubr.msk.f32.mxu0 %vm1804_vm1, %v2305_v21  ;;  %4416 = vmatprep.mubr.msk.f32.mxu1 %vm1804_vm1, %v2436_v42  ;;  %v524_v21 = vsel %vm403_vm0, %v6358_v40, -inf }
 0x130   : > { %4742 = vmatpush3.bf16.msra.mxu1 %v4739_v55  ;;  %426 = vmax.xlane.f32.xlu0 %v425_v11  ;;  %v6348_v55 = vld [vmem:[%s6159_s23 + $0xf8] sm:$0xff] }
 0x131   : > { %480 = vmax.xlane.f32.xlu1 %v479_v22  ;;  %4744 = vmatprep.subr.bf16.mxu1 %v4743_v33  ;;  %v497_v41 = vsel %vm403_vm0, %v6348_v55, -inf  ;;  %v6364_v22 = vld [vmem:[%s6159_s23 + $0xb0] sm:$0xff] }
 0x132   : > { %v2306_v46 = vpop.trf.xlu0  ;;  %v2437_v27 = vpop.trf.xlu1  ;;  %v470_v13 = vsel %vm403_vm0, %v6364_v22, -inf }
 0x133   : > { %4392 = vmatmul.mubr.msk.f32.vlgmr.msra.gmra.mrb[8].mxu0 %vm1804_vm1, %v2306_v46  ;;  %4417 = vmatmul.mubr.msk.f32.gmra.mrb[10].mxu1 %vm1804_vm1, %v2437_v27  ;;  %v6386_v46 = vld [vmem:[%s6159_s23 + $0x100] sm:$0xff] }
 0x134   : > { %4722 = vmatpush3.bf16.msra.mxu0 %v6228_v53  ;;  %4746 = vmatpush3.bf16.msra.mxu1 %v4743_v33  ;;  %v488_v53 = vsel %vm403_vm0, %v6316_v31, -inf  ;;  %v467_v33 = vsel %vm403_vm0, %v6353_v19, -inf }
 0x135   : > { %483 = vmax.xlane.f32.xlu1 %v482_v16  ;;  %4724 = vmatprep.subr.bf16.mxu0 %v4723_v60  ;;  %v473_v16 = vsel %vm403_vm0, %v6375_v9, -inf }
 0x136   : > { %v2307_v52 = vpop.trf.xlu0  ;;  %4748 = vmatprep.subr.bf16.mxu1 %v4747_v62  ;;  %453 = vmax.xlane.f32.xlu0 %v452_v10  ;;  %v500_v10 = vsel %vm403_vm0, %v6386_v46, -inf }
 0x137   : > { %4394 = vmatprep.mubr.msk.f32.mxu0 %vm1804_vm1, %v2307_v52  ;;  %v6403_v52 = vld [vmem:[%s6159_s23 + $0x160] sm:$0xff] }
 0x138   : > { %4726 = vmatpush3.bf16.msra.mxu0 %v4723_v60  ;;  %4750 = vmatpush3.bf16.msra.mxu1 %v4747_v62  ;;  %v6380_v60 = vld [vmem:[%s6159_s23 + $0x150] sm:$0xff] }
 0x139   : > { %486 = vmax.xlane.f32.xlu1 %v485_v0  ;;  %4728 = vmatprep.subr.bf16.mxu0 %v4727_v34  ;;  %v530_v27 = vsel %vm403_vm0, %v6380_v60, -inf  ;;  %v533_v0 = vsel %vm403_vm0, %v6391_v3, -inf }
 0x13a   : > { %v2308_v63 = vpop.trf.xlu0  ;;  %456 = vmax.xlane.f32.xlu0 %v455_v32  ;;  %v6409_v32 = vld [vmem:[%s6159_s23 + $0x110] sm:$0xff] }
 0x13b   : > { %4395 = vmatmul.mubr.msk.f32.gmra.mrb[10].mxu0 %vm1804_vm1, %v2308_v63 }
 0x13c   : > { %4730 = vmatpush3.bf16.msra.mxu0 %v4727_v34  ;;  %v6398_v34 = vld [vmem:[%s6159_s23 + $0x108] sm:$0xff] }
 0x13d   : > { %489 = vmax.xlane.f32.xlu1 %v488_v53  ;;  %4732 = vmatprep.subr.bf16.mxu0 %v4731_v59  ;;  %v503_v38 = vsel %vm403_vm0, %v6398_v34, -inf  ;;  %v6414_v53 = vld [vmem:[%s6159_s23 + $0x168] sm:$0xff] }
 0x13e   : > { %459 = vmax.xlane.f32.xlu0 %v458_v26  ;;  %v506_v26 = vsel %vm403_vm0, %v6409_v32, -inf }
 0x140   : > { %4734 = vmatpush3.bf16.msra.mxu0 %v4731_v59  ;;  %v536_v59 = vsel %vm403_vm0, %v6403_v52, -inf }
 0x141   : > { %492 = vmax.xlane.f32.xlu1 %v491_v39  ;;  %v6420_v39 = vld [vmem:[%s6159_s23 + $0x118] sm:$0xff] }
 0x142   : > { %462 = vmax.xlane.f32.xlu0 %v461_v58  ;;  %v539_v58 = vsel %vm403_vm0, %v6414_v53, -inf }
 0x145   : > { %495 = vmax.xlane.f32.xlu1 %v494_v30  ;;  %v6425_v30 = vld [vmem:[%s6159_s23 + $0x170] sm:$0xff] }
 0x146   : > { %v2692_v6 = vpop.trf.xlu1  ;;  %465 = vmax.xlane.f32.xlu0 %v464_v20 }
 0x147   : > { %4457 = vmatprep.mubr.msk.f32.mxu1 %vm1804_vm1, %v2692_v6  ;;  %v6431_v6 = vld [vmem:[%s6159_s23 + $0x120] sm:$0xff] }
 0x149   : > { %498 = vmax.xlane.f32.xlu1 %v497_v41  ;;  %v509_v41 = vsel %vm403_vm0, %v6420_v39, -inf }
 0x14a   : > { %v2693_v42 = vpop.trf.xlu1  ;;  %468 = vmax.xlane.f32.xlu0 %v467_v33  ;;  %v542_v33 = vsel %vm403_vm0, %v6425_v30, -inf }
 0x14b   : > { %4458 = vmatmul.mubr.msk.f32.vlgmr.msra.gmra.mrb[12].mxu1 %vm1804_vm1, %v2693_v42  ;;  %v512_v42 = vsel %vm403_vm0, %v6431_v6, -inf }
 0x14d   : > { %525 = vmax.xlane.f32.xlu1 %v524_v21  ;;  %v6436_v21 = vld [vmem:[%s6159_s23 + $0x178] sm:$0xff] }
 0x14e   : > { %v2694_v11 = vpop.trf.xlu1  ;;  %471 = vmax.xlane.f32.xlu0 %v470_v13  ;;  %v2563_v62 = vpop.trf.xlu0  ;;  %v6441_v13 = vld [vmem:[%s6159_s23 + $0x128] sm:$0xff] }
 0x14f   : > { %4460 = vmatprep.mubr.msk.f32.mxu1 %vm1804_vm1, %v2694_v11  ;;  %4435 = vmatprep.mubr.msk.f32.mxu0 %vm1804_vm1, %v2563_v62  ;;  %v6446_v11 = vld [vmem:[%s6159_s23 + $0x1c0] sm:$0xff]  ;;  %v6456_v62 = vld [vmem:[%s6159_s23 + $0x1c8] sm:$0xff] }
 0x151   : > { %528 = vmax.xlane.f32.xlu1 %v527_v51  ;;  %v545_v51 = vsel %vm403_vm0, %v6436_v21, -inf }
 0x152   : > { %v2695_v43 = vpop.trf.xlu1  ;;  %474 = vmax.xlane.f32.xlu0 %v473_v16  ;;  %v2564_v12 = vpop.trf.xlu0  ;;  %v515_v16 = vsel %vm403_vm0, %v6441_v13, -inf }
 0x153   : > { %4461 = vmatmul.mubr.msk.f32.gmra.mrb[14].mxu1 %vm1804_vm1, %v2695_v43  ;;  %4436 = vmatmul.mubr.msk.f32.vlgmr.msra.gmra.mrb[12].mxu0 %vm1804_vm1, %v2564_v12  ;;  %v572_v43 = vsel %vm403_vm0, %v6446_v11, -inf  ;;  %v575_v12 = vsel %vm403_vm0, %v6456_v62, -inf }
 0x155   : > { %531 = vmax.xlane.f32.xlu1 %v530_v27  ;;  %v6451_v27 = vld [vmem:[%s6159_s23 + $0x130] sm:$0xff] }
 0x156   : > { %501 = vmax.xlane.f32.xlu0 %v500_v10  ;;  %v2565_v63 = vpop.trf.xlu0  ;;  %v518_v10 = vsel %vm403_vm0, %v6451_v27, -inf }
 0x157   : > { %4438 = vmatprep.mubr.msk.f32.mxu0 %vm1804_vm1, %v2565_v63  ;;  %v6471_v63 = vld [vmem:[%s6159_s23 + $0x180] sm:$0xff] }
 0x158   : > { %7268 = vst [vmem:[#allocation5_spill] sm:$0xff] %v6471_v63 }
 0x159   : > { %534 = vmax.xlane.f32.xlu1 %v533_v0  ;;  %v6461_v0 = vld [vmem:[%s6159_s23 + $0x138] sm:$0xff] }
 0x15a   : > { %504 = vmax.xlane.f32.xlu0 %v503_v38  ;;  %v2566_v20 = vpop.trf.xlu0  ;;  %v6466_v38 = vld [vmem:[%s6159_s23 + $0x1d0] sm:$0xff] }
 0x15b   : > { %4439 = vmatmul.mubr.msk.f32.gmra.mrb[14].mxu0 %vm1804_vm1, %v2566_v20  ;;  %7267 = vst [vmem:[#allocation4_spill] sm:$0xff] %v6466_v38  ;;  %v548_v20 = vsel %vm403_vm0, %v6471_v63, -inf }
 0x15d   : > { %537 = vmax.xlane.f32.xlu1 %v536_v59  ;;  %v521_v59 = vsel %vm403_vm0, %v6461_v0, -inf }
 0x15e   : > { %507 = vmax.xlane.f32.xlu0 %v506_v26  ;;  %v578_v26 = vsel %vm403_vm0, %v6466_v38, -inf }
 0x161   : > { %540 = vmax.xlane.f32.xlu1 %v539_v58  ;;  %v6476_v58 = vld [vmem:[%s6159_s23 + $0x1d8] sm:$0xff] }
 0x162   : > { %510 = vmax.xlane.f32.xlu0 %v509_v41  ;;  %7269 = vst [vmem:[#allocation7_spill] sm:$0xff] %v6476_v58  ;;  %v6481_v41 = vld [vmem:[%s6159_s23 + $0x188] sm:$0xff] }
 0x163   : > { %7270 = vst [vmem:[#allocation10_spill] sm:$0xff] %v6481_v41 }
 0x165   : > { %543 = vmax.xlane.f32.xlu1 %v542_v33  ;;  %v581_v33 = vsel %vm403_vm0, %v6476_v58, -inf }
 0x166   : > { %513 = vmax.xlane.f32.xlu0 %v512_v42  ;;  %v6486_v42 = vld [vmem:[%s6159_s23 + $0x1e0] sm:$0xff] }
 0x167   : > { %7271 = vst [vmem:[#allocation11_spill] sm:$0xff] %v6486_v42 }
 0x169   : > { %546 = vmax.xlane.f32.xlu1 %v545_v51  ;;  %v551_v51 = vsel %vm403_vm0, %v6481_v41, -inf }
 0x16a   : > { %516 = vmax.xlane.f32.xlu0 %v515_v16  ;;  %v6491_v16 = vld [vmem:[%s6159_s23 + $0x190] sm:$0xff] }
 0x16b   : > { %7272 = vst [vmem:[#allocation12_spill] sm:$0xff] %v6491_v16 }
 0x16d   : > { %573 = vmax.xlane.f32.xlu1 %v572_v43  ;;  %v584_v43 = vsel %vm403_vm0, %v6486_v42, -inf  ;;  %v6511_v42 = vld [vmem:[%s6159_s23 + $0x1a0] sm:$0xff] }
 0x16e   : > { %519 = vmax.xlane.f32.xlu0 %v518_v10  ;;  %v6496_v10 = vld [vmem:[%s6159_s23 + $0x1e8] sm:$0xff]  ;;  %7276 = vst [vmem:[#allocation9_spill] sm:$0xff] %v6511_v42 }
 0x16f   : > { %7273 = vst [vmem:[#allocation6_spill] sm:$0xff] %v6496_v10 }
 0x171   : > { %576 = vmax.xlane.f32.xlu1 %v575_v12  ;;  %v554_v12 = vsel %vm403_vm0, %v6491_v16, -inf  ;;  %v6521_v16 = vld [vmem:[%s6159_s23 + $0x1a8] sm:$0xff] }
 0x172   : > { %522 = vmax.xlane.f32.xlu0 %v521_v59  ;;  %v6501_v59 = vld [vmem:[%s6159_s23 + $0x198] sm:$0xff]  ;;  %7278 = vst [vmem:[#allocation14_spill] sm:$0xff] %v6521_v16 }
 0x173   : > { %7274 = vst [vmem:[#allocation2_spill] sm:$0xff] %v6501_v59 }
 0x175   : > { %579 = vmax.xlane.f32.xlu1 %v578_v26  ;;  %v587_v26 = vsel %vm403_vm0, %v6496_v10, -inf  ;;  %v560_v10 = vsel %vm403_vm0, %v6511_v42, -inf }
 0x176   : > { %549 = vmax.xlane.f32.xlu0 %v548_v20  ;;  %v6506_v20 = vld [vmem:[%s6159_s23 + $0x1f0] sm:$0xff] }
 0x177   : > { %7275 = vst [vmem:[#allocation8_spill] sm:$0xff] %v6506_v20 }
 0x179   : > { %582 = vmax.xlane.f32.xlu1 %v581_v33  ;;  %v557_v33 = vsel %vm403_vm0, %v6501_v59, -inf  ;;  %v6528_v59 = vld [vmem:[%s6159_s23 + $0x1b0] sm:$0xff] }
 0x17a   : > { %552 = vmax.xlane.f32.xlu0 %v551_v51  ;;  %v590_v51 = vsel %vm403_vm0, %v6506_v20, -inf  ;;  %7279 = vst [vmem:[#allocation3_spill] sm:$0xff] %v6528_v59  ;;  %v6533_v20 = vld [vmem:[%s6159_s23 + $0x1b8] sm:$0xff] }
 0x17d   : > { %585 = vmax.xlane.f32.xlu1 %v584_v43  ;;  %v6516_v43 = vld [vmem:[%s6159_s23 + $0x1f8] sm:$0xff] }
 0x17e   : > { %555 = vmax.xlane.f32.xlu0 %v554_v12  ;;  %7277 = vst [vmem:[#allocation13_spill] sm:$0xff] %v6516_v43  ;;  %v593_v12 = vsel %vm403_vm0, %v6516_v43, -inf }
 0x181   : > { %588 = vmax.xlane.f32.xlu1 %v587_v26  ;;  %v563_v26 = vsel %vm403_vm0, %v6521_v16, -inf }
 0x182   : > { %558 = vmax.xlane.f32.xlu0 %v557_v33  ;;  %v566_v33 = vsel %vm403_vm0, %v6528_v59, -inf }
 0x185   : > { %591 = vmax.xlane.f32.xlu1 %v590_v51  ;;  %v569_v51 = vsel %vm403_vm0, %v6533_v20, -inf }
 0x186   : > { %561 = vmax.xlane.f32.xlu0 %v560_v10 }
 0x189   : > { %594 = vmax.xlane.f32.xlu1 %v593_v12 }
 0x18a   : > { %564 = vmax.xlane.f32.xlu0 %v563_v26 }
 0x18e   : > { %567 = vmax.xlane.f32.xlu0 %v566_v33 }
 0x192   : > { %570 = vmax.xlane.f32.xlu0 %v569_v51 }
 0x196   : > { %v430_v42 = vpop.xlane.xlu1 %429 }
 0x197   : > { %v604_v10 = vsub.f32 %v6162_v44, %v430_v42 }
 0x199   : > { %v676_v43 = vmul.f32 1.442695, %v604_v10 }
 0x19a   : > { %v409_v41 = vpop.xlane.xlu1 %408 }
 0x19b   : > { %4968 = vpow2.f32 %v676_v43  ;;  %v597_v42 = vsub.f32 %v6169_v48, %v409_v41 }
 0x19e   : > { %v433_v12 = vpop.xlane.xlu1 %432 }
 0x19f   : > { %v605_v16 = vsub.f32 %v6177_v25, %v433_v12 }
 0x1a1   : > { %v678_v26 = vmul.f32 1.442695, %v605_v16 }
 0x1a2   : > { %v436_v58 = vpop.xlane.xlu1 %435 }
 0x1a3   : > { %4970 = vpow2.f32 %v678_v26  ;;  %v606_v59 = vsub.f32 %v6185_v1, %v436_v58  ;;  %v662_v58 = vmul.f32 1.442695, %v597_v42 }
 0x1a4   : > { %v406_v43 = vpop.xlane.xlu0 %405 }
 0x1a5   : > { %v6540_v63 = vpop.eup %4968  ;;  %v680_v33 = vmul.f32 1.442695, %v606_v59  ;;  %v596_v16 = vsub.f32 %v6203_v61, %v406_v43 }
 0x1a6   : > { %7280 = vst [vmem:[#allocation15_spill] sm:$0xff] %v6540_v63  ;;  %v439_v38 = vpop.xlane.xlu1 %438  ;;  %v812_v51 = vsel %vm403_vm0, %v6540_v63, 0.0 }
 0x1a7   : > { %4972 = vpow2.f32 %v680_v33  ;;  %v607_v44 = vsub.f32 %v6196_v15, %v439_v38  ;;  %813 = vadd.xlane.f32.xlu1 %v812_v51  ;;  %v660_v59 = vmul.f32 1.442695, %v596_v16 }
 0x1a8   : > { %v412_v26 = vpop.xlane.xlu0 %411 }
 0x1a9   : > { %v682_v25 = vmul.f32 1.442695, %v607_v44  ;;  %v598_v15 = vsub.f32 %v6216_v47, %v412_v26 }
 0x1aa   : > { %v442_v10 = vpop.xlane.xlu1 %441 }
 0x1ab   : > { %4974 = vpow2.f32 %v682_v25  ;;  %v608_v1 = vsub.f32 %v6210_v56, %v442_v10  ;;  %v664_v41 = vmul.f32 1.442695, %v598_v15 }
 0x1ac   : > { %4976 = vpow2.f32 %v660_v59  ;;  %v415_v33 = vpop.xlane.xlu0 %414 }
 0x1ad   : > { %v6548_v12 = vpop.eup %4970  ;;  %v684_v63 = vmul.f32 1.442695, %v608_v1  ;;  %v599_v44 = vsub.f32 %v6231_v35, %v415_v33 }
 0x1ae   : > { %v445_v38 = vpop.xlane.xlu1 %444  ;;  %v815_v48 = vsel %vm403_vm0, %v6548_v12, 0.0 }
 0x1af   : > { %4978 = vpow2.f32 %v684_v63  ;;  %v609_v61 = vsub.f32 %v6223_v45, %v445_v38  ;;  %816 = vadd.xlane.f32.xlu1 %v815_v48  ;;  %v666_v63 = vmul.f32 1.442695, %v599_v44 }
 0x1b0   : > { %4980 = vpow2.f32 %v662_v58  ;;  %v418_v25 = vpop.xlane.xlu0 %417 }
 0x1b1   : > { %v6554_v56 = vpop.eup %4972  ;;  %v686_v51 = vmul.f32 1.442695, %v609_v61  ;;  %4982 = vpow2.f32 %v664_v41  ;;  %v600_v10 = vsub.f32 %v6242_v24, %v418_v25 }
 0x1b2   : > { %v448_v42 = vpop.xlane.xlu1 %447  ;;  %v818_v47 = vsel %vm403_vm0, %v6554_v56, 0.0 }
 0x1b3   : > { %4984 = vpow2.f32 %v686_v51  ;;  %v610_v43 = vsub.f32 %v6236_v17, %v448_v42  ;;  %819 = vadd.xlane.f32.xlu1 %v818_v47  ;;  %v668_v17 = vmul.f32 1.442695, %v600_v10 }
 0x1b4   : > { %4986 = vpow2.f32 %v666_v63  ;;  %v421_v38 = vpop.xlane.xlu0 %420 }
 0x1b5   : > { %v6560_v45 = vpop.eup %4974  ;;  %v688_v16 = vmul.f32 1.442695, %v610_v43  ;;  %v601_v24 = vsub.f32 %v6252_v23, %v421_v38 }
 0x1b6   : > { %v451_v1 = vpop.xlane.xlu1 %450  ;;  %v821_v35 = vsel %vm403_vm0, %v6560_v45, 0.0  ;;  %v6566_v59 = vpop.eup %4976 }
 0x1b7   : > { %4988 = vpow2.f32 %v688_v16  ;;  %v611_v58 = vsub.f32 %v6247_v7, %v451_v1  ;;  %822 = vadd.xlane.f32.xlu1 %v821_v35  ;;  %v788_v15 = vsel %vm403_vm0, %v6566_v59, 0.0  ;;  %v670_v44 = vmul.f32 1.442695, %v601_v24 }
 0x1b8   : > { %4990 = vpow2.f32 %v668_v17  ;;  %789 = vadd.xlane.f32.xlu0 %v788_v15  ;;  %v424_v43 = vpop.xlane.xlu0 %423 }
 0x1b9   : > { %v6568_v26 = vpop.eup %4978  ;;  %v690_v48 = vmul.f32 1.442695, %v611_v58  ;;  %v602_v23 = vsub.f32 %v6265_v50, %v424_v43 }
 0x1ba   : > { %v6572_v61 = vpop.eup %4980  ;;  %v478_v41 = vpop.xlane.xlu1 %477  ;;  %v824_v7 = vsel %vm403_vm0, %v6568_v26, 0.0 }
 0x1bb   : > { %4992 = vpow2.f32 %v690_v48  ;;  %v620_v33 = vsub.f32 %v6259_v28, %v478_v41  ;;  %825 = vadd.xlane.f32.xlu1 %v824_v7  ;;  %v6578_v51 = vpop.eup %4982  ;;  %v791_v47 = vsel %vm403_vm0, %v6572_v61, 0.0  ;;  %v672_v17 = vmul.f32 1.442695, %v602_v23 }
 0x1bc   : > { %4994 = vpow2.f32 %v670_v44  ;;  %792 = vadd.xlane.f32.xlu0 %v791_v47  ;;  %v794_v10 = vsel %vm403_vm0, %v6578_v51, 0.0 }
 0x1bd   : > { %v6580_v42 = vpop.eup %4984  ;;  %v708_v63 = vmul.f32 1.442695, %v620_v33  ;;  %v427_v50 = vpop.xlane.xlu0 %426 }
 0x1be   : > { %v481_v25 = vpop.xlane.xlu1 %480  ;;  %v827_v16 = vsel %vm403_vm0, %v6580_v42, 0.0  ;;  %v4327_v28 = vpop.f32.mrb[0].mxu1  ;;  %v603_v24 = vsub.f32 %v6278_v4, %v427_v50 }
 0x1bf   : > { %4996 = vpow2.f32 %v708_v63  ;;  %v621_v1 = vsub.f32 %v6272_v18, %v481_v25  ;;  %828 = vadd.xlane.f32.xlu1 %v827_v16  ;;  %v2012_v35 = vpop.f32.mrb[1].mxu1  ;;  %v6590_v58 = vpop.eup %4986 }
 0x1c0   : > { %v4759_v15 = vpack.c.bf16 %v4327_v28, %v2012_v35  ;;  %4998 = vpow2.f32 %v672_v17  ;;  %795 = vadd.xlane.f32.xlu0 %v794_v10  ;;  %v797_v18 = vsel %vm403_vm0, %v6590_v58, 0.0  ;;  %v674_v47 = vmul.f32 1.442695, %v603_v24 }
 0x1c1   : > { %v6592_v38 = vpop.eup %4988  ;;  %v710_v48 = vmul.f32 1.442695, %v621_v1 }
 0x1c2   : > { %v484_v41 = vpop.xlane.xlu1 %483  ;;  %v830_v7 = vsel %vm403_vm0, %v6592_v38, 0.0  ;;  %4760 = vmatprep.subr.bf16.mxu1 %v4759_v15  ;;  %v6600_v44 = vpop.eup %4990 }
 0x1c3   : > { %5000 = vpow2.f32 %v710_v48  ;;  %v622_v33 = vsub.f32 %v6285_v8, %v484_v41  ;;  %831 = vadd.xlane.f32.xlu1 %v830_v7  ;;  %4762 = vmatpush3.bf16.msra.mxu1 %v4759_v15  ;;  %v454_v63 = vpop.xlane.xlu0 %453  ;;  %v800_v8 = vsel %vm403_vm0, %v6600_v44, 0.0 }
 0x1c4   : > { %5002 = vpow2.f32 %v674_v47  ;;  %798 = vadd.xlane.f32.xlu0 %v797_v18  ;;  %v612_v23 = vsub.f32 %v6294_v37, %v454_v63 }
 0x1c5   : > { %v6602_v43 = vpop.eup %4992  ;;  %v712_v4 = vmul.f32 1.442695, %v622_v33 }
 0x1c6   : > { %v487_v25 = vpop.xlane.xlu1 %486  ;;  %v833_v16 = vsel %vm403_vm0, %v6602_v43, 0.0  ;;  %v4305_v28 = vpop.f32.mrb[0].mxu0  ;;  %v692_v15 = vmul.f32 1.442695, %v612_v23 }
 0x1c7   : > { %5004 = vpow2.f32 %v712_v4  ;;  %v623_v10 = vsub.f32 %v6301_v14, %v487_v25  ;;  %834 = vadd.xlane.f32.xlu1 %v833_v16  ;;  %v1883_v1 = vpop.f32.mrb[1].mxu0  ;;  %v4330_v35 = vpop.f32.mrb[2].mxu1 }
 0x1c8   : > { %v6610_v17 = vpop.eup %4994  ;;  %v4751_v50 = vpack.c.bf16 %v4305_v28, %v1883_v1  ;;  %v2022_v48 = vpop.f32.mrb[3].mxu1  ;;  %5006 = vpow2.f32 %v692_v15  ;;  %801 = vadd.xlane.f32.xlu0 %v800_v8 }
 0x1c9   : > { %v6612_v37 = vpop.eup %4996  ;;  %v457_v24 = vpop.xlane.xlu0 %456  ;;  %v714_v41 = vmul.f32 1.442695, %v623_v10  ;;  %v4763_v7 = vpack.c.bf16 %v4330_v35, %v2022_v48  ;;  %v803_v47 = vsel %vm403_vm0, %v6610_v17, 0.0 }
 0x1ca   : > { %v613_v18 = vsub.f32 %v6309_v54, %v457_v24  ;;  %v490_v33 = vpop.xlane.xlu1 %489  ;;  %v860_v14 = vsel %vm403_vm0, %v6612_v37, 0.0  ;;  %4752 = vmatprep.subr.bf16.mxu0 %v4751_v50  ;;  %v6620_v4 = vpop.eup %4998 }
 0x1cb   : > { %5008 = vpow2.f32 %v714_v41  ;;  %v624_v63 = vsub.f32 %v6316_v31, %v490_v33  ;;  %861 = vadd.xlane.f32.xlu1 %v860_v14  ;;  %4754 = vmatpush3.bf16.msra.mxu0 %v4751_v50  ;;  %v806_v1 = vsel %vm403_vm0, %v6620_v4, 0.0 }
 0x1cc   : > { %v694_v23 = vmul.f32 1.442695, %v613_v18  ;;  %4764 = vmatprep.subr.bf16.mxu1 %v4763_v7  ;;  %804 = vadd.xlane.f32.xlu0 %v803_v47 }
 0x1cd   : > { %v6622_v25 = vpop.eup %5000  ;;  %v460_v54 = vpop.xlane.xlu0 %459  ;;  %v716_v16 = vmul.f32 1.442695, %v624_v63  ;;  %4766 = vmatpush3.bf16.msra.mxu1 %v4763_v7 }
 0x1ce   : > { %5010 = vpow2.f32 %v694_v23  ;;  %v614_v28 = vsub.f32 %v6322_v5, %v460_v54  ;;  %v493_v8 = vpop.xlane.xlu1 %492  ;;  %v863_v10 = vsel %vm403_vm0, %v6622_v25, 0.0  ;;  %v4308_v31 = vpop.f32.mrb[2].mxu0 }
 0x1cf   : > { %5012 = vpow2.f32 %v716_v16  ;;  %v625_v35 = vsub.f32 %v6327_v49, %v493_v8  ;;  %864 = vadd.xlane.f32.xlu1 %v863_v10  ;;  %v1893_v15 = vpop.f32.mrb[3].mxu0  ;;  %v6630_v50 = vpop.eup %5002 }
 0x1d0   : > { %v696_v48 = vmul.f32 1.442695, %v614_v28  ;;  %v4755_v24 = vpack.c.bf16 %v4308_v31, %v1893_v15  ;;  %807 = vadd.xlane.f32.xlu0 %v806_v1  ;;  %v809_v49 = vsel %vm403_vm0, %v6630_v50, 0.0 }
 0x1d1   : > { %v6632_v41 = vpop.eup %5004  ;;  %v463_v5 = vpop.xlane.xlu0 %462  ;;  %v718_v7 = vmul.f32 1.442695, %v625_v35 }
 0x1d2   : > { %5014 = vpow2.f32 %v696_v48  ;;  %v615_v18 = vsub.f32 %v6333_v29, %v463_v5  ;;  %v496_v33 = vpop.xlane.xlu1 %495  ;;  %v866_v14 = vsel %vm403_vm0, %v6632_v41, 0.0  ;;  %4756 = vmatprep.subr.bf16.mxu0 %v4755_v24  ;;  %v6640_v63 = vpop.eup %5006 }
 0x1d3   : > { %5016 = vpow2.f32 %v718_v7  ;;  %v626_v47 = vsub.f32 %v6338_v36, %v496_v33  ;;  %867 = vadd.xlane.f32.xlu1 %v866_v14  ;;  %4758 = vmatpush3.bf16.msra.mxu0 %v4755_v24  ;;  %v836_v36 = vsel %vm403_vm0, %v6640_v63, 0.0 }
 0x1d4   : > { %v698_v23 = vmul.f32 1.442695, %v615_v18  ;;  %810 = vadd.xlane.f32.xlu0 %v809_v49 }
 0x1d5   : > { %v6642_v54 = vpop.eup %5008  ;;  %v466_v16 = vpop.xlane.xlu0 %465  ;;  %v720_v29 = vmul.f32 1.442695, %v626_v47 }
 0x1d6   : > { %5018 = vpow2.f32 %v698_v23  ;;  %v616_v28 = vsub.f32 %v6343_v2, %v466_v16  ;;  %v499_v8 = vpop.xlane.xlu1 %498  ;;  %v869_v10 = vsel %vm403_vm0, %v6642_v54, 0.0 }
 0x1d7   : > { %5020 = vpow2.f32 %v720_v29  ;;  %v627_v31 = vsub.f32 %v6348_v55, %v499_v8  ;;  %870 = vadd.xlane.f32.xlu1 %v869_v10 }
 0x1d8   : > { %v6650_v1 = vpop.eup %5010  ;;  %v700_v35 = vmul.f32 1.442695, %v616_v28  ;;  %837 = vadd.xlane.f32.xlu0 %v836_v36 }
 0x1d9   : > { %v6652_v15 = vpop.eup %5012  ;;  %v469_v48 = vpop.xlane.xlu0 %468  ;;  %v722_v24 = vmul.f32 1.442695, %v627_v31  ;;  %v839_v18 = vsel %vm403_vm0, %v6650_v1, 0.0 }
 0x1da   : > { %5022 = vpow2.f32 %v700_v35  ;;  %v617_v2 = vsub.f32 %v6353_v19, %v469_v48  ;;  %v526_v5 = vpop.xlane.xlu1 %525  ;;  %v872_v7 = vsel %vm403_vm0, %v6652_v15, 0.0 }
 0x1db   : > { %5024 = vpow2.f32 %v722_v24  ;;  %v636_v55 = vsub.f32 %v6358_v40, %v526_v5  ;;  %873 = vadd.xlane.f32.xlu1 %v872_v7 }
 0x1dc   : > { %v6660_v33 = vpop.eup %5014  ;;  %v702_v14 = vmul.f32 1.442695, %v617_v2  ;;  %840 = vadd.xlane.f32.xlu0 %v839_v18 }
 0x1dd   : > { %v6662_v49 = vpop.eup %5016  ;;  %v472_v47 = vpop.xlane.xlu0 %471  ;;  %v740_v23 = vmul.f32 1.442695, %v636_v55  ;;  %v842_v40 = vsel %vm403_vm0, %v6660_v33, 0.0 }
 0x1de   : > { %5026 = vpow2.f32 %v702_v14  ;;  %v618_v19 = vsub.f32 %v6364_v22, %v472_v47  ;;  %v529_v16 = vpop.xlane.xlu1 %528  ;;  %v875_v29 = vsel %vm403_vm0, %v6662_v49, 0.0  ;;  %v4371_v28 = vpop.f32.mrb[4].mxu1 }
 0x1df   : > { %5028 = vpow2.f32 %v740_v23  ;;  %v637_v8 = vsub.f32 %v6369_v57, %v529_v16  ;;  %876 = vadd.xlane.f32.xlu1 %v875_v29  ;;  %v2270_v10 = vpop.f32.mrb[5].mxu1 }
 0x1e0   : > { %v6670_v36 = vpop.eup %5018  ;;  %v704_v31 = vmul.f32 1.442695, %v618_v19  ;;  %v6672_v35 = vpack.c.bf16 %v4371_v28, %v2270_v10  ;;  %843 = vadd.xlane.f32.xlu0 %v842_v40 }
 0x1e1   : > { %v6674_v48 = vpop.eup %5020  ;;  %v475_v22 = vpop.xlane.xlu0 %474  ;;  %v742_v24 = vmul.f32 1.442695, %v637_v8  ;;  %v845_v57 = vsel %vm403_vm0, %v6670_v36, 0.0 }
 0x1e2   : > { %5030 = vpow2.f32 %v704_v31  ;;  %v619_v2 = vsub.f32 %v6375_v9, %v475_v22  ;;  %v532_v5 = vpop.xlane.xlu1 %531  ;;  %v878_v7 = vsel %vm403_vm0, %v6674_v48, 0.0  ;;  %4776 = vmatprep.subr.bf16.mxu1 %v6672_v35 }
 0x1e3   : > { %5032 = vpow2.f32 %v742_v24  ;;  %v638_v18 = vsub.f32 %v6380_v60, %v532_v5  ;;  %879 = vadd.xlane.f32.xlu1 %v878_v7 }
 0x1e4   : > { %v6683_v55 = vpop.eup %5022  ;;  %v706_v14 = vmul.f32 1.442695, %v619_v2  ;;  %846 = vadd.xlane.f32.xlu0 %v845_v57 }
 0x1e5   : > { %v6685_v47 = vpop.eup %5024  ;;  %v502_v23 = vpop.xlane.xlu0 %501  ;;  %v744_v9 = vmul.f32 1.442695, %v638_v18  ;;  %v848_v60 = vsel %vm403_vm0, %v6683_v55, 0.0 }
 0x1e6   : > { %5034 = vpow2.f32 %v706_v14  ;;  %v628_v19 = vsub.f32 %v6386_v46, %v502_v23  ;;  %v535_v16 = vpop.xlane.xlu1 %534  ;;  %v881_v29 = vsel %vm403_vm0, %v6685_v47, 0.0  ;;  %v4349_v28 = vpop.f32.mrb[4].mxu0 }
 0x1e7   : > { %5036 = vpow2.f32 %v744_v9  ;;  %v639_v40 = vsub.f32 %v6391_v3, %v535_v16  ;;  %882 = vadd.xlane.f32.xlu1 %v881_v29  ;;  %v2141_v8 = vpop.f32.mrb[5].mxu0  ;;  %v4374_v10 = vpop.f32.mrb[6].mxu1 }
 0x1e8   : > { %v6693_v31 = vpop.eup %5026  ;;  %v724_v22 = vmul.f32 1.442695, %v628_v19  ;;  %v6695_v24 = vpack.c.bf16 %v4349_v28, %v2141_v8  ;;  %v2280_v46 = vpop.f32.mrb[7].mxu1  ;;  %849 = vadd.xlane.f32.xlu0 %v848_v60 }
 0x1e9   : > { %v6697_v2 = vpop.eup %5028  ;;  %v505_v5 = vpop.xlane.xlu0 %504  ;;  %v746_v7 = vmul.f32 1.442695, %v639_v40  ;;  %v6699_v57 = vpack.c.bf16 %v4374_v10, %v2280_v46  ;;  %v851_v23 = vsel %vm403_vm0, %v6693_v31, 0.0 }
 0x1ea   : > { %5038 = vpow2.f32 %v724_v22  ;;  %v629_v18 = vsub.f32 %v6398_v34, %v505_v5  ;;  %v538_v3 = vpop.xlane.xlu1 %537  ;;  %v908_v14 = vsel %vm403_vm0, %v6697_v2, 0.0  ;;  %4768 = vmatprep.subr.bf16.mxu0 %v6695_v24 }
 0x1eb   : > { %5040 = vpow2.f32 %v746_v7  ;;  %v640_v9 = vsub.f32 %v6403_v52, %v538_v3  ;;  %909 = vadd.xlane.f32.xlu1 %v908_v14 }
 0x1ec   : > { %v6708_v19 = vpop.eup %5030  ;;  %v726_v16 = vmul.f32 1.442695, %v629_v18  ;;  %852 = vadd.xlane.f32.xlu0 %v851_v23 }
 0x1ed   : > { %v6710_v29 = vpop.eup %5032  ;;  %v508_v28 = vpop.xlane.xlu0 %507  ;;  %v748_v34 = vmul.f32 1.442695, %v640_v9  ;;  %v854_v52 = vsel %vm403_vm0, %v6708_v19, 0.0 }
 0x1ee   : > { %5042 = vpow2.f32 %v726_v16  ;;  %v630_v60 = vsub.f32 %v6409_v32, %v508_v28  ;;  %v541_v40 = vpop.xlane.xlu1 %540  ;;  %v911_v8 = vsel %vm403_vm0, %v6710_v29, 0.0  ;;  %v4352_v10 = vpop.f32.mrb[6].mxu0 }
 0x1ef   : > { %5044 = vpow2.f32 %v748_v34  ;;  %v641_v22 = vsub.f32 %v6414_v53, %v541_v40  ;;  %912 = vadd.xlane.f32.xlu1 %v911_v8  ;;  %v2151_v46 = vpop.f32.mrb[7].mxu0 }
 0x1f0   : > { %v6718_v5 = vpop.eup %5034  ;;  %v728_v7 = vmul.f32 1.442695, %v630_v60  ;;  %v6720_v18 = vpack.c.bf16 %v4352_v10, %v2151_v46  ;;  %855 = vadd.xlane.f32.xlu0 %v854_v52 }
 0x1f1   : > { %v6722_v3 = vpop.eup %5036  ;;  %v511_v32 = vpop.xlane.xlu0 %510  ;;  %v750_v14 = vmul.f32 1.442695, %v641_v22  ;;  %v857_v53 = vsel %vm403_vm0, %v6718_v5, 0.0 }
 0x1f2   : > { %5046 = vpow2.f32 %v728_v7  ;;  %v631_v23 = vsub.f32 %v6420_v39, %v511_v32  ;;  %v544_v9 = vpop.xlane.xlu1 %543  ;;  %v914_v16 = vsel %vm403_vm0, %v6722_v3, 0.0 }
 0x1f3   : > { %5048 = vpow2.f32 %v750_v14  ;;  %v642_v28 = vsub.f32 %v6425_v30, %v544_v9  ;;  %915 = vadd.xlane.f32.xlu1 %v914_v16 }
 0x1f4   : > { %v6730_v34 = vpop.eup %5038  ;;  %v730_v60 = vmul.f32 1.442695, %v631_v23  ;;  %858 = vadd.xlane.f32.xlu0 %v857_v53 }
 0x1f5   : > { %v6732_v40 = vpop.eup %5040  ;;  %v514_v8 = vpop.xlane.xlu0 %513  ;;  %v752_v10 = vmul.f32 1.442695, %v642_v28  ;;  %v884_v46 = vsel %vm403_vm0, %v6730_v34, 0.0 }
 0x1f6   : > { %5050 = vpow2.f32 %v730_v60  ;;  %v632_v39 = vsub.f32 %v6431_v6, %v514_v8  ;;  %v547_v52 = vpop.xlane.xlu1 %546  ;;  %v917_v22 = vsel %vm403_vm0, %v6732_v40, 0.0 }
 0x1f7   : > { %5052 = vpow2.f32 %v752_v10  ;;  %v643_v30 = vsub.f32 %v6436_v21, %v547_v52  ;;  %918 = vadd.xlane.f32.xlu1 %v917_v22 }
 0x1f8   : > { %v6740_v7 = vpop.eup %5042  ;;  %v732_v32 = vmul.f32 1.442695, %v632_v39  ;;  %885 = vadd.xlane.f32.xlu0 %v884_v46 }
 0x1f9   : > { %7281 = vst [vmem:[#allocation16_spill] sm:$0xff] %v6740_v7  ;;  %v6742_v14 = vpop.eup %5044  ;;  %v517_v23 = vpop.xlane.xlu0 %516  ;;  %v754_v9 = vmul.f32 1.442695, %v643_v30  ;;  %v887_v28 = vsel %vm403_vm0, %v6740_v7, 0.0 }
 0x1fa   : > { %5054 = vpow2.f32 %v732_v32  ;;  %v633_v6 = vsub.f32 %v6441_v13, %v517_v23  ;;  %v574_v16 = vpop.xlane.xlu1 %573  ;;  %v920_v53 = vsel %vm403_vm0, %v6742_v14, 0.0 }
 0x1fb   : > { %5056 = vpow2.f32 %v754_v9  ;;  %v652_v21 = vsub.f32 %v6446_v11, %v574_v16  ;;  %921 = vadd.xlane.f32.xlu1 %v920_v53 }
 0x1fc   : > { %v6750_v60 = vpop.eup %5046  ;;  %v734_v8 = vmul.f32 1.442695, %v633_v6  ;;  %888 = vadd.xlane.f32.xlu0 %v887_v28 }
 0x1fd   : > { %7282 = vst [vmem:[#allocation17_spill] sm:$0xff] %v6750_v60  ;;  %v6752_v10 = vpop.eup %5048  ;;  %v520_v39 = vpop.xlane.xlu0 %519  ;;  %v772_v52 = vmul.f32 1.442695, %v652_v21  ;;  %v890_v11 = vsel %vm403_vm0, %v6750_v60, 0.0 }
 0x1fe   : > { %7283 = vst [vmem:[#allocation18_spill] sm:$0xff] %v6752_v10  ;;  %5058 = vpow2.f32 %v734_v8  ;;  %v634_v13 = vsub.f32 %v6451_v27, %v520_v39  ;;  %v577_v22 = vpop.xlane.xlu1 %576  ;;  %v923_v46 = vsel %vm403_vm0, %v6752_v10, 0.0  ;;  %v4415_v30 = vpop.f32.mrb[8].mxu1 }
 0x1ff   : > { %5060 = vpow2.f32 %v772_v52  ;;  %v653_v32 = vsub.f32 %v6456_v62, %v577_v22  ;;  %924 = vadd.xlane.f32.xlu1 %v923_v46  ;;  %v2528_v23 = vpop.f32.mrb[9].mxu1  ;;  %v7286_v52 = vld [vmem:[#allocation4_spill] sm:$0xff] }
 0x200   : > { %v6760_v9 = vpop.eup %5050  ;;  %v736_v6 = vmul.f32 1.442695, %v634_v13  ;;  %v6762_v16 = vpack.c.bf16 %v4415_v30, %v2528_v23  ;;  %891 = vadd.xlane.f32.xlu0 %v890_v11 }
 0x201   : > { %7284 = vst [vmem:[#allocation19_spill] sm:$0xff] %v6760_v9  ;;  %v6764_v53 = vpop.eup %5052  ;;  %v523_v27 = vpop.xlane.xlu0 %522  ;;  %v774_v28 = vmul.f32 1.442695, %v653_v32  ;;  %v893_v62 = vsel %vm403_vm0, %v6760_v9, 0.0 }
 0x202   : > { %7285 = vst [vmem:[#allocation20_spill] sm:$0xff] %v6764_v53  ;;  %5062 = vpow2.f32 %v736_v6  ;;  %v635_v21 = vsub.f32 %v6461_v0, %v523_v27  ;;  %v580_v8 = vpop.xlane.xlu1 %579  ;;  %v926_v39 = vsel %vm403_vm0, %v6764_v53, 0.0  ;;  %v7289_v0 = vld [vmem:[#allocation5_spill] sm:$0xff] }
 0x203   : > { %5064 = vpow2.f32 %v774_v28  ;;  %v654_v13 = vsub.f32 %v7286_v52, %v580_v8  ;;  %927 = vadd.xlane.f32.xlu1 %v926_v39  ;;  %v7290_v8 = vld [vmem:[#allocation7_spill] sm:$0xff] }
 0x204   : > { %v6772_v22 = vpop.eup %5054  ;;  %v738_v46 = vmul.f32 1.442695, %v635_v21  ;;  %894 = vadd.xlane.f32.xlu0 %v893_v62 }
 0x205   : > { %7287 = vst [vmem:[#allocation4_spill] sm:$0xff] %v6772_v22  ;;  %v6774_v30 = vpop.eup %5056  ;;  %v550_v32 = vpop.xlane.xlu0 %549  ;;  %v776_v11 = vmul.f32 1.442695, %v654_v13  ;;  %v896_v28 = vsel %vm403_vm0, %v6772_v22, 0.0 }
 0x206   : > { %7288 = vst [vmem:[#allocation21_spill] sm:$0xff] %v6774_v30  ;;  %5066 = vpow2.f32 %v738_v46  ;;  %v644_v23 = vsub.f32 %v7289_v0, %v550_v32  ;;  %v583_v6 = vpop.xlane.xlu1 %582  ;;  %v929_v27 = vsel %vm403_vm0, %v6774_v30, 0.0  ;;  %v4393_v9 = vpop.f32.mrb[8].mxu0 }
 0x207   : > { %5068 = vpow2.f32 %v776_v11  ;;  %v655_v39 = vsub.f32 %v7290_v8, %v583_v6  ;;  %930 = vadd.xlane.f32.xlu1 %v929_v27  ;;  %v2399_v21 = vpop.f32.mrb[9].mxu0  ;;  %v4418_v52 = vpop.f32.mrb[10].mxu1  ;;  %v7293_v11 = vld [vmem:[#allocation10_spill] sm:$0xff] }
 0x208   : > { %v6782_v53 = vpop.eup %5058  ;;  %v756_v13 = vmul.f32 1.442695, %v644_v23  ;;  %v6784_v62 = vpack.c.bf16 %v4393_v9, %v2399_v21  ;;  %v2538_v46 = vpop.f32.mrb[11].mxu1  ;;  %897 = vadd.xlane.f32.xlu0 %v896_v28  ;;  %v7294_v9 = vld [vmem:[#allocation11_spill] sm:$0xff] }
 0x209   : > { %7291 = vst [vmem:[#allocation5_spill] sm:$0xff] %v6782_v53  ;;  %v6786_v32 = vpop.eup %5060  ;;  %v553_v0 = vpop.xlane.xlu0 %552  ;;  %v778_v30 = vmul.f32 1.442695, %v655_v39  ;;  %v6788_v60 = vpack.c.bf16 %v4418_v52, %v2538_v46  ;;  %v899_v23 = vsel %vm403_vm0, %v6782_v53, 0.0  ;;  %v7296_v46 = vld [vmem:[#allocation12_spill] sm:$0xff] }
 0x20a   : > { %7292 = vst [vmem:[#allocation7_spill] sm:$0xff] %v6786_v32  ;;  %5070 = vpow2.f32 %v756_v13  ;;  %v645_v22 = vsub.f32 %v7293_v11, %v553_v0  ;;  %v586_v6 = vpop.xlane.xlu1 %585  ;;  %v956_v27 = vsel %vm403_vm0, %v6786_v32, 0.0 }
 0x20b   : > { %5072 = vpow2.f32 %v778_v30  ;;  %v656_v8 = vsub.f32 %v7294_v9, %v586_v6  ;;  %957 = vadd.xlane.f32.xlu1 %v956_v27  ;;  %v7297_v6 = vld [vmem:[#allocation6_spill] sm:$0xff] }
 0x20c   : > { %v6796_v21 = vpop.eup %5062  ;;  %v758_v39 = vmul.f32 1.442695, %v645_v22  ;;  %900 = vadd.xlane.f32.xlu0 %v899_v23 }
 0x20d   : > { %v6798_v52 = vpop.eup %5064  ;;  %v556_v13 = vpop.xlane.xlu0 %555  ;;  %v780_v28 = vmul.f32 1.442695, %v656_v8  ;;  %v902_v30 = vsel %vm403_vm0, %v6796_v21, 0.0 }
 0x20e   : > { %7295 = vst [vmem:[#allocation10_spill] sm:$0xff] %v6798_v52  ;;  %5074 = vpow2.f32 %v758_v39  ;;  %v646_v0 = vsub.f32 %v7296_v46, %v556_v13  ;;  %v589_v11 = vpop.xlane.xlu1 %588  ;;  %v959_v32 = vsel %vm403_vm0, %v6798_v52, 0.0  ;;  %v4396_v53 = vpop.f32.mrb[10].mxu0  ;;  %v7300_v52 = vld [vmem:[#allocation2_spill] sm:$0xff] }
 0x20f   : > { %5076 = vpow2.f32 %v780_v28  ;;  %v657_v27 = vsub.f32 %v7297_v6, %v589_v11  ;;  %960 = vadd.xlane.f32.xlu1 %v959_v32  ;;  %v2409_v22 = vpop.f32.mrb[11].mxu0  ;;  %v7301_v11 = vld [vmem:[#allocation8_spill] sm:$0xff] }
 0x210   : > { %v6806_v9 = vpop.eup %5066  ;;  %v760_v8 = vmul.f32 1.442695, %v646_v0  ;;  %v6808_v39 = vpack.c.bf16 %v4396_v53, %v2409_v22  ;;  %903 = vadd.xlane.f32.xlu0 %v902_v30 }
 0x211   : > { %7298 = vst [vmem:[#allocation11_spill] sm:$0xff] %v6806_v9  ;;  %v6810_v23 = vpop.eup %5068  ;;  %v559_v13 = vpop.xlane.xlu0 %558  ;;  %v782_v46 = vmul.f32 1.442695, %v657_v27  ;;  %v905_v32 = vsel %vm403_vm0, %v6806_v9, 0.0 }
 0x212   : > { %7299 = vst [vmem:[#allocation12_spill] sm:$0xff] %v6810_v23  ;;  %5078 = vpow2.f32 %v760_v8  ;;  %v647_v10 = vsub.f32 %v7300_v52, %v559_v13  ;;  %v592_v7 = vpop.xlane.xlu1 %591  ;;  %v962_v28 = vsel %vm403_vm0, %v6810_v23, 0.0  ;;  %v7304_v52 = vld [vmem:[#allocation9_spill] sm:$0xff] }
 0x213   : > { %5080 = vpow2.f32 %v782_v46  ;;  %v658_v0 = vsub.f32 %v7301_v11, %v592_v7  ;;  %963 = vadd.xlane.f32.xlu1 %v962_v28  ;;  %v7305_v7 = vld [vmem:[#allocation13_spill] sm:$0xff] }
 0x214   : > { %v6818_v53 = vpop.eup %5070  ;;  %v762_v6 = vmul.f32 1.442695, %v647_v10  ;;  %906 = vadd.xlane.f32.xlu0 %v905_v32 }
 0x215   : > { %7302 = vst [vmem:[#allocation6_spill] sm:$0xff] %v6818_v53  ;;  %v6820_v22 = vpop.eup %5072  ;;  %v562_v27 = vpop.xlane.xlu0 %561  ;;  %v784_v30 = vmul.f32 1.442695, %v658_v0  ;;  %v932_v46 = vsel %vm403_vm0, %v6818_v53, 0.0 }
 0x216   : > { %7303 = vst [vmem:[#allocation2_spill] sm:$0xff] %v6820_v22  ;;  %5082 = vpow2.f32 %v762_v6  ;;  %v648_v8 = vsub.f32 %v7304_v52, %v562_v27  ;;  %v595_v13 = vpop.xlane.xlu1 %594  ;;  %v965_v23 = vsel %vm403_vm0, %v6820_v22, 0.0  ;;  %v7308_v6 = vld [vmem:[#allocation14_spill] sm:$0xff] }
 0x217   : > { %5084 = vpow2.f32 %v784_v30  ;;  %v659_v28 = vsub.f32 %v7305_v7, %v595_v13  ;;  %966 = vadd.xlane.f32.xlu1 %v965_v23 }
 0x218   : > { %v6828_v10 = vpop.eup %5074  ;;  %v764_v11 = vmul.f32 1.442695, %v648_v8  ;;  %933 = vadd.xlane.f32.xlu0 %v932_v46 }
 0x219   : > { %7306 = vst [vmem:[#allocation8_spill] sm:$0xff] %v6828_v10  ;;  %v6830_v9 = vpop.eup %5076  ;;  %v565_v0 = vpop.xlane.xlu0 %564  ;;  %v786_v32 = vmul.f32 1.442695, %v659_v28  ;;  %v935_v30 = vsel %vm403_vm0, %v6828_v10, 0.0  ;;  %v7311_v28 = vld [vmem:[#allocation3_spill] sm:$0xff] }
 0x21a   : > { %7307 = vst [vmem:[#allocation9_spill] sm:$0xff] %v6830_v9  ;;  %5086 = vpow2.f32 %v764_v11  ;;  %v649_v27 = vsub.f32 %v7308_v6, %v565_v0  ;;  %v968_v52 = vsel %vm403_vm0, %v6830_v9, 0.0 }
 0x21b   : > { %5088 = vpow2.f32 %v786_v32  ;;  %969 = vadd.xlane.f32.xlu1 %v968_v52 }
 0x21c   : > { %v6837_v23 = vpop.eup %5078  ;;  %v766_v13 = vmul.f32 1.442695, %v649_v27  ;;  %936 = vadd.xlane.f32.xlu0 %v935_v30 }
 0x21d   : > { %7309 = vst [vmem:[#allocation13_spill] sm:$0xff] %v6837_v23  ;;  %v6839_v8 = vpop.eup %5080  ;;  %v568_v7 = vpop.xlane.xlu0 %567  ;;  %v938_v6 = vsel %vm403_vm0, %v6837_v23, 0.0 }
 0x21e   : > { %7310 = vst [vmem:[#allocation14_spill] sm:$0xff] %v6839_v8  ;;  %5090 = vpow2.f32 %v766_v13  ;;  %v650_v46 = vsub.f32 %v7311_v28, %v568_v7  ;;  %v971_v11 = vsel %vm403_vm0, %v6839_v8, 0.0  ;;  %v4459_v0 = vpop.f32.mrb[12].mxu1 }
 0x21f   : > { %972 = vadd.xlane.f32.xlu1 %v971_v11  ;;  %v2786_v32 = vpop.f32.mrb[13].mxu1 }
 0x220   : > { %v6846_v52 = vpop.eup %5082  ;;  %v768_v10 = vmul.f32 1.442695, %v650_v46  ;;  %v6848_v27 = vpack.c.bf16 %v4459_v0, %v2786_v32  ;;  %939 = vadd.xlane.f32.xlu0 %v938_v6 }
 0x221   : > { %7312 = vst [vmem:[#allocation3_spill] sm:$0xff] %v6846_v52  ;;  %v6850_v9 = vpop.eup %5084  ;;  %v571_v13 = vpop.xlane.xlu0 %570  ;;  %v941_v28 = vsel %vm403_vm0, %v6846_v52, 0.0 }
 0x222   : > { %7313 = vst [vmem:[#allocation22_spill] sm:$0xff] %v6850_v9  ;;  %5092 = vpow2.f32 %v768_v10  ;;  %v651_v30 = vsub.f32 %v6533_v20, %v571_v13  ;;  %v974_v7 = vsel %vm403_vm0, %v6850_v9, 0.0 }
 0x223   : > { %975 = vadd.xlane.f32.xlu1 %v974_v7 }
 0x224   : > { %v6857_v11 = vpop.eup %5086  ;;  %v770_v23 = vmul.f32 1.442695, %v651_v30  ;;  %942 = vadd.xlane.f32.xlu0 %v941_v28 }
 0x225   : > { %7314 = vst [vmem:[#allocation23_spill] sm:$0xff] %v6857_v11  ;;  %v6859_v46 = vpop.eup %5088  ;;  %v944_v20 = vsel %vm403_vm0, %v6857_v11, 0.0 }
 0x226   : > { %7315 = vst [vmem:[#allocation24_spill] sm:$0xff] %v6859_v46  ;;  %5094 = vpow2.f32 %v770_v23  ;;  %v977_v10 = vsel %vm403_vm0, %v6859_v46, 0.0  ;;  %v4462_v0 = vpop.f32.mrb[14].mxu1  ;;  %v4437_v7 = vpop.f32.mrb[12].mxu0 }
 0x227   : > { %978 = vadd.xlane.f32.xlu1 %v977_v10  ;;  %v2796_v6 = vpop.f32.mrb[15].mxu1  ;;  %v2657_v28 = vpop.f32.mrb[13].mxu0 }
 0x228   : > { %v6865_v32 = vpop.eup %5090  ;;  %v6867_v13 = vpack.c.bf16 %v4462_v0, %v2796_v6  ;;  %945 = vadd.xlane.f32.xlu0 %v944_v20  ;;  %v6873_v52 = vpack.c.bf16 %v4437_v7, %v2657_v28 }
 0x229   : > { %7316 = vst [vmem:[#allocation25_spill] sm:$0xff] %v6865_v32  ;;  %v947_v30 = vsel %vm403_vm0, %v6865_v32, 0.0 }
 0x22c   : > { %v6871_v23 = vpop.eup %5092  ;;  %948 = vadd.xlane.f32.xlu0 %v947_v30 }
 0x22d   : > { %7317 = vst [vmem:[#allocation26_spill] sm:$0xff] %v6871_v23  ;;  %v950_v11 = vsel %vm403_vm0, %v6871_v23, 0.0  ;;  %v7319_v23 = vld [vmem:[#allocation15_spill] sm:$0xff] }
 0x22e   : > { %v4440_v20 = vpop.f32.mrb[14].mxu0 }
 0x22f   : > { %v2667_v46 = vpop.f32.mrb[15].mxu0 }
 0x230   : > { %v6877_v10 = vpop.eup %5094  ;;  %951 = vadd.xlane.f32.xlu0 %v950_v11  ;;  %v6881_v32 = vpack.c.bf16 %v4440_v20, %v2667_v46 }
 0x231   : > { %7318 = vst [vmem:[#allocation27_spill] sm:$0xff] %v6877_v10  ;;  %v953_v0 = vsel %vm403_vm0, %v6877_v10, 0.0 }
 0x234   : > { %v814_v6 = vpop.xlane.xlu1 %813  ;;  %954 = vadd.xlane.f32.xlu0 %v953_v0 }
 0x235   : > { %5096 = vrcp.f32 %v814_v6 }
 0x23c   : > { %v817_v9 = vpop.xlane.xlu1 %816 }
 0x23d   : > { %5098 = vrcp.f32 %v817_v9 }
 0x23f   : > { %v5097_v7 = vpop.eup %5096 }
 0x240   : > { %v997_v30 = vmul.f32 0.17677669, %v5097_v7  ;;  %v820_v28 = vpop.xlane.xlu1 %819 }
 0x241   : > { %5100 = vrcp.f32 %v820_v28 }
 0x242   : > { %v1116_v8 = vmul.f32 %v7319_v23, %v997_v30 }
 0x244   : > { %4491 = vmatprep.mubr.msk.f32.mxu1 %vm403_vm0, %v1116_v8  ;;  %v823_v11 = vpop.xlane.xlu1 %822 }
 0x245   : > { %5102 = vrcp.f32 %v823_v11  ;;  %v790_v53 = vpop.xlane.xlu0 %789 }
 0x246   : > { %5104 = vrcp.f32 %v790_v53 }
 0x247   : > { %v5099_v10 = vpop.eup %5098 }
 0x248   : > { %v999_v22 = vmul.f32 0.17677669, %v5099_v10  ;;  %v826_v6 = vpop.xlane.xlu1 %825 }
 0x249   : > { %5106 = vrcp.f32 %v826_v6  ;;  %v793_v9 = vpop.xlane.xlu0 %792 }
 0x24a   : > { %v1117_v46 = vmul.f32 %v6548_v12, %v999_v22  ;;  %5108 = vrcp.f32 %v793_v9 }
 0x24b   : > { %v5101_v0 = vpop.eup %5100 }
 0x24c   : > { %v1001_v20 = vmul.f32 0.17677669, %v5101_v0  ;;  %4492 = vmatmul.mubr.msk.f32.vlgmr.msra.gmra.mrb[16].mxu1 %vm403_vm0, %v1117_v46  ;;  %v829_v7 = vpop.xlane.xlu1 %828 }
 0x24d   : > { %4778 = vmatpush3.bf16.msra.mxu1 %v6672_v35  ;;  %5110 = vrcp.f32 %v829_v7  ;;  %v796_v23 = vpop.xlane.xlu0 %795 }
 0x24e   : > { %v1118_v8 = vmul.f32 %v6554_v56, %v1001_v20  ;;  %4780 = vmatprep.subr.bf16.mxu1 %v6699_v57  ;;  %5112 = vrcp.f32 %v796_v23 }
 0x24f   : > { %v5103_v53 = vpop.eup %5102 }
 0x250   : > { %v1003_v10 = vmul.f32 0.17677669, %v5103_v53  ;;  %4494 = vmatprep.mubr.msk.f32.mxu1 %vm403_vm0, %v1118_v8  ;;  %v832_v12 = vpop.xlane.xlu1 %831  ;;  %v5105_v22 = vpop.eup %5104 }
 0x251   : > { %4782 = vmatpush3.bf16.msra.mxu1 %v6699_v57  ;;  %5114 = vrcp.f32 %v832_v12  ;;  %v981_v28 = vmul.f32 0.17677669, %v5105_v22  ;;  %v799_v56 = vpop.xlane.xlu0 %798 }
 0x252   : > { %v1119_v30 = vmul.f32 %v6560_v45, %v1003_v10  ;;  %4792 = vmatprep.subr.bf16.mxu1 %v6762_v16  ;;  %5116 = vrcp.f32 %v799_v56 }
 0x253   : > { %v5107_v35 = vpop.eup %5106  ;;  %v1108_v46 = vmul.f32 %v6566_v59, %v981_v28 }
 0x254   : > { %v1005_v11 = vmul.f32 0.17677669, %v5107_v35  ;;  %4495 = vmatmul.mubr.msk.f32.gmra.mrb[18].mxu1 %vm403_vm0, %v1119_v30  ;;  %v835_v6 = vpop.xlane.xlu1 %834  ;;  %v5109_v0 = vpop.eup %5108 }
 0x255   : > { %5118 = vrcp.f32 %v835_v6  ;;  %v983_v20 = vmul.f32 0.17677669, %v5109_v0  ;;  %4471 = vmatprep.mubr.msk.f32.mxu0 %vm403_vm0, %v1108_v46  ;;  %v802_v45 = vpop.xlane.xlu0 %801 }
 0x256   : > { %v1120_v57 = vmul.f32 %v6568_v26, %v1005_v11  ;;  %5120 = vrcp.f32 %v802_v45 }
 0x257   : > { %v5111_v9 = vpop.eup %5110  ;;  %v1109_v53 = vmul.f32 %v6572_v61, %v983_v20 }
 0x258   : > { %v1007_v7 = vmul.f32 0.17677669, %v5111_v9  ;;  %4497 = vmatprep.mubr.msk.f32.mxu1 %vm403_vm0, %v1120_v57  ;;  %v862_v8 = vpop.xlane.xlu1 %861  ;;  %v5113_v23 = vpop.eup %5112 }
 0x259   : > { %5122 = vrcp.f32 %v862_v8  ;;  %v985_v12 = vmul.f32 0.17677669, %v5113_v23  ;;  %4472 = vmatmul.mubr.msk.f32.vlgmr.msra.gmra.mrb[16].mxu0 %vm403_vm0, %v1109_v53  ;;  %v805_v26 = vpop.xlane.xlu0 %804 }
 0x25a   : > { %v1121_v59 = vmul.f32 %v6580_v42, %v1007_v7  ;;  %4770 = vmatpush3.bf16.msra.mxu0 %v6695_v24  ;;  %5124 = vrcp.f32 %v805_v26 }
 0x25b   : > { %v5115_v10 = vpop.eup %5114  ;;  %v1110_v35 = vmul.f32 %v6578_v51, %v985_v12  ;;  %4772 = vmatprep.subr.bf16.mxu0 %v6720_v18 }
 0x25c   : > { %v1009_v22 = vmul.f32 0.17677669, %v5115_v10  ;;  %4498 = vmatmul.mubr.msk.f32.gmra.mrb[20].mxu1 %vm403_vm0, %v1121_v59  ;;  %v865_v30 = vpop.xlane.xlu1 %864  ;;  %v5117_v61 = vpop.eup %5116 }
 0x25d   : > { %5126 = vrcp.f32 %v865_v30  ;;  %v987_v56 = vmul.f32 0.17677669, %v5117_v61  ;;  %4474 = vmatprep.mubr.msk.f32.mxu0 %vm403_vm0, %v1110_v35  ;;  %v808_v11 = vpop.xlane.xlu0 %807 }
 0x25e   : > { %v1122_v42 = vmul.f32 %v6592_v38, %v1009_v22  ;;  %4774 = vmatpush3.bf16.msra.mxu0 %v6720_v18  ;;  %5128 = vrcp.f32 %v808_v11 }
 0x25f   : > { %v5119_v28 = vpop.eup %5118  ;;  %v1111_v51 = vmul.f32 %v6590_v58, %v987_v56  ;;  %4784 = vmatprep.subr.bf16.mxu0 %v6784_v62 }
 0x260   : > { %v1011_v24 = vmul.f32 0.17677669, %v5119_v28  ;;  %4500 = vmatprep.mubr.msk.f32.mxu1 %vm403_vm0, %v1122_v42  ;;  %v868_v6 = vpop.xlane.xlu1 %867  ;;  %v5121_v46 = vpop.eup %5120 }
 0x261   : > { %5130 = vrcp.f32 %v868_v6  ;;  %v989_v57 = vmul.f32 0.17677669, %v5121_v46  ;;  %4475 = vmatmul.mubr.msk.f32.gmra.mrb[18].mxu0 %vm403_vm0, %v1111_v51  ;;  %v811_v9 = vpop.xlane.xlu0 %810 }
 0x262   : > { %v1123_v38 = vmul.f32 %v6602_v43, %v1011_v24  ;;  %5132 = vrcp.f32 %v811_v9 }
 0x263   : > { %v5123_v0 = vpop.eup %5122  ;;  %v1112_v45 = vmul.f32 %v6600_v44, %v989_v57 }
 0x264   : > { %v1029_v18 = vmul.f32 0.17677669, %v5123_v0  ;;  %4501 = vmatmul.mubr.msk.f32.gmra.mrb[22].mxu1 %vm403_vm0, %v1123_v38  ;;  %v871_v20 = vpop.xlane.xlu1 %870  ;;  %v5125_v58 = vpop.eup %5124 }
 0x265   : > { %5134 = vrcp.f32 %v871_v20  ;;  %v991_v53 = vmul.f32 0.17677669, %v5125_v58  ;;  %4477 = vmatprep.mubr.msk.f32.mxu0 %vm403_vm0, %v1112_v45  ;;  %v838_v43 = vpop.xlane.xlu0 %837 }
 0x266   : > { %v1132_v7 = vmul.f32 %v6612_v37, %v1029_v18  ;;  %5136 = vrcp.f32 %v838_v43 }
 0x267   : > { %v5127_v8 = vpop.eup %5126  ;;  %v1113_v10 = vmul.f32 %v6610_v17, %v991_v53 }
 0x268   : > { %v1031_v23 = vmul.f32 0.17677669, %v5127_v8  ;;  %4531 = vmatprep.mubr.msk.f32.mxu1 %vm403_vm0, %v1132_v7  ;;  %v874_v59 = vpop.xlane.xlu1 %873  ;;  %v5129_v12 = vpop.eup %5128 }
 0x269   : > { %5138 = vrcp.f32 %v874_v59  ;;  %v993_v22 = vmul.f32 0.17677669, %v5129_v12  ;;  %4478 = vmatmul.mubr.msk.f32.gmra.mrb[20].mxu0 %vm403_vm0, %v1113_v10  ;;  %v841_v37 = vpop.xlane.xlu0 %840 }
 0x26a   : > { %v1133_v44 = vmul.f32 %v6622_v25, %v1031_v23  ;;  %5140 = vrcp.f32 %v841_v37 }
 0x26b   : > { %v5131_v26 = vpop.eup %5130  ;;  %v1114_v61 = vmul.f32 %v6620_v4, %v993_v22 }
 0x26c   : > { %v1033_v30 = vmul.f32 0.17677669, %v5131_v26  ;;  %4532 = vmatmul.mubr.msk.f32.vlgmr.msra.gmra.mrb[24].mxu1 %vm403_vm0, %v1133_v44  ;;  %v877_v35 = vpop.xlane.xlu1 %876  ;;  %v5133_v17 = vpop.eup %5132 }
 0x26d   : > { %4794 = vmatpush3.bf16.msra.mxu1 %v6762_v16  ;;  %5142 = vrcp.f32 %v877_v35  ;;  %v995_v28 = vmul.f32 0.17677669, %v5133_v17  ;;  %4480 = vmatprep.mubr.msk.f32.mxu0 %vm403_vm0, %v1114_v61  ;;  %v844_v56 = vpop.xlane.xlu0 %843 }
 0x26e   : > { %v1134_v42 = vmul.f32 %v6632_v41, %v1033_v30  ;;  %4796 = vmatprep.subr.bf16.mxu1 %v6788_v60  ;;  %5144 = vrcp.f32 %v844_v56 }
 0x26f   : > { %v5135_v25 = vpop.eup %5134  ;;  %v1115_v4 = vmul.f32 %v6630_v50, %v995_v28 }
 0x270   : > { %v1035_v11 = vmul.f32 0.17677669, %v5135_v25  ;;  %4534 = vmatprep.mubr.msk.f32.mxu1 %vm403_vm0, %v1134_v42  ;;  %v880_v24 = vpop.xlane.xlu1 %879  ;;  %v5137_v16 = vpop.eup %5136 }
 0x271   : > { %4798 = vmatpush3.bf16.msra.mxu1 %v6788_v60  ;;  %5146 = vrcp.f32 %v880_v24  ;;  %v1013_v51 = vmul.f32 0.17677669, %v5137_v16  ;;  %4481 = vmatmul.mubr.msk.f32.gmra.mrb[22].mxu0 %vm403_vm0, %v1115_v4  ;;  %v847_v46 = vpop.xlane.xlu0 %846 }
 0x272   : > { %v1135_v41 = vmul.f32 %v6642_v54, %v1035_v11  ;;  %4808 = vmatprep.subr.bf16.mxu1 %v6848_v27  ;;  %5148 = vrcp.f32 %v847_v46 }
 0x273   : > { %v5139_v6 = vpop.eup %5138  ;;  %v1124_v50 = vmul.f32 %v6640_v63, %v1013_v51 }
 0x274   : > { %v1037_v38 = vmul.f32 0.17677669, %v5139_v6  ;;  %4535 = vmatmul.mubr.msk.f32.gmra.mrb[26].mxu1 %vm403_vm0, %v1135_v41  ;;  %v883_v0 = vpop.xlane.xlu1 %882  ;;  %v5141_v60 = vpop.eup %5140 }
 0x275   : > { %5150 = vrcp.f32 %v883_v0  ;;  %v1015_v54 = vmul.f32 0.17677669, %v5141_v60  ;;  %4511 = vmatprep.mubr.msk.f32.mxu0 %vm403_vm0, %v1124_v50  ;;  %v850_v18 = vpop.xlane.xlu0 %849 }
 0x276   : > { %v1136_v57 = vmul.f32 %v6652_v15, %v1037_v38  ;;  %5152 = vrcp.f32 %v850_v18 }
 0x277   : > { %v5143_v9 = vpop.eup %5142  ;;  %v1125_v58 = vmul.f32 %v6650_v1, %v1015_v54 }
 0x278   : > { %v1039_v20 = vmul.f32 0.17677669, %v5143_v9  ;;  %4537 = vmatprep.mubr.msk.f32.mxu1 %vm403_vm0, %v1136_v57  ;;  %v910_v45 = vpop.xlane.xlu1 %909  ;;  %v5145_v7 = vpop.eup %5144 }
 0x279   : > { %5154 = vrcp.f32 %v910_v45  ;;  %v1017_v53 = vmul.f32 0.17677669, %v5145_v7  ;;  %4512 = vmatmul.mubr.msk.f32.vlgmr.msra.gmra.mrb[24].mxu0 %vm403_vm0, %v1125_v58  ;;  %v853_v15 = vpop.xlane.xlu0 %852 }
 0x27a   : > { %v1137_v63 = vmul.f32 %v6662_v49, %v1039_v20  ;;  %4786 = vmatpush3.bf16.msra.mxu0 %v6784_v62  ;;  %5156 = vrcp.f32 %v853_v15  ;;  %v7320_v15 = vld [vmem:[#allocation16_spill] sm:$0xff] }
 0x27b   : > { %v5147_v8 = vpop.eup %5146  ;;  %v1126_v59 = vmul.f32 %v6660_v33, %v1017_v53  ;;  %4788 = vmatprep.subr.bf16.mxu0 %v6808_v39 }
 0x27c   : > { %v1041_v43 = vmul.f32 0.17677669, %v5147_v8  ;;  %4538 = vmatmul.mubr.msk.f32.gmra.mrb[28].mxu1 %vm403_vm0, %v1137_v63  ;;  %v913_v23 = vpop.xlane.xlu1 %912  ;;  %v5149_v1 = vpop.eup %5148 }
 0x27d   : > { %5158 = vrcp.f32 %v913_v23  ;;  %v1019_v12 = vmul.f32 0.17677669, %v5149_v1  ;;  %4514 = vmatprep.mubr.msk.f32.mxu0 %vm403_vm0, %v1126_v59  ;;  %v856_v44 = vpop.xlane.xlu0 %855  ;;  %v7321_v59 = vld [vmem:[#allocation18_spill] sm:$0xff] }
 0x27e   : > { %v1138_v49 = vmul.f32 %v6674_v48, %v1041_v43  ;;  %4790 = vmatpush3.bf16.msra.mxu0 %v6808_v39  ;;  %5160 = vrcp.f32 %v856_v44  ;;  %v7322_v44 = vld [vmem:[#allocation17_spill] sm:$0xff] }
 0x27f   : > { %v5151_v10 = vpop.eup %5150  ;;  %v1127_v33 = vmul.f32 %v6670_v36, %v1019_v12  ;;  %4800 = vmatprep.subr.bf16.mxu0 %v6873_v52 }
 0x280   : > { %v1043_v62 = vmul.f32 0.17677669, %v5151_v10  ;;  %4540 = vmatprep.mubr.msk.f32.mxu1 %vm403_vm0, %v1138_v49  ;;  %v916_v26 = vpop.xlane.xlu1 %915  ;;  %v5153_v22 = vpop.eup %5152 }
 0x281   : > { %5162 = vrcp.f32 %v916_v26  ;;  %v1021_v30 = vmul.f32 0.17677669, %v5153_v22  ;;  %4515 = vmatmul.mubr.msk.f32.gmra.mrb[26].mxu0 %vm403_vm0, %v1127_v33  ;;  %v859_v35 = vpop.xlane.xlu0 %858  ;;  %v7323_v33 = vld [vmem:[#allocation20_spill] sm:$0xff] }
 0x282   : > { %v1139_v48 = vmul.f32 %v6685_v47, %v1043_v62  ;;  %5164 = vrcp.f32 %v859_v35 }
 0x283   : > { %v5155_v37 = vpop.eup %5154  ;;  %v1128_v17 = vmul.f32 %v6683_v55, %v1021_v30 }
 0x284   : > { %v1061_v39 = vmul.f32 0.17677669, %v5155_v37  ;;  %4541 = vmatmul.mubr.msk.f32.gmra.mrb[30].mxu1 %vm403_vm0, %v1139_v48  ;;  %v919_v61 = vpop.xlane.xlu1 %918  ;;  %v5157_v36 = vpop.eup %5156 }
 0x285   : > { %5166 = vrcp.f32 %v919_v61  ;;  %v1023_v28 = vmul.f32 0.17677669, %v5157_v36  ;;  %4517 = vmatprep.mubr.msk.f32.mxu0 %vm403_vm0, %v1128_v17  ;;  %v886_v47 = vpop.xlane.xlu0 %885  ;;  %v7325_v36 = vld [vmem:[#allocation21_spill] sm:$0xff] }
 0x286   : > { %v1148_v42 = vmul.f32 %v6697_v2, %v1061_v39  ;;  %5168 = vrcp.f32 %v886_v47  ;;  %v7324_v39 = vld [vmem:[#allocation19_spill] sm:$0xff] }
 0x287   : > { %v5159_v25 = vpop.eup %5158  ;;  %v1129_v24 = vmul.f32 %v6693_v31, %v1023_v28 }
 0x288   : > { %v1063_v56 = vmul.f32 0.17677669, %v5159_v25  ;;  %4571 = vmatprep.mubr.msk.f32.mxu1 %vm403_vm0, %v1148_v42  ;;  %v922_v11 = vpop.xlane.xlu1 %921  ;;  %v5161_v4 = vpop.eup %5160 }
 0x289   : > { %5170 = vrcp.f32 %v922_v11  ;;  %v1025_v41 = vmul.f32 0.17677669, %v5161_v4  ;;  %4518 = vmatmul.mubr.msk.f32.gmra.mrb[28].mxu0 %vm403_vm0, %v1129_v24  ;;  %v889_v2 = vpop.xlane.xlu0 %888  ;;  %v7326_v11 = vld [vmem:[#allocation4_spill] sm:$0xff] }
 0x28a   : > { %v1149_v55 = vmul.f32 %v6710_v29, %v1063_v56  ;;  %5172 = vrcp.f32 %v889_v2 }
 0x28b   : > { %v5163_v16 = vpop.eup %5162  ;;  %v1130_v46 = vmul.f32 %v6708_v19, %v1025_v41 }
 0x28c   : > { %v1065_v6 = vmul.f32 0.17677669, %v5163_v16  ;;  %4572 = vmatmul.mubr.msk.f32.vlgmr.msra.gmra.mrb[32].mxu1 %vm403_vm0, %v1149_v55  ;;  %v925_v51 = vpop.xlane.xlu1 %924  ;;  %v5165_v31 = vpop.eup %5164  ;;  %v7327_v55 = vld [vmem:[#allocation7_spill] sm:$0xff] }
 0x28d   : > { %4810 = vmatpush3.bf16.msra.mxu1 %v6848_v27  ;;  %5174 = vrcp.f32 %v925_v51  ;;  %v1027_v0 = vmul.f32 0.17677669, %v5165_v31  ;;  %4520 = vmatprep.mubr.msk.f32.mxu0 %vm403_vm0, %v1130_v46  ;;  %v892_v50 = vpop.xlane.xlu0 %891  ;;  %v7328_v31 = vld [vmem:[#allocation5_spill] sm:$0xff] }
 0x28e   : > { %v1150_v38 = vmul.f32 %v6722_v3, %v1065_v6  ;;  %4812 = vmatprep.subr.bf16.mxu1 %v6867_v13  ;;  %5176 = vrcp.f32 %v892_v50 }
 0x28f   : > { %v5167_v29 = vpop.eup %5166  ;;  %v1131_v19 = vmul.f32 %v6718_v5, %v1027_v0  ;;  %v7329_v0 = vld [vmem:[#allocation10_spill] sm:$0xff] }
 0x290   : > { %v1067_v60 = vmul.f32 0.17677669, %v5167_v29  ;;  %4574 = vmatprep.mubr.msk.f32.mxu1 %vm403_vm0, %v1150_v38  ;;  %v928_v57 = vpop.xlane.xlu1 %927  ;;  %v5169_v27 = vpop.eup %5168 }
 0x291   : > { %4814 = vmatpush3.bf16.msra.mxu1 %v6867_v13  ;;  %5178 = vrcp.f32 %v928_v57  ;;  %v1045_v54 = vmul.f32 0.17677669, %v5169_v27  ;;  %4521 = vmatmul.mubr.msk.f32.gmra.mrb[30].mxu0 %vm403_vm0, %v1131_v19  ;;  %v895_v18 = vpop.xlane.xlu0 %894 }
 0x292   : > { %v1151_v3 = vmul.f32 %v6732_v40, %v1067_v60  ;;  %5180 = vrcp.f32 %v895_v18  ;;  %v7330_v18 = vld [vmem:[#allocation12_spill] sm:$0xff] }
 0x293   : > { %v5171_v9 = vpop.eup %5170  ;;  %v1140_v58 = vmul.f32 %v6730_v34, %v1045_v54 }
 0x294   : > { %v1069_v20 = vmul.f32 0.17677669, %v5171_v9  ;;  %4575 = vmatmul.mubr.msk.f32.gmra.mrb[34].mxu1 %vm403_vm0, %v1151_v3  ;;  %v931_v45 = vpop.xlane.xlu1 %930  ;;  %v5173_v5 = vpop.eup %5172 }
 0x295   : > { %5182 = vrcp.f32 %v931_v45  ;;  %v1047_v63 = vmul.f32 0.17677669, %v5173_v5  ;;  %4551 = vmatprep.mubr.msk.f32.mxu0 %vm403_vm0, %v1140_v58  ;;  %v898_v40 = vpop.xlane.xlu0 %897 }
 0x296   : > { %v1152_v13 = vmul.f32 %v6742_v14, %v1069_v20  ;;  %5184 = vrcp.f32 %v898_v40 }
 0x297   : > { %v5175_v7 = vpop.eup %5174  ;;  %v1141_v43 = vmul.f32 %v7320_v15, %v1047_v63  ;;  %v7331_v63 = vld [vmem:[#allocation11_spill] sm:$0xff] }
 0x298   : > { %v1071_v8 = vmul.f32 0.17677669, %v5175_v7  ;;  %4577 = vmatprep.mubr.msk.f32.mxu1 %vm403_vm0, %v1152_v13  ;;  %v958_v53 = vpop.xlane.xlu1 %957  ;;  %v5177_v23 = vpop.eup %5176 }
 0x299   : > { %5186 = vrcp.f32 %v958_v53  ;;  %v1049_v49 = vmul.f32 0.17677669, %v5177_v23  ;;  %4552 = vmatmul.mubr.msk.f32.vlgmr.msra.gmra.mrb[32].mxu0 %vm403_vm0, %v1141_v43  ;;  %v901_v14 = vpop.xlane.xlu0 %900  ;;  %v7332_v53 = vld [vmem:[#allocation2_spill] sm:$0xff] }
 0x29a   : > { %v1153_v34 = vmul.f32 %v7321_v59, %v1071_v8  ;;  %4802 = vmatpush3.bf16.msra.mxu0 %v6873_v52  ;;  %5188 = vrcp.f32 %v901_v14 }
 0x29b   : > { %v5179_v1 = vpop.eup %5178  ;;  %v1142_v62 = vmul.f32 %v7322_v44, %v1049_v49  ;;  %4804 = vmatprep.subr.bf16.mxu0 %v6881_v32 }
 0x29c   : > { %v1073_v10 = vmul.f32 0.17677669, %v5179_v1  ;;  %4578 = vmatmul.mubr.msk.f32.gmra.mrb[36].mxu1 %vm403_vm0, %v1153_v34  ;;  %v961_v12 = vpop.xlane.xlu1 %960  ;;  %v5181_v26 = vpop.eup %5180  ;;  %v7333_v1 = vld [vmem:[#allocation6_spill] sm:$0xff] }
 0x29d   : > { %5190 = vrcp.f32 %v961_v12  ;;  %v1051_v37 = vmul.f32 0.17677669, %v5181_v26  ;;  %4554 = vmatprep.mubr.msk.f32.mxu0 %vm403_vm0, %v1142_v62  ;;  %v904_v30 = vpop.xlane.xlu0 %903 }
 0x29e   : > { %v1154_v22 = vmul.f32 %v7323_v33, %v1073_v10  ;;  %4806 = vmatpush3.bf16.msra.mxu0 %v6881_v32  ;;  %5192 = vrcp.f32 %v904_v30  ;;  %v7334_v10 = vld [vmem:[#allocation9_spill] sm:$0xff]  ;;  %v7336_v30 = vld [vmem:[#allocation14_spill] sm:$0xff] }
 0x29f   : > { %v5183_v48 = vpop.eup %5182  ;;  %v1143_v61 = vmul.f32 %v7324_v39, %v1051_v37 }
 0x2a0   : > { %v1075_v52 = vmul.f32 0.17677669, %v5183_v48  ;;  %4580 = vmatprep.mubr.msk.f32.mxu1 %vm403_vm0, %v1154_v22  ;;  %v964_v35 = vpop.xlane.xlu1 %963  ;;  %v5185_v17 = vpop.eup %5184  ;;  %v7335_v22 = vld [vmem:[#allocation8_spill] sm:$0xff] }
 0x2a1   : > { %5194 = vrcp.f32 %v964_v35  ;;  %v1053_v28 = vmul.f32 0.17677669, %v5185_v17  ;;  %4555 = vmatmul.mubr.msk.f32.gmra.mrb[34].mxu0 %vm403_vm0, %v1143_v61  ;;  %v907_v47 = vpop.xlane.xlu0 %906 }
 0x2a2   : > { %v1155_v42 = vmul.f32 %v7325_v36, %v1075_v52  ;;  %5196 = vrcp.f32 %v907_v47  ;;  %v7337_v36 = vld [vmem:[#allocation13_spill] sm:$0xff] }
 0x2a3   : > { %v5187_v25 = vpop.eup %5186  ;;  %v1144_v24 = vmul.f32 %v7326_v11, %v1053_v28  ;;  %v7338_v28 = vld [vmem:[#allocation22_spill] sm:$0xff] }
 0x2a4   : > { %v1093_v56 = vmul.f32 0.17677669, %v5187_v25  ;;  %4581 = vmatmul.mubr.msk.f32.gmra.mrb[38].mxu1 %vm403_vm0, %v1155_v42  ;;  %v967_v32 = vpop.xlane.xlu1 %966  ;;  %v5189_v4 = vpop.eup %5188 }
 0x2a5   : > { %5198 = vrcp.f32 %v967_v32  ;;  %v1055_v2 = vmul.f32 0.17677669, %v5189_v4  ;;  %4557 = vmatprep.mubr.msk.f32.mxu0 %vm403_vm0, %v1144_v24  ;;  %v934_v6 = vpop.xlane.xlu0 %933  ;;  %v7339_v4 = vld [vmem:[#allocation3_spill] sm:$0xff] }
 0x2a6   : > { %v1164_v16 = vmul.f32 %v7327_v55, %v1093_v56  ;;  %5200 = vrcp.f32 %v934_v6 }
 0x2a7   : > { %v5191_v41 = vpop.eup %5190  ;;  %v1145_v38 = vmul.f32 %v7328_v31, %v1055_v2 }
 0x2a8   : > { %v1095_v51 = vmul.f32 0.17677669, %v5191_v41  ;;  %4611 = vmatprep.mubr.msk.f32.mxu1 %vm403_vm0, %v1164_v16  ;;  %v970_v46 = vpop.xlane.xlu1 %969  ;;  %v5193_v29 = vpop.eup %5192  ;;  %v7340_v41 = vld [vmem:[#allocation24_spill] sm:$0xff] }
 0x2a9   : > { %5202 = vrcp.f32 %v970_v46  ;;  %v1057_v57 = vmul.f32 0.17677669, %v5193_v29  ;;  %4558 = vmatmul.mubr.msk.f32.gmra.mrb[36].mxu0 %vm403_vm0, %v1145_v38  ;;  %v937_v19 = vpop.xlane.xlu0 %936  ;;  %v7341_v46 = vld [vmem:[#allocation23_spill] sm:$0xff] }
 0x2aa   : > { %v1165_v50 = vmul.f32 %v7329_v0, %v1095_v51  ;;  %5204 = vrcp.f32 %v937_v19  ;;  %v7342_v0 = vld [vmem:[#allocation25_spill] sm:$0xff]  ;;  %v7343_v19 = vld [vmem:[#allocation26_spill] sm:$0xff] }
 0x2ab   : > { %v5195_v60 = vpop.eup %5194  ;;  %v1146_v9 = vmul.f32 %v6796_v21, %v1057_v57 }
 0x2ac   : > { %v1097_v27 = vmul.f32 0.17677669, %v5195_v60  ;;  %4612 = vmatmul.mubr.msk.f32.vlgmr.msra.gmra.mrb[40].mxu1 %vm403_vm0, %v1165_v50  ;;  %v973_v3 = vpop.xlane.xlu1 %972  ;;  %v5197_v54 = vpop.eup %5196 }
 0x2ad   : > { %5206 = vrcp.f32 %v973_v3  ;;  %v1059_v58 = vmul.f32 0.17677669, %v5197_v54  ;;  %4560 = vmatprep.mubr.msk.f32.mxu0 %vm403_vm0, %v1146_v9  ;;  %v940_v5 = vpop.xlane.xlu0 %939  ;;  %v7344_v54 = vld [vmem:[#allocation27_spill] sm:$0xff] }
 0x2ae   : > { %v1166_v20 = vmul.f32 %v7330_v18, %v1097_v27  ;;  %5208 = vrcp.f32 %v940_v5 }
 0x2af   : > { %v5199_v45 = vpop.eup %5198  ;;  %v1147_v40 = vmul.f32 %v7331_v63, %v1059_v58 }
 0x2b0   : > { %v1099_v13 = vmul.f32 0.17677669, %v5199_v45  ;;  %4614 = vmatprep.mubr.msk.f32.mxu1 %vm403_vm0, %v1166_v20  ;;  %v976_v7 = vpop.xlane.xlu1 %975  ;;  %v5201_v8 = vpop.eup %5200 }
 0x2b1   : > { %5210 = vrcp.f32 %v976_v7  ;;  %v1077_v43 = vmul.f32 0.17677669, %v5201_v8  ;;  %4561 = vmatmul.mubr.msk.f32.gmra.mrb[38].mxu0 %vm403_vm0, %v1147_v40  ;;  %v943_v23 = vpop.xlane.xlu0 %942 }
 0x2b2   : > { %v1167_v21 = vmul.f32 %v7332_v53, %v1099_v13  ;;  %5212 = vrcp.f32 %v943_v23 }
 0x2b3   : > { %v5203_v15 = vpop.eup %5202  ;;  %v1156_v49 = vmul.f32 %v7333_v1, %v1077_v43 }
 0x2b4   : > { %v1101_v59 = vmul.f32 0.17677669, %v5203_v15  ;;  %4615 = vmatmul.mubr.msk.f32.gmra.mrb[42].mxu1 %vm403_vm0, %v1167_v21  ;;  %v979_v34 = vpop.xlane.xlu1 %978  ;;  %v5205_v14 = vpop.eup %5204 }
 0x2b5   : > { %5214 = vrcp.f32 %v979_v34  ;;  %v1079_v62 = vmul.f32 0.17677669, %v5205_v14  ;;  %4591 = vmatprep.mubr.msk.f32.mxu0 %vm403_vm0, %v1156_v49  ;;  %v946_v26 = vpop.xlane.xlu0 %945 }
 0x2b6   : > { %v1168_v12 = vmul.f32 %v7334_v10, %v1101_v59  ;;  %5216 = vrcp.f32 %v946_v26 }
 0x2b7   : > { %v5207_v44 = vpop.eup %5206  ;;  %v1157_v48 = vmul.f32 %v7335_v22, %v1079_v62 }
 0x2b8   : > { %v1103_v33 = vmul.f32 0.17677669, %v5207_v44  ;;  %4617 = vmatprep.mubr.msk.f32.mxu1 %vm403_vm0, %v1168_v12  ;;  %v5209_v37 = vpop.eup %5208 }
 0x2b9   : > { %v1081_v39 = vmul.f32 0.17677669, %v5209_v37  ;;  %4592 = vmatmul.mubr.msk.f32.vlgmr.msra.gmra.mrb[40].mxu0 %vm403_vm0, %v1157_v48  ;;  %v949_v61 = vpop.xlane.xlu0 %948 }
 0x2ba   : > { %v1169_v52 = vmul.f32 %v7336_v30, %v1103_v33  ;;  %5218 = vrcp.f32 %v949_v61 }
 0x2bb   : > { %v5211_v35 = vpop.eup %5210  ;;  %v1158_v42 = vmul.f32 %v7337_v36, %v1081_v39 }
 0x2bc   : > { %v1105_v17 = vmul.f32 0.17677669, %v5211_v35  ;;  %4618 = vmatmul.mubr.msk.f32.gmra.mrb[44].mxu1 %vm403_vm0, %v1169_v52  ;;  %v5213_v25 = vpop.eup %5212 }
 0x2bd   : > { %v1083_v32 = vmul.f32 0.17677669, %v5213_v25  ;;  %4594 = vmatprep.mubr.msk.f32.mxu0 %vm403_vm0, %v1158_v42  ;;  %v952_v11 = vpop.xlane.xlu0 %951 }
 0x2be   : > { %v1170_v47 = vmul.f32 %v7338_v28, %v1105_v17  ;;  %5220 = vrcp.f32 %v952_v11 }
 0x2bf   : > { %v5215_v56 = vpop.eup %5214  ;;  %v1159_v55 = vmul.f32 %v7339_v4, %v1083_v32 }
 0x2c0   : > { %v1107_v24 = vmul.f32 0.17677669, %v5215_v56  ;;  %4620 = vmatprep.mubr.msk.f32.mxu1 %vm403_vm0, %v1170_v47  ;;  %v5217_v16 = vpop.eup %5216 }
 0x2c1   : > { %v1085_v6 = vmul.f32 0.17677669, %v5217_v16  ;;  %4595 = vmatmul.mubr.msk.f32.gmra.mrb[42].mxu0 %vm403_vm0, %v1159_v55  ;;  %v955_v51 = vpop.xlane.xlu0 %954 }
 0x2c2   : > { %v1171_v2 = vmul.f32 %v7340_v41, %v1107_v24  ;;  %5222 = vrcp.f32 %v955_v51 }
 0x2c3   : > { %v1160_v31 = vmul.f32 %v7341_v46, %v1085_v6 }
 0x2c4   : > { %4621 = vmatmul.mubr.msk.f32.gmra.mrb[46].mxu1 %vm403_vm0, %v1171_v2  ;;  %v5219_v38 = vpop.eup %5218 }
 0x2c5   : > { %v1087_v29 = vmul.f32 0.17677669, %v5219_v38  ;;  %4597 = vmatprep.mubr.msk.f32.mxu0 %vm403_vm0, %v1160_v31 }
 0x2c7   : > { %v1161_v50 = vmul.f32 %v7342_v0, %v1087_v29 }
 0x2c8   : > { %v5221_v60 = vpop.eup %5220 }
 0x2c9   : > { %v1089_v57 = vmul.f32 0.17677669, %v5221_v60  ;;  %4598 = vmatmul.mubr.msk.f32.gmra.mrb[44].mxu0 %vm403_vm0, %v1161_v50 }
 0x2cb   : > { %v1162_v27 = vmul.f32 %v7343_v19, %v1089_v57 }
 0x2cc   : > { %v5223_v3 = vpop.eup %5222 }
 0x2cd   : > { %v1091_v9 = vmul.f32 0.17677669, %v5223_v3  ;;  %4600 = vmatprep.mubr.msk.f32.mxu0 %vm403_vm0, %v1162_v27 }
 0x2cf   : > { %v1163_v18 = vmul.f32 %v7344_v54, %v1091_v9 }
 0x2d1   : > { %4601 = vmatmul.mubr.msk.f32.gmra.mrb[46].mxu0 %vm403_vm0, %v1163_v18 }
 0x31f   : > { %v4493_v20 = vpop.f32.mrb[16].mxu1 }
 0x320   : > { %3846 = vst.msk [vmem:[%s7037_s26 + $0x48] sm:$0xff] %vm403_vm0, %v4493_v20  ;;  %v3024_v45 = vpop.f32.mrb[17].mxu1 }
 0x321   : > { %3845 = vst.msk [vmem:[%s7037_s26 + $0x40] sm:$0xff] %vm403_vm0, %v3024_v45 }
 0x327   : > { %v4496_v58 = vpop.f32.mrb[18].mxu1 }
 0x328   : > { %3848 = vst.msk [vmem:[%s7037_s26 + $0x58] sm:$0xff] %vm403_vm0, %v4496_v58  ;;  %v3034_v5 = vpop.f32.mrb[19].mxu1 }
 0x329   : > { %3847 = vst.msk [vmem:[%s7037_s26 + $0x50] sm:$0xff] %vm403_vm0, %v3034_v5 }
 0x32c   : > { %v4473_v13 = vpop.f32.mrb[16].mxu0 }
 0x32d   : > { %3838 = vst.msk [vmem:[%s7037_s26 + $0x8] sm:$0xff] %vm403_vm0, %v4473_v13  ;;  %v2895_v7 = vpop.f32.mrb[17].mxu0 }
 0x32e   : > { %3837 = vst.msk [vmem:[%s7037_s26] sm:$0xff] %vm403_vm0, %v2895_v7 }
 0x32f   : > { %v4499_v63 = vpop.f32.mrb[20].mxu1 }
 0x330   : > { %3850 = vst.msk [vmem:[%s7037_s26 + $0x68] sm:$0xff] %vm403_vm0, %v4499_v63  ;;  %v3044_v40 = vpop.f32.mrb[21].mxu1 }
 0x331   : > { %3849 = vst.msk [vmem:[%s7037_s26 + $0x60] sm:$0xff] %vm403_vm0, %v3044_v40 }
 0x334   : > { %v4476_v8 = vpop.f32.mrb[18].mxu0 }
 0x335   : > { %3840 = vst.msk [vmem:[%s7037_s26 + $0x18] sm:$0xff] %vm403_vm0, %v4476_v8  ;;  %v2905_v53 = vpop.f32.mrb[19].mxu0 }
 0x336   : > { %3839 = vst.msk [vmem:[%s7037_s26 + $0x10] sm:$0xff] %vm403_vm0, %v2905_v53 }
 0x337   : > { %v4502_v21 = vpop.f32.mrb[22].mxu1 }
 0x338   : > { %3852 = vst.msk [vmem:[%s7037_s26 + $0x78] sm:$0xff] %vm403_vm0, %v4502_v21  ;;  %v3054_v15 = vpop.f32.mrb[23].mxu1 }
 0x339   : > { %3851 = vst.msk [vmem:[%s7037_s26 + $0x70] sm:$0xff] %vm403_vm0, %v3054_v15 }
 0x33c   : > { %v4479_v43 = vpop.f32.mrb[20].mxu0 }
 0x33d   : > { %3842 = vst.msk [vmem:[%s7037_s26 + $0x28] sm:$0xff] %vm403_vm0, %v4479_v43  ;;  %v2915_v23 = vpop.f32.mrb[21].mxu0 }
 0x33e   : > { %3841 = vst.msk [vmem:[%s7037_s26 + $0x20] sm:$0xff] %vm403_vm0, %v2915_v23 }
 0x33f   : > { %v4533_v59 = vpop.f32.mrb[24].mxu1 }
 0x340   : > { %3862 = vst.msk [vmem:[%s7037_s26 + $0xc8] sm:$0xff] %vm403_vm0, %v4533_v59  ;;  %v3282_v34 = vpop.f32.mrb[25].mxu1 }
 0x341   : > { %3861 = vst.msk [vmem:[%s7037_s26 + $0xc0] sm:$0xff] %vm403_vm0, %v3282_v34 }
 0x344   : > { %v4482_v1 = vpop.f32.mrb[22].mxu0 }
 0x345   : > { %3844 = vst.msk [vmem:[%s7037_s26 + $0x38] sm:$0xff] %vm403_vm0, %v4482_v1  ;;  %v2925_v49 = vpop.f32.mrb[23].mxu0 }
 0x346   : > { %3843 = vst.msk [vmem:[%s7037_s26 + $0x30] sm:$0xff] %vm403_vm0, %v2925_v49 }
 0x347   : > { %v4536_v14 = vpop.f32.mrb[26].mxu1 }
 0x348   : > { %3864 = vst.msk [vmem:[%s7037_s26 + $0xd8] sm:$0xff] %vm403_vm0, %v4536_v14  ;;  %v3292_v10 = vpop.f32.mrb[27].mxu1 }
 0x349   : > { %3863 = vst.msk [vmem:[%s7037_s26 + $0xd0] sm:$0xff] %vm403_vm0, %v3292_v10 }
 0x34c   : > { %v4513_v12 = vpop.f32.mrb[24].mxu0 }
 0x34d   : > { %3854 = vst.msk [vmem:[%s7037_s26 + $0x88] sm:$0xff] %vm403_vm0, %v4513_v12  ;;  %v3153_v44 = vpop.f32.mrb[25].mxu0 }
 0x34e   : > { %3853 = vst.msk [vmem:[%s7037_s26 + $0x80] sm:$0xff] %vm403_vm0, %v3153_v44 }
 0x34f   : > { %v4539_v62 = vpop.f32.mrb[28].mxu1 }
 0x350   : > { %3866 = vst.msk [vmem:[%s7037_s26 + $0xe8] sm:$0xff] %vm403_vm0, %v4539_v62  ;;  %v3302_v26 = vpop.f32.mrb[29].mxu1 }
 0x351   : > { %3865 = vst.msk [vmem:[%s7037_s26 + $0xe0] sm:$0xff] %vm403_vm0, %v3302_v26 }
 0x354   : > { %v4516_v33 = vpop.f32.mrb[26].mxu0 }
 0x355   : > { %3856 = vst.msk [vmem:[%s7037_s26 + $0x98] sm:$0xff] %vm403_vm0, %v4516_v33  ;;  %v3163_v22 = vpop.f32.mrb[27].mxu0 }
 0x356   : > { %3855 = vst.msk [vmem:[%s7037_s26 + $0x90] sm:$0xff] %vm403_vm0, %v3163_v22 }
 0x357   : > { %v4542_v48 = vpop.f32.mrb[30].mxu1 }
 0x358   : > { %3868 = vst.msk [vmem:[%s7037_s26 + $0xf8] sm:$0xff] %vm403_vm0, %v4542_v48  ;;  %v3312_v37 = vpop.f32.mrb[31].mxu1 }
 0x359   : > { %3867 = vst.msk [vmem:[%s7037_s26 + $0xf0] sm:$0xff] %vm403_vm0, %v3312_v37 }
 0x35c   : > { %v4519_v30 = vpop.f32.mrb[28].mxu0 }
 0x35d   : > { %3858 = vst.msk [vmem:[%s7037_s26 + $0xa8] sm:$0xff] %vm403_vm0, %v4519_v30  ;;  %v3173_v52 = vpop.f32.mrb[29].mxu0 }
 0x35e   : > { %3857 = vst.msk [vmem:[%s7037_s26 + $0xa0] sm:$0xff] %vm403_vm0, %v3173_v52 }
 0x35f   : > { %v4573_v35 = vpop.f32.mrb[32].mxu1 }
 0x360   : > { %3878 = vst.msk [vmem:[%s7037_s26 + $0x148] sm:$0xff] %vm403_vm0, %v4573_v35  ;;  %v3540_v39 = vpop.f32.mrb[33].mxu1 }
 0x361   : > { %3877 = vst.msk [vmem:[%s7037_s26 + $0x140] sm:$0xff] %vm403_vm0, %v3540_v39 }
 0x364   : > { %v4522_v61 = vpop.f32.mrb[30].mxu0 }
 0x365   : > { %3860 = vst.msk [vmem:[%s7037_s26 + $0xb8] sm:$0xff] %vm403_vm0, %v4522_v61  ;;  %v3183_v17 = vpop.f32.mrb[31].mxu0 }
 0x366   : > { %3859 = vst.msk [vmem:[%s7037_s26 + $0xb0] sm:$0xff] %vm403_vm0, %v3183_v17 }
 0x367   : > { %v4576_v36 = vpop.f32.mrb[34].mxu1 }
 0x368   : > { %3880 = vst.msk [vmem:[%s7037_s26 + $0x158] sm:$0xff] %vm403_vm0, %v4576_v36  ;;  %v3550_v42 = vpop.f32.mrb[35].mxu1 }
 0x369   : > { %3879 = vst.msk [vmem:[%s7037_s26 + $0x150] sm:$0xff] %vm403_vm0, %v3550_v42 }
 0x36c   : > { %v4553_v25 = vpop.f32.mrb[32].mxu0 }
 0x36d   : > { %3870 = vst.msk [vmem:[%s7037_s26 + $0x108] sm:$0xff] %vm403_vm0, %v4553_v25  ;;  %v3411_v28 = vpop.f32.mrb[33].mxu0 }
 0x36e   : > { %3869 = vst.msk [vmem:[%s7037_s26 + $0x100] sm:$0xff] %vm403_vm0, %v3411_v28 }
 0x36f   : > { %v4579_v47 = vpop.f32.mrb[36].mxu1 }
 0x370   : > { %3882 = vst.msk [vmem:[%s7037_s26 + $0x168] sm:$0xff] %vm403_vm0, %v4579_v47  ;;  %v3560_v56 = vpop.f32.mrb[37].mxu1 }
 0x371   : > { %3881 = vst.msk [vmem:[%s7037_s26 + $0x160] sm:$0xff] %vm403_vm0, %v3560_v56 }
 0x374   : > { %v4556_v32 = vpop.f32.mrb[34].mxu0 }
 0x375   : > { %3872 = vst.msk [vmem:[%s7037_s26 + $0x118] sm:$0xff] %vm403_vm0, %v4556_v32  ;;  %v3421_v11 = vpop.f32.mrb[35].mxu0 }
 0x376   : > { %3871 = vst.msk [vmem:[%s7037_s26 + $0x110] sm:$0xff] %vm403_vm0, %v3421_v11 }
 0x377   : > { %v4582_v24 = vpop.f32.mrb[38].mxu1 }
 0x378   : > { %3884 = vst.msk [vmem:[%s7037_s26 + $0x178] sm:$0xff] %vm403_vm0, %v4582_v24  ;;  %v3570_v4 = vpop.f32.mrb[39].mxu1 }
 0x379   : > { %3883 = vst.msk [vmem:[%s7037_s26 + $0x170] sm:$0xff] %vm403_vm0, %v3570_v4 }
 0x37c   : > { %v4559_v55 = vpop.f32.mrb[36].mxu0 }
 0x37d   : > { %3874 = vst.msk [vmem:[%s7037_s26 + $0x128] sm:$0xff] %vm403_vm0, %v4559_v55  ;;  %v3431_v16 = vpop.f32.mrb[37].mxu0 }
 0x37e   : > { %3873 = vst.msk [vmem:[%s7037_s26 + $0x120] sm:$0xff] %vm403_vm0, %v3431_v16 }
 0x37f   : > { %v4613_v41 = vpop.f32.mrb[40].mxu1 }
 0x380   : > { %3894 = vst.msk [vmem:[%s7037_s26 + $0x1c8] sm:$0xff] %vm403_vm0, %v4613_v41  ;;  %v3798_v2 = vpop.f32.mrb[41].mxu1 }
 0x381   : > { %3893 = vst.msk [vmem:[%s7037_s26 + $0x1c0] sm:$0xff] %vm403_vm0, %v3798_v2 }
 0x384   : > { %v4562_v6 = vpop.f32.mrb[38].mxu0 }
 0x385   : > { %3876 = vst.msk [vmem:[%s7037_s26 + $0x138] sm:$0xff] %vm403_vm0, %v4562_v6  ;;  %v3441_v51 = vpop.f32.mrb[39].mxu0 }
 0x386   : > { %3875 = vst.msk [vmem:[%s7037_s26 + $0x130] sm:$0xff] %vm403_vm0, %v3441_v51 }
 0x387   : > { %v4616_v46 = vpop.f32.mrb[42].mxu1 }
 0x388   : > { %3896 = vst.msk [vmem:[%s7037_s26 + $0x1d8] sm:$0xff] %vm403_vm0, %v4616_v46  ;;  %v3808_v31 = vpop.f32.mrb[43].mxu1 }
 0x389   : > { %3895 = vst.msk [vmem:[%s7037_s26 + $0x1d0] sm:$0xff] %vm403_vm0, %v3808_v31 }
 0x38c   : > { %v4593_v38 = vpop.f32.mrb[40].mxu0 }
 0x38d   : > { %3886 = vst.msk [vmem:[%s7037_s26 + $0x188] sm:$0xff] %vm403_vm0, %v4593_v38  ;;  %v3669_v29 = vpop.f32.mrb[41].mxu0 }
 0x38e   : > { %3885 = vst.msk [vmem:[%s7037_s26 + $0x180] sm:$0xff] %vm403_vm0, %v3669_v29 }
 0x38f   : > { %v4619_v0 = vpop.f32.mrb[44].mxu1 }
 0x390   : > { %3898 = vst.msk [vmem:[%s7037_s26 + $0x1e8] sm:$0xff] %vm403_vm0, %v4619_v0  ;;  %v3818_v50 = vpop.f32.mrb[45].mxu1 }
 0x391   : > { %3897 = vst.msk [vmem:[%s7037_s26 + $0x1e0] sm:$0xff] %vm403_vm0, %v3818_v50 }
 0x394   : > { %v4596_v60 = vpop.f32.mrb[42].mxu0 }
 0x395   : > { %3888 = vst.msk [vmem:[%s7037_s26 + $0x198] sm:$0xff] %vm403_vm0, %v4596_v60  ;;  %v3679_v57 = vpop.f32.mrb[43].mxu0 }
 0x396   : > { %3887 = vst.msk [vmem:[%s7037_s26 + $0x190] sm:$0xff] %vm403_vm0, %v3679_v57 }
 0x397   : > { %v4622_v19 = vpop.f32.mrb[46].mxu1 }
 0x398   : > { %3900 = vst.msk [vmem:[%s7037_s26 + $0x1f8] sm:$0xff] %vm403_vm0, %v4622_v19  ;;  %v3828_v27 = vpop.f32.mrb[47].mxu1 }
 0x399   : > { %3899 = vst.msk [vmem:[%s7037_s26 + $0x1f0] sm:$0xff] %vm403_vm0, %v3828_v27 }
 0x39c   : > { %v4599_v3 = vpop.f32.mrb[44].mxu0 }
 0x39d   : > { %3890 = vst.msk [vmem:[%s7037_s26 + $0x1a8] sm:$0xff] %vm403_vm0, %v4599_v3  ;;  %v3689_v9 = vpop.f32.mrb[45].mxu0 }
 0x39e   : > { %3889 = vst.msk [vmem:[%s7037_s26 + $0x1a0] sm:$0xff] %vm403_vm0, %v3689_v9 }
 0x3a4   : > { %v4602_v54 = vpop.f32.mrb[46].mxu0 }
 0x3a5   : > { %3892 = vst.msk [vmem:[%s7037_s26 + $0x1b8] sm:$0xff] %vm403_vm0, %v4602_v54  ;;  %v3699_v18 = vpop.f32.mrb[47].mxu0 }
 0x3a6   : > { %3891 = vst.msk [vmem:[%s7037_s26 + $0x1b0] sm:$0xff] %vm403_vm0, %v3699_v18 }
 0x3a7 PF: > { %s13_s12 = sadd.s32 1, %s5230_s12  }
 0x3a8   : > { %p10_p4 = scmp.ge.s32.totalorder %s13_s12, 4  }
 0x3aa   :  { %12 = sbr.rel (!%p10_p4) target bundleno = 1 (0x1), region = 68 }

// kernel: linear_attention_transformer_block.5
= control target key start
LH: loop header
LB: loop body
LE: loop exit
PB: predicated region body
PF: predicated region fallthrough
CT: control target
= control target key end

     0   :  { %s4844_s9 = smov 0   ;;  %s4846_s10 = smov 0   ;;  %s7125_s0 = inlined_call_operand.vmem [shape: f32[2,10,10,768], index: 0, kind: input, shape index: {}]   ;;  %s7126_s1 = inlined_call_operand.vmem [shape: f32[9,768], index: 1, kind: input, shape index: {}]   ;;  %s7127_s2 = inlined_call_operand.vmem [shape: f32[2,8,8,768], index: 2, kind: output, shape index: {}]  }
   0x1   :  { %s4848_s11 = smov 0  }
   0x2 LB: > { %s24_s12 = sadd.s32 1, %s4823_s10  ;;  %p4278_p0 = scmp.ge.s32.totalorder %s4827_s11, 1  ;;  %s4827_s11 = sphi %s4848_s11, %s12_s11   ;;  %s4823_s10 = sphi %s4846_s10, %s7553_s10   ;;  %s4819_s9 = sphi %s4844_s9, %s7552_s9  }
   0x3   : > { %p26_p1 = scmp.ge.s32.totalorder %s24_s12, 2  ;;  %p144_p2 = scmp.lt.s32.totalorder %s4827_s11, 3 }
   0x5   : > { %s7555_s12 = smov (%p26_p1, %s24_s12), 0  ;;  %p145_p3 = pnand %p4278_p0, %p144_p2 }
   0x7   : > { %148 = sbr.rel (%p145_p3) target bundleno = 542 (0x21e), region = 28 }
   0xe   : > { %p180_p4 = scmp.lt.s32.totalorder %s4819_s9, 1  ;;  %v205_v0 = vld [vmem:[%s7126_s1] ss:$8 sm:$0xf]  ;;  %v257_v1 = vlaneseq  ;;  %vm706_vm0 = vcmask 1046528   ;;  %vm1270_vm1 = vcmask 1045504  }
   0xf   : > { %v206_v2 = vld [vmem:[%s7126_s1] ss:$8 sm:$0x30]  ;;  %v4281_v3 = vld [vmem:[%s7126_s1 + $0x1] ss:$8 sm:$0xf] }
  0x10   : > { %s7557_s9 = smov (!%p180_p4, %s4819_s9), 1  ;;  %v4873_v4 = vor.u32 %v206_v2, %v205_v0  ;;  %v4875_v5 = vshrl.u32 %v257_v1, 7  ;;  %v4282_v6 = vld [vmem:[%s7126_s1 + $0x1] ss:$8 sm:$0x30] }
  0x11   : > { %v4880_v7 = vor.u32 %v4282_v6, %v4281_v3  ;;  %v4283_v8 = vld [vmem:[%s7126_s1 + $0x2] ss:$8 sm:$0xf]  ;;  %s4779_s25 = smul.u32 960, %s7557_s9 }
  0x12   : > { %v4284_v9 = vld [vmem:[%s7126_s1 + $0x2] ss:$8 sm:$0x30]  ;;  %v4890_v10 = vsub.s32 0, %v4875_v5  ;;  %v4898_v13 = vsub.s32 1, %v4875_v5  ;;  %v4904_v15 = vsub.s32 2, %v4875_v5 }
  0x13   : > { %v4892_v11 = vor.u32 %v4284_v9, %v4283_v8  ;;  %v4285_v12 = vld [vmem:[%s7126_s1 + $0x3] ss:$8 sm:$0xf]  ;;  %v4907_v16 = vsub.s32 3, %v4875_v5  ;;  %s4912_s4 = scalar_lea.vmem %s7125_s0, %s4779_s25  ;;  %s4780_s29 = smul.u32 384, %s7557_s9 }
  0x14   : > { %v4286_v14 = vld [vmem:[%s7126_s1 + $0x3] ss:$8 sm:$0x30]  ;;  %v4916_v17 = vrot.slane %v4873_v4, %v4890_v10  ;;  %v4920_v18 = vrot.slane %v4880_v7, %v4890_v10  ;;  %v4335_v21 = vld [vmem:[%s7126_s1 + $0x4] ss:$8 sm:$0xf]  ;;  %v4941_v27 = vrot.slane %v4873_v4, %v4898_v13  ;;  %v4945_v28 = vrot.slane %v4880_v7, %v4898_v13 }
  0x15   : > { %v4924_v19 = vrot.slane %v4892_v11, %v4890_v10  ;;  %v4926_v20 = vor.u32 %v4286_v14, %v4285_v12  ;;  %v4336_v22 = vld [vmem:[%s7126_s1 + $0x4] ss:$8 sm:$0x30]  ;;  %v393_v25 = vld [vmem:[%s4912_s4 + $0x30] sm:$0x1]  ;;  %v4949_v29 = vrot.slane %v4892_v11, %v4898_v13  ;;  %v5003_v60 = vrot.slane %v4873_v4, %v4904_v15  ;;  %s5107_s3 = scalar_lea.vmem %s7127_s2, %s4780_s29 }
  0x16   : > { %7309 = vst [vmem:[#allocation2_spill] sm:$0xff] %v4916_v17  ;;  %v208_v23 = vld [vmem:[%s4912_s4] sm:$0xff]  ;;  %v4937_v26 = vor.u32 %v4336_v22, %v4335_v21  ;;  %v520_v32 = vmul.f32 %v4920_v18, %v393_v25  ;;  %v957_v34 = vld [vmem:[%s4912_s4 + $0x30] sm:$0x3]  ;;  %v209_v54 = vld [vmem:[%s4912_s4 + $0x8] sm:$0xff] }
  0x17   : > { %v387_v24 = vld [vmem:[%s4912_s4] sm:$0xfe]  ;;  %v287_v30 = vmul.f32 %v4916_v17, %v208_v23  ;;  %v4958_v35 = vrot.slane %v4926_v20, %v4890_v10  ;;  %v1084_v37 = vmul.f32 %v4924_v19, %v957_v34  ;;  %v4343_v40 = vld [vmem:[%s4912_s4 + $0x90] sm:$0x1]  ;;  %v4973_v42 = vrot.slane %v4926_v20, %v4898_v13  ;;  %v5010_v2 = vld [vmem:[%s4912_s4 + $0x68] sm:$0xff] }
  0x18   : > { %v514_v31 = vmul.f32 %v4920_v18, %v387_v24  ;;  %v951_v33 = vld [vmem:[%s4912_s4] sm:$0xfc]  ;;  %v4969_v41 = vrot.slane %v4937_v26, %v4890_v10  ;;  %v708_v44 = vrot.slane %v520_v32, 1  ;;  %v4982_v47 = vrot.slane %v4937_v26, %v4898_v13  ;;  %v4441_v57 = vld [vmem:[%s4912_s4 + $0x90] sm:$0x3] }
  0x19   : > { %v1078_v36 = vmul.f32 %v4924_v19, %v951_v33  ;;  %v4963_v38 = vld [vmem:[%s4912_s4 + $0x60] sm:$0xff]  ;;  %7310 = vst [vmem:[#allocation3_spill] sm:$0xff] %v4973_v42  ;;  %v1272_v49 = vrot.slane %v1084_v37, 2  ;;  %v4999_v59 = vmul.f32 %v4941_v27, %v209_v54  ;;  %v5026_v12 = vmul.f32 %v5010_v2, %v4973_v42  ;;  %v4589_v25 = vld [vmem:[%s4912_s4 + $0xf0] sm:$0x1] }
  0x1a   : > { %v4337_v39 = vld [vmem:[%s4912_s4 + $0x60] sm:$0xfe]  ;;  %v707_v43 = vrot.slane %v514_v31, 1  ;;  %v1595_v45 = vmul.f32 %v4963_v38, %v4958_v35  ;;  %v1828_v51 = vmul.f32 %v4343_v40, %v4969_v41  ;;  %v4679_v34 = vld [vmem:[%s7126_s1 + $0x30] ss:$8 sm:$0xf] }
  0x1b   : > { %v4433_v46 = vld [vmem:[%s7126_s1 + $0x5] ss:$8 sm:$0xf]  ;;  %v1271_v48 = vrot.slane %v1078_v36, 2  ;;  %v1822_v50 = vmul.f32 %v4337_v39, %v4969_v41 }
  0x1c   : > { %v4434_v52 = vld [vmem:[%s7126_s1 + $0x5] ss:$8 sm:$0x30]  ;;  %v709_v55 = vsel %vm706_vm0, %v707_v43, %v708_v44  ;;  %v4531_v58 = vld [vmem:[%s7126_s1 + $0x6] ss:$8 sm:$0xf] }
  0x1d   : > { %v4435_v53 = vld [vmem:[%s4912_s4 + $0x60] sm:$0xfc]  ;;  %v4992_v56 = vor.u32 %v4434_v52, %v4433_v46  ;;  %v899_v61 = vadd.f32 %v709_v55, %v287_v30  ;;  %v1273_v62 = vsel %vm1270_vm1, %v1271_v48, %v1272_v49  ;;  %v2014_v63 = vrot.slane %v1822_v50, 1  ;;  %v4680_v36 = vld [vmem:[%s7126_s1 + $0x30] ss:$8 sm:$0x30] }
  0x1e   : > { %v2015_v0 = vrot.slane %v1828_v51, 1  ;;  %v4532_v1 = vld [vmem:[%s7126_s1 + $0x6] ss:$8 sm:$0x30]  ;;  %v5039_v30 = vrot.slane %v4880_v7, %v4904_v15  ;;  %v5064_v44 = vor.u32 %v4680_v36, %v4679_v34  ;;  %v394_v48 = vld [vmem:[%s4912_s4 + $0x38] sm:$0x1] }
  0x1f   : > { %v5014_v3 = vrot.slane %v4992_v56, %v4890_v10  ;;  %v5016_v6 = vor.u32 %v4532_v1, %v4531_v58  ;;  %v4581_v8 = vld [vmem:[%s7126_s1 + $0x7] ss:$8 sm:$0xf]  ;;  %v5030_v14 = vrot.slane %v4992_v56, %v4898_v13  ;;  %v1463_v21 = vadd.f32 %v1273_v62, %v899_v61  ;;  %v4687_v61 = vld [vmem:[%s4912_s4 + $0xf0] sm:$0x3] }
  0x20   : > { %v4582_v9 = vld [vmem:[%s7126_s1 + $0x7] ss:$8 sm:$0x30]  ;;  %v2016_v22 = vsel %vm706_vm0, %v2014_v63, %v2015_v0  ;;  %7312 = vst [vmem:[#allocation5_spill] sm:$0xff] %v5039_v30  ;;  %v5082_v62 = vrot.slane %v5064_v44, %v4890_v10  ;;  %v958_v63 = vld [vmem:[%s4912_s4 + $0x38] sm:$0x3]  ;;  %v521_v1 = vmul.f32 %v4945_v28, %v394_v48 }
  0x21   : > { %7311 = vst [vmem:[#allocation4_spill] sm:$0xff] %v5030_v14  ;;  %v5033_v23 = vor.u32 %v4582_v9, %v4581_v8  ;;  %v4583_v24 = vld [vmem:[%s4912_s4 + $0xc0] sm:$0xfe]  ;;  %v2385_v31 = vmul.f32 %v4435_v53, %v5014_v3  ;;  %v2391_v32 = vmul.f32 %v4441_v57, %v5014_v3  ;;  %v5045_v33 = vrot.slane %v5016_v6, %v4890_v10  ;;  %v388_v46 = vld [vmem:[%s4912_s4 + $0x8] sm:$0xfe] }
  0x22   : > { %v5055_v37 = vrot.slane %v5016_v6, %v4898_v13  ;;  %v1643_v39 = vadd.f32 %v1595_v45, %v1463_v21  ;;  %v5058_v40 = vld [vmem:[%s4912_s4 + $0xc0] sm:$0xff]  ;;  %v515_v53 = vmul.f32 %v4945_v28, %v388_v46  ;;  %v952_v54 = vld [vmem:[%s4912_s4 + $0x8] sm:$0xfc]  ;;  %v711_v34 = vrot.slane %v521_v1, 1 }
  0x23   : > { %v5062_v43 = vrot.slane %v5033_v23, %v4890_v10  ;;  %v5070_v49 = vrot.slane %v5033_v23, %v4898_v13  ;;  %v2577_v50 = vrot.slane %v2385_v31, 2  ;;  %v2578_v51 = vrot.slane %v2391_v32, 2  ;;  %v4681_v52 = vld [vmem:[%s4912_s4 + $0xc0] sm:$0xfc]  ;;  %v4338_v21 = vld [vmem:[%s4912_s4 + $0x68] sm:$0xfe] }
  0x24   : > { %7313 = vst [vmem:[#allocation6_spill] sm:$0xff] %v5055_v37  ;;  %v2901_v45 = vmul.f32 %v5058_v40, %v5045_v33  ;;  %v2206_v55 = vadd.f32 %v2016_v22, %v1643_v39  ;;  %v710_v8 = vrot.slane %v515_v53, 1  ;;  %v1079_v9 = vmul.f32 %v4949_v29, %v952_v54  ;;  %v4344_v32 = vld [vmem:[%s4912_s4 + $0x98] sm:$0x1]  ;;  %v4436_v46 = vld [vmem:[%s4912_s4 + $0x68] sm:$0xfc] }
  0x25   : > { %7314 = vst [vmem:[#allocation7_spill] sm:$0xff] %v5070_v49  ;;  %v3128_v57 = vmul.f32 %v4583_v24, %v5062_v43  ;;  %v3134_v58 = vmul.f32 %v4589_v25, %v5062_v43  ;;  %v2579_v0 = vsel %vm1270_vm1, %v2577_v50, %v2578_v51  ;;  %v3691_v25 = vmul.f32 %v4681_v52, %v5082_v62  ;;  %v4442_v54 = vld [vmem:[%s4912_s4 + $0x98] sm:$0x3]  ;;  %v4584_v1 = vld [vmem:[%s4912_s4 + $0xc8] sm:$0xfe] }
  0x26   : > { %v2769_v22 = vadd.f32 %v2579_v0, %v2206_v55  ;;  %v3697_v10 = vmul.f32 %v4687_v61, %v5082_v62  ;;  %v1085_v36 = vmul.f32 %v4949_v29, %v958_v63  ;;  %v1274_v39 = vrot.slane %v1079_v9, 2  ;;  %v4590_v9 = vld [vmem:[%s4912_s4 + $0xf8] sm:$0x1] }
  0x27   : > { %v3320_v24 = vrot.slane %v3128_v57, 1  ;;  %v3321_v31 = vrot.slane %v3134_v58, 1  ;;  %v3883_v51 = vrot.slane %v3691_v25, 2  ;;  %v1823_v53 = vmul.f32 %v4338_v21, %v4982_v47  ;;  %v389_v25 = vld [vmem:[%s4912_s4 + $0x10] sm:$0xfe] }
  0x28   : > { %v2949_v48 = vadd.f32 %v2901_v45, %v2769_v22  ;;  %v3884_v52 = vrot.slane %v3697_v10, 2  ;;  %v712_v55 = vsel %vm706_vm0, %v710_v8, %v711_v34  ;;  %v1275_v57 = vrot.slane %v1085_v36, 2 }
  0x29   : > { %v3322_v50 = vsel %vm706_vm0, %v3320_v24, %v3321_v31  ;;  %v1829_v58 = vmul.f32 %v4344_v32, %v4982_v47  ;;  %v900_v63 = vadd.f32 %v712_v55, %v4999_v59  ;;  %v2017_v0 = vrot.slane %v1823_v53, 1  ;;  %v5113_v24 = vld [vmem:[%s4912_s4 + $0xc8] sm:$0xff]  ;;  %v210_v31 = vld [vmem:[%s4912_s4 + $0x10] sm:$0xff] }
  0x2a   : > { %v3512_v61 = vadd.f32 %v3322_v50, %v2949_v48  ;;  %v2386_v45 = vmul.f32 %v4436_v46, %v5030_v14  ;;  %v3885_v8 = vsel %vm1270_vm1, %v3883_v51, %v3884_v52  ;;  %v1276_v21 = vsel %vm1270_vm1, %v1274_v39, %v1275_v57  ;;  %v395_v46 = vld [vmem:[%s4912_s4 + $0x40] sm:$0x1]  ;;  %v4682_v53 = vld [vmem:[%s4912_s4 + $0xc8] sm:$0xfc] }
  0x2b   : > { %v2018_v22 = vrot.slane %v1829_v58, 1  ;;  %v2392_v59 = vmul.f32 %v4442_v54, %v5030_v14  ;;  %v1464_v10 = vadd.f32 %v1276_v21, %v900_v63  ;;  %v2902_v36 = vmul.f32 %v5113_v24, %v5055_v37  ;;  %v4688_v54 = vld [vmem:[%s4912_s4 + $0xf8] sm:$0x3]  ;;  %v959_v21 = vld [vmem:[%s4912_s4 + $0x40] sm:$0x3] }
  0x2c   : > { %v4075_v32 = vadd.f32 %v3885_v8, %v3512_v61  ;;  %v2580_v34 = vrot.slane %v2386_v45, 2  ;;  %v3129_v39 = vmul.f32 %v4584_v1, %v5070_v49  ;;  %v3135_v51 = vmul.f32 %v4590_v9, %v5070_v49  ;;  %v953_v8 = vld [vmem:[%s4912_s4 + $0x10] sm:$0xfc] }
  0x2d   : > { %v2019_v48 = vsel %vm706_vm0, %v2017_v0, %v2018_v22  ;;  %v2581_v50 = vrot.slane %v2392_v59, 2  ;;  %v1644_v52 = vadd.f32 %v5026_v12, %v1464_v10  ;;  %v5129_v55 = vrot.slane %v5064_v44, %v4898_v13 }
  0x2e   : > { %4123 = vst [vmem:[%s5107_s3] sm:$0xff] %v4075_v32  ;;  %v289_v57 = vmul.f32 %v5003_v60, %v210_v31  ;;  %v516_v58 = vmul.f32 %v5039_v30, %v389_v25  ;;  %v3323_v63 = vrot.slane %v3129_v39, 1  ;;  %v3324_v0 = vrot.slane %v3135_v51, 1  ;;  %v4339_v32 = vld [vmem:[%s4912_s4 + $0x70] sm:$0xfe] }
  0x2f   : > { %7315 = vst [vmem:[#allocation8_spill] sm:$0xff] %v5129_v55  ;;  %v2582_v61 = vsel %vm1270_vm1, %v2580_v34, %v2581_v50  ;;  %v522_v45 = vmul.f32 %v5039_v30, %v395_v46  ;;  %v2207_v1 = vadd.f32 %v2019_v48, %v1644_v52  ;;  %v3692_v12 = vmul.f32 %v4682_v53, %v5129_v55  ;;  %v5150_v48 = vld [vmem:[%s4912_s4 + $0x70] sm:$0xff]  ;;  %v4345_v50 = vld [vmem:[%s4912_s4 + $0xa0] sm:$0x1] }
  0x30   : > { %v3698_v9 = vmul.f32 %v4688_v54, %v5129_v55  ;;  %v713_v13 = vrot.slane %v516_v58, 1  ;;  %v3325_v22 = vsel %vm706_vm0, %v3323_v63, %v3324_v0  ;;  %v5142_v31 = vrot.slane %v4892_v11, %v4904_v15 }
  0x31   : > { %v714_v59 = vrot.slane %v522_v45, 1  ;;  %v5146_v25 = vrot.slane %v4926_v20, %v4904_v15  ;;  %v2770_v10 = vadd.f32 %v2582_v61, %v2207_v1  ;;  %v3886_v34 = vrot.slane %v3692_v12, 2  ;;  %v4437_v45 = vld [vmem:[%s4912_s4 + $0x70] sm:$0xfc]  ;;  %v4443_v1 = vld [vmem:[%s4912_s4 + $0xa0] sm:$0x3] }
  0x32   : > { %7316 = vst [vmem:[#allocation9_spill] sm:$0xff] %v5142_v31  ;;  %v3887_v46 = vrot.slane %v3698_v9, 2  ;;  %v5155_v39 = vrot.slane %v4937_v26, %v4904_v15  ;;  %v1080_v53 = vmul.f32 %v5142_v31, %v953_v8  ;;  %v1086_v54 = vmul.f32 %v5142_v31, %v959_v21  ;;  %v4585_v21 = vld [vmem:[%s4912_s4 + $0xd0] sm:$0xfe] }
  0x33   : > { %7317 = vst [vmem:[#allocation10_spill] sm:$0xff] %v5146_v25  ;;  %v715_v51 = vsel %vm706_vm0, %v713_v13, %v714_v59  ;;  %v1597_v52 = vmul.f32 %v5150_v48, %v5146_v25  ;;  %v2950_v58 = vadd.f32 %v2902_v36, %v2770_v10  ;;  %v5169_v8 = vrot.slane %v4992_v56, %v4904_v15  ;;  %v4683_v25 = vld [vmem:[%s4912_s4 + $0xd0] sm:$0xfc] }
  0x34   : > { %7318 = vst [vmem:[#allocation11_spill] sm:$0xff] %v5155_v39  ;;  %v3888_v61 = vsel %vm1270_vm1, %v3886_v34, %v3887_v46  ;;  %v901_v63 = vadd.f32 %v715_v51, %v289_v57  ;;  %v1824_v0 = vmul.f32 %v4339_v32, %v5155_v39  ;;  %v1277_v12 = vrot.slane %v1080_v53, 2  ;;  %v4591_v32 = vld [vmem:[%s4912_s4 + $0x100] sm:$0x1]  ;;  %v5185_v51 = vld [vmem:[%s4912_s4 + $0xd0] sm:$0xff] }
  0x35   : > { %v1278_v9 = vrot.slane %v1086_v54, 2  ;;  %v1830_v13 = vmul.f32 %v4345_v50, %v5155_v39  ;;  %7319 = vst [vmem:[#allocation12_spill] sm:$0xff] %v5169_v8  ;;  %v3513_v36 = vadd.f32 %v3325_v22, %v2950_v58  ;;  %v5174_v57 = vrot.slane %v5016_v6, %v4904_v15  ;;  %7322 = vst [vmem:[#allocation15_spill] sm:$0xff] %v5185_v51  ;;  %v390_v39 = vld [vmem:[%s4912_s4 + $0x18] sm:$0xfe] }
  0x36   : > { %v2020_v59 = vrot.slane %v1824_v0, 1  ;;  %v5179_v10 = vrot.slane %v5033_v23, %v4904_v15  ;;  %v2387_v50 = vmul.f32 %v4437_v45, %v5169_v8  ;;  %v2393_v22 = vmul.f32 %v4443_v1, %v5169_v8  ;;  %v4689_v8 = vld [vmem:[%s4912_s4 + $0x100] sm:$0x3] }
  0x37   : > { %7320 = vst [vmem:[#allocation13_spill] sm:$0xff] %v5174_v57  ;;  %v1279_v34 = vsel %vm1270_vm1, %v1277_v12, %v1278_v9  ;;  %v2021_v46 = vrot.slane %v1830_v13, 1  ;;  %v4076_v53 = vadd.f32 %v3888_v61, %v3513_v36  ;;  %v2903_v58 = vmul.f32 %v5185_v51, %v5174_v57  ;;  %v211_v12 = vld [vmem:[%s4912_s4 + $0x18] sm:$0xff] }
  0x38   : > { %7321 = vst [vmem:[#allocation14_spill] sm:$0xff] %v5179_v10  ;;  %v1465_v54 = vadd.f32 %v1279_v34, %v901_v63  ;;  %v3130_v0 = vmul.f32 %v4585_v21, %v5179_v10  ;;  %v2583_v13 = vrot.slane %v2387_v50, 2  ;;  %v2584_v45 = vrot.slane %v2393_v22, 2  ;;  %v396_v34 = vld [vmem:[%s4912_s4 + $0x48] sm:$0x1] }
  0x39   : > { %v2022_v9 = vsel %vm706_vm0, %v2020_v59, %v2021_v46  ;;  %v3136_v1 = vmul.f32 %v4591_v32, %v5179_v10  ;;  %4124 = vst [vmem:[%s5107_s3 + $0x8] sm:$0xff] %v4076_v53  ;;  %v5199_v36 = vrot.slane %v5064_v44, %v4904_v15  ;;  %v5203_v21 = vrot.slane %v4873_v4, %v4907_v16  ;;  %v954_v59 = vld [vmem:[%s4912_s4 + $0x18] sm:$0xfc] }
  0x3a   : > { %v1645_v61 = vadd.f32 %v1597_v52, %v1465_v54  ;;  %v3326_v63 = vrot.slane %v3130_v0, 1  ;;  %v2585_v46 = vsel %vm1270_vm1, %v2583_v13, %v2584_v45  ;;  %v5210_v32 = vrot.slane %v4880_v7, %v4907_v16  ;;  %v960_v52 = vld [vmem:[%s4912_s4 + $0x48] sm:$0x3]  ;;  %v4340_v51 = vld [vmem:[%s4912_s4 + $0x78] sm:$0xfe] }
  0x3b   : > { %7323 = vst [vmem:[#allocation16_spill] sm:$0xff] %v5199_v36  ;;  %7324 = vst [vmem:[#allocation17_spill] sm:$0xff] %v5203_v21  ;;  %v3327_v50 = vrot.slane %v3136_v1, 1  ;;  %v5215_v22 = vrot.slane %v4892_v11, %v4907_v16  ;;  %v3693_v53 = vmul.f32 %v4683_v25, %v5199_v36  ;;  %v3699_v54 = vmul.f32 %v4689_v8, %v5199_v36 }
  0x3c   : > { %7325 = vst [vmem:[#allocation18_spill] sm:$0xff] %v5210_v32  ;;  %v2208_v15 = vadd.f32 %v2022_v9, %v1645_v61  ;;  %v290_v0 = vmul.f32 %v5203_v21, %v211_v12  ;;  %v517_v45 = vmul.f32 %v5210_v32, %v390_v39  ;;  %v523_v1 = vmul.f32 %v5210_v32, %v396_v34  ;;  %v4346_v39 = vld [vmem:[%s4912_s4 + $0xa8] sm:$0x1]  ;;  %v4586_v21 = vld [vmem:[%s4912_s4 + $0xd8] sm:$0xfe] }
  0x3d   : > { %7326 = vst [vmem:[#allocation19_spill] sm:$0xff] %v5215_v22  ;;  %v3328_v13 = vsel %vm706_vm0, %v3326_v63, %v3327_v50  ;;  %v1081_v57 = vmul.f32 %v5215_v22, %v954_v59  ;;  %v3889_v9 = vrot.slane %v3693_v53, 2  ;;  %v3890_v61 = vrot.slane %v3699_v54, 2 }
  0x3e   : > { %v2771_v10 = vadd.f32 %v2585_v46, %v2208_v15  ;;  %v1087_v25 = vmul.f32 %v5215_v22, %v960_v52  ;;  %v716_v8 = vrot.slane %v517_v45, 1  ;;  %v717_v36 = vrot.slane %v523_v1, 1  ;;  %v5233_v46 = vld [vmem:[%s4912_s4 + $0x78] sm:$0xff] }
  0x3f   : > { %v1280_v12 = vrot.slane %v1081_v57, 2  ;;  %v5228_v63 = vrot.slane %v4926_v20, %v4907_v16  ;;  %v3891_v59 = vsel %vm1270_vm1, %v3889_v9, %v3890_v61  ;;  %7328 = vst [vmem:[#allocation21_spill] sm:$0xff] %v5233_v46  ;;  %v5237_v15 = vrot.slane %v4937_v26, %v4907_v16  ;;  %v4438_v52 = vld [vmem:[%s4912_s4 + $0x78] sm:$0xfc]  ;;  %v4444_v57 = vld [vmem:[%s4912_s4 + $0xa8] sm:$0x3] }
  0x40   : > { %v2951_v34 = vadd.f32 %v2903_v58, %v2771_v10  ;;  %v1281_v50 = vrot.slane %v1087_v25, 2  ;;  %v718_v53 = vsel %vm706_vm0, %v716_v8, %v717_v36  ;;  %v5246_v10 = vrot.slane %v4992_v56, %v4907_v16  ;;  %v5255_v36 = vld [vmem:[%s4912_s4 + $0xd8] sm:$0xff] }
  0x41   : > { %7327 = vst [vmem:[#allocation20_spill] sm:$0xff] %v5228_v63  ;;  %7329 = vst [vmem:[#allocation22_spill] sm:$0xff] %v5237_v15  ;;  %v1598_v54 = vmul.f32 %v5233_v46, %v5228_v63  ;;  %v5250_v58 = vrot.slane %v5016_v6, %v4907_v16  ;;  %v902_v1 = vadd.f32 %v718_v53, %v290_v0 }
  0x42   : > { %7330 = vst [vmem:[#allocation23_spill] sm:$0xff] %v5246_v10  ;;  %v3514_v45 = vadd.f32 %v3328_v13, %v2951_v34  ;;  %v1282_v9 = vsel %vm1270_vm1, %v1280_v12, %v1281_v50  ;;  %v1825_v61 = vmul.f32 %v4340_v51, %v5237_v15  ;;  %7332 = vst [vmem:[#allocation25_spill] sm:$0xff] %v5255_v36  ;;  %v4592_v13 = vld [vmem:[%s4912_s4 + $0x108] sm:$0x1]  ;;  %v4684_v12 = vld [vmem:[%s4912_s4 + $0xd8] sm:$0xfc] }
  0x43   : > { %7331 = vst [vmem:[#allocation24_spill] sm:$0xff] %v5250_v58  ;;  %v1831_v25 = vmul.f32 %v4346_v39, %v5237_v15  ;;  %v2388_v8 = vmul.f32 %v4438_v52, %v5246_v10  ;;  %v2394_v63 = vmul.f32 %v4444_v57, %v5246_v10  ;;  %v2904_v46 = vmul.f32 %v5255_v36, %v5250_v58  ;;  %v4690_v39 = vld [vmem:[%s4912_s4 + $0x108] sm:$0x3]  ;;  %v5312_v10 = vld [vmem:[%s4912_s4 + $0x80] sm:$0xff] }
  0x44   : > { %v4077_v34 = vadd.f32 %v3891_v59, %v3514_v45  ;;  %v1466_v0 = vadd.f32 %v1282_v9, %v902_v1  ;;  %v2023_v53 = vrot.slane %v1825_v61, 1  ;;  %v5266_v51 = vrot.slane %v5033_v23, %v4907_v16  ;;  %7339 = vst [vmem:[#allocation32_spill] sm:$0xff] %v5312_v10 }
  0x45   : > { %v2024_v50 = vrot.slane %v1831_v25, 1  ;;  %v2586_v52 = vrot.slane %v2388_v8, 2  ;;  %v2587_v15 = vrot.slane %v2394_v63, 2  ;;  %v5272_v57 = vrot.slane %v5064_v44, %v4907_v16  ;;  %v212_v8 = vld [vmem:[%s4912_s4 + $0x20] sm:$0xff] }
  0x46   : > { %7333 = vst [vmem:[#allocation26_spill] sm:$0xff] %v5266_v51  ;;  %4125 = vst [vmem:[%s5107_s3 + $0x10] sm:$0xff] %v4077_v34  ;;  %v1646_v59 = vadd.f32 %v1598_v54, %v1466_v0  ;;  %v3131_v45 = vmul.f32 %v4586_v21, %v5266_v51  ;;  %v3137_v1 = vmul.f32 %v4592_v13, %v5266_v51  ;;  %v5278_v9 = vsub.s32 4, %v4875_v5  ;;  %v391_v34 = vld [vmem:[%s4912_s4 + $0x20] sm:$0xfe] }
  0x47   : > { %7334 = vst [vmem:[#allocation27_spill] sm:$0xff] %v5272_v57  ;;  %v2025_v61 = vsel %vm706_vm0, %v2023_v53, %v2024_v50  ;;  %v2588_v63 = vsel %vm1270_vm1, %v2586_v52, %v2587_v15  ;;  %v3694_v25 = vmul.f32 %v4684_v12, %v5272_v57  ;;  %v3700_v16 = vmul.f32 %v4690_v39, %v5272_v57  ;;  %v397_v13 = vld [vmem:[%s4912_s4 + $0x50] sm:$0x1]  ;;  %v955_v51 = vld [vmem:[%s4912_s4 + $0x20] sm:$0xfc] }
  0x48   : > { %v2209_v58 = vadd.f32 %v2025_v61, %v1646_v59  ;;  %v3329_v54 = vrot.slane %v3131_v45, 1  ;;  %v3330_v0 = vrot.slane %v3137_v1, 1  ;;  %v5288_v21 = vrot.slane %v4873_v4, %v5278_v9  ;;  %v961_v39 = vld [vmem:[%s4912_s4 + $0x50] sm:$0x3] }
  0x49   : > { %v3892_v53 = vrot.slane %v3694_v25, 2  ;;  %v3893_v15 = vrot.slane %v3700_v16, 2  ;;  %v5294_v12 = vrot.slane %v4880_v7, %v5278_v9  ;;  %v5299_v50 = vrot.slane %v4892_v11, %v5278_v9 }
  0x4a   : > { %7335 = vst [vmem:[#allocation28_spill] sm:$0xff] %v5288_v21  ;;  %v2772_v52 = vadd.f32 %v2588_v63, %v2209_v58  ;;  %v3331_v59 = vsel %vm706_vm0, %v3329_v54, %v3330_v0  ;;  %v291_v45 = vmul.f32 %v5288_v21, %v212_v8  ;;  %v5305_v1 = vrot.slane %v4926_v20, %v5278_v9  ;;  %v4341_v58 = vld [vmem:[%s4912_s4 + $0x80] sm:$0xfe]  ;;  %v4347_v63 = vld [vmem:[%s4912_s4 + $0xb0] sm:$0x1] }
  0x4b   : > { %7336 = vst [vmem:[#allocation29_spill] sm:$0xff] %v5294_v12  ;;  %7337 = vst [vmem:[#allocation30_spill] sm:$0xff] %v5299_v50  ;;  %v3894_v61 = vsel %vm1270_vm1, %v3892_v53, %v3893_v15  ;;  %v518_v25 = vmul.f32 %v5294_v12, %v391_v34  ;;  %v524_v16 = vmul.f32 %v5294_v12, %v397_v13  ;;  %v4439_v34 = vld [vmem:[%s4912_s4 + $0x80] sm:$0xfc]  ;;  %v4445_v53 = vld [vmem:[%s4912_s4 + $0xb0] sm:$0x3] }
  0x4c   : > { %7338 = vst [vmem:[#allocation31_spill] sm:$0xff] %v5305_v1  ;;  %v1082_v57 = vmul.f32 %v5299_v50, %v955_v51  ;;  %v2952_v36 = vadd.f32 %v2904_v46, %v2772_v52  ;;  %v1088_v54 = vmul.f32 %v5299_v50, %v961_v39  ;;  %v1599_v8 = vmul.f32 %v5312_v10, %v5305_v1  ;;  %v4587_v21 = vld [vmem:[%s4912_s4 + $0xe0] sm:$0xfe] }
  0x4d   : > { %v5321_v0 = vrot.slane %v4937_v26, %v5278_v9  ;;  %v719_v13 = vrot.slane %v518_v25, 1  ;;  %v720_v15 = vrot.slane %v524_v16, 1  ;;  %v5327_v46 = vrot.slane %v4992_v56, %v5278_v9 }
  0x4e   : > { %v1283_v51 = vrot.slane %v1082_v57, 2  ;;  %v3515_v39 = vadd.f32 %v3331_v59, %v2952_v36  ;;  %v1284_v52 = vrot.slane %v1088_v54, 2  ;;  %v5336_v16 = vrot.slane %v5016_v6, %v5278_v9 }
  0x4f   : > { %7340 = vst [vmem:[#allocation33_spill] sm:$0xff] %v5321_v0  ;;  %7341 = vst [vmem:[#allocation34_spill] sm:$0xff] %v5327_v46  ;;  %v1826_v1 = vmul.f32 %v4341_v58, %v5321_v0  ;;  %v1832_v50 = vmul.f32 %v4347_v63, %v5321_v0  ;;  %v721_v10 = vsel %vm706_vm0, %v719_v13, %v720_v15  ;;  %v5341_v63 = vld [vmem:[%s4912_s4 + $0xe0] sm:$0xff]  ;;  %v4593_v13 = vld [vmem:[%s4912_s4 + $0x110] sm:$0x1] }
  0x50   : > { %v2389_v25 = vmul.f32 %v4439_v34, %v5327_v46  ;;  %v2395_v57 = vmul.f32 %v4445_v53, %v5327_v46  ;;  %7342 = vst [vmem:[#allocation35_spill] sm:$0xff] %v5336_v16  ;;  %v4078_v36 = vadd.f32 %v3894_v61, %v3515_v39  ;;  %v903_v59 = vadd.f32 %v721_v10, %v291_v45  ;;  %v399_v15 = vld [vmem:[%s4912_s4 + $0x60] sm:$0xfe]  ;;  %v4691_v45 = vld [vmem:[%s4912_s4 + $0x110] sm:$0x3] }
  0x51   : > { %v1285_v58 = vsel %vm1270_vm1, %v1283_v51, %v1284_v52  ;;  %v2026_v54 = vrot.slane %v1826_v1, 1  ;;  %v2027_v0 = vrot.slane %v1832_v50, 1  ;;  %v2905_v53 = vmul.f32 %v5341_v63, %v5336_v16  ;;  %v4685_v46 = vld [vmem:[%s4912_s4 + $0xe0] sm:$0xfc]  ;;  %v398_v16 = vld [vmem:[%s4912_s4 + $0x58] sm:$0x1] }
  0x52   : > { %v2589_v34 = vrot.slane %v2389_v25, 2  ;;  %v2590_v12 = vrot.slane %v2395_v57, 2  ;;  %4126 = vst [vmem:[%s5107_s3 + $0x18] sm:$0xff] %v4078_v36  ;;  %v1467_v61 = vadd.f32 %v1285_v58, %v903_v59  ;;  %v5351_v10 = vrot.slane %v5033_v23, %v5278_v9  ;;  %v213_v59 = vld [vmem:[%s4912_s4 + $0x28] sm:$0xff] }
  0x53   : > { %v5356_v1 = vrot.slane %v5064_v44, %v5278_v9  ;;  %v5359_v50 = vsub.s32 5, %v4875_v5  ;;  %v2028_v51 = vsel %vm706_vm0, %v2026_v54, %v2027_v0  ;;  %v5365_v52 = vmul.f32 %v4963_v38, %v4916_v17  ;;  %v392_v58 = vld [vmem:[%s4912_s4 + $0x28] sm:$0xfe] }
  0x54   : > { %7343 = vst [vmem:[#allocation36_spill] sm:$0xff] %v5351_v10  ;;  %v2591_v39 = vsel %vm1270_vm1, %v2589_v34, %v2590_v12  ;;  %v5368_v25 = vmul.f32 %v4920_v18, %v399_v15  ;;  %v1647_v57 = vadd.f32 %v1599_v8, %v1467_v61  ;;  %v3132_v9 = vmul.f32 %v4587_v21, %v5351_v10  ;;  %v956_v8 = vld [vmem:[%s4912_s4 + $0x28] sm:$0xfc]  ;;  %v962_v21 = vld [vmem:[%s4912_s4 + $0x58] sm:$0x3] }
  0x55   : > { %7344 = vst [vmem:[#allocation37_spill] sm:$0xff] %v5356_v1  ;;  %v3138_v36 = vmul.f32 %v4593_v13, %v5351_v10  ;;  %v3695_v5 = vmul.f32 %v4685_v46, %v5356_v1  ;;  %v3701_v0 = vmul.f32 %v4691_v45, %v5356_v1  ;;  %v5379_v12 = vrot.slane %v4873_v4, %v5359_v50 }
  0x56   : > { %v5383_v38 = vrot.slane %v4880_v7, %v5359_v50  ;;  %v5389_v54 = vrot.slane %v4892_v11, %v5359_v50  ;;  %v2210_v46 = vadd.f32 %v2028_v51, %v1647_v57  ;;  %v3332_v13 = vrot.slane %v3132_v9, 1  ;;  %v5398_v57 = vld [vmem:[%s4912_s4 + $0x88] sm:$0xff] }
  0x57   : > { %v3333_v15 = vrot.slane %v3138_v36, 1  ;;  %v3895_v34 = vrot.slane %v3695_v5, 2  ;;  %v3896_v61 = vrot.slane %v3701_v0, 2  ;;  %v292_v4 = vmul.f32 %v5379_v12, %v213_v59 }
  0x58   : > { %7345 = vst [vmem:[#allocation38_spill] sm:$0xff] %v5389_v54  ;;  %v519_v45 = vmul.f32 %v5383_v38, %v392_v58  ;;  %v525_v7 = vmul.f32 %v5383_v38, %v398_v16  ;;  %v2773_v17 = vadd.f32 %v2591_v39, %v2210_v46  ;;  %v1083_v11 = vmul.f32 %v5389_v54, %v956_v8  ;;  %v4342_v16 = vld [vmem:[%s4912_s4 + $0x88] sm:$0xfe]  ;;  %v4348_v39 = vld [vmem:[%s4912_s4 + $0xb8] sm:$0x1] }
  0x59   : > { %v3334_v1 = vsel %vm706_vm0, %v3332_v13, %v3333_v15  ;;  %v1089_v51 = vmul.f32 %v5389_v54, %v962_v21  ;;  %v3897_v9 = vsel %vm1270_vm1, %v3895_v34, %v3896_v61  ;;  %v5403_v59 = vrot.slane %v4926_v20, %v5359_v50  ;;  %v4440_v21 = vld [vmem:[%s4912_s4 + $0x88] sm:$0xfc]  ;;  %v4446_v13 = vld [vmem:[%s4912_s4 + $0xb8] sm:$0x3] }
  0x5a   : > { %v722_v36 = vrot.slane %v519_v45, 1  ;;  %v723_v5 = vrot.slane %v525_v7, 1  ;;  %v2953_v58 = vadd.f32 %v2905_v53, %v2773_v17  ;;  %v1286_v0 = vrot.slane %v1083_v11, 2  ;;  %v5427_v7 = vld [vmem:[%s4912_s4 + $0xe8] sm:$0xff] }
  0x5b   : > { %7346 = vst [vmem:[#allocation39_spill] sm:$0xff] %v5403_v59  ;;  %v1287_v46 = vrot.slane %v1089_v51, 2  ;;  %v5409_v8 = vrot.slane %v4937_v26, %v5359_v50  ;;  %v1600_v20 = vmul.f32 %v5398_v57, %v5403_v59  ;;  %v5418_v34 = vrot.slane %v4992_v56, %v5359_v50  ;;  %7350 = vst [vmem:[#allocation43_spill] sm:$0xff] %v5427_v7 }
  0x5c   : > { %v724_v15 = vsel %vm706_vm0, %v722_v36, %v723_v5  ;;  %v5422_v17 = vrot.slane %v5016_v6, %v5359_v50  ;;  %v3516_v26 = vadd.f32 %v3334_v1, %v2953_v58  ;;  %v4588_v1 = vld [vmem:[%s4912_s4 + $0xe8] sm:$0xfe]  ;;  %v4594_v36 = vld [vmem:[%s4912_s4 + $0x118] sm:$0x1] }
  0x5d   : > { %7347 = vst [vmem:[#allocation40_spill] sm:$0xff] %v5409_v8  ;;  %7348 = vst [vmem:[#allocation41_spill] sm:$0xff] %v5418_v34  ;;  %v904_v53 = vadd.f32 %v724_v15, %v292_v4  ;;  %v1288_v61 = vsel %vm1270_vm1, %v1286_v0, %v1287_v46  ;;  %v1827_v45 = vmul.f32 %v4342_v16, %v5409_v8  ;;  %v405_v4 = vld [vmem:[%s4912_s4 + $0x90] sm:$0x1]  ;;  %v4692_v46 = vld [vmem:[%s4912_s4 + $0x118] sm:$0x3] }
  0x5e   : > { %7349 = vst [vmem:[#allocation42_spill] sm:$0xff] %v5422_v17  ;;  %v1833_v11 = vmul.f32 %v4348_v39, %v5409_v8  ;;  %v2390_v51 = vmul.f32 %v4440_v21, %v5418_v34  ;;  %v2396_v56 = vmul.f32 %v4446_v13, %v5418_v34  ;;  %v2906_v6 = vmul.f32 %v5427_v7, %v5422_v17  ;;  %v4686_v39 = vld [vmem:[%s4912_s4 + $0xe8] sm:$0xfc] }
  0x5f   : > { %v4079_v5 = vadd.f32 %v3897_v9, %v3516_v26  ;;  %v1468_v58 = vadd.f32 %v1288_v61, %v904_v53  ;;  %v2029_v0 = vrot.slane %v1827_v45, 1  ;;  %v5439_v16 = vrot.slane %v5033_v23, %v5359_v50  ;;  %v963_v53 = vld [vmem:[%s4912_s4 + $0x60] sm:$0xfc] }
  0x60   : > { %v2030_v21 = vrot.slane %v1833_v11, 1  ;;  %v2592_v15 = vrot.slane %v2390_v51, 2  ;;  %v2593_v13 = vrot.slane %v2396_v56, 2  ;;  %v5445_v17 = vrot.slane %v5064_v44, %v5359_v50  ;;  %v969_v50 = vld [vmem:[%s4912_s4 + $0x90] sm:$0x3] }
  0x61   : > { %7351 = vst [vmem:[#allocation44_spill] sm:$0xff] %v5439_v16  ;;  %4127 = vst [vmem:[%s5107_s3 + $0x20] sm:$0xff] %v4079_v5  ;;  %v1648_v7 = vadd.f32 %v1600_v20, %v1468_v58  ;;  %v3133_v9 = vmul.f32 %v4588_v1, %v5439_v16  ;;  %v3139_v26 = vmul.f32 %v4594_v36, %v5439_v16  ;;  %v725_v1 = vrot.slane %v5368_v25, 1  ;;  %v4349_v36 = vld [vmem:[%s4912_s4 + $0xc0] sm:$0xfe] }
  0x62   : > { %7352 = vst [vmem:[#allocation45_spill] sm:$0xff] %v5445_v17  ;;  %v532_v23 = vmul.f32 %v4920_v18, %v405_v4  ;;  %v2031_v61 = vsel %vm706_vm0, %v2029_v0, %v2030_v21  ;;  %v2594_v45 = vsel %vm1270_vm1, %v2592_v15, %v2593_v13  ;;  %v3696_v11 = vmul.f32 %v4686_v39, %v5445_v17  ;;  %v4355_v21 = vld [vmem:[%s4912_s4 + $0xf0] sm:$0x1]  ;;  %v4447_v13 = vld [vmem:[%s4912_s4 + $0xc0] sm:$0xfc] }
  0x63   : > { %v3702_v44 = vmul.f32 %v4692_v46, %v5445_v17  ;;  %v2211_v20 = vadd.f32 %v2031_v61, %v1648_v7  ;;  %v3335_v51 = vrot.slane %v3133_v9, 1  ;;  %v3336_v56 = vrot.slane %v3139_v26, 1  ;;  %v4453_v7 = vld [vmem:[%s4912_s4 + $0xf0] sm:$0x3] }
  0x64   : > { %v3898_v4 = vrot.slane %v3696_v11, 2  ;;  %v726_v58 = vrot.slane %v532_v23, 1  ;;  %v1090_v0 = vmul.f32 %v4924_v19, %v963_v53  ;;  %v1096_v46 = vmul.f32 %v4924_v19, %v969_v50  ;;  %v4595_v53 = vld [vmem:[%s4912_s4 + $0x120] sm:$0xfe]  ;;  %v4601_v50 = vld [vmem:[%s4912_s4 + $0x150] sm:$0x1] }
  0x65   : > { %v3899_v5 = vrot.slane %v3702_v44, 2  ;;  %v2774_v39 = vadd.f32 %v2594_v45, %v2211_v20  ;;  %v3337_v15 = vsel %vm706_vm0, %v3335_v51, %v3336_v56  ;;  %v1601_v26 = vmul.f32 %v5058_v40, %v4958_v35 }
  0x66   : > { %v727_v9 = vsel %vm706_vm0, %v725_v1, %v726_v58  ;;  %v1289_v25 = vrot.slane %v1090_v0, 2  ;;  %v1834_v23 = vmul.f32 %v4349_v36, %v4969_v41  ;;  %v1290_v11 = vrot.slane %v1096_v46, 2  ;;  %v4693_v1 = vld [vmem:[%s4912_s4 + $0x120] sm:$0xfc]  ;;  %v4699_v0 = vld [vmem:[%s4912_s4 + $0x150] sm:$0x3] }
  0x67   : > { %v2954_v61 = vadd.f32 %v2906_v6, %v2774_v39  ;;  %v905_v45 = vadd.f32 %v727_v9, %v5365_v52  ;;  %v1840_v44 = vmul.f32 %v4355_v21, %v4969_v41  ;;  %v3900_v20 = vsel %vm1270_vm1, %v3898_v4, %v3899_v5  ;;  %v400_v46 = vld [vmem:[%s4912_s4 + $0x68] sm:$0xfe] }
  0x68   : > { %v2032_v51 = vrot.slane %v1834_v23, 1  ;;  %v2397_v56 = vmul.f32 %v4447_v13, %v5014_v3  ;;  %v2403_v40 = vmul.f32 %v4453_v7, %v5014_v3  ;;  %v1291_v6 = vsel %vm1270_vm1, %v1289_v25, %v1290_v11  ;;  %v406_v13 = vld [vmem:[%s4912_s4 + $0x98] sm:$0x1]  ;;  %v5485_v7 = vld [vmem:[%s4912_s4 + $0x120] sm:$0xff] }
  0x69   : > { %v3517_v36 = vadd.f32 %v3337_v15, %v2954_v61  ;;  %v2033_v52 = vrot.slane %v1840_v44, 1  ;;  %v3140_v58 = vmul.f32 %v4595_v53, %v5062_v43  ;;  %v1469_v21 = vadd.f32 %v1291_v6, %v905_v45  ;;  %v964_v53 = vld [vmem:[%s4912_s4 + $0x68] sm:$0xfc] }
  0x6a   : > { %v2595_v39 = vrot.slane %v2397_v56, 2  ;;  %v2596_v4 = vrot.slane %v2403_v40, 2  ;;  %v3146_v5 = vmul.f32 %v4601_v50, %v5062_v43  ;;  %v3703_v23 = vmul.f32 %v4693_v1, %v5082_v62  ;;  %v970_v50 = vld [vmem:[%s4912_s4 + $0x98] sm:$0x3]  ;;  %v4350_v1 = vld [vmem:[%s4912_s4 + $0xc8] sm:$0xfe] }
  0x6b   : > { %v4080_v9 = vadd.f32 %v3900_v20, %v3517_v36  ;;  %v2034_v15 = vsel %vm706_vm0, %v2032_v51, %v2033_v52  ;;  %v3338_v25 = vrot.slane %v3140_v58, 1  ;;  %v1649_v61 = vadd.f32 %v1601_v26, %v1469_v21  ;;  %v4356_v58 = vld [vmem:[%s4912_s4 + $0xf8] sm:$0x1] }
  0x6c   : > { %v2907_v45 = vmul.f32 %v5485_v7, %v5045_v33  ;;  %v3339_v11 = vrot.slane %v3146_v5, 1  ;;  %v3709_v44 = vmul.f32 %v4699_v0, %v5082_v62  ;;  %v2597_v20 = vsel %vm1270_vm1, %v2595_v39, %v2596_v4  ;;  %v4448_v0 = vld [vmem:[%s4912_s4 + $0xc8] sm:$0xfc] }
  0x6d   : > { %4128 = vst [vmem:[%s5107_s3 + $0x28] sm:$0xff] %v4080_v9  ;;  %v3901_v51 = vrot.slane %v3703_v23, 2  ;;  %v527_v56 = vmul.f32 %v4945_v28, %v400_v46  ;;  %v533_v40 = vmul.f32 %v4945_v28, %v406_v13  ;;  %v2212_v36 = vadd.f32 %v2034_v15, %v1649_v61  ;;  %v4454_v46 = vld [vmem:[%s4912_s4 + $0xf8] sm:$0x3] }
  0x6e   : > { %v3340_v26 = vsel %vm706_vm0, %v3338_v25, %v3339_v11  ;;  %v294_v6 = vmul.f32 %v5010_v2, %v4941_v27  ;;  %v1091_v52 = vmul.f32 %v4949_v29, %v964_v53  ;;  %v3902_v21 = vrot.slane %v3709_v44, 2  ;;  %v4596_v11 = vld [vmem:[%s4912_s4 + $0x128] sm:$0xfe]  ;;  %v4602_v44 = vld [vmem:[%s4912_s4 + $0x158] sm:$0x1] }
  0x6f   : > { %v728_v39 = vrot.slane %v527_v56, 1  ;;  %v729_v4 = vrot.slane %v533_v40, 1  ;;  %v1097_v5 = vmul.f32 %v4949_v29, %v970_v50  ;;  %v2775_v13 = vadd.f32 %v2597_v20, %v2212_v36  ;;  %v4694_v36 = vld [vmem:[%s4912_s4 + $0x128] sm:$0xfc] }
  0x70   : > { %v1292_v9 = vrot.slane %v1091_v52, 2  ;;  %v1602_v15 = vmul.f32 %v5113_v24, %v4973_v42  ;;  %v1835_v2 = vmul.f32 %v4350_v1, %v4982_v47  ;;  %v1841_v53 = vmul.f32 %v4356_v58, %v4982_v47  ;;  %v4700_v24 = vld [vmem:[%s4912_s4 + $0x158] sm:$0x3] }
  0x71   : > { %v730_v25 = vsel %vm706_vm0, %v728_v39, %v729_v4  ;;  %v1293_v23 = vrot.slane %v1097_v5, 2  ;;  %v2398_v61 = vmul.f32 %v4448_v0, %v5030_v14  ;;  %v2955_v50 = vadd.f32 %v2907_v45, %v2775_v13  ;;  %v5520_v45 = vld [vmem:[%s4912_s4 + $0x128] sm:$0xff] }
  0x72   : > { %v906_v56 = vadd.f32 %v730_v25, %v294_v6  ;;  %v2035_v40 = vrot.slane %v1835_v2, 1  ;;  %v2404_v20 = vmul.f32 %v4454_v46, %v5030_v14  ;;  %v3903_v1 = vsel %vm1270_vm1, %v3901_v51, %v3902_v21  ;;  %v401_v21 = vld [vmem:[%s4912_s4 + $0x70] sm:$0xfe] }
  0x73   : > { %v1294_v52 = vsel %vm1270_vm1, %v1292_v9, %v1293_v23  ;;  %v2036_v58 = vrot.slane %v1841_v53, 1  ;;  %v2598_v39 = vrot.slane %v2398_v61, 2  ;;  %v3518_v0 = vadd.f32 %v3340_v26, %v2955_v50  ;;  %v407_v9 = vld [vmem:[%s4912_s4 + $0xa0] sm:$0x1]  ;;  %v965_v26 = vld [vmem:[%s4912_s4 + $0x70] sm:$0xfc] }
  0x74   : > { %v1470_v4 = vadd.f32 %v1294_v52, %v906_v56  ;;  %v2599_v5 = vrot.slane %v2404_v20, 2  ;;  %v3141_v6 = vmul.f32 %v4596_v11, %v5070_v49  ;;  %v3147_v13 = vmul.f32 %v4602_v44, %v5070_v49  ;;  %v971_v11 = vld [vmem:[%s4912_s4 + $0xa0] sm:$0x3] }
  0x75   : > { %v2037_v46 = vsel %vm706_vm0, %v2035_v40, %v2036_v58  ;;  %v3704_v2 = vmul.f32 %v4694_v36, %v5129_v55  ;;  %v3710_v51 = vmul.f32 %v4700_v24, %v5129_v55  ;;  %v4081_v25 = vadd.f32 %v3903_v1, %v3518_v0  ;;  %v4357_v52 = vld [vmem:[%s4912_s4 + $0x100] sm:$0x1]  ;;  %v4449_v58 = vld [vmem:[%s4912_s4 + $0xd0] sm:$0xfc] }
  0x76   : > { %v1650_v23 = vadd.f32 %v1602_v15, %v1470_v4  ;;  %v2908_v53 = vmul.f32 %v5520_v45, %v5055_v37  ;;  %v3341_v61 = vrot.slane %v3141_v6, 1  ;;  %v2600_v50 = vsel %vm1270_vm1, %v2598_v39, %v2599_v5  ;;  %v4351_v15 = vld [vmem:[%s4912_s4 + $0xd0] sm:$0xfe]  ;;  %v4455_v6 = vld [vmem:[%s4912_s4 + $0x100] sm:$0x3] }
  0x77   : > { %v3342_v44 = vrot.slane %v3147_v13, 1  ;;  %v3904_v56 = vrot.slane %v3704_v2, 2  ;;  %v3905_v40 = vrot.slane %v3710_v51, 2  ;;  %4129 = vst [vmem:[%s5107_s3 + $0x30] sm:$0xff] %v4081_v25  ;;  %v528_v36 = vmul.f32 %v5039_v30, %v401_v21 }
  0x78   : > { %v2213_v20 = vadd.f32 %v2037_v46, %v1650_v23  ;;  %v534_v24 = vmul.f32 %v5039_v30, %v407_v9  ;;  %v1092_v1 = vmul.f32 %v5142_v31, %v965_v26  ;;  %v295_v4 = vmul.f32 %v5150_v48, %v5003_v60  ;;  %v7353_v9 = vld [vmem:[#allocation11_spill] sm:$0xff]  ;;  %v7354_v23 = vld [vmem:[#allocation12_spill] sm:$0xff] }
  0x79   : > { %v3343_v0 = vsel %vm706_vm0, %v3341_v61, %v3342_v44  ;;  %v3906_v39 = vsel %vm1270_vm1, %v3904_v56, %v3905_v40  ;;  %v1098_v5 = vmul.f32 %v5142_v31, %v971_v11  ;;  %v731_v13 = vrot.slane %v528_v36, 1  ;;  %v4597_v44 = vld [vmem:[%s4912_s4 + $0x130] sm:$0xfe]  ;;  %v7355_v11 = vld [vmem:[#allocation10_spill] sm:$0xff]  ;;  %v7356_v40 = vld [vmem:[#allocation15_spill] sm:$0xff] }
  0x7a   : > { %v2776_v46 = vadd.f32 %v2600_v50, %v2213_v20  ;;  %v732_v2 = vrot.slane %v534_v24, 1  ;;  %v1295_v51 = vrot.slane %v1092_v1, 2  ;;  %v1836_v26 = vmul.f32 %v4351_v15, %v7353_v9  ;;  %v4603_v20 = vld [vmem:[%s4912_s4 + $0x160] sm:$0x1]  ;;  %v4695_v36 = vld [vmem:[%s4912_s4 + $0x130] sm:$0xfc] }
  0x7b   : > { %v1296_v21 = vrot.slane %v1098_v5, 2  ;;  %v1842_v25 = vmul.f32 %v4357_v52, %v7353_v9  ;;  %v2399_v61 = vmul.f32 %v4449_v58, %v7354_v23  ;;  %v1603_v31 = vmul.f32 %v7356_v40, %v7355_v11  ;;  %v4701_v58 = vld [vmem:[%s4912_s4 + $0x160] sm:$0x3] }
  0x7c   : > { %v2956_v48 = vadd.f32 %v2908_v53, %v2776_v46  ;;  %v733_v56 = vsel %vm706_vm0, %v731_v13, %v732_v2  ;;  %v2405_v50 = vmul.f32 %v4455_v6, %v7354_v23  ;;  %v2038_v15 = vrot.slane %v1836_v26, 1  ;;  %v5560_v13 = vld [vmem:[%s4912_s4 + $0x130] sm:$0xff]  ;;  %v7358_v2 = vld [vmem:[#allocation14_spill] sm:$0xff]  ;;  %v7359_v23 = vld [vmem:[#allocation13_spill] sm:$0xff] }
  0x7d   : > { %v907_v24 = vadd.f32 %v733_v56, %v295_v4  ;;  %v1297_v1 = vsel %vm1270_vm1, %v1295_v51, %v1296_v21  ;;  %v2039_v52 = vrot.slane %v1842_v25, 1  ;;  %v2601_v53 = vrot.slane %v2399_v61, 2  ;;  %7357 = vst [vmem:[#allocation15_spill] sm:$0xff] %v5560_v13  ;;  %v7360_v56 = vld [vmem:[#allocation16_spill] sm:$0xff]  ;;  %v402_v21 = vld [vmem:[%s4912_s4 + $0x78] sm:$0xfe] }
  0x7e   : > { %v3519_v5 = vadd.f32 %v3343_v0, %v2956_v48  ;;  %v2602_v46 = vrot.slane %v2405_v50, 2  ;;  %v3142_v40 = vmul.f32 %v4597_v44, %v7358_v2  ;;  %v2909_v9 = vmul.f32 %v5560_v13, %v7359_v23  ;;  %v408_v26 = vld [vmem:[%s4912_s4 + $0xa8] sm:$0x1]  ;;  %v966_v0 = vld [vmem:[%s4912_s4 + $0x78] sm:$0xfc] }
  0x7f   : > { %v1471_v6 = vadd.f32 %v1297_v1, %v907_v24  ;;  %v3148_v4 = vmul.f32 %v4603_v20, %v7358_v2  ;;  %v3705_v51 = vmul.f32 %v4695_v36, %v7360_v56  ;;  %v2040_v61 = vsel %vm706_vm0, %v2038_v15, %v2039_v52  ;;  %v972_v50 = vld [vmem:[%s4912_s4 + $0xa8] sm:$0x3]  ;;  %v4352_v15 = vld [vmem:[%s4912_s4 + $0xd8] sm:$0xfe] }
  0x80   : > { %v4082_v25 = vadd.f32 %v3906_v39, %v3519_v5  ;;  %v3344_v48 = vrot.slane %v3142_v40, 1  ;;  %v3711_v44 = vmul.f32 %v4701_v58, %v7360_v56  ;;  %v2603_v1 = vsel %vm1270_vm1, %v2601_v53, %v2602_v46  ;;  %v4358_v52 = vld [vmem:[%s4912_s4 + $0x108] sm:$0x1]  ;;  %v7362_v40 = vld [vmem:[#allocation21_spill] sm:$0xff] }
  0x81   : > { %v1651_v24 = vadd.f32 %v1603_v31, %v1471_v6  ;;  %v3345_v20 = vrot.slane %v3148_v4, 1  ;;  %v3907_v23 = vrot.slane %v3705_v51, 2  ;;  %v529_v2 = vmul.f32 %v5210_v32, %v402_v21  ;;  %v7361_v31 = vld [vmem:[#allocation17_spill] sm:$0xff]  ;;  %v4456_v4 = vld [vmem:[%s4912_s4 + $0x108] sm:$0x3] }
  0x82   : > { %4130 = vst [vmem:[%s5107_s3 + $0x38] sm:$0xff] %v4082_v25  ;;  %v3908_v36 = vrot.slane %v3711_v44, 2  ;;  %v535_v13 = vmul.f32 %v5210_v32, %v408_v26  ;;  %v1093_v39 = vmul.f32 %v5215_v22, %v966_v0  ;;  %v296_v6 = vmul.f32 %v7362_v40, %v7361_v31  ;;  %v4450_v46 = vld [vmem:[%s4912_s4 + $0xd8] sm:$0xfc]  ;;  %v7363_v25 = vld [vmem:[#allocation20_spill] sm:$0xff]  ;;  %v7366_v31 = vld [vmem:[#allocation23_spill] sm:$0xff] }
  0x83   : > { %v2214_v58 = vadd.f32 %v2040_v61, %v1651_v24  ;;  %v3346_v5 = vsel %vm706_vm0, %v3344_v48, %v3345_v20  ;;  %v1099_v53 = vmul.f32 %v5215_v22, %v972_v50  ;;  %v734_v51 = vrot.slane %v529_v2, 1  ;;  %v7364_v0 = vld [vmem:[#allocation25_spill] sm:$0xff]  ;;  %v7365_v24 = vld [vmem:[#allocation22_spill] sm:$0xff]  ;;  %v7369_v56 = vld [vmem:[#allocation27_spill] sm:$0xff] }
  0x84   : > { %v735_v21 = vrot.slane %v535_v13, 1  ;;  %v1298_v26 = vrot.slane %v1093_v39, 2  ;;  %v1604_v44 = vmul.f32 %v7364_v0, %v7363_v25  ;;  %v1837_v48 = vmul.f32 %v4352_v15, %v7365_v24  ;;  %v4598_v40 = vld [vmem:[%s4912_s4 + $0x138] sm:$0xfe]  ;;  %v4604_v39 = vld [vmem:[%s4912_s4 + $0x168] sm:$0x1] }
  0x85   : > { %v2777_v32 = vadd.f32 %v2603_v1, %v2214_v58  ;;  %v1299_v61 = vrot.slane %v1099_v53, 2  ;;  %v1843_v20 = vmul.f32 %v4358_v52, %v7365_v24  ;;  %v3909_v50 = vsel %vm1270_vm1, %v3907_v23, %v3908_v36  ;;  %v4696_v0 = vld [vmem:[%s4912_s4 + $0x138] sm:$0xfc]  ;;  %v4702_v52 = vld [vmem:[%s4912_s4 + $0x168] sm:$0x3] }
  0x86   : > { %v736_v22 = vsel %vm706_vm0, %v734_v51, %v735_v21  ;;  %v2400_v2 = vmul.f32 %v4450_v46, %v7366_v31  ;;  %v2406_v13 = vmul.f32 %v4456_v4, %v7366_v31  ;;  %v2041_v53 = vrot.slane %v1837_v48, 1  ;;  %v7367_v51 = vld [vmem:[#allocation26_spill] sm:$0xff]  ;;  %v5601_v4 = vld [vmem:[%s4912_s4 + $0x138] sm:$0xff] }
  0x87   : > { %v2957_v1 = vadd.f32 %v2909_v9, %v2777_v32  ;;  %v908_v58 = vadd.f32 %v736_v22, %v296_v6  ;;  %v1300_v15 = vsel %vm1270_vm1, %v1298_v26, %v1299_v61  ;;  %v2042_v25 = vrot.slane %v1843_v20, 1  ;;  %7368 = vst [vmem:[#allocation21_spill] sm:$0xff] %v5601_v4  ;;  %v403_v22 = vld [vmem:[%s4912_s4 + $0x80] sm:$0xfe]  ;;  %v409_v9 = vld [vmem:[%s4912_s4 + $0xb0] sm:$0x1] }
  0x88   : > { %v2604_v23 = vrot.slane %v2400_v2, 2  ;;  %v2605_v36 = vrot.slane %v2406_v13, 2  ;;  %v3143_v21 = vmul.f32 %v4598_v40, %v7367_v51  ;;  %v3149_v31 = vmul.f32 %v4604_v39, %v7367_v51  ;;  %v7370_v26 = vld [vmem:[#allocation24_spill] sm:$0xff] }
  0x89   : > { %v3520_v46 = vadd.f32 %v3346_v5, %v2957_v1  ;;  %v1472_v24 = vadd.f32 %v1300_v15, %v908_v58  ;;  %v3706_v32 = vmul.f32 %v4696_v0, %v7369_v56  ;;  %v2043_v6 = vsel %vm706_vm0, %v2041_v53, %v2042_v25  ;;  %v967_v5 = vld [vmem:[%s4912_s4 + $0x80] sm:$0xfc]  ;;  %v973_v40 = vld [vmem:[%s4912_s4 + $0xb0] sm:$0x3]  ;;  %v7371_v15 = vld [vmem:[#allocation29_spill] sm:$0xff] }
  0x8a   : > { %v2910_v61 = vmul.f32 %v5601_v4, %v7370_v26  ;;  %v3347_v48 = vrot.slane %v3143_v21, 1  ;;  %v3712_v20 = vmul.f32 %v4702_v52, %v7369_v56  ;;  %v2606_v39 = vsel %vm1270_vm1, %v2604_v23, %v2605_v36  ;;  %v4353_v26 = vld [vmem:[%s4912_s4 + $0xe0] sm:$0xfe]  ;;  %v7372_v52 = vld [vmem:[#allocation28_spill] sm:$0xff] }
  0x8b   : > { %v4083_v2 = vadd.f32 %v3909_v50, %v3520_v46  ;;  %v1652_v13 = vadd.f32 %v1604_v44, %v1472_v24  ;;  %v3348_v0 = vrot.slane %v3149_v31, 1  ;;  %v3910_v1 = vrot.slane %v3706_v32, 2  ;;  %v7373_v56 = vld [vmem:[#allocation32_spill] sm:$0xff]  ;;  %v7374_v4 = vld [vmem:[#allocation30_spill] sm:$0xff]  ;;  %v7375_v32 = vld [vmem:[#allocation31_spill] sm:$0xff] }
  0x8c   : > { %v3911_v58 = vrot.slane %v3712_v20, 2  ;;  %v530_v25 = vmul.f32 %v7371_v15, %v403_v22  ;;  %v536_v53 = vmul.f32 %v7371_v15, %v409_v9  ;;  %v297_v51 = vmul.f32 %v7373_v56, %v7372_v52  ;;  %v4359_v44 = vld [vmem:[%s4912_s4 + $0x110] sm:$0x1]  ;;  %v4451_v31 = vld [vmem:[%s4912_s4 + $0xe0] sm:$0xfc]  ;;  %v7376_v20 = vld [vmem:[#allocation33_spill] sm:$0xff] }
  0x8d   : > { %4131 = vst [vmem:[%s5107_s3 + $0x40] sm:$0xff] %v4083_v2  ;;  %v2215_v21 = vadd.f32 %v2043_v6, %v1652_v13  ;;  %v1094_v11 = vmul.f32 %v7374_v4, %v967_v5  ;;  %v1100_v50 = vmul.f32 %v7374_v4, %v973_v40  ;;  %v4457_v24 = vld [vmem:[%s4912_s4 + $0x110] sm:$0x3]  ;;  %v3349_v23 = vsel %vm706_vm0, %v3347_v48, %v3348_v0  ;;  %v7377_v13 = vld [vmem:[#allocation34_spill] sm:$0xff] }
  0x8e   : > { %v737_v36 = vrot.slane %v530_v25, 1  ;;  %v738_v46 = vrot.slane %v536_v53, 1  ;;  %v1605_v22 = vmul.f32 %v5341_v63, %v7375_v32  ;;  %v1838_v5 = vmul.f32 %v4353_v26, %v7376_v20  ;;  %v4599_v0 = vld [vmem:[%s4912_s4 + $0x140] sm:$0xfe]  ;;  %v4605_v25 = vld [vmem:[%s4912_s4 + $0x170] sm:$0x1] }
  0x8f   : > { %v2778_v9 = vadd.f32 %v2606_v39, %v2215_v21  ;;  %v1301_v56 = vrot.slane %v1094_v11, 2  ;;  %v1302_v6 = vrot.slane %v1100_v50, 2  ;;  %v1844_v2 = vmul.f32 %v4359_v44, %v7376_v20  ;;  %v4697_v21 = vld [vmem:[%s4912_s4 + $0x140] sm:$0xfc]  ;;  %v4703_v26 = vld [vmem:[%s4912_s4 + $0x170] sm:$0x3] }
  0x90   : > { %v739_v40 = vsel %vm706_vm0, %v737_v36, %v738_v46  ;;  %v2401_v4 = vmul.f32 %v4451_v31, %v7377_v13  ;;  %v2407_v48 = vmul.f32 %v4457_v24, %v7377_v13  ;;  %v2044_v11 = vrot.slane %v1838_v5, 1  ;;  %v5640_v32 = vld [vmem:[%s4912_s4 + $0x140] sm:$0xff]  ;;  %v410_v5 = vld [vmem:[%s4912_s4 + $0xb8] sm:$0x1] }
  0x91   : > { %v2958_v53 = vadd.f32 %v2910_v61, %v2778_v9  ;;  %v909_v63 = vadd.f32 %v739_v40, %v297_v51  ;;  %v1303_v39 = vsel %vm1270_vm1, %v1301_v56, %v1302_v6  ;;  %v3912_v50 = vsel %vm1270_vm1, %v3910_v1, %v3911_v58  ;;  %v404_v9 = vld [vmem:[%s4912_s4 + $0x88] sm:$0xfe]  ;;  %v7379_v58 = vld [vmem:[#allocation37_spill] sm:$0xff] }
  0x92   : > { %v2045_v44 = vrot.slane %v1844_v2, 1  ;;  %v2607_v36 = vrot.slane %v2401_v4, 2  ;;  %v2608_v31 = vrot.slane %v2407_v48, 2  ;;  %v3144_v61 = vmul.f32 %v4599_v0, %v5351_v10  ;;  %v7378_v6 = vld [vmem:[#allocation35_spill] sm:$0xff] }
  0x93   : > { %v3521_v46 = vadd.f32 %v3349_v23, %v2958_v53  ;;  %v1473_v24 = vadd.f32 %v1303_v39, %v909_v63  ;;  %v3150_v51 = vmul.f32 %v4605_v25, %v5351_v10  ;;  %v2911_v1 = vmul.f32 %v5640_v32, %v7378_v6  ;;  %v968_v40 = vld [vmem:[%s4912_s4 + $0x88] sm:$0xfc]  ;;  %v974_v53 = vld [vmem:[%s4912_s4 + $0xb8] sm:$0x3] }
  0x94   : > { %v2046_v56 = vsel %vm706_vm0, %v2044_v11, %v2045_v44  ;;  %v3707_v4 = vmul.f32 %v4697_v21, %v7379_v58  ;;  %v3713_v23 = vmul.f32 %v4703_v26, %v7379_v58  ;;  %v3350_v0 = vrot.slane %v3144_v61, 1  ;;  %v4354_v6 = vld [vmem:[%s4912_s4 + $0xe8] sm:$0xfe]  ;;  %v4458_v61 = vld [vmem:[%s4912_s4 + $0x118] sm:$0x3] }
  0x95   : > { %v4084_v2 = vadd.f32 %v3912_v50, %v3521_v46  ;;  %v1653_v48 = vadd.f32 %v1605_v22, %v1473_v24  ;;  %v3351_v25 = vrot.slane %v3150_v51, 1  ;;  %v2609_v63 = vsel %vm1270_vm1, %v2607_v36, %v2608_v31  ;;  %v4360_v46 = vld [vmem:[%s4912_s4 + $0x118] sm:$0x1]  ;;  %v4452_v24 = vld [vmem:[%s4912_s4 + $0xe8] sm:$0xfc] }
  0x96   : > { %v3913_v39 = vrot.slane %v3707_v4, 2  ;;  %v3914_v11 = vrot.slane %v3713_v23, 2  ;;  %v531_v44 = vmul.f32 %v5383_v38, %v404_v9  ;;  %v298_v26 = vmul.f32 %v5398_v57, %v5379_v12 }
  0x97   : > { %4132 = vst [vmem:[%s5107_s3 + $0x48] sm:$0xff] %v4084_v2  ;;  %v2216_v21 = vadd.f32 %v2046_v56, %v1653_v48  ;;  %v537_v50 = vmul.f32 %v5383_v38, %v410_v5  ;;  %v1095_v22 = vmul.f32 %v5389_v54, %v968_v40  ;;  %v3352_v36 = vsel %vm706_vm0, %v3350_v0, %v3351_v25  ;;  %v4600_v0 = vld [vmem:[%s4912_s4 + $0x148] sm:$0xfe]  ;;  %v4606_v25 = vld [vmem:[%s4912_s4 + $0x178] sm:$0x1] }
  0x98   : > { %v3915_v31 = vsel %vm1270_vm1, %v3913_v39, %v3914_v11  ;;  %v740_v51 = vrot.slane %v531_v44, 1  ;;  %v1101_v9 = vmul.f32 %v5389_v54, %v974_v53  ;;  %v1839_v23 = vmul.f32 %v4354_v6, %v5409_v8  ;;  %v4704_v6 = vld [vmem:[%s4912_s4 + $0x178] sm:$0x3] }
  0x99   : > { %v2779_v56 = vadd.f32 %v2609_v63, %v2216_v21  ;;  %v741_v57 = vrot.slane %v537_v50, 1  ;;  %v1304_v4 = vrot.slane %v1095_v22, 2  ;;  %v1845_v40 = vmul.f32 %v4360_v46, %v5409_v8  ;;  %v7380_v63 = vld [vmem:[#allocation43_spill] sm:$0xff] }
  0x9a   : > { %v1305_v5 = vrot.slane %v1101_v9, 2  ;;  %v2402_v2 = vmul.f32 %v4452_v24, %v5418_v34  ;;  %v2408_v48 = vmul.f32 %v4458_v61, %v5418_v34  ;;  %v1606_v11 = vmul.f32 %v7380_v63, %v5403_v59  ;;  %v4698_v21 = vld [vmem:[%s4912_s4 + $0x148] sm:$0xfc]  ;;  %v7381_v63 = vld [vmem:[#allocation42_spill] sm:$0xff] }
  0x9b   : > { %v2959_v39 = vadd.f32 %v2911_v1, %v2779_v56  ;;  %v742_v53 = vsel %vm706_vm0, %v740_v51, %v741_v57  ;;  %v2047_v44 = vrot.slane %v1839_v23, 1  ;;  %v2048_v46 = vrot.slane %v1845_v40, 1  ;;  %v5680_v1 = vld [vmem:[%s4912_s4 + $0x148] sm:$0xff]  ;;  %v220_v57 = vld [vmem:[%s4912_s4 + $0xc0] sm:$0xff]  ;;  %v417_v40 = vld [vmem:[%s4912_s4 + $0xf0] sm:$0x1] }
  0x9c   : > { %v910_v50 = vadd.f32 %v742_v53, %v298_v26  ;;  %v1306_v22 = vsel %vm1270_vm1, %v1304_v4, %v1305_v5  ;;  %v2610_v24 = vrot.slane %v2402_v2, 2  ;;  %v2611_v9 = vrot.slane %v2408_v48, 2  ;;  %v975_v2 = vld [vmem:[%s4912_s4 + $0xc0] sm:$0xfc]  ;;  %v981_v53 = vld [vmem:[%s4912_s4 + $0xf0] sm:$0x3] }
  0x9d   : > { %v3522_v61 = vadd.f32 %v3352_v36, %v2959_v39  ;;  %v3145_v51 = vmul.f32 %v4600_v0, %v5439_v16  ;;  %v3151_v56 = vmul.f32 %v4606_v25, %v5439_v16  ;;  %v2912_v26 = vmul.f32 %v5680_v1, %v7381_v63  ;;  %v411_v36 = vld [vmem:[%s4912_s4 + $0xc0] sm:$0xfe] }
  0x9e   : > { %v1474_v23 = vadd.f32 %v1306_v22, %v910_v50  ;;  %v3708_v4 = vmul.f32 %v4698_v21, %v5445_v17  ;;  %v3714_v5 = vmul.f32 %v4704_v6, %v5445_v17  ;;  %v2049_v0 = vsel %vm706_vm0, %v2047_v44, %v2048_v46  ;;  %v4361_v21 = vld [vmem:[%s4912_s4 + $0x120] sm:$0xfe]  ;;  %v4367_v44 = vld [vmem:[%s4912_s4 + $0x150] sm:$0x1] }
  0x9f   : > { %v4085_v48 = vadd.f32 %v3915_v31, %v3522_v61  ;;  %v3353_v25 = vrot.slane %v3145_v51, 1  ;;  %v3354_v39 = vrot.slane %v3151_v56, 1  ;;  %v2612_v22 = vsel %vm1270_vm1, %v2610_v24, %v2611_v9  ;;  %v7382_v6 = vld [vmem:[#allocation2_spill] sm:$0xff]  ;;  %v4465_v56 = vld [vmem:[%s4912_s4 + $0x150] sm:$0x3] }
  0xa0   : > { %v1654_v50 = vadd.f32 %v1606_v11, %v1474_v23  ;;  %v3916_v63 = vrot.slane %v3708_v4, 2  ;;  %v3917_v16 = vrot.slane %v3714_v5, 2  ;;  %v299_v17 = vmul.f32 %v7382_v6, %v220_v57  ;;  %v4459_v46 = vld [vmem:[%s4912_s4 + $0x120] sm:$0xfc] }
  0xa1   : > { %4133 = vst [vmem:[%s5107_s3 + $0x50] sm:$0xff] %v4085_v48  ;;  %v538_v34 = vmul.f32 %v4920_v18, %v411_v36  ;;  %v544_v31 = vmul.f32 %v4920_v18, %v417_v40  ;;  %v1102_v61 = vmul.f32 %v4924_v19, %v975_v2  ;;  %v3355_v51 = vsel %vm706_vm0, %v3353_v25, %v3354_v39  ;;  %v4613_v25 = vld [vmem:[%s4912_s4 + $0x1b0] sm:$0x1] }
  0xa2   : > { %v2217_v11 = vadd.f32 %v2049_v0, %v1654_v50  ;;  %v3918_v24 = vsel %vm1270_vm1, %v3916_v63, %v3917_v16  ;;  %v1108_v9 = vmul.f32 %v4924_v19, %v981_v53  ;;  %v1846_v5 = vmul.f32 %v4361_v21, %v4969_v41  ;;  %v4607_v0 = vld [vmem:[%s4912_s4 + $0x180] sm:$0xfe] }
  0xa3   : > { %v743_v57 = vrot.slane %v538_v34, 1  ;;  %v744_v23 = vrot.slane %v544_v31, 1  ;;  %v1307_v4 = vrot.slane %v1102_v61, 2  ;;  %v1852_v2 = vmul.f32 %v4367_v44, %v4969_v41  ;;  %v4705_v53 = vld [vmem:[%s4912_s4 + $0x180] sm:$0xfc] }
  0xa4   : > { %v2780_v36 = vadd.f32 %v2612_v22, %v2217_v11  ;;  %v1308_v40 = vrot.slane %v1108_v9, 2  ;;  %v2409_v48 = vmul.f32 %v4459_v46, %v5014_v3  ;;  %v1607_v63 = vmul.f32 %v5485_v7, %v4958_v35  ;;  %v4711_v61 = vld [vmem:[%s4912_s4 + $0x1b0] sm:$0x3]  ;;  %v5720_v11 = vld [vmem:[%s4912_s4 + $0x180] sm:$0xff] }
  0xa5   : > { %v745_v16 = vsel %vm706_vm0, %v743_v57, %v744_v23  ;;  %v2050_v34 = vrot.slane %v1846_v5, 1  ;;  %v2415_v39 = vmul.f32 %v4465_v56, %v5014_v3  ;;  %v2051_v31 = vrot.slane %v1852_v2, 1  ;;  %v221_v23 = vld [vmem:[%s4912_s4 + $0xc8] sm:$0xff]  ;;  %v418_v5 = vld [vmem:[%s4912_s4 + $0xf8] sm:$0x1] }
  0xa6   : > { %v2960_v50 = vadd.f32 %v2912_v26, %v2780_v36  ;;  %v911_v22 = vadd.f32 %v745_v16, %v299_v17  ;;  %v1309_v21 = vsel %vm1270_vm1, %v1307_v4, %v1308_v40  ;;  %v2613_v44 = vrot.slane %v2409_v48, 2  ;;  %v412_v4 = vld [vmem:[%s4912_s4 + $0xc8] sm:$0xfe] }
  0xa7   : > { %v2614_v46 = vrot.slane %v2415_v39, 2  ;;  %v3152_v7 = vmul.f32 %v4607_v0, %v5062_v43  ;;  %v3158_v9 = vmul.f32 %v4613_v25, %v5062_v43  ;;  %v2913_v17 = vmul.f32 %v5720_v11, %v5045_v33  ;;  %v976_v0 = vld [vmem:[%s4912_s4 + $0xc8] sm:$0xfc] }
  0xa8   : > { %v3523_v56 = vadd.f32 %v3355_v51, %v2960_v50  ;;  %v1475_v57 = vadd.f32 %v1309_v21, %v911_v22  ;;  %v3715_v26 = vmul.f32 %v4705_v53, %v5082_v62  ;;  %v2052_v36 = vsel %vm706_vm0, %v2050_v34, %v2051_v31  ;;  %v982_v51 = vld [vmem:[%s4912_s4 + $0xf8] sm:$0x3]  ;;  %v4362_v50 = vld [vmem:[%s4912_s4 + $0x128] sm:$0xfe] }
  0xa9   : > { %v3356_v40 = vrot.slane %v3152_v7, 1  ;;  %v3357_v2 = vrot.slane %v3158_v9, 1  ;;  %v3721_v48 = vmul.f32 %v4711_v61, %v5082_v62  ;;  %v2615_v39 = vsel %vm1270_vm1, %v2613_v44, %v2614_v46  ;;  %v4368_v7 = vld [vmem:[%s4912_s4 + $0x158] sm:$0x1]  ;;  %v4460_v44 = vld [vmem:[%s4912_s4 + $0x128] sm:$0xfc] }
  0xaa   : > { %v4086_v25 = vadd.f32 %v3918_v24, %v3523_v56  ;;  %v1655_v16 = vadd.f32 %v1607_v63, %v1475_v57  ;;  %v3919_v53 = vrot.slane %v3715_v26, 2  ;;  %v300_v21 = vmul.f32 %v4941_v27, %v221_v23  ;;  %v4466_v46 = vld [vmem:[%s4912_s4 + $0x158] sm:$0x3] }
  0xab   : > { %v3358_v22 = vsel %vm706_vm0, %v3356_v40, %v3357_v2  ;;  %v539_v34 = vmul.f32 %v4945_v28, %v412_v4  ;;  %v545_v31 = vmul.f32 %v4945_v28, %v418_v5  ;;  %v3920_v9 = vrot.slane %v3721_v48, 2  ;;  %v4608_v2 = vld [vmem:[%s4912_s4 + $0x188] sm:$0xfe] }
  0xac   : > { %4134 = vst [vmem:[%s5107_s3 + $0x58] sm:$0xff] %v4086_v25  ;;  %v2218_v61 = vadd.f32 %v2052_v36, %v1655_v16  ;;  %v1103_v24 = vmul.f32 %v4949_v29, %v976_v0  ;;  %v1109_v63 = vmul.f32 %v4949_v29, %v982_v51  ;;  %v1608_v26 = vmul.f32 %v5520_v45, %v4973_v42  ;;  %v4614_v16 = vld [vmem:[%s4912_s4 + $0x1b8] sm:$0x1] }
  0xad   : > { %v746_v56 = vrot.slane %v539_v34, 1  ;;  %v747_v57 = vrot.slane %v545_v31, 1  ;;  %v1847_v23 = vmul.f32 %v4362_v50, %v4982_v47  ;;  %v1853_v40 = vmul.f32 %v4368_v7, %v4982_v47  ;;  %v4706_v31 = vld [vmem:[%s4912_s4 + $0x188] sm:$0xfc]  ;;  %v4712_v7 = vld [vmem:[%s4912_s4 + $0x1b8] sm:$0x3] }
  0xae   : > { %v2781_v4 = vadd.f32 %v2615_v39, %v2218_v61  ;;  %v1310_v5 = vrot.slane %v1103_v24, 2  ;;  %v1311_v36 = vrot.slane %v1109_v63, 2  ;;  %v2410_v51 = vmul.f32 %v4460_v44, %v5030_v14  ;;  %v5760_v44 = vld [vmem:[%s4912_s4 + $0x188] sm:$0xff] }
  0xaf   : > { %v748_v48 = vsel %vm706_vm0, %v746_v56, %v747_v57  ;;  %v2053_v0 = vrot.slane %v1847_v23, 1  ;;  %v2416_v25 = vmul.f32 %v4466_v46, %v5030_v14  ;;  %v2054_v34 = vrot.slane %v1853_v40, 1  ;;  %v222_v23 = vld [vmem:[%s4912_s4 + $0xd0] sm:$0xff] }
  0xb0   : > { %v2961_v45 = vadd.f32 %v2913_v17, %v2781_v4  ;;  %v912_v50 = vadd.f32 %v748_v48, %v300_v21  ;;  %v1312_v39 = vsel %vm1270_vm1, %v1310_v5, %v1311_v36  ;;  %v3921_v61 = vsel %vm1270_vm1, %v3919_v53, %v3920_v9  ;;  %v413_v4 = vld [vmem:[%s4912_s4 + $0xd0] sm:$0xfe]  ;;  %v419_v5 = vld [vmem:[%s4912_s4 + $0x100] sm:$0x1] }
  0xb1   : > { %v2616_v24 = vrot.slane %v2410_v51, 2  ;;  %v2617_v63 = vrot.slane %v2416_v25, 2  ;;  %v3153_v46 = vmul.f32 %v4608_v2, %v5070_v49  ;;  %v2914_v21 = vmul.f32 %v5760_v44, %v5055_v37  ;;  %v983_v2 = vld [vmem:[%s4912_s4 + $0x100] sm:$0x3] }
  0xb2   : > { %v3524_v56 = vadd.f32 %v3358_v22, %v2961_v45  ;;  %v1476_v17 = vadd.f32 %v1312_v39, %v912_v50  ;;  %v3159_v57 = vmul.f32 %v4614_v16, %v5070_v49  ;;  %v2055_v53 = vsel %vm706_vm0, %v2053_v0, %v2054_v34  ;;  %v977_v22 = vld [vmem:[%s4912_s4 + $0xd0] sm:$0xfc] }
  0xb3   : > { %v3359_v9 = vrot.slane %v3153_v46, 1  ;;  %v3716_v36 = vmul.f32 %v4706_v31, %v5129_v55  ;;  %v3722_v40 = vmul.f32 %v4712_v7, %v5129_v55  ;;  %v2618_v25 = vsel %vm1270_vm1, %v2616_v24, %v2617_v63  ;;  %v4363_v34 = vld [vmem:[%s4912_s4 + $0x130] sm:$0xfe]  ;;  %v4369_v31 = vld [vmem:[%s4912_s4 + $0x160] sm:$0x1]  ;;  %v7383_v55 = vld [vmem:[#allocation9_spill] sm:$0xff] }
  0xb4   : > { %v4087_v48 = vadd.f32 %v3921_v61, %v3524_v56  ;;  %v1656_v51 = vadd.f32 %v1608_v26, %v1476_v17  ;;  %v3360_v16 = vrot.slane %v3159_v57, 1  ;;  %v301_v50 = vmul.f32 %v5003_v60, %v222_v23  ;;  %v4461_v61 = vld [vmem:[%s4912_s4 + $0x130] sm:$0xfc]  ;;  %v4467_v24 = vld [vmem:[%s4912_s4 + $0x160] sm:$0x3]  ;;  %v7385_v23 = vld [vmem:[#allocation15_spill] sm:$0xff] }
  0xb5   : > { %v3922_v45 = vrot.slane %v3716_v36, 2  ;;  %v540_v0 = vmul.f32 %v5039_v30, %v413_v4  ;;  %v546_v39 = vmul.f32 %v5039_v30, %v419_v5  ;;  %v3923_v46 = vrot.slane %v3722_v40, 2  ;;  %v7384_v57 = vld [vmem:[#allocation10_spill] sm:$0xff]  ;;  %v7386_v40 = vld [vmem:[#allocation11_spill] sm:$0xff] }
  0xb6   : > { %4135 = vst [vmem:[%s5107_s3 + $0x60] sm:$0xff] %v4087_v48  ;;  %v2219_v7 = vadd.f32 %v2055_v53, %v1656_v51  ;;  %v1104_v37 = vmul.f32 %v7383_v55, %v977_v22  ;;  %v1110_v26 = vmul.f32 %v7383_v55, %v983_v2  ;;  %v3361_v63 = vsel %vm706_vm0, %v3359_v9, %v3360_v16  ;;  %v7387_v51 = vld [vmem:[#allocation12_spill] sm:$0xff] }
  0xb7   : > { %v749_v56 = vrot.slane %v540_v0, 1  ;;  %v750_v17 = vrot.slane %v546_v39, 1  ;;  %v1609_v4 = vmul.f32 %v7385_v23, %v7384_v57  ;;  %v1848_v22 = vmul.f32 %v4363_v34, %v7386_v40  ;;  %v4609_v16 = vld [vmem:[%s4912_s4 + $0x190] sm:$0xfe]  ;;  %v4615_v0 = vld [vmem:[%s4912_s4 + $0x1c0] sm:$0x1] }
  0xb8   : > { %v2782_v5 = vadd.f32 %v2618_v25, %v2219_v7  ;;  %v1313_v53 = vrot.slane %v1104_v37, 2  ;;  %v1314_v36 = vrot.slane %v1110_v26, 2  ;;  %v1854_v2 = vmul.f32 %v4369_v31, %v7386_v40  ;;  %v4707_v7 = vld [vmem:[%s4912_s4 + $0x190] sm:$0xfc]  ;;  %v4713_v34 = vld [vmem:[%s4912_s4 + $0x1c0] sm:$0x3] }
  0xb9   : > { %v751_v48 = vsel %vm706_vm0, %v749_v56, %v750_v17  ;;  %v2411_v55 = vmul.f32 %v4461_v61, %v7387_v51  ;;  %v2417_v9 = vmul.f32 %v4467_v24, %v7387_v51  ;;  %v2056_v37 = vrot.slane %v1848_v22, 1  ;;  %v5800_v57 = vld [vmem:[%s4912_s4 + $0x190] sm:$0xff]  ;;  %v7390_v22 = vld [vmem:[#allocation13_spill] sm:$0xff] }
  0xba   : > { %v2962_v39 = vadd.f32 %v2914_v21, %v2782_v5  ;;  %v913_v23 = vadd.f32 %v751_v48, %v301_v50  ;;  %v1315_v25 = vsel %vm1270_vm1, %v1313_v53, %v1314_v36  ;;  %v3924_v26 = vsel %vm1270_vm1, %v3922_v45, %v3923_v46  ;;  %7388 = vst [vmem:[#allocation25_spill] sm:$0xff] %v5800_v57  ;;  %v7389_v21 = vld [vmem:[#allocation14_spill] sm:$0xff]  ;;  %v414_v53 = vld [vmem:[%s4912_s4 + $0xd8] sm:$0xfe]  ;;  %v7391_v46 = vld [vmem:[#allocation16_spill] sm:$0xff] }
  0xbb   : > { %v2057_v31 = vrot.slane %v1854_v2, 1  ;;  %v2619_v61 = vrot.slane %v2411_v55, 2  ;;  %v2620_v56 = vrot.slane %v2417_v9, 2  ;;  %v3154_v50 = vmul.f32 %v4609_v16, %v7389_v21  ;;  %v223_v48 = vld [vmem:[%s4912_s4 + $0xd8] sm:$0xff]  ;;  %v420_v2 = vld [vmem:[%s4912_s4 + $0x108] sm:$0x1] }
  0xbc   : > { %v3525_v17 = vadd.f32 %v3361_v63, %v2962_v39  ;;  %v1477_v24 = vadd.f32 %v1315_v25, %v913_v23  ;;  %v3160_v5 = vmul.f32 %v4615_v0, %v7389_v21  ;;  %v2915_v45 = vmul.f32 %v5800_v57, %v7390_v22  ;;  %v978_v9 = vld [vmem:[%s4912_s4 + $0xd8] sm:$0xfc]  ;;  %v984_v25 = vld [vmem:[%s4912_s4 + $0x108] sm:$0x3]  ;;  %v7392_v21 = vld [vmem:[#allocation18_spill] sm:$0xff] }
  0xbd   : > { %v2058_v36 = vsel %vm706_vm0, %v2056_v37, %v2057_v31  ;;  %v3717_v55 = vmul.f32 %v4707_v7, %v7391_v46  ;;  %v3723_v63 = vmul.f32 %v4713_v34, %v7391_v46  ;;  %v3362_v0 = vrot.slane %v3154_v50, 1  ;;  %v4364_v7 = vld [vmem:[%s4912_s4 + $0x138] sm:$0xfe]  ;;  %v4468_v50 = vld [vmem:[%s4912_s4 + $0x168] sm:$0x3] }
  0xbe   : > { %v4088_v39 = vadd.f32 %v3924_v26, %v3525_v17  ;;  %v1657_v16 = vadd.f32 %v1609_v4, %v1477_v24  ;;  %v3363_v23 = vrot.slane %v3160_v5, 1  ;;  %v2621_v37 = vsel %vm1270_vm1, %v2619_v61, %v2620_v56  ;;  %v7393_v46 = vld [vmem:[#allocation17_spill] sm:$0xff]  ;;  %v7394_v26 = vld [vmem:[#allocation19_spill] sm:$0xff] }
  0xbf   : > { %v3925_v31 = vrot.slane %v3717_v55, 2  ;;  %v3926_v22 = vrot.slane %v3723_v63, 2  ;;  %v541_v57 = vmul.f32 %v7392_v21, %v414_v53  ;;  %v302_v51 = vmul.f32 %v7393_v46, %v223_v48  ;;  %v4370_v4 = vld [vmem:[%s4912_s4 + $0x168] sm:$0x1]  ;;  %v4462_v24 = vld [vmem:[%s4912_s4 + $0x138] sm:$0xfc] }
  0xc0   : > { %4136 = vst [vmem:[%s5107_s3 + $0x68] sm:$0xff] %v4088_v39  ;;  %v2220_v34 = vadd.f32 %v2058_v36, %v1657_v16  ;;  %v547_v40 = vmul.f32 %v7392_v21, %v420_v2  ;;  %v1105_v17 = vmul.f32 %v7394_v26, %v978_v9  ;;  %v3364_v61 = vsel %vm706_vm0, %v3362_v0, %v3363_v23  ;;  %v7395_v48 = vld [vmem:[#allocation22_spill] sm:$0xff]  ;;  %v7396_v16 = vld [vmem:[#allocation23_spill] sm:$0xff]  ;;  %v4610_v23 = vld [vmem:[%s4912_s4 + $0x198] sm:$0xfe] }
  0xc1   : > { %v3927_v56 = vsel %vm1270_vm1, %v3925_v31, %v3926_v22  ;;  %v752_v5 = vrot.slane %v541_v57, 1  ;;  %v1111_v53 = vmul.f32 %v7394_v26, %v984_v25  ;;  %v1849_v2 = vmul.f32 %v4364_v7, %v7395_v48  ;;  %v4616_v22 = vld [vmem:[%s4912_s4 + $0x1c8] sm:$0x1]  ;;  %v7397_v31 = vld [vmem:[#allocation20_spill] sm:$0xff] }
  0xc2   : > { %v2783_v36 = vadd.f32 %v2621_v37, %v2220_v34  ;;  %v753_v55 = vrot.slane %v547_v40, 1  ;;  %v1316_v63 = vrot.slane %v1105_v17, 2  ;;  %v1855_v39 = vmul.f32 %v4370_v4, %v7395_v48  ;;  %v7398_v37 = vld [vmem:[#allocation21_spill] sm:$0xff]  ;;  %v4714_v7 = vld [vmem:[%s4912_s4 + $0x1c8] sm:$0x3] }
  0xc3   : > { %v1317_v9 = vrot.slane %v1111_v53, 2  ;;  %v2412_v21 = vmul.f32 %v4462_v24, %v7396_v16  ;;  %v2418_v0 = vmul.f32 %v4468_v50, %v7396_v16  ;;  %v1610_v40 = vmul.f32 %v7398_v37, %v7397_v31  ;;  %v4708_v17 = vld [vmem:[%s4912_s4 + $0x198] sm:$0xfc]  ;;  %v7401_v31 = vld [vmem:[#allocation24_spill] sm:$0xff] }
  0xc4   : > { %v2963_v57 = vadd.f32 %v2915_v45, %v2783_v36  ;;  %v754_v25 = vsel %vm706_vm0, %v752_v5, %v753_v55  ;;  %v2059_v34 = vrot.slane %v1849_v2, 1  ;;  %v2060_v53 = vrot.slane %v1855_v39, 1  ;;  %v5840_v45 = vld [vmem:[%s4912_s4 + $0x198] sm:$0xff]  ;;  %v7400_v5 = vld [vmem:[#allocation26_spill] sm:$0xff] }
  0xc5   : > { %v914_v4 = vadd.f32 %v754_v25, %v302_v51  ;;  %v1318_v24 = vsel %vm1270_vm1, %v1316_v63, %v1317_v9  ;;  %v2622_v50 = vrot.slane %v2412_v21, 2  ;;  %v2623_v48 = vrot.slane %v2418_v0, 2  ;;  %7399 = vst [vmem:[#allocation29_spill] sm:$0xff] %v5840_v45  ;;  %v224_v2 = vld [vmem:[%s4912_s4 + $0xe0] sm:$0xff]  ;;  %v7402_v25 = vld [vmem:[#allocation27_spill] sm:$0xff] }
  0xc6   : > { %v3526_v16 = vadd.f32 %v3364_v61, %v2963_v57  ;;  %v3155_v36 = vmul.f32 %v4610_v23, %v7400_v5  ;;  %v3161_v55 = vmul.f32 %v4616_v22, %v7400_v5  ;;  %v2916_v51 = vmul.f32 %v5840_v45, %v7401_v31  ;;  %v415_v61 = vld [vmem:[%s4912_s4 + $0xe0] sm:$0xfe]  ;;  %v421_v9 = vld [vmem:[%s4912_s4 + $0x110] sm:$0x1] }
  0xc7   : > { %v1478_v37 = vadd.f32 %v1318_v24, %v914_v4  ;;  %v3718_v63 = vmul.f32 %v4708_v17, %v7402_v25  ;;  %v3724_v21 = vmul.f32 %v4714_v7, %v7402_v25  ;;  %v979_v39 = vld [vmem:[%s4912_s4 + $0xe0] sm:$0xfc]  ;;  %v2061_v23 = vsel %vm706_vm0, %v2059_v34, %v2060_v53  ;;  %v985_v4 = vld [vmem:[%s4912_s4 + $0x110] sm:$0x3] }
  0xc8   : > { %v4089_v0 = vadd.f32 %v3927_v56, %v3526_v16  ;;  %v3365_v22 = vrot.slane %v3155_v36, 1  ;;  %v3366_v57 = vrot.slane %v3161_v55, 1  ;;  %v2624_v31 = vsel %vm1270_vm1, %v2622_v50, %v2623_v48  ;;  %v4365_v17 = vld [vmem:[%s4912_s4 + $0x140] sm:$0xfe]  ;;  %v4371_v34 = vld [vmem:[%s4912_s4 + $0x170] sm:$0x1] }
  0xc9   : > { %v1658_v24 = vadd.f32 %v1610_v40, %v1478_v37  ;;  %v3928_v5 = vrot.slane %v3718_v63, 2  ;;  %v3929_v45 = vrot.slane %v3724_v21, 2  ;;  %v303_v7 = vmul.f32 %v7372_v52, %v224_v2  ;;  %v7403_v16 = vld [vmem:[#allocation30_spill] sm:$0xff]  ;;  %v4469_v55 = vld [vmem:[%s4912_s4 + $0x170] sm:$0x3] }
  0xca   : > { %4137 = vst [vmem:[%s5107_s3 + $0x70] sm:$0xff] %v4089_v0  ;;  %v542_v25 = vmul.f32 %v7371_v15, %v415_v61  ;;  %v548_v56 = vmul.f32 %v7371_v15, %v421_v9  ;;  %v1106_v26 = vmul.f32 %v7403_v16, %v979_v39  ;;  %v4463_v53 = vld [vmem:[%s4912_s4 + $0x140] sm:$0xfc]  ;;  %v3367_v36 = vsel %vm706_vm0, %v3365_v22, %v3366_v57  ;;  %v4617_v22 = vld [vmem:[%s4912_s4 + $0x1d0] sm:$0x1] }
  0xcb   : > { %v2221_v40 = vadd.f32 %v2061_v23, %v1658_v24  ;;  %v3930_v48 = vsel %vm1270_vm1, %v3928_v5, %v3929_v45  ;;  %v1112_v50 = vmul.f32 %v7403_v16, %v985_v4  ;;  %v1850_v21 = vmul.f32 %v4365_v17, %v7376_v20  ;;  %v4611_v23 = vld [vmem:[%s4912_s4 + $0x1a0] sm:$0xfe]  ;;  %v7404_v5 = vld [vmem:[#allocation31_spill] sm:$0xff] }
  0xcc   : > { %v755_v2 = vrot.slane %v542_v25, 1  ;;  %v756_v37 = vrot.slane %v548_v56, 1  ;;  %v1319_v63 = vrot.slane %v1106_v26, 2  ;;  %v1856_v39 = vmul.f32 %v4371_v34, %v7376_v20  ;;  %v4709_v4 = vld [vmem:[%s4912_s4 + $0x1a0] sm:$0xfc] }
  0xcd   : > { %v2784_v61 = vadd.f32 %v2624_v31, %v2221_v40  ;;  %v1320_v9 = vrot.slane %v1112_v50, 2  ;;  %v2413_v0 = vmul.f32 %v4463_v53, %v7377_v13  ;;  %v1611_v57 = vmul.f32 %v5640_v32, %v7404_v5  ;;  %v4715_v34 = vld [vmem:[%s4912_s4 + $0x1d0] sm:$0x3]  ;;  %v5880_v50 = vld [vmem:[%s4912_s4 + $0x1a0] sm:$0xff] }
  0xce   : > { %v757_v45 = vsel %vm706_vm0, %v755_v2, %v756_v37  ;;  %v2062_v25 = vrot.slane %v1850_v21, 1  ;;  %v2419_v26 = vmul.f32 %v4469_v55, %v7377_v13  ;;  %v2063_v56 = vrot.slane %v1856_v39, 1  ;;  %v7405_v21 = vld [vmem:[#allocation35_spill] sm:$0xff] }
  0xcf   : > { %v2964_v31 = vadd.f32 %v2916_v51, %v2784_v61  ;;  %v915_v24 = vadd.f32 %v757_v45, %v303_v7  ;;  %v1321_v17 = vsel %vm1270_vm1, %v1319_v63, %v1320_v9  ;;  %v2625_v53 = vrot.slane %v2413_v0, 2  ;;  %v225_v63 = vld [vmem:[%s4912_s4 + $0xe8] sm:$0xff]  ;;  %v422_v9 = vld [vmem:[%s4912_s4 + $0x118] sm:$0x1] }
  0xd0   : > { %v2626_v40 = vrot.slane %v2419_v26, 2  ;;  %v3156_v32 = vmul.f32 %v4611_v23, %v5351_v10  ;;  %v3162_v55 = vmul.f32 %v4617_v22, %v5351_v10  ;;  %v2917_v51 = vmul.f32 %v5880_v50, %v7405_v21  ;;  %v416_v61 = vld [vmem:[%s4912_s4 + $0xe8] sm:$0xfe] }
  0xd1   : > { %v3527_v2 = vadd.f32 %v3367_v36, %v2964_v31  ;;  %v1479_v37 = vadd.f32 %v1321_v17, %v915_v24  ;;  %v3719_v7 = vmul.f32 %v4709_v4, %v7379_v58  ;;  %v2064_v39 = vsel %vm706_vm0, %v2062_v25, %v2063_v56  ;;  %v980_v22 = vld [vmem:[%s4912_s4 + $0xe8] sm:$0xfc]  ;;  %v986_v36 = vld [vmem:[%s4912_s4 + $0x118] sm:$0x3] }
  0xd2   : > { %v3368_v0 = vrot.slane %v3156_v32, 1  ;;  %v3369_v45 = vrot.slane %v3162_v55, 1  ;;  %v3725_v23 = vmul.f32 %v4715_v34, %v7379_v58  ;;  %v2627_v24 = vsel %vm1270_vm1, %v2625_v53, %v2626_v40  ;;  %v4366_v17 = vld [vmem:[%s4912_s4 + $0x148] sm:$0xfe]  ;;  %v4372_v32 = vld [vmem:[%s4912_s4 + $0x178] sm:$0x1] }
  0xd3   : > { %v4090_v26 = vadd.f32 %v3930_v48, %v3527_v2  ;;  %v1659_v31 = vadd.f32 %v1611_v57, %v1479_v37  ;;  %v3931_v4 = vrot.slane %v3719_v7, 2  ;;  %v304_v10 = vmul.f32 %v5379_v12, %v225_v63  ;;  %v4464_v53 = vld [vmem:[%s4912_s4 + $0x148] sm:$0xfc]  ;;  %v4470_v40 = vld [vmem:[%s4912_s4 + $0x178] sm:$0x3] }
  0xd4   : > { %v3370_v21 = vsel %vm706_vm0, %v3368_v0, %v3369_v45  ;;  %v543_v25 = vmul.f32 %v5383_v38, %v416_v61  ;;  %v549_v56 = vmul.f32 %v5383_v38, %v422_v9  ;;  %v3932_v55 = vrot.slane %v3725_v23, 2  ;;  %v4612_v45 = vld [vmem:[%s4912_s4 + $0x1a8] sm:$0xfe] }
  0xd5   : > { %4138 = vst [vmem:[%s5107_s3 + $0x78] sm:$0xff] %v4090_v26  ;;  %v2222_v34 = vadd.f32 %v2064_v39, %v1659_v31  ;;  %v1107_v48 = vmul.f32 %v5389_v54, %v980_v22  ;;  %v1113_v57 = vmul.f32 %v5389_v54, %v986_v36  ;;  %v1612_v7 = vmul.f32 %v5680_v1, %v5403_v59  ;;  %v7406_v36 = vld [vmem:[#allocation41_spill] sm:$0xff] }
  0xd6   : > { %v758_v2 = vrot.slane %v543_v25, 1  ;;  %v759_v37 = vrot.slane %v549_v56, 1  ;;  %v1851_v63 = vmul.f32 %v4366_v17, %v5409_v8  ;;  %v1857_v0 = vmul.f32 %v4372_v32, %v5409_v8  ;;  %v4618_v25 = vld [vmem:[%s4912_s4 + $0x1d8] sm:$0x1] }
  0xd7   : > { %v2785_v61 = vadd.f32 %v2627_v24, %v2222_v34  ;;  %v1322_v9 = vrot.slane %v1107_v48, 2  ;;  %v1323_v39 = vrot.slane %v1113_v57, 2  ;;  %v2414_v26 = vmul.f32 %v4464_v53, %v7406_v36  ;;  %v4710_v34 = vld [vmem:[%s4912_s4 + $0x1a8] sm:$0xfc]  ;;  %v4716_v32 = vld [vmem:[%s4912_s4 + $0x1d8] sm:$0x3] }
  0xd8   : > { %v760_v23 = vsel %vm706_vm0, %v758_v2, %v759_v37  ;;  %v2065_v22 = vrot.slane %v1851_v63, 1  ;;  %v2420_v31 = vmul.f32 %v4470_v40, %v7406_v36  ;;  %v2066_v56 = vrot.slane %v1857_v0, 1  ;;  %v5920_v53 = vld [vmem:[%s4912_s4 + $0x1a8] sm:$0xff]  ;;  %v7408_v40 = vld [vmem:[#allocation44_spill] sm:$0xff]  ;;  %v423_v0 = vld [vmem:[%s4912_s4 + $0x120] sm:$0xfe] }
  0xd9   : > { %v2965_v1 = vadd.f32 %v2917_v51, %v2785_v61  ;;  %v916_v17 = vadd.f32 %v760_v23, %v304_v10  ;;  %v1324_v24 = vsel %vm1270_vm1, %v1322_v9, %v1323_v39  ;;  %v3933_v48 = vsel %vm1270_vm1, %v3931_v4, %v3932_v55  ;;  %7407 = vst [vmem:[#allocation28_spill] sm:$0xff] %v5920_v53  ;;  %v7409_v61 = vld [vmem:[#allocation42_spill] sm:$0xff]  ;;  %v429_v23 = vld [vmem:[%s4912_s4 + $0x150] sm:$0x1] }
  0xda   : > { %v2628_v57 = vrot.slane %v2414_v26, 2  ;;  %v2629_v2 = vrot.slane %v2420_v31, 2  ;;  %v3157_v37 = vmul.f32 %v4612_v45, %v7408_v40  ;;  %v2918_v10 = vmul.f32 %v5920_v53, %v7409_v61  ;;  %v226_v39 = vld [vmem:[%s4912_s4 + $0x120] sm:$0xff]  ;;  %v7410_v26 = vld [vmem:[#allocation45_spill] sm:$0xff] }
  0xdb   : > { %v3528_v63 = vadd.f32 %v3370_v21, %v2965_v1  ;;  %v1480_v51 = vadd.f32 %v1324_v24, %v916_v17  ;;  %v3163_v9 = vmul.f32 %v4618_v25, %v7408_v40  ;;  %v2067_v4 = vsel %vm706_vm0, %v2065_v22, %v2066_v56  ;;  %v987_v21 = vld [vmem:[%s4912_s4 + $0x120] sm:$0xfc]  ;;  %v993_v1 = vld [vmem:[%s4912_s4 + $0x150] sm:$0x3] }
  0xdc   : > { %v3371_v55 = vrot.slane %v3157_v37, 1  ;;  %v3720_v31 = vmul.f32 %v4710_v34, %v7410_v26  ;;  %v3726_v45 = vmul.f32 %v4716_v32, %v7410_v26  ;;  %v2630_v25 = vsel %vm1270_vm1, %v2628_v57, %v2629_v2  ;;  %v4373_v37 = vld [vmem:[%s4912_s4 + $0x180] sm:$0xfe]  ;;  %v4379_v34 = vld [vmem:[%s4912_s4 + $0x1b0] sm:$0x1] }
  0xdd   : > { %v4091_v17 = vadd.f32 %v3933_v48, %v3528_v63  ;;  %v1660_v24 = vadd.f32 %v1612_v7, %v1480_v51  ;;  %v3372_v61 = vrot.slane %v3163_v9, 1  ;;  %v305_v53 = vmul.f32 %v7382_v6, %v226_v39  ;;  %v4471_v48 = vld [vmem:[%s4912_s4 + $0x180] sm:$0xfc]  ;;  %v4477_v57 = vld [vmem:[%s4912_s4 + $0x1b0] sm:$0x3] }
  0xde   : > { %v3934_v40 = vrot.slane %v3720_v31, 2  ;;  %v550_v22 = vmul.f32 %v4920_v18, %v423_v0  ;;  %v556_v56 = vmul.f32 %v4920_v18, %v429_v23  ;;  %v3935_v26 = vrot.slane %v3726_v45, 2 }
  0xdf   : > { %4139 = vst [vmem:[%s5107_s3 + $0x80] sm:$0xff] %v4091_v17  ;;  %v2223_v32 = vadd.f32 %v2067_v4, %v1660_v24  ;;  %v1114_v59 = vmul.f32 %v4924_v19, %v987_v21  ;;  %v1120_v7 = vmul.f32 %v4924_v19, %v993_v1  ;;  %v3373_v2 = vsel %vm706_vm0, %v3371_v55, %v3372_v61  ;;  %v4619_v55 = vld [vmem:[%s4912_s4 + $0x1e0] sm:$0xfe]  ;;  %v4625_v1 = vld [vmem:[%s4912_s4 + $0x210] sm:$0x1] }
  0xe0   : > { %v761_v63 = vrot.slane %v550_v22, 1  ;;  %v762_v51 = vrot.slane %v556_v56, 1  ;;  %v1613_v9 = vmul.f32 %v5720_v11, %v4958_v35  ;;  %v1858_v4 = vmul.f32 %v4373_v37, %v4969_v41  ;;  %v4723_v22 = vld [vmem:[%s4912_s4 + $0x210] sm:$0x3] }
  0xe1   : > { %v2786_v39 = vadd.f32 %v2630_v25, %v2223_v32  ;;  %v1325_v0 = vrot.slane %v1114_v59, 2  ;;  %v1326_v23 = vrot.slane %v1120_v7, 2  ;;  %v1864_v45 = vmul.f32 %v4379_v34, %v4969_v41  ;;  %v4717_v25 = vld [vmem:[%s4912_s4 + $0x1e0] sm:$0xfc] }
  0xe2   : > { %v763_v31 = vsel %vm706_vm0, %v761_v63, %v762_v51  ;;  %v2421_v21 = vmul.f32 %v4471_v48, %v5014_v3  ;;  %v2427_v61 = vmul.f32 %v4477_v57, %v5014_v3  ;;  %v2068_v59 = vrot.slane %v1858_v4, 1  ;;  %v5960_v57 = vld [vmem:[%s4912_s4 + $0x1e0] sm:$0xff]  ;;  %v424_v63 = vld [vmem:[%s4912_s4 + $0x128] sm:$0xfe] }
  0xe3   : > { %v2966_v17 = vadd.f32 %v2918_v10, %v2786_v39  ;;  %v917_v11 = vadd.f32 %v763_v31, %v305_v53  ;;  %v1327_v24 = vsel %vm1270_vm1, %v1325_v0, %v1326_v23  ;;  %v3936_v56 = vsel %vm1270_vm1, %v3934_v40, %v3935_v26  ;;  %v227_v39 = vld [vmem:[%s4912_s4 + $0x128] sm:$0xff]  ;;  %v430_v0 = vld [vmem:[%s4912_s4 + $0x158] sm:$0x1] }
  0xe4   : > { %v2069_v37 = vrot.slane %v1864_v45, 1  ;;  %v2631_v34 = vrot.slane %v2421_v21, 2  ;;  %v2632_v32 = vrot.slane %v2427_v61, 2  ;;  %v3164_v53 = vmul.f32 %v4619_v55, %v5062_v43  ;;  %v988_v23 = vld [vmem:[%s4912_s4 + $0x128] sm:$0xfc] }
  0xe5   : > { %v3529_v7 = vadd.f32 %v3373_v2, %v2966_v17  ;;  %v1481_v48 = vadd.f32 %v1327_v24, %v917_v11  ;;  %v3170_v10 = vmul.f32 %v4625_v1, %v5062_v43  ;;  %v2919_v40 = vmul.f32 %v5960_v57, %v5045_v33  ;;  %v994_v61 = vld [vmem:[%s4912_s4 + $0x158] sm:$0x3]  ;;  %v4374_v24 = vld [vmem:[%s4912_s4 + $0x188] sm:$0xfe] }
  0xe6   : > { %v2070_v51 = vsel %vm706_vm0, %v2068_v59, %v2069_v37  ;;  %v3727_v26 = vmul.f32 %v4717_v25, %v5082_v62  ;;  %v3733_v2 = vmul.f32 %v4723_v22, %v5082_v62  ;;  %v3374_v45 = vrot.slane %v3164_v53, 1  ;;  %v4472_v37 = vld [vmem:[%s4912_s4 + $0x188] sm:$0xfc] }
  0xe7   : > { %v4092_v4 = vadd.f32 %v3936_v56, %v3529_v7  ;;  %v1661_v31 = vadd.f32 %v1613_v9, %v1481_v48  ;;  %v3375_v21 = vrot.slane %v3170_v10, 1  ;;  %v2633_v55 = vsel %vm1270_vm1, %v2631_v34, %v2632_v32  ;;  %v4380_v9 = vld [vmem:[%s4912_s4 + $0x1b8] sm:$0x1] }
  0xe8   : > { %v3937_v1 = vrot.slane %v3727_v26, 2  ;;  %v3938_v17 = vrot.slane %v3733_v2, 2  ;;  %v551_v11 = vmul.f32 %v4945_v28, %v424_v63  ;;  %v306_v25 = vmul.f32 %v4941_v27, %v227_v39  ;;  %v4478_v7 = vld [vmem:[%s4912_s4 + $0x1b8] sm:$0x3] }
  0xe9   : > { %4140 = vst [vmem:[%s5107_s3 + $0x88] sm:$0xff] %v4092_v4  ;;  %v2224_v59 = vadd.f32 %v2070_v51, %v1661_v31  ;;  %v557_v22 = vmul.f32 %v4945_v28, %v430_v0  ;;  %v1115_v56 = vmul.f32 %v4949_v29, %v988_v23  ;;  %v3376_v34 = vsel %vm706_vm0, %v3374_v45, %v3375_v21  ;;  %v4620_v4 = vld [vmem:[%s4912_s4 + $0x1e8] sm:$0xfe]  ;;  %v4626_v31 = vld [vmem:[%s4912_s4 + $0x218] sm:$0x1] }
  0xea   : > { %v3939_v32 = vsel %vm1270_vm1, %v3937_v1, %v3938_v17  ;;  %v764_v48 = vrot.slane %v551_v11, 1  ;;  %v1121_v53 = vmul.f32 %v4949_v29, %v994_v61  ;;  %v1859_v26 = vmul.f32 %v4374_v24, %v4982_v47  ;;  %v4718_v1 = vld [vmem:[%s4912_s4 + $0x1e8] sm:$0xfc]  ;;  %v4724_v17 = vld [vmem:[%s4912_s4 + $0x218] sm:$0x3] }
  0xeb   : > { %v2787_v10 = vadd.f32 %v2633_v55, %v2224_v59  ;;  %v765_v63 = vrot.slane %v557_v22, 1  ;;  %v1328_v51 = vrot.slane %v1115_v56, 2  ;;  %v1865_v39 = vmul.f32 %v4380_v9, %v4982_v47 }
  0xec   : > { %v1329_v2 = vrot.slane %v1121_v53, 2  ;;  %v2422_v0 = vmul.f32 %v4472_v37, %v5030_v14  ;;  %v2428_v23 = vmul.f32 %v4478_v7, %v5030_v14  ;;  %v1614_v61 = vmul.f32 %v5760_v44, %v4973_v42  ;;  %v228_v7 = vld [vmem:[%s4912_s4 + $0x130] sm:$0xff]  ;;  %v7411_v53 = vld [vmem:[#allocation6_spill] sm:$0xff] }
  0xed   : > { %v2967_v45 = vadd.f32 %v2919_v40, %v2787_v10  ;;  %v766_v21 = vsel %vm706_vm0, %v764_v48, %v765_v63  ;;  %v2071_v55 = vrot.slane %v1859_v26, 1  ;;  %v2072_v59 = vrot.slane %v1865_v39, 1  ;;  %v6000_v40 = vld [vmem:[%s4912_s4 + $0x1e8] sm:$0xff]  ;;  %v7412_v10 = vld [vmem:[#allocation8_spill] sm:$0xff]  ;;  %v431_v26 = vld [vmem:[%s4912_s4 + $0x160] sm:$0x1] }
  0xee   : > { %v918_v11 = vadd.f32 %v766_v21, %v306_v25  ;;  %v1330_v24 = vsel %vm1270_vm1, %v1328_v51, %v1329_v2  ;;  %v2634_v22 = vrot.slane %v2422_v0, 2  ;;  %v2635_v9 = vrot.slane %v2428_v23, 2  ;;  %v989_v2 = vld [vmem:[%s4912_s4 + $0x130] sm:$0xfc] }
  0xef   : > { %v3530_v56 = vadd.f32 %v3376_v34, %v2967_v45  ;;  %v3165_v37 = vmul.f32 %v4620_v4, %v5070_v49  ;;  %v3171_v44 = vmul.f32 %v4626_v31, %v5070_v49  ;;  %v2920_v25 = vmul.f32 %v6000_v40, %v7411_v53  ;;  %v425_v34 = vld [vmem:[%s4912_s4 + $0x130] sm:$0xfe]  ;;  %v995_v31 = vld [vmem:[%s4912_s4 + $0x160] sm:$0x3] }
  0xf0   : > { %v1482_v48 = vadd.f32 %v1330_v24, %v918_v11  ;;  %v3728_v63 = vmul.f32 %v4718_v1, %v7412_v10  ;;  %v3734_v51 = vmul.f32 %v4724_v17, %v7412_v10  ;;  %v2073_v0 = vsel %vm706_vm0, %v2071_v55, %v2072_v59  ;;  %v4375_v1 = vld [vmem:[%s4912_s4 + $0x190] sm:$0xfe]  ;;  %v4381_v55 = vld [vmem:[%s4912_s4 + $0x1c0] sm:$0x1] }
  0xf1   : > { %v4093_v39 = vadd.f32 %v3939_v32, %v3530_v56  ;;  %v3377_v23 = vrot.slane %v3165_v37, 1  ;;  %v3378_v4 = vrot.slane %v3171_v44, 1  ;;  %v2636_v21 = vsel %vm1270_vm1, %v2634_v22, %v2635_v9  ;;  %v7413_v56 = vld [vmem:[#allocation9_spill] sm:$0xff]  ;;  %v4473_v59 = vld [vmem:[%s4912_s4 + $0x190] sm:$0xfc] }
  0xf2   : > { %v1662_v45 = vadd.f32 %v1614_v61, %v1482_v48  ;;  %v3940_v11 = vrot.slane %v3728_v63, 2  ;;  %v3941_v24 = vrot.slane %v3734_v51, 2  ;;  %v307_v17 = vmul.f32 %v5003_v60, %v228_v7  ;;  %v4479_v44 = vld [vmem:[%s4912_s4 + $0x1c0] sm:$0x3]  ;;  %v7414_v51 = vld [vmem:[#allocation11_spill] sm:$0xff] }
  0xf3   : > { %4141 = vst [vmem:[%s5107_s3 + $0x90] sm:$0xff] %v4093_v39  ;;  %v552_v10 = vmul.f32 %v5039_v30, %v425_v34  ;;  %v558_v32 = vmul.f32 %v5039_v30, %v431_v26  ;;  %v1116_v53 = vmul.f32 %v7413_v56, %v989_v2  ;;  %v3379_v37 = vsel %vm706_vm0, %v3377_v23, %v3378_v4  ;;  %v7415_v30 = vld [vmem:[#allocation12_spill] sm:$0xff]  ;;  %v4627_v4 = vld [vmem:[%s4912_s4 + $0x220] sm:$0x1] }
  0xf4   : > { %v2225_v61 = vadd.f32 %v2073_v0, %v1662_v45  ;;  %v3942_v22 = vsel %vm1270_vm1, %v3940_v11, %v3941_v24  ;;  %v1122_v9 = vmul.f32 %v7413_v56, %v995_v31  ;;  %v1860_v34 = vmul.f32 %v4375_v1, %v7414_v51  ;;  %v4621_v23 = vld [vmem:[%s4912_s4 + $0x1f0] sm:$0xfe]  ;;  %v7416_v31 = vld [vmem:[#allocation10_spill] sm:$0xff]  ;;  %v7417_v11 = vld [vmem:[#allocation25_spill] sm:$0xff] }
  0xf5   : > { %v767_v7 = vrot.slane %v552_v10, 1  ;;  %v768_v48 = vrot.slane %v558_v32, 1  ;;  %v1331_v63 = vrot.slane %v1116_v53, 2  ;;  %v1866_v39 = vmul.f32 %v4381_v55, %v7414_v51  ;;  %v4719_v1 = vld [vmem:[%s4912_s4 + $0x1f0] sm:$0xfc] }
  0xf6   : > { %v2788_v26 = vadd.f32 %v2636_v21, %v2225_v61  ;;  %v1332_v2 = vrot.slane %v1122_v9, 2  ;;  %v2423_v0 = vmul.f32 %v4473_v59, %v7415_v30  ;;  %v1615_v24 = vmul.f32 %v7417_v11, %v7416_v31  ;;  %v4725_v59 = vld [vmem:[%s4912_s4 + $0x220] sm:$0x3]  ;;  %v7420_v31 = vld [vmem:[#allocation13_spill] sm:$0xff] }
  0xf7   : > { %v769_v45 = vsel %vm706_vm0, %v767_v7, %v768_v48  ;;  %v2074_v10 = vrot.slane %v1860_v34, 1  ;;  %v2429_v53 = vmul.f32 %v4479_v44, %v7415_v30  ;;  %v2075_v61 = vrot.slane %v1866_v39, 1  ;;  %v6040_v7 = vld [vmem:[%s4912_s4 + $0x1f0] sm:$0xff]  ;;  %v7419_v48 = vld [vmem:[#allocation14_spill] sm:$0xff]  ;;  %v432_v39 = vld [vmem:[%s4912_s4 + $0x168] sm:$0x1] }
  0xf8   : > { %v2968_v21 = vadd.f32 %v2920_v25, %v2788_v26  ;;  %v919_v32 = vadd.f32 %v769_v45, %v307_v17  ;;  %v1333_v55 = vsel %vm1270_vm1, %v1331_v63, %v1332_v2  ;;  %v2637_v9 = vrot.slane %v2423_v0, 2  ;;  %7418 = vst [vmem:[#allocation32_spill] sm:$0xff] %v6040_v7  ;;  %v7421_v17 = vld [vmem:[#allocation16_spill] sm:$0xff]  ;;  %v229_v26 = vld [vmem:[%s4912_s4 + $0x138] sm:$0xff] }
  0xf9   : > { %v2638_v51 = vrot.slane %v2429_v53, 2  ;;  %v3166_v34 = vmul.f32 %v4621_v23, %v7419_v48  ;;  %v3172_v44 = vmul.f32 %v4627_v4, %v7419_v48  ;;  %v2921_v25 = vmul.f32 %v6040_v7, %v7420_v31  ;;  %v426_v2 = vld [vmem:[%s4912_s4 + $0x138] sm:$0xfe] }
  0xfa   : > { %v3531_v11 = vadd.f32 %v3379_v37, %v2968_v21  ;;  %v1483_v30 = vadd.f32 %v1333_v55, %v919_v32  ;;  %v3729_v63 = vmul.f32 %v4719_v1, %v7421_v17  ;;  %v2076_v0 = vsel %vm706_vm0, %v2074_v10, %v2075_v61  ;;  %v990_v4 = vld [vmem:[%s4912_s4 + $0x138] sm:$0xfc]  ;;  %v996_v37 = vld [vmem:[%s4912_s4 + $0x168] sm:$0x3]  ;;  %v7422_v10 = vld [vmem:[#allocation18_spill] sm:$0xff] }
  0xfb   : > { %v3380_v45 = vrot.slane %v3166_v34, 1  ;;  %v3381_v53 = vrot.slane %v3172_v44, 1  ;;  %v3735_v23 = vmul.f32 %v4725_v59, %v7421_v17  ;;  %v2639_v55 = vsel %vm1270_vm1, %v2637_v9, %v2638_v51  ;;  %v4376_v31 = vld [vmem:[%s4912_s4 + $0x198] sm:$0xfe]  ;;  %v4382_v44 = vld [vmem:[%s4912_s4 + $0x1c8] sm:$0x1] }
  0xfc   : > { %v4094_v21 = vadd.f32 %v3942_v22, %v3531_v11  ;;  %v1663_v32 = vadd.f32 %v1615_v24, %v1483_v30  ;;  %v3943_v1 = vrot.slane %v3729_v63, 2  ;;  %v308_v7 = vmul.f32 %v7393_v46, %v229_v26  ;;  %v7423_v22 = vld [vmem:[#allocation19_spill] sm:$0xff]  ;;  %v4474_v51 = vld [vmem:[%s4912_s4 + $0x198] sm:$0xfc] }
  0xfd   : > { %v3382_v48 = vsel %vm706_vm0, %v3380_v45, %v3381_v53  ;;  %v553_v61 = vmul.f32 %v7422_v10, %v426_v2  ;;  %v559_v34 = vmul.f32 %v7422_v10, %v432_v39  ;;  %v3944_v17 = vrot.slane %v3735_v23, 2  ;;  %v4480_v24 = vld [vmem:[%s4912_s4 + $0x1c8] sm:$0x3]  ;;  %v7424_v45 = vld [vmem:[#allocation20_spill] sm:$0xff]  ;;  %v7425_v26 = vld [vmem:[#allocation29_spill] sm:$0xff] }
  0xfe   : > { %4142 = vst [vmem:[%s5107_s3 + $0x98] sm:$0xff] %v4094_v21  ;;  %v2226_v59 = vadd.f32 %v2076_v0, %v1663_v32  ;;  %v1117_v11 = vmul.f32 %v7423_v22, %v990_v4  ;;  %v1123_v30 = vmul.f32 %v7423_v22, %v996_v37  ;;  %v1616_v53 = vmul.f32 %v7425_v26, %v7424_v45  ;;  %v7426_v2 = vld [vmem:[#allocation22_spill] sm:$0xff]  ;;  %v4622_v4 = vld [vmem:[%s4912_s4 + $0x1f8] sm:$0xfe]  ;;  %v7427_v22 = vld [vmem:[#allocation23_spill] sm:$0xff] }
  0xff   : > { %v770_v9 = vrot.slane %v553_v61, 1  ;;  %v771_v63 = vrot.slane %v559_v34, 1  ;;  %v1861_v39 = vmul.f32 %v4376_v31, %v7426_v2  ;;  %v1867_v23 = vmul.f32 %v4382_v44, %v7426_v2  ;;  %v4628_v10 = vld [vmem:[%s4912_s4 + $0x228] sm:$0x1] }
 0x100   : > { %v2789_v46 = vadd.f32 %v2639_v55, %v2226_v59  ;;  %v1334_v21 = vrot.slane %v1117_v11, 2  ;;  %v1335_v0 = vrot.slane %v1123_v30, 2  ;;  %v2424_v61 = vmul.f32 %v4474_v51, %v7427_v22  ;;  %v4720_v11 = vld [vmem:[%s4912_s4 + $0x1f8] sm:$0xfc]  ;;  %v4726_v44 = vld [vmem:[%s4912_s4 + $0x228] sm:$0x3] }
 0x101   : > { %v772_v37 = vsel %vm706_vm0, %v770_v9, %v771_v63  ;;  %v2077_v32 = vrot.slane %v1861_v39, 1  ;;  %v2430_v34 = vmul.f32 %v4480_v24, %v7427_v22  ;;  %v2078_v59 = vrot.slane %v1867_v23, 1  ;;  %v6080_v51 = vld [vmem:[%s4912_s4 + $0x1f8] sm:$0xff]  ;;  %v7429_v24 = vld [vmem:[#allocation26_spill] sm:$0xff] }
 0x102   : > { %v2969_v26 = vadd.f32 %v2921_v25, %v2789_v46  ;;  %v920_v31 = vadd.f32 %v772_v37, %v308_v7  ;;  %v1336_v55 = vsel %vm1270_vm1, %v1334_v21, %v1335_v0  ;;  %v3945_v30 = vsel %vm1270_vm1, %v3943_v1, %v3944_v17  ;;  %7428 = vst [vmem:[#allocation33_spill] sm:$0xff] %v6080_v51  ;;  %v7430_v25 = vld [vmem:[#allocation24_spill] sm:$0xff]  ;;  %v230_v0 = vld [vmem:[%s4912_s4 + $0x140] sm:$0xff] }
 0x103   : > { %v2640_v9 = vrot.slane %v2424_v61, 2  ;;  %v2641_v63 = vrot.slane %v2430_v34, 2  ;;  %v3167_v39 = vmul.f32 %v4622_v4, %v7429_v24  ;;  %v2922_v7 = vmul.f32 %v6080_v51, %v7430_v25  ;;  %v427_v23 = vld [vmem:[%s4912_s4 + $0x140] sm:$0xfe]  ;;  %v433_v37 = vld [vmem:[%s4912_s4 + $0x170] sm:$0x1] }
 0x104   : > { %v3532_v45 = vadd.f32 %v3382_v48, %v2969_v26  ;;  %v1484_v46 = vadd.f32 %v1336_v55, %v920_v31  ;;  %v3173_v21 = vmul.f32 %v4628_v10, %v7429_v24  ;;  %v2079_v17 = vsel %vm706_vm0, %v2077_v32, %v2078_v59  ;;  %v7431_v61 = vld [vmem:[#allocation27_spill] sm:$0xff]  ;;  %v991_v48 = vld [vmem:[%s4912_s4 + $0x140] sm:$0xfc]  ;;  %v997_v26 = vld [vmem:[%s4912_s4 + $0x170] sm:$0x3] }
 0x105   : > { %v3383_v1 = vrot.slane %v3167_v39, 1  ;;  %v3730_v34 = vmul.f32 %v4720_v11, %v7431_v61  ;;  %v3736_v4 = vmul.f32 %v4726_v44, %v7431_v61  ;;  %v2642_v10 = vsel %vm1270_vm1, %v2640_v9, %v2641_v63  ;;  %v4377_v39 = vld [vmem:[%s4912_s4 + $0x1a0] sm:$0xfe]  ;;  %v4383_v11 = vld [vmem:[%s4912_s4 + $0x1d0] sm:$0x1] }
 0x106   : > { %v4095_v31 = vadd.f32 %v3945_v30, %v3532_v45  ;;  %v1664_v55 = vadd.f32 %v1616_v53, %v1484_v46  ;;  %v3384_v25 = vrot.slane %v3173_v21, 1  ;;  %v309_v51 = vmul.f32 %v7372_v52, %v230_v0  ;;  %v4475_v53 = vld [vmem:[%s4912_s4 + $0x1a0] sm:$0xfc]  ;;  %v4481_v30 = vld [vmem:[%s4912_s4 + $0x1d0] sm:$0x3] }
 0x107   : > { %v3946_v24 = vrot.slane %v3730_v34, 2  ;;  %v554_v32 = vmul.f32 %v7371_v15, %v427_v23  ;;  %v560_v59 = vmul.f32 %v7371_v15, %v433_v37  ;;  %v3947_v61 = vrot.slane %v3736_v4, 2 }
 0x108   : > { %4143 = vst [vmem:[%s5107_s3 + $0xa0] sm:$0xff] %v4095_v31  ;;  %v2227_v44 = vadd.f32 %v2079_v17, %v1664_v55  ;;  %v1118_v22 = vmul.f32 %v7403_v16, %v991_v48  ;;  %v1124_v45 = vmul.f32 %v7403_v16, %v997_v26  ;;  %v3385_v9 = vsel %vm706_vm0, %v3383_v1, %v3384_v25  ;;  %v4623_v1 = vld [vmem:[%s4912_s4 + $0x200] sm:$0xfe]  ;;  %v4629_v26 = vld [vmem:[%s4912_s4 + $0x230] sm:$0x1] }
 0x109   : > { %v773_v63 = vrot.slane %v554_v32, 1  ;;  %v774_v46 = vrot.slane %v560_v59, 1  ;;  %v1617_v21 = vmul.f32 %v5880_v50, %v7404_v5  ;;  %v1862_v17 = vmul.f32 %v4377_v39, %v7376_v20  ;;  %v4727_v32 = vld [vmem:[%s4912_s4 + $0x230] sm:$0x3] }
 0x10a   : > { %v2790_v0 = vadd.f32 %v2642_v10, %v2227_v44  ;;  %v1337_v23 = vrot.slane %v1118_v22, 2  ;;  %v1338_v37 = vrot.slane %v1124_v45, 2  ;;  %v1868_v4 = vmul.f32 %v4383_v11, %v7376_v20  ;;  %v4721_v10 = vld [vmem:[%s4912_s4 + $0x200] sm:$0xfc] }
 0x10b   : > { %v775_v34 = vsel %vm706_vm0, %v773_v63, %v774_v46  ;;  %v2425_v48 = vmul.f32 %v4475_v53, %v7377_v13  ;;  %v2431_v25 = vmul.f32 %v4481_v30, %v7377_v13  ;;  %v2080_v22 = vrot.slane %v1862_v17, 1  ;;  %v6120_v30 = vld [vmem:[%s4912_s4 + $0x200] sm:$0xff]  ;;  %v428_v46 = vld [vmem:[%s4912_s4 + $0x148] sm:$0xfe]  ;;  %v434_v17 = vld [vmem:[%s4912_s4 + $0x178] sm:$0x1] }
 0x10c   : > { %v2970_v31 = vadd.f32 %v2922_v7, %v2790_v0  ;;  %v921_v50 = vadd.f32 %v775_v34, %v309_v51  ;;  %v1339_v55 = vsel %vm1270_vm1, %v1337_v23, %v1338_v37  ;;  %v3948_v59 = vsel %vm1270_vm1, %v3946_v24, %v3947_v61  ;;  %v7432_v7 = vld [vmem:[#allocation36_spill] sm:$0xff]  ;;  %v7433_v23 = vld [vmem:[#allocation35_spill] sm:$0xff] }
 0x10d   : > { %v2081_v39 = vrot.slane %v1868_v4, 1  ;;  %v2643_v11 = vrot.slane %v2425_v48, 2  ;;  %v2644_v44 = vrot.slane %v2431_v25, 2  ;;  %v3168_v51 = vmul.f32 %v4623_v1, %v7432_v7  ;;  %v231_v37 = vld [vmem:[%s4912_s4 + $0x148] sm:$0xff] }
 0x10e   : > { %v3533_v45 = vadd.f32 %v3385_v9, %v2970_v31  ;;  %v1485_v53 = vadd.f32 %v1339_v55, %v921_v50  ;;  %v3174_v63 = vmul.f32 %v4629_v26, %v7432_v7  ;;  %v2923_v24 = vmul.f32 %v6120_v30, %v7433_v23  ;;  %v992_v34 = vld [vmem:[%s4912_s4 + $0x148] sm:$0xfc]  ;;  %v998_v26 = vld [vmem:[%s4912_s4 + $0x178] sm:$0x3] }
 0x10f   : > { %v2082_v0 = vsel %vm706_vm0, %v2080_v22, %v2081_v39  ;;  %v3731_v61 = vmul.f32 %v4721_v10, %v7379_v58  ;;  %v3737_v9 = vmul.f32 %v4727_v32, %v7379_v58  ;;  %v3386_v25 = vrot.slane %v3168_v51, 1  ;;  %v4378_v10 = vld [vmem:[%s4912_s4 + $0x1a8] sm:$0xfe] }
 0x110   : > { %v4096_v4 = vadd.f32 %v3948_v59, %v3533_v45  ;;  %v1665_v48 = vadd.f32 %v1617_v21, %v1485_v53  ;;  %v3387_v1 = vrot.slane %v3174_v63, 1  ;;  %v2645_v31 = vsel %vm1270_vm1, %v2643_v11, %v2644_v44  ;;  %v4384_v21 = vld [vmem:[%s4912_s4 + $0x1d8] sm:$0x1]  ;;  %v4476_v45 = vld [vmem:[%s4912_s4 + $0x1a8] sm:$0xfc] }
 0x111   : > { %v3949_v50 = vrot.slane %v3731_v61, 2  ;;  %v3950_v55 = vrot.slane %v3737_v9, 2  ;;  %v555_v22 = vmul.f32 %v5383_v38, %v428_v46  ;;  %v310_v39 = vmul.f32 %v5379_v12, %v231_v37  ;;  %v4482_v53 = vld [vmem:[%s4912_s4 + $0x1d8] sm:$0x3] }
 0x112   : > { %4144 = vst [vmem:[%s5107_s3 + $0xa8] sm:$0xff] %v4096_v4  ;;  %v2228_v32 = vadd.f32 %v2082_v0, %v1665_v48  ;;  %v561_v58 = vmul.f32 %v5383_v38, %v434_v17  ;;  %v1119_v59 = vmul.f32 %v5389_v54, %v992_v34  ;;  %v3388_v11 = vsel %vm706_vm0, %v3386_v25, %v3387_v1  ;;  %v4624_v48 = vld [vmem:[%s4912_s4 + $0x208] sm:$0xfe]  ;;  %v4630_v25 = vld [vmem:[%s4912_s4 + $0x238] sm:$0x1] }
 0x113   : > { %v3951_v44 = vsel %vm1270_vm1, %v3949_v50, %v3950_v55  ;;  %v776_v51 = vrot.slane %v555_v22, 1  ;;  %v1125_v63 = vmul.f32 %v5389_v54, %v998_v26  ;;  %v1863_v9 = vmul.f32 %v4378_v10, %v5409_v8  ;;  %v7434_v50 = vld [vmem:[#allocation39_spill] sm:$0xff]  ;;  %v4728_v10 = vld [vmem:[%s4912_s4 + $0x238] sm:$0x3] }
 0x114   : > { %v2791_v46 = vadd.f32 %v2645_v31, %v2228_v32  ;;  %v777_v0 = vrot.slane %v561_v58, 1  ;;  %v1340_v61 = vrot.slane %v1119_v59, 2  ;;  %v1869_v17 = vmul.f32 %v4384_v21, %v5409_v8  ;;  %v7435_v31 = vld [vmem:[#allocation28_spill] sm:$0xff]  ;;  %v4722_v22 = vld [vmem:[%s4912_s4 + $0x208] sm:$0xfc] }
 0x115   : > { %v1341_v37 = vrot.slane %v1125_v63, 2  ;;  %v2426_v34 = vmul.f32 %v4476_v45, %v7406_v36  ;;  %v2432_v4 = vmul.f32 %v4482_v53, %v7406_v36  ;;  %v1618_v58 = vmul.f32 %v7435_v31, %v7434_v50  ;;  %v7437_v36 = vld [vmem:[#allocation42_spill] sm:$0xff] }
 0x116   : > { %v2971_v1 = vadd.f32 %v2923_v24, %v2791_v46  ;;  %v778_v26 = vsel %vm706_vm0, %v776_v51, %v777_v0  ;;  %v2083_v55 = vrot.slane %v1863_v9, 1  ;;  %v2084_v21 = vrot.slane %v1869_v17, 1  ;;  %v6160_v24 = vld [vmem:[%s4912_s4 + $0x208] sm:$0xff]  ;;  %v7436_v51 = vld [vmem:[#allocation44_spill] sm:$0xff]  ;;  %v232_v9 = vld [vmem:[%s4912_s4 + $0x180] sm:$0xff] }
 0x117   : > { %v922_v32 = vadd.f32 %v778_v26, %v310_v39  ;;  %v1342_v59 = vsel %vm1270_vm1, %v1340_v61, %v1341_v37  ;;  %v2646_v45 = vrot.slane %v2426_v34, 2  ;;  %v2647_v63 = vrot.slane %v2432_v4, 2  ;;  %v7438_v26 = vld [vmem:[#allocation45_spill] sm:$0xff]  ;;  %v441_v17 = vld [vmem:[%s4912_s4 + $0x1b0] sm:$0x1] }
 0x118   : > { %v3534_v53 = vadd.f32 %v3388_v11, %v2971_v1  ;;  %v3169_v46 = vmul.f32 %v4624_v48, %v7436_v51  ;;  %v3175_v0 = vmul.f32 %v4630_v25, %v7436_v51  ;;  %v2924_v39 = vmul.f32 %v6160_v24, %v7437_v36  ;;  %v435_v11 = vld [vmem:[%s4912_s4 + $0x180] sm:$0xfe] }
 0x119   : > { %v1486_v31 = vadd.f32 %v1342_v59, %v922_v32  ;;  %v3732_v61 = vmul.f32 %v4722_v22, %v7438_v26  ;;  %v3738_v37 = vmul.f32 %v4728_v10, %v7438_v26  ;;  %v999_v34 = vld [vmem:[%s4912_s4 + $0x180] sm:$0xfc]  ;;  %v2085_v48 = vsel %vm706_vm0, %v2083_v55, %v2084_v21  ;;  %v1005_v32 = vld [vmem:[%s4912_s4 + $0x1b0] sm:$0x3] }
 0x11a   : > { %v4097_v4 = vadd.f32 %v3951_v44, %v3534_v53  ;;  %v3389_v25 = vrot.slane %v3169_v46, 1  ;;  %v3390_v1 = vrot.slane %v3175_v0, 1  ;;  %v2648_v36 = vsel %vm1270_vm1, %v2646_v45, %v2647_v63  ;;  %v4385_v22 = vld [vmem:[%s4912_s4 + $0x1e0] sm:$0xfe]  ;;  %v4391_v55 = vld [vmem:[%s4912_s4 + $0x210] sm:$0x1] }
 0x11b   : > { %v1666_v59 = vadd.f32 %v1618_v58, %v1486_v31  ;;  %v3952_v51 = vrot.slane %v3732_v61, 2  ;;  %v3953_v8 = vrot.slane %v3738_v37, 2  ;;  %v311_v10 = vmul.f32 %v7382_v6, %v232_v9  ;;  %v4483_v21 = vld [vmem:[%s4912_s4 + $0x1e0] sm:$0xfc]  ;;  %v4489_v0 = vld [vmem:[%s4912_s4 + $0x210] sm:$0x3] }
 0x11c   : > { %4145 = vst [vmem:[%s5107_s3 + $0xb0] sm:$0xff] %v4097_v4  ;;  %v562_v26 = vmul.f32 %v4920_v18, %v435_v11  ;;  %v568_v44 = vmul.f32 %v4920_v18, %v441_v17  ;;  %v1126_v53 = vmul.f32 %v4924_v19, %v999_v34  ;;  %v3391_v46 = vsel %vm706_vm0, %v3389_v25, %v3390_v1  ;;  %v4637_v25 = vld [vmem:[%s4912_s4 + $0x270] sm:$0x1] }
 0x11d   : > { %v2229_v58 = vadd.f32 %v2085_v48, %v1666_v59  ;;  %v3954_v45 = vsel %vm1270_vm1, %v3952_v51, %v3953_v8  ;;  %v1132_v63 = vmul.f32 %v4924_v19, %v1005_v32  ;;  %v1870_v37 = vmul.f32 %v4385_v22, %v4969_v41  ;;  %v4631_v48 = vld [vmem:[%s4912_s4 + $0x240] sm:$0xfe] }
 0x11e   : > { %v779_v9 = vrot.slane %v562_v26, 1  ;;  %v780_v31 = vrot.slane %v568_v44, 1  ;;  %v1343_v61 = vrot.slane %v1126_v53, 2  ;;  %v1876_v34 = vmul.f32 %v4391_v55, %v4969_v41  ;;  %v4729_v32 = vld [vmem:[%s4912_s4 + $0x240] sm:$0xfc] }
 0x11f   : > { %v2792_v11 = vadd.f32 %v2648_v36, %v2229_v58  ;;  %v1344_v17 = vrot.slane %v1132_v63, 2  ;;  %v2433_v4 = vmul.f32 %v4483_v21, %v5014_v3  ;;  %v1619_v51 = vmul.f32 %v5960_v57, %v4958_v35  ;;  %v4735_v53 = vld [vmem:[%s4912_s4 + $0x270] sm:$0x3]  ;;  %v6200_v58 = vld [vmem:[%s4912_s4 + $0x240] sm:$0xff] }
 0x120   : > { %v781_v8 = vsel %vm706_vm0, %v779_v9, %v780_v31  ;;  %v2086_v26 = vrot.slane %v1870_v37, 1  ;;  %v2439_v1 = vmul.f32 %v4489_v0, %v5014_v3  ;;  %v2087_v44 = vrot.slane %v1876_v34, 1  ;;  %v233_v31 = vld [vmem:[%s4912_s4 + $0x188] sm:$0xff]  ;;  %v442_v37 = vld [vmem:[%s4912_s4 + $0x1b8] sm:$0x1] }
 0x121   : > { %v2972_v36 = vadd.f32 %v2924_v39, %v2792_v11  ;;  %v923_v59 = vadd.f32 %v781_v8, %v311_v10  ;;  %v1345_v22 = vsel %vm1270_vm1, %v1343_v61, %v1344_v17  ;;  %v2649_v55 = vrot.slane %v2433_v4, 2  ;;  %v436_v61 = vld [vmem:[%s4912_s4 + $0x188] sm:$0xfe] }
 0x122   : > { %v2650_v21 = vrot.slane %v2439_v1, 2  ;;  %v3176_v57 = vmul.f32 %v4631_v48, %v5062_v43  ;;  %v3182_v63 = vmul.f32 %v4637_v25, %v5062_v43  ;;  %v2925_v39 = vmul.f32 %v6200_v58, %v5045_v33  ;;  %v1000_v48 = vld [vmem:[%s4912_s4 + $0x188] sm:$0xfc] }
 0x123   : > { %v3535_v0 = vadd.f32 %v3391_v46, %v2972_v36  ;;  %v1487_v9 = vadd.f32 %v1345_v22, %v923_v59  ;;  %v3739_v10 = vmul.f32 %v4729_v32, %v5082_v62  ;;  %v2088_v11 = vsel %vm706_vm0, %v2086_v26, %v2087_v44  ;;  %v1006_v46 = vld [vmem:[%s4912_s4 + $0x1b8] sm:$0x3]  ;;  %v4386_v36 = vld [vmem:[%s4912_s4 + $0x1e8] sm:$0xfe] }
 0x124   : > { %v3392_v17 = vrot.slane %v3176_v57, 1  ;;  %v3393_v34 = vrot.slane %v3182_v63, 1  ;;  %v3745_v4 = vmul.f32 %v4735_v53, %v5082_v62  ;;  %v2651_v1 = vsel %vm1270_vm1, %v2649_v55, %v2650_v21  ;;  %v4392_v57 = vld [vmem:[%s4912_s4 + $0x218] sm:$0x1]  ;;  %v4484_v55 = vld [vmem:[%s4912_s4 + $0x1e8] sm:$0xfc] }
 0x125   : > { %v4098_v25 = vadd.f32 %v3954_v45, %v3535_v0  ;;  %v1667_v8 = vadd.f32 %v1619_v51, %v1487_v9  ;;  %v3955_v32 = vrot.slane %v3739_v10, 2  ;;  %v312_v22 = vmul.f32 %v4941_v27, %v233_v31  ;;  %v4490_v21 = vld [vmem:[%s4912_s4 + $0x218] sm:$0x3] }
 0x126   : > { %v3394_v59 = vsel %vm706_vm0, %v3392_v17, %v3393_v34  ;;  %v563_v26 = vmul.f32 %v4945_v28, %v436_v61  ;;  %v569_v44 = vmul.f32 %v4945_v28, %v442_v37  ;;  %v3956_v63 = vrot.slane %v3745_v4, 2  ;;  %v4632_v34 = vld [vmem:[%s4912_s4 + $0x248] sm:$0xfe] }
 0x127   : > { %4146 = vst [vmem:[%s5107_s3 + $0xb8] sm:$0xff] %v4098_v25  ;;  %v2230_v53 = vadd.f32 %v2088_v11, %v1667_v8  ;;  %v1127_v45 = vmul.f32 %v4949_v29, %v1000_v48  ;;  %v1133_v51 = vmul.f32 %v4949_v29, %v1006_v46  ;;  %v1620_v10 = vmul.f32 %v6000_v40, %v4973_v42  ;;  %v4638_v8 = vld [vmem:[%s4912_s4 + $0x278] sm:$0x1] }
 0x128   : > { %v782_v0 = vrot.slane %v563_v26, 1  ;;  %v783_v9 = vrot.slane %v569_v44, 1  ;;  %v1871_v31 = vmul.f32 %v4386_v36, %v4982_v47  ;;  %v1877_v17 = vmul.f32 %v4392_v57, %v4982_v47  ;;  %v4730_v44 = vld [vmem:[%s4912_s4 + $0x248] sm:$0xfc]  ;;  %v4736_v57 = vld [vmem:[%s4912_s4 + $0x278] sm:$0x3] }
 0x129   : > { %v2793_v61 = vadd.f32 %v2651_v1, %v2230_v53  ;;  %v1346_v37 = vrot.slane %v1127_v45, 2  ;;  %v1347_v11 = vrot.slane %v1133_v51, 2  ;;  %v2434_v46 = vmul.f32 %v4484_v55, %v5030_v14  ;;  %v6240_v55 = vld [vmem:[%s4912_s4 + $0x248] sm:$0xff] }
 0x12a   : > { %v784_v4 = vsel %vm706_vm0, %v782_v0, %v783_v9  ;;  %v2089_v48 = vrot.slane %v1871_v31, 1  ;;  %v2440_v25 = vmul.f32 %v4490_v21, %v5030_v14  ;;  %v2090_v26 = vrot.slane %v1877_v17, 1  ;;  %7439 = vst [vmem:[#allocation34_spill] sm:$0xff] %v6240_v55  ;;  %v7440_v9 = vld [vmem:[#allocation6_spill] sm:$0xff]  ;;  %v7441_v17 = vld [vmem:[#allocation8_spill] sm:$0xff] }
 0x12b   : > { %v2973_v40 = vadd.f32 %v2925_v39, %v2793_v61  ;;  %v924_v36 = vadd.f32 %v784_v4, %v312_v22  ;;  %v1348_v1 = vsel %vm1270_vm1, %v1346_v37, %v1347_v11  ;;  %v3957_v53 = vsel %vm1270_vm1, %v3955_v32, %v3956_v63  ;;  %v234_v61 = vld [vmem:[%s4912_s4 + $0x190] sm:$0xff]  ;;  %v443_v11 = vld [vmem:[%s4912_s4 + $0x1c0] sm:$0x1] }
 0x12c   : > { %v2652_v45 = vrot.slane %v2434_v46, 2  ;;  %v2653_v51 = vrot.slane %v2440_v25, 2  ;;  %v3177_v21 = vmul.f32 %v4632_v34, %v5070_v49  ;;  %v2926_v22 = vmul.f32 %v6240_v55, %v7440_v9  ;;  %v437_v37 = vld [vmem:[%s4912_s4 + $0x190] sm:$0xfe]  ;;  %v1007_v46 = vld [vmem:[%s4912_s4 + $0x1c0] sm:$0x3] }
 0x12d   : > { %v3536_v0 = vadd.f32 %v3394_v59, %v2973_v40  ;;  %v1488_v39 = vadd.f32 %v1348_v1, %v924_v36  ;;  %v3183_v31 = vmul.f32 %v4638_v8, %v5070_v49  ;;  %v2091_v32 = vsel %vm706_vm0, %v2089_v48, %v2090_v26  ;;  %v1001_v59 = vld [vmem:[%s4912_s4 + $0x190] sm:$0xfc]  ;;  %v7442_v49 = vld [vmem:[#allocation5_spill] sm:$0xff] }
 0x12e   : > { %v3395_v63 = vrot.slane %v3177_v21, 1  ;;  %v3740_v4 = vmul.f32 %v4730_v44, %v7441_v17  ;;  %v3746_v34 = vmul.f32 %v4736_v57, %v7441_v17  ;;  %v2654_v8 = vsel %vm1270_vm1, %v2652_v45, %v2653_v51  ;;  %v4387_v21 = vld [vmem:[%s4912_s4 + $0x1f0] sm:$0xfe]  ;;  %v4393_v44 = vld [vmem:[%s4912_s4 + $0x220] sm:$0x1] }
 0x12f   : > { %v4099_v25 = vadd.f32 %v3957_v53, %v3536_v0  ;;  %v1668_v40 = vadd.f32 %v1620_v10, %v1488_v39  ;;  %v3396_v36 = vrot.slane %v3183_v31, 1  ;;  %v313_v9 = vmul.f32 %v5003_v60, %v234_v61  ;;  %v4485_v53 = vld [vmem:[%s4912_s4 + $0x1f0] sm:$0xfc]  ;;  %v4491_v45 = vld [vmem:[%s4912_s4 + $0x220] sm:$0x3] }
 0x130   : > { %v3958_v1 = vrot.slane %v3740_v4, 2  ;;  %v564_v48 = vmul.f32 %v7442_v49, %v437_v37  ;;  %v570_v26 = vmul.f32 %v7442_v49, %v443_v11  ;;  %v3959_v17 = vrot.slane %v3746_v34, 2  ;;  %v7443_v31 = vld [vmem:[#allocation10_spill] sm:$0xff]  ;;  %v7444_v61 = vld [vmem:[#allocation32_spill] sm:$0xff]  ;;  %v7445_v34 = vld [vmem:[#allocation11_spill] sm:$0xff] }
 0x131   : > { %4147 = vst [vmem:[%s5107_s3 + $0xc0] sm:$0xff] %v4099_v25  ;;  %v2231_v57 = vadd.f32 %v2091_v32, %v1668_v40  ;;  %v1128_v55 = vmul.f32 %v7413_v56, %v1001_v59  ;;  %v1134_v10 = vmul.f32 %v7413_v56, %v1007_v46  ;;  %v3397_v51 = vsel %vm706_vm0, %v3395_v63, %v3396_v36  ;;  %v7446_v40 = vld [vmem:[#allocation12_spill] sm:$0xff] }
 0x132   : > { %v785_v0 = vrot.slane %v564_v48, 1  ;;  %v786_v39 = vrot.slane %v570_v26, 1  ;;  %v1621_v37 = vmul.f32 %v7444_v61, %v7443_v31  ;;  %v1872_v59 = vmul.f32 %v4387_v21, %v7445_v34  ;;  %v4633_v36 = vld [vmem:[%s4912_s4 + $0x250] sm:$0xfe]  ;;  %v4639_v48 = vld [vmem:[%s4912_s4 + $0x280] sm:$0x1] }
 0x133   : > { %v2794_v11 = vadd.f32 %v2654_v8, %v2231_v57  ;;  %v1349_v32 = vrot.slane %v1128_v55, 2  ;;  %v1350_v4 = vrot.slane %v1134_v10, 2  ;;  %v1878_v46 = vmul.f32 %v4393_v44, %v7445_v34  ;;  %v4731_v57 = vld [vmem:[%s4912_s4 + $0x250] sm:$0xfc]  ;;  %v4737_v21 = vld [vmem:[%s4912_s4 + $0x280] sm:$0x3] }
 0x134   : > { %v787_v25 = vsel %vm706_vm0, %v785_v0, %v786_v39  ;;  %v2435_v56 = vmul.f32 %v4485_v53, %v7446_v40  ;;  %v2441_v63 = vmul.f32 %v4491_v45, %v7446_v40  ;;  %v2092_v55 = vrot.slane %v1872_v59, 1  ;;  %v6280_v31 = vld [vmem:[%s4912_s4 + $0x250] sm:$0xff]  ;;  %v7449_v59 = vld [vmem:[#allocation13_spill] sm:$0xff] }
 0x135   : > { %v2974_v26 = vadd.f32 %v2926_v22, %v2794_v11  ;;  %v925_v61 = vadd.f32 %v787_v25, %v313_v9  ;;  %v1351_v8 = vsel %vm1270_vm1, %v1349_v32, %v1350_v4  ;;  %v3960_v10 = vsel %vm1270_vm1, %v3958_v1, %v3959_v17  ;;  %7447 = vst [vmem:[#allocation43_spill] sm:$0xff] %v6280_v31  ;;  %v7448_v22 = vld [vmem:[#allocation14_spill] sm:$0xff]  ;;  %v438_v32 = vld [vmem:[%s4912_s4 + $0x198] sm:$0xfe]  ;;  %v7450_v1 = vld [vmem:[#allocation16_spill] sm:$0xff] }
 0x136   : > { %v2093_v44 = vrot.slane %v1878_v46, 1  ;;  %v2655_v53 = vrot.slane %v2435_v56, 2  ;;  %v2656_v0 = vrot.slane %v2441_v63, 2  ;;  %v3178_v9 = vmul.f32 %v4633_v36, %v7448_v22  ;;  %v235_v25 = vld [vmem:[%s4912_s4 + $0x198] sm:$0xff]  ;;  %v444_v46 = vld [vmem:[%s4912_s4 + $0x1c8] sm:$0x1] }
 0x137   : > { %v3537_v39 = vadd.f32 %v3397_v51, %v2974_v26  ;;  %v1489_v45 = vadd.f32 %v1351_v8, %v925_v61  ;;  %v3184_v11 = vmul.f32 %v4639_v48, %v7448_v22  ;;  %v2927_v17 = vmul.f32 %v6280_v31, %v7449_v59  ;;  %v1002_v63 = vld [vmem:[%s4912_s4 + $0x198] sm:$0xfc]  ;;  %v1008_v8 = vld [vmem:[%s4912_s4 + $0x1c8] sm:$0x3]  ;;  %v7451_v22 = vld [vmem:[#allocation18_spill] sm:$0xff] }
 0x138   : > { %v2094_v4 = vsel %vm706_vm0, %v2092_v55, %v2093_v44  ;;  %v3741_v56 = vmul.f32 %v4731_v57, %v7450_v1  ;;  %v3747_v51 = vmul.f32 %v4737_v21, %v7450_v1  ;;  %v3398_v48 = vrot.slane %v3178_v9, 1  ;;  %v4388_v57 = vld [vmem:[%s4912_s4 + $0x1f8] sm:$0xfe]  ;;  %v4492_v9 = vld [vmem:[%s4912_s4 + $0x228] sm:$0x3] }
 0x139   : > { %v4100_v26 = vadd.f32 %v3960_v10, %v3537_v39  ;;  %v1669_v36 = vadd.f32 %v1621_v37, %v1489_v45  ;;  %v3399_v61 = vrot.slane %v3184_v11, 1  ;;  %v2657_v55 = vsel %vm1270_vm1, %v2655_v53, %v2656_v0  ;;  %v7452_v1 = vld [vmem:[#allocation17_spill] sm:$0xff]  ;;  %v7453_v10 = vld [vmem:[#allocation19_spill] sm:$0xff] }
 0x13a   : > { %v3961_v44 = vrot.slane %v3741_v56, 2  ;;  %v3962_v59 = vrot.slane %v3747_v51, 2  ;;  %v565_v31 = vmul.f32 %v7451_v22, %v438_v32  ;;  %v314_v40 = vmul.f32 %v7452_v1, %v235_v25  ;;  %v4394_v37 = vld [vmem:[%s4912_s4 + $0x228] sm:$0x1]  ;;  %v4486_v45 = vld [vmem:[%s4912_s4 + $0x1f8] sm:$0xfc] }
 0x13b   : > { %4148 = vst [vmem:[%s5107_s3 + $0xc8] sm:$0xff] %v4100_v26  ;;  %v2232_v21 = vadd.f32 %v2094_v4, %v1669_v36  ;;  %v571_v34 = vmul.f32 %v7451_v22, %v444_v46  ;;  %v1129_v39 = vmul.f32 %v7453_v10, %v1002_v63  ;;  %v3400_v53 = vsel %vm706_vm0, %v3398_v48, %v3399_v61  ;;  %v7454_v26 = vld [vmem:[#allocation23_spill] sm:$0xff]  ;;  %v4634_v61 = vld [vmem:[%s4912_s4 + $0x258] sm:$0xfe] }
 0x13c   : > { %v3963_v0 = vsel %vm1270_vm1, %v3961_v44, %v3962_v59  ;;  %v788_v11 = vrot.slane %v565_v31, 1  ;;  %v1135_v32 = vmul.f32 %v7453_v10, %v1008_v8  ;;  %v1873_v25 = vmul.f32 %v4388_v57, %v7426_v2  ;;  %v4640_v59 = vld [vmem:[%s4912_s4 + $0x288] sm:$0x1]  ;;  %v7455_v44 = vld [vmem:[#allocation20_spill] sm:$0xff] }
 0x13d   : > { %v2795_v4 = vadd.f32 %v2657_v55, %v2232_v21  ;;  %v789_v56 = vrot.slane %v571_v34, 1  ;;  %v1352_v51 = vrot.slane %v1129_v39, 2  ;;  %v1879_v63 = vmul.f32 %v4394_v37, %v7426_v2  ;;  %v7456_v55 = vld [vmem:[#allocation33_spill] sm:$0xff]  ;;  %v4738_v57 = vld [vmem:[%s4912_s4 + $0x288] sm:$0x3] }
 0x13e   : > { %v1353_v46 = vrot.slane %v1135_v32, 2  ;;  %v2436_v36 = vmul.f32 %v4486_v45, %v7454_v26  ;;  %v2442_v48 = vmul.f32 %v4492_v9, %v7454_v26  ;;  %v1622_v34 = vmul.f32 %v7456_v55, %v7455_v44  ;;  %v4732_v39 = vld [vmem:[%s4912_s4 + $0x258] sm:$0xfc]  ;;  %v7459_v44 = vld [vmem:[#allocation24_spill] sm:$0xff] }
 0x13f   : > { %v2975_v31 = vadd.f32 %v2927_v17, %v2795_v4  ;;  %v790_v8 = vsel %vm706_vm0, %v788_v11, %v789_v56  ;;  %v2095_v21 = vrot.slane %v1873_v25, 1  ;;  %v2096_v32 = vrot.slane %v1879_v63, 1  ;;  %v6320_v17 = vld [vmem:[%s4912_s4 + $0x258] sm:$0xff]  ;;  %v7458_v11 = vld [vmem:[#allocation26_spill] sm:$0xff]  ;;  %v445_v63 = vld [vmem:[%s4912_s4 + $0x1d0] sm:$0x1] }
 0x140   : > { %v926_v37 = vadd.f32 %v790_v8, %v314_v40  ;;  %v1354_v45 = vsel %vm1270_vm1, %v1352_v51, %v1353_v46  ;;  %v2658_v9 = vrot.slane %v2436_v36, 2  ;;  %v2659_v2 = vrot.slane %v2442_v48, 2  ;;  %7457 = vst [vmem:[#allocation2_spill] sm:$0xff] %v6320_v17  ;;  %v236_v25 = vld [vmem:[%s4912_s4 + $0x1a0] sm:$0xff]  ;;  %v7460_v8 = vld [vmem:[#allocation27_spill] sm:$0xff] }
 0x141   : > { %v3538_v26 = vadd.f32 %v3400_v53, %v2975_v31  ;;  %v3179_v4 = vmul.f32 %v4634_v61, %v7458_v11  ;;  %v3185_v56 = vmul.f32 %v4640_v59, %v7458_v11  ;;  %v2928_v40 = vmul.f32 %v6320_v17, %v7459_v44  ;;  %v439_v53 = vld [vmem:[%s4912_s4 + $0x1a0] sm:$0xfe] }
 0x142   : > { %v1490_v55 = vadd.f32 %v1354_v45, %v926_v37  ;;  %v3742_v51 = vmul.f32 %v4732_v39, %v7460_v8  ;;  %v3748_v46 = vmul.f32 %v4738_v57, %v7460_v8  ;;  %v1003_v36 = vld [vmem:[%s4912_s4 + $0x1a0] sm:$0xfc]  ;;  %v2097_v61 = vsel %vm706_vm0, %v2095_v21, %v2096_v32  ;;  %v1009_v37 = vld [vmem:[%s4912_s4 + $0x1d0] sm:$0x3] }
 0x143   : > { %v4101_v48 = vadd.f32 %v3963_v0, %v3538_v26  ;;  %v3401_v59 = vrot.slane %v3179_v4, 1  ;;  %v3402_v31 = vrot.slane %v3185_v56, 1  ;;  %v2660_v44 = vsel %vm1270_vm1, %v2658_v9, %v2659_v2  ;;  %v4389_v39 = vld [vmem:[%s4912_s4 + $0x200] sm:$0xfe]  ;;  %v4395_v21 = vld [vmem:[%s4912_s4 + $0x230] sm:$0x1] }
 0x144   : > { %v1670_v45 = vadd.f32 %v1622_v34, %v1490_v55  ;;  %v3964_v11 = vrot.slane %v3742_v51, 2  ;;  %v3965_v17 = vrot.slane %v3748_v46, 2  ;;  %v315_v57 = vmul.f32 %v7372_v52, %v236_v25  ;;  %v4487_v32 = vld [vmem:[%s4912_s4 + $0x200] sm:$0xfc]  ;;  %v4493_v56 = vld [vmem:[%s4912_s4 + $0x230] sm:$0x3] }
 0x145   : > { %4149 = vst [vmem:[%s5107_s3 + $0xd0] sm:$0xff] %v4101_v48  ;;  %v566_v8 = vmul.f32 %v7371_v15, %v439_v53  ;;  %v572_v0 = vmul.f32 %v7371_v15, %v445_v63  ;;  %v1130_v26 = vmul.f32 %v7403_v16, %v1003_v36  ;;  %v3403_v4 = vsel %vm706_vm0, %v3401_v59, %v3402_v31  ;;  %v4641_v59 = vld [vmem:[%s4912_s4 + $0x290] sm:$0x1] }
 0x146   : > { %v2233_v34 = vadd.f32 %v2097_v61, %v1670_v45  ;;  %v3966_v2 = vsel %vm1270_vm1, %v3964_v11, %v3965_v17  ;;  %v1136_v9 = vmul.f32 %v7403_v16, %v1009_v37  ;;  %v1874_v46 = vmul.f32 %v4389_v39, %v7376_v20  ;;  %v4635_v61 = vld [vmem:[%s4912_s4 + $0x260] sm:$0xfe] }
 0x147   : > { %v791_v25 = vrot.slane %v566_v8, 1  ;;  %v792_v55 = vrot.slane %v572_v0, 1  ;;  %v1355_v51 = vrot.slane %v1130_v26, 2  ;;  %v1880_v36 = vmul.f32 %v4395_v21, %v7376_v20  ;;  %v4733_v37 = vld [vmem:[%s4912_s4 + $0x260] sm:$0xfc] }
 0x148   : > { %v2796_v53 = vadd.f32 %v2660_v44, %v2233_v34  ;;  %v1356_v63 = vrot.slane %v1136_v9, 2  ;;  %v2437_v48 = vmul.f32 %v4487_v32, %v7377_v13  ;;  %v1623_v11 = vmul.f32 %v6120_v30, %v7404_v5  ;;  %v4739_v26 = vld [vmem:[%s4912_s4 + $0x290] sm:$0x3]  ;;  %v6360_v34 = vld [vmem:[%s4912_s4 + $0x260] sm:$0xff] }
 0x149   : > { %v793_v17 = vsel %vm706_vm0, %v791_v25, %v792_v55  ;;  %v2098_v8 = vrot.slane %v1874_v46, 1  ;;  %v2443_v31 = vmul.f32 %v4493_v56, %v7377_v13  ;;  %v2099_v0 = vrot.slane %v1880_v36, 1  ;;  %v440_v46 = vld [vmem:[%s4912_s4 + $0x1a8] sm:$0xfe] }
 0x14a   : > { %v2976_v44 = vadd.f32 %v2928_v40, %v2796_v53  ;;  %v927_v45 = vadd.f32 %v793_v17, %v315_v57  ;;  %v1357_v39 = vsel %vm1270_vm1, %v1355_v51, %v1356_v63  ;;  %v2661_v21 = vrot.slane %v2437_v48, 2  ;;  %v7461_v57 = vld [vmem:[#allocation37_spill] sm:$0xff]  ;;  %v237_v51 = vld [vmem:[%s4912_s4 + $0x1a8] sm:$0xff] }
 0x14b   : > { %v2662_v32 = vrot.slane %v2443_v31, 2  ;;  %v3180_v30 = vmul.f32 %v4635_v61, %v7432_v7  ;;  %v3186_v9 = vmul.f32 %v4641_v59, %v7432_v7  ;;  %v2929_v40 = vmul.f32 %v6360_v34, %v7433_v23  ;;  %v446_v53 = vld [vmem:[%s4912_s4 + $0x1d8] sm:$0x1]  ;;  %v1004_v59 = vld [vmem:[%s4912_s4 + $0x1a8] sm:$0xfc] }
 0x14c   : > { %v3539_v56 = vadd.f32 %v3403_v4, %v2976_v44  ;;  %v1491_v25 = vadd.f32 %v1357_v39, %v927_v45  ;;  %v3743_v55 = vmul.f32 %v4733_v37, %v7461_v57  ;;  %v2100_v63 = vsel %vm706_vm0, %v2098_v8, %v2099_v0  ;;  %v1010_v4 = vld [vmem:[%s4912_s4 + $0x1d8] sm:$0x3]  ;;  %v4390_v45 = vld [vmem:[%s4912_s4 + $0x208] sm:$0xfe] }
 0x14d   : > { %v3404_v36 = vrot.slane %v3180_v30, 1  ;;  %v3405_v48 = vrot.slane %v3186_v9, 1  ;;  %v3749_v61 = vmul.f32 %v4739_v26, %v7461_v57  ;;  %v2663_v44 = vsel %vm1270_vm1, %v2661_v21, %v2662_v32  ;;  %v4396_v30 = vld [vmem:[%s4912_s4 + $0x238] sm:$0x1]  ;;  %v4488_v21 = vld [vmem:[%s4912_s4 + $0x208] sm:$0xfc] }
 0x14e   : > { %v4102_v17 = vadd.f32 %v3966_v2, %v3539_v56  ;;  %v1671_v31 = vadd.f32 %v1623_v11, %v1491_v25  ;;  %v3967_v37 = vrot.slane %v3743_v55, 2  ;;  %v316_v23 = vmul.f32 %v5379_v12, %v237_v51  ;;  %v4494_v32 = vld [vmem:[%s4912_s4 + $0x238] sm:$0x3]  ;;  %v7462_v51 = vld [vmem:[#allocation40_spill] sm:$0xff] }
 0x14f   : > { %v3406_v39 = vsel %vm706_vm0, %v3404_v36, %v3405_v48  ;;  %v567_v8 = vmul.f32 %v5383_v38, %v440_v46  ;;  %v573_v0 = vmul.f32 %v5383_v38, %v446_v53  ;;  %v3968_v9 = vrot.slane %v3749_v61, 2  ;;  %v4636_v61 = vld [vmem:[%s4912_s4 + $0x268] sm:$0xfe] }
 0x150   : > { %4150 = vst [vmem:[%s5107_s3 + $0xd8] sm:$0xff] %v4102_v17  ;;  %v2234_v26 = vadd.f32 %v2100_v63, %v1671_v31  ;;  %v1131_v2 = vmul.f32 %v5389_v54, %v1004_v59  ;;  %v1137_v11 = vmul.f32 %v5389_v54, %v1010_v4  ;;  %v1624_v55 = vmul.f32 %v6160_v24, %v7434_v50  ;;  %v7463_v17 = vld [vmem:[#allocation41_spill] sm:$0xff] }
 0x151   : > { %v794_v56 = vrot.slane %v567_v8, 1  ;;  %v795_v25 = vrot.slane %v573_v0, 1  ;;  %v1875_v46 = vmul.f32 %v4390_v45, %v7462_v51  ;;  %v1881_v48 = vmul.f32 %v4396_v30, %v7462_v51  ;;  %v4642_v0 = vld [vmem:[%s4912_s4 + $0x298] sm:$0x1] }
 0x152   : > { %v2797_v53 = vadd.f32 %v2663_v44, %v2234_v26  ;;  %v1358_v36 = vrot.slane %v1131_v2, 2  ;;  %v1359_v63 = vrot.slane %v1137_v11, 2  ;;  %v2438_v31 = vmul.f32 %v4488_v21, %v7463_v17  ;;  %v4734_v2 = vld [vmem:[%s4912_s4 + $0x268] sm:$0xfc]  ;;  %v4740_v30 = vld [vmem:[%s4912_s4 + $0x298] sm:$0x3] }
 0x153   : > { %v796_v59 = vsel %vm706_vm0, %v794_v56, %v795_v25  ;;  %v2101_v4 = vrot.slane %v1875_v46, 1  ;;  %v2444_v8 = vmul.f32 %v4494_v32, %v7463_v17  ;;  %v2102_v26 = vrot.slane %v1881_v48, 1  ;;  %v6400_v21 = vld [vmem:[%s4912_s4 + $0x268] sm:$0xff]  ;;  %v7465_v32 = vld [vmem:[#allocation44_spill] sm:$0xff]  ;;  %v447_v48 = vld [vmem:[%s4912_s4 + $0x1e0] sm:$0xfe] }
 0x154   : > { %v2977_v24 = vadd.f32 %v2929_v40, %v2797_v53  ;;  %v928_v45 = vadd.f32 %v796_v59, %v316_v23  ;;  %v1360_v44 = vsel %vm1270_vm1, %v1358_v36, %v1359_v63  ;;  %v3969_v11 = vsel %vm1270_vm1, %v3967_v37, %v3968_v9  ;;  %7464 = vst [vmem:[#allocation15_spill] sm:$0xff] %v6400_v21  ;;  %v7466_v53 = vld [vmem:[#allocation42_spill] sm:$0xff]  ;;  %v453_v59 = vld [vmem:[%s4912_s4 + $0x210] sm:$0x1] }
 0x155   : > { %v2664_v56 = vrot.slane %v2438_v31, 2  ;;  %v2665_v25 = vrot.slane %v2444_v8, 2  ;;  %v3181_v46 = vmul.f32 %v4636_v61, %v7465_v32  ;;  %v2930_v23 = vmul.f32 %v6400_v21, %v7466_v53  ;;  %v238_v63 = vld [vmem:[%s4912_s4 + $0x1e0] sm:$0xff]  ;;  %v7467_v31 = vld [vmem:[#allocation45_spill] sm:$0xff] }
 0x156   : > { %v3540_v50 = vadd.f32 %v3406_v39, %v2977_v24  ;;  %v1492_v40 = vadd.f32 %v1360_v44, %v928_v45  ;;  %v3187_v36 = vmul.f32 %v4642_v0, %v7465_v32  ;;  %v2103_v37 = vsel %vm706_vm0, %v2101_v4, %v2102_v26  ;;  %v1011_v39 = vld [vmem:[%s4912_s4 + $0x1e0] sm:$0xfc]  ;;  %v1017_v24 = vld [vmem:[%s4912_s4 + $0x210] sm:$0x3] }
 0x157   : > { %v3407_v9 = vrot.slane %v3181_v46, 1  ;;  %v3744_v8 = vmul.f32 %v4734_v2, %v7467_v31  ;;  %v3750_v61 = vmul.f32 %v4740_v30, %v7467_v31  ;;  %v2666_v0 = vsel %vm1270_vm1, %v2664_v56, %v2665_v25  ;;  %v4397_v46 = vld [vmem:[%s4912_s4 + $0x240] sm:$0xfe]  ;;  %v4403_v2 = vld [vmem:[%s4912_s4 + $0x270] sm:$0x1] }
 0x158   : > { %v4103_v45 = vadd.f32 %v3969_v11, %v3540_v50  ;;  %v1672_v44 = vadd.f32 %v1624_v55, %v1492_v40  ;;  %v3408_v53 = vrot.slane %v3187_v36, 1  ;;  %v317_v21 = vmul.f32 %v7382_v6, %v238_v63  ;;  %v4495_v55 = vld [vmem:[%s4912_s4 + $0x240] sm:$0xfc]  ;;  %v4501_v11 = vld [vmem:[%s4912_s4 + $0x270] sm:$0x3] }
 0x159   : > { %v3970_v32 = vrot.slane %v3744_v8, 2  ;;  %v574_v4 = vmul.f32 %v4920_v18, %v447_v48  ;;  %v580_v26 = vmul.f32 %v4920_v18, %v453_v59  ;;  %v3971_v31 = vrot.slane %v3750_v61, 2 }
 0x15a   : > { %4151 = vst [vmem:[%s5107_s3 + $0xe0] sm:$0xff] %v4103_v45  ;;  %v2235_v30 = vadd.f32 %v2103_v37, %v1672_v44  ;;  %v1138_v17 = vmul.f32 %v4924_v19, %v1011_v39  ;;  %v1144_v50 = vmul.f32 %v4924_v19, %v1017_v24  ;;  %v3409_v56 = vsel %vm706_vm0, %v3407_v9, %v3408_v53  ;;  %v4643_v9 = vld [vmem:[%s4912_s4 + $0x2a0] sm:$0xfe]  ;;  %v4649_v24 = vld [vmem:[%s4912_s4 + $0x2d0] sm:$0x1] }
 0x15b   : > { %v797_v25 = vrot.slane %v574_v4, 1  ;;  %v798_v40 = vrot.slane %v580_v26, 1  ;;  %v1625_v36 = vmul.f32 %v6200_v58, %v4958_v35  ;;  %v1882_v37 = vmul.f32 %v4397_v46, %v4969_v41  ;;  %v4747_v4 = vld [vmem:[%s4912_s4 + $0x2d0] sm:$0x3] }
 0x15c   : > { %v2798_v63 = vadd.f32 %v2666_v0, %v2235_v30  ;;  %v1361_v48 = vrot.slane %v1138_v17, 2  ;;  %v1362_v59 = vrot.slane %v1144_v50, 2  ;;  %v1888_v61 = vmul.f32 %v4403_v2, %v4969_v41  ;;  %v4741_v0 = vld [vmem:[%s4912_s4 + $0x2a0] sm:$0xfc] }
 0x15d   : > { %v799_v8 = vsel %vm706_vm0, %v797_v25, %v798_v40  ;;  %v2445_v39 = vmul.f32 %v4495_v55, %v5014_v3  ;;  %v2451_v53 = vmul.f32 %v4501_v11, %v5014_v3  ;;  %v2104_v17 = vrot.slane %v1882_v37, 1  ;;  %v6440_v11 = vld [vmem:[%s4912_s4 + $0x2a0] sm:$0xff]  ;;  %v448_v25 = vld [vmem:[%s4912_s4 + $0x1e8] sm:$0xfe] }
 0x15e   : > { %v2978_v45 = vadd.f32 %v2930_v23, %v2798_v63  ;;  %v929_v58 = vadd.f32 %v799_v8, %v317_v21  ;;  %v1363_v44 = vsel %vm1270_vm1, %v1361_v48, %v1362_v59  ;;  %v3972_v26 = vsel %vm1270_vm1, %v3970_v32, %v3971_v31  ;;  %v239_v63 = vld [vmem:[%s4912_s4 + $0x1e8] sm:$0xff]  ;;  %v454_v48 = vld [vmem:[%s4912_s4 + $0x218] sm:$0x1] }
 0x15f   : > { %v2105_v46 = vrot.slane %v1888_v61, 1  ;;  %v2667_v2 = vrot.slane %v2445_v39, 2  ;;  %v2668_v30 = vrot.slane %v2451_v53, 2  ;;  %v3188_v21 = vmul.f32 %v4643_v9, %v5062_v43  ;;  %v1012_v59 = vld [vmem:[%s4912_s4 + $0x1e8] sm:$0xfc] }
 0x160   : > { %v3541_v50 = vadd.f32 %v3409_v56, %v2978_v45  ;;  %v1493_v55 = vadd.f32 %v1363_v44, %v929_v58  ;;  %v3194_v23 = vmul.f32 %v4649_v24, %v5062_v43  ;;  %v2931_v32 = vmul.f32 %v6440_v11, %v5045_v33  ;;  %v1018_v53 = vld [vmem:[%s4912_s4 + $0x218] sm:$0x3]  ;;  %v4398_v44 = vld [vmem:[%s4912_s4 + $0x248] sm:$0xfe] }
 0x161   : > { %v2106_v40 = vsel %vm706_vm0, %v2104_v17, %v2105_v46  ;;  %v3751_v31 = vmul.f32 %v4741_v0, %v5082_v62  ;;  %v3757_v56 = vmul.f32 %v4747_v4, %v5082_v62  ;;  %v3410_v61 = vrot.slane %v3188_v21, 1  ;;  %v4496_v46 = vld [vmem:[%s4912_s4 + $0x248] sm:$0xfc] }
 0x162   : > { %v4104_v37 = vadd.f32 %v3972_v26, %v3541_v50  ;;  %v1673_v8 = vadd.f32 %v1625_v36, %v1493_v55  ;;  %v3411_v39 = vrot.slane %v3194_v23, 1  ;;  %v2669_v9 = vsel %vm1270_vm1, %v2667_v2, %v2668_v30  ;;  %v4404_v36 = vld [vmem:[%s4912_s4 + $0x278] sm:$0x1] }
 0x163   : > { %v3973_v24 = vrot.slane %v3751_v31, 2  ;;  %v3974_v45 = vrot.slane %v3757_v56, 2  ;;  %v575_v58 = vmul.f32 %v4945_v28, %v448_v25  ;;  %v318_v0 = vmul.f32 %v4941_v27, %v239_v63  ;;  %v4502_v50 = vld [vmem:[%s4912_s4 + $0x278] sm:$0x3] }
 0x164   : > { %4152 = vst [vmem:[%s5107_s3 + $0xe8] sm:$0xff] %v4104_v37  ;;  %v2236_v17 = vadd.f32 %v2106_v40, %v1673_v8  ;;  %v581_v4 = vmul.f32 %v4945_v28, %v454_v48  ;;  %v1139_v26 = vmul.f32 %v4949_v29, %v1012_v59  ;;  %v3412_v2 = vsel %vm706_vm0, %v3410_v61, %v3411_v39  ;;  %v4644_v37 = vld [vmem:[%s4912_s4 + $0x2a8] sm:$0xfe]  ;;  %v4650_v8 = vld [vmem:[%s4912_s4 + $0x2d8] sm:$0x1] }
 0x165   : > { %v3975_v30 = vsel %vm1270_vm1, %v3973_v24, %v3974_v45  ;;  %v800_v55 = vrot.slane %v575_v58, 1  ;;  %v1145_v21 = vmul.f32 %v4949_v29, %v1018_v53  ;;  %v1883_v31 = vmul.f32 %v4398_v44, %v4982_v47  ;;  %v7468_v53 = vld [vmem:[#allocation34_spill] sm:$0xff]  ;;  %v4742_v45 = vld [vmem:[%s4912_s4 + $0x2a8] sm:$0xfc]  ;;  %v4748_v58 = vld [vmem:[%s4912_s4 + $0x2d8] sm:$0x3] }
 0x166   : > { %v2799_v23 = vadd.f32 %v2669_v9, %v2236_v17  ;;  %v801_v25 = vrot.slane %v581_v4, 1  ;;  %v1364_v40 = vrot.slane %v1139_v26, 2  ;;  %v1889_v63 = vmul.f32 %v4404_v36, %v4982_v47 }
 0x167   : > { %v1365_v56 = vrot.slane %v1145_v21, 2  ;;  %v2446_v48 = vmul.f32 %v4496_v46, %v5030_v14  ;;  %v2452_v59 = vmul.f32 %v4502_v50, %v5030_v14  ;;  %v1626_v9 = vmul.f32 %v7468_v53, %v4973_v42  ;;  %v7469_v50 = vld [vmem:[#allocation7_spill] sm:$0xff]  ;;  %v1019_v53 = vld [vmem:[%s4912_s4 + $0x220] sm:$0x3] }
 0x168   : > { %v2979_v61 = vadd.f32 %v2931_v32, %v2799_v23  ;;  %v802_v39 = vsel %vm706_vm0, %v800_v55, %v801_v25  ;;  %v2107_v24 = vrot.slane %v1883_v31, 1  ;;  %v2108_v4 = vrot.slane %v1889_v63, 1  ;;  %v6480_v32 = vld [vmem:[%s4912_s4 + $0x2a8] sm:$0xff]  ;;  %v240_v23 = vld [vmem:[%s4912_s4 + $0x1f0] sm:$0xff]  ;;  %v7470_v31 = vld [vmem:[#allocation6_spill] sm:$0xff] }
 0x169   : > { %v930_v44 = vadd.f32 %v802_v39, %v318_v0  ;;  %v1366_v17 = vsel %vm1270_vm1, %v1364_v40, %v1365_v56  ;;  %v2670_v26 = vrot.slane %v2446_v48, 2  ;;  %v2671_v46 = vrot.slane %v2452_v59, 2  ;;  %v7471_v39 = vld [vmem:[#allocation8_spill] sm:$0xff]  ;;  %v455_v63 = vld [vmem:[%s4912_s4 + $0x220] sm:$0x1] }
 0x16a   : > { %v3542_v36 = vadd.f32 %v3412_v2, %v2979_v61  ;;  %v3189_v55 = vmul.f32 %v4644_v37, %v7469_v50  ;;  %v3195_v21 = vmul.f32 %v4650_v8, %v7469_v50  ;;  %v2932_v0 = vmul.f32 %v6480_v32, %v7470_v31  ;;  %v449_v2 = vld [vmem:[%s4912_s4 + $0x1f0] sm:$0xfe] }
 0x16b   : > { %v1494_v25 = vadd.f32 %v1366_v17, %v930_v44  ;;  %v3752_v40 = vmul.f32 %v4742_v45, %v7471_v39  ;;  %v3758_v56 = vmul.f32 %v4748_v58, %v7471_v39  ;;  %v1013_v48 = vld [vmem:[%s4912_s4 + $0x1f0] sm:$0xfc]  ;;  %v2109_v37 = vsel %vm706_vm0, %v2107_v24, %v2108_v4  ;;  %v4405_v24 = vld [vmem:[%s4912_s4 + $0x280] sm:$0x1] }
 0x16c   : > { %v4105_v59 = vadd.f32 %v3975_v30, %v3542_v36  ;;  %v3413_v8 = vrot.slane %v3189_v55, 1  ;;  %v3414_v61 = vrot.slane %v3195_v21, 1  ;;  %v2672_v17 = vsel %vm1270_vm1, %v2670_v26, %v2671_v46  ;;  %v4399_v45 = vld [vmem:[%s4912_s4 + $0x250] sm:$0xfe]  ;;  %v7472_v36 = vld [vmem:[#allocation9_spill] sm:$0xff] }
 0x16d   : > { %v1674_v44 = vadd.f32 %v1626_v9, %v1494_v25  ;;  %v3976_v31 = vrot.slane %v3752_v40, 2  ;;  %v3977_v50 = vrot.slane %v3758_v56, 2  ;;  %v319_v58 = vmul.f32 %v5003_v60, %v240_v23  ;;  %v4497_v4 = vld [vmem:[%s4912_s4 + $0x250] sm:$0xfc]  ;;  %v4503_v21 = vld [vmem:[%s4912_s4 + $0x280] sm:$0x3] }
 0x16e   : > { %4153 = vst [vmem:[%s5107_s3 + $0xf0] sm:$0xff] %v4105_v59  ;;  %v576_v39 = vmul.f32 %v7442_v49, %v449_v2  ;;  %v582_v30 = vmul.f32 %v7442_v49, %v455_v63  ;;  %v1140_v14 = vmul.f32 %v7472_v36, %v1013_v48  ;;  %v3415_v55 = vsel %vm706_vm0, %v3413_v8, %v3414_v61  ;;  %v7473_v56 = vld [vmem:[#allocation11_spill] sm:$0xff]  ;;  %v7474_v49 = vld [vmem:[#allocation12_spill] sm:$0xff]  ;;  %v4651_v61 = vld [vmem:[%s4912_s4 + $0x2e0] sm:$0x1] }
 0x16f   : > { %v2237_v9 = vadd.f32 %v2109_v37, %v1674_v44  ;;  %v3978_v26 = vsel %vm1270_vm1, %v3976_v31, %v3977_v50  ;;  %v1146_v46 = vmul.f32 %v7472_v36, %v1019_v53  ;;  %v1884_v2 = vmul.f32 %v4399_v45, %v7473_v56  ;;  %v4645_v8 = vld [vmem:[%s4912_s4 + $0x2b0] sm:$0xfe]  ;;  %v7475_v31 = vld [vmem:[#allocation10_spill] sm:$0xff]  ;;  %v7476_v53 = vld [vmem:[#allocation43_spill] sm:$0xff] }
 0x170   : > { %v803_v23 = vrot.slane %v576_v39, 1  ;;  %v804_v25 = vrot.slane %v582_v30, 1  ;;  %v1367_v40 = vrot.slane %v1140_v14, 2  ;;  %v1890_v59 = vmul.f32 %v4405_v24, %v7473_v56  ;;  %v4743_v45 = vld [vmem:[%s4912_s4 + $0x2b0] sm:$0xfc] }
 0x171   : > { %v2800_v63 = vadd.f32 %v2672_v17, %v2237_v9  ;;  %v1368_v48 = vrot.slane %v1146_v46, 2  ;;  %v2447_v37 = vmul.f32 %v4497_v4, %v7474_v49  ;;  %v1627_v44 = vmul.f32 %v7476_v53, %v7475_v31  ;;  %v4749_v4 = vld [vmem:[%s4912_s4 + $0x2e0] sm:$0x3]  ;;  %v7479_v31 = vld [vmem:[#allocation13_spill] sm:$0xff] }
 0x172   : > { %v805_v50 = vsel %vm706_vm0, %v803_v23, %v804_v25  ;;  %v2110_v39 = vrot.slane %v1884_v2, 1  ;;  %v2453_v14 = vmul.f32 %v4503_v21, %v7474_v49  ;;  %v2111_v9 = vrot.slane %v1890_v59, 1  ;;  %v6520_v23 = vld [vmem:[%s4912_s4 + $0x2b0] sm:$0xff]  ;;  %v7478_v25 = vld [vmem:[#allocation14_spill] sm:$0xff]  ;;  %v456_v59 = vld [vmem:[%s4912_s4 + $0x228] sm:$0x1] }
 0x173   : > { %v2980_v17 = vadd.f32 %v2932_v0, %v2800_v63  ;;  %v931_v30 = vadd.f32 %v805_v50, %v319_v58  ;;  %v1369_v24 = vsel %vm1270_vm1, %v1367_v40, %v1368_v48  ;;  %v2673_v46 = vrot.slane %v2447_v37, 2  ;;  %7477 = vst [vmem:[#allocation21_spill] sm:$0xff] %v6520_v23  ;;  %v7480_v58 = vld [vmem:[#allocation16_spill] sm:$0xff]  ;;  %v241_v63 = vld [vmem:[%s4912_s4 + $0x1f8] sm:$0xff] }
 0x174   : > { %v2674_v56 = vrot.slane %v2453_v14, 2  ;;  %v3190_v2 = vmul.f32 %v4645_v8, %v7478_v25  ;;  %v3196_v21 = vmul.f32 %v4651_v61, %v7478_v25  ;;  %v2933_v0 = vmul.f32 %v6520_v23, %v7479_v31  ;;  %v450_v48 = vld [vmem:[%s4912_s4 + $0x1f8] sm:$0xfe] }
 0x175   : > { %v3543_v53 = vadd.f32 %v3415_v55, %v2980_v17  ;;  %v1495_v49 = vadd.f32 %v1369_v24, %v931_v30  ;;  %v3753_v40 = vmul.f32 %v4743_v45, %v7480_v58  ;;  %v2112_v37 = vsel %vm706_vm0, %v2110_v39, %v2111_v9  ;;  %v1014_v61 = vld [vmem:[%s4912_s4 + $0x1f8] sm:$0xfc]  ;;  %v1020_v55 = vld [vmem:[%s4912_s4 + $0x228] sm:$0x3] }
 0x176   : > { %v3416_v50 = vrot.slane %v3190_v2, 1  ;;  %v3417_v14 = vrot.slane %v3196_v21, 1  ;;  %v3759_v8 = vmul.f32 %v4749_v4, %v7480_v58  ;;  %v2675_v24 = vsel %vm1270_vm1, %v2673_v46, %v2674_v56  ;;  %v4400_v31 = vld [vmem:[%s4912_s4 + $0x258] sm:$0xfe]  ;;  %v4406_v2 = vld [vmem:[%s4912_s4 + $0x288] sm:$0x1] }
 0x177   : > { %v4106_v17 = vadd.f32 %v3978_v26, %v3543_v53  ;;  %v1675_v30 = vadd.f32 %v1627_v44, %v1495_v49  ;;  %v3979_v45 = vrot.slane %v3753_v40, 2  ;;  %v320_v23 = vmul.f32 %v7452_v1, %v241_v63  ;;  %v4498_v56 = vld [vmem:[%s4912_s4 + $0x258] sm:$0xfc]  ;;  %v4504_v44 = vld [vmem:[%s4912_s4 + $0x288] sm:$0x3]  ;;  %v7481_v40 = vld [vmem:[#allocation20_spill] sm:$0xff] }
 0x178   : > { %v3418_v25 = vsel %vm706_vm0, %v3416_v50, %v3417_v14  ;;  %v577_v39 = vmul.f32 %v7451_v22, %v450_v48  ;;  %v583_v9 = vmul.f32 %v7451_v22, %v456_v59  ;;  %v3980_v21 = vrot.slane %v3759_v8, 2  ;;  %v7482_v63 = vld [vmem:[#allocation2_spill] sm:$0xff]  ;;  %v4652_v1 = vld [vmem:[%s4912_s4 + $0x2e8] sm:$0x1] }
 0x179   : > { %4154 = vst [vmem:[%s5107_s3 + $0xf8] sm:$0xff] %v4106_v17  ;;  %v2238_v4 = vadd.f32 %v2112_v37, %v1675_v30  ;;  %v1141_v26 = vmul.f32 %v7453_v10, %v1014_v61  ;;  %v1147_v49 = vmul.f32 %v7453_v10, %v1020_v55  ;;  %v1628_v50 = vmul.f32 %v7482_v63, %v7481_v40  ;;  %v7483_v48 = vld [vmem:[#allocation22_spill] sm:$0xff]  ;;  %v4646_v61 = vld [vmem:[%s4912_s4 + $0x2b8] sm:$0xfe]  ;;  %v7484_v10 = vld [vmem:[#allocation23_spill] sm:$0xff] }
 0x17a   : > { %v806_v46 = vrot.slane %v577_v39, 1  ;;  %v807_v53 = vrot.slane %v583_v9, 1  ;;  %v1885_v59 = vmul.f32 %v4400_v31, %v7483_v48  ;;  %v1891_v8 = vmul.f32 %v4406_v2, %v7483_v48  ;;  %v4750_v2 = vld [vmem:[%s4912_s4 + $0x2e8] sm:$0x3] }
 0x17b   : > { %v2801_v14 = vadd.f32 %v2675_v24, %v2238_v4  ;;  %v1370_v17 = vrot.slane %v1141_v26, 2  ;;  %v1371_v37 = vrot.slane %v1147_v49, 2  ;;  %v2448_v39 = vmul.f32 %v4498_v56, %v7484_v10  ;;  %v4744_v26 = vld [vmem:[%s4912_s4 + $0x2b8] sm:$0xfc] }
 0x17c   : > { %v808_v55 = vsel %vm706_vm0, %v806_v46, %v807_v53  ;;  %v2113_v30 = vrot.slane %v1885_v59, 1  ;;  %v2454_v9 = vmul.f32 %v4504_v44, %v7484_v10  ;;  %v2114_v4 = vrot.slane %v1891_v8, 1  ;;  %v6560_v56 = vld [vmem:[%s4912_s4 + $0x2b8] sm:$0xff]  ;;  %v7486_v44 = vld [vmem:[#allocation26_spill] sm:$0xff] }
 0x17d   : > { %v2981_v63 = vadd.f32 %v2933_v0, %v2801_v14  ;;  %v932_v31 = vadd.f32 %v808_v55, %v320_v23  ;;  %v1372_v24 = vsel %vm1270_vm1, %v1370_v17, %v1371_v37  ;;  %v3981_v49 = vsel %vm1270_vm1, %v3979_v45, %v3980_v21  ;;  %7485 = vst [vmem:[#allocation30_spill] sm:$0xff] %v6560_v56  ;;  %v7487_v14 = vld [vmem:[#allocation24_spill] sm:$0xff]  ;;  %v242_v37 = vld [vmem:[%s4912_s4 + $0x200] sm:$0xff] }
 0x17e   : > { %v2676_v46 = vrot.slane %v2448_v39, 2  ;;  %v2677_v53 = vrot.slane %v2454_v9, 2  ;;  %v3191_v59 = vmul.f32 %v4646_v61, %v7486_v44  ;;  %v2934_v23 = vmul.f32 %v6560_v56, %v7487_v14  ;;  %v451_v8 = vld [vmem:[%s4912_s4 + $0x200] sm:$0xfe]  ;;  %v457_v55 = vld [vmem:[%s4912_s4 + $0x230] sm:$0x1] }
 0x17f   : > { %v3544_v40 = vadd.f32 %v3418_v25, %v2981_v63  ;;  %v1496_v0 = vadd.f32 %v1372_v24, %v932_v31  ;;  %v3197_v17 = vmul.f32 %v4652_v1, %v7486_v44  ;;  %v2115_v45 = vsel %vm706_vm0, %v2113_v30, %v2114_v4  ;;  %v7488_v39 = vld [vmem:[#allocation27_spill] sm:$0xff]  ;;  %v1015_v25 = vld [vmem:[%s4912_s4 + $0x200] sm:$0xfc]  ;;  %v1021_v63 = vld [vmem:[%s4912_s4 + $0x230] sm:$0x3] }
 0x180   : > { %v3419_v21 = vrot.slane %v3191_v59, 1  ;;  %v3754_v9 = vmul.f32 %v4744_v26, %v7488_v39  ;;  %v3760_v61 = vmul.f32 %v4750_v2, %v7488_v39  ;;  %v2678_v1 = vsel %vm1270_vm1, %v2676_v46, %v2677_v53  ;;  %v4401_v59 = vld [vmem:[%s4912_s4 + $0x260] sm:$0xfe]  ;;  %v4407_v26 = vld [vmem:[%s4912_s4 + $0x290] sm:$0x1] }
 0x181   : > { %v4107_v31 = vadd.f32 %v3981_v49, %v3544_v40  ;;  %v1676_v24 = vadd.f32 %v1628_v50, %v1496_v0  ;;  %v3420_v14 = vrot.slane %v3197_v17, 1  ;;  %v321_v56 = vmul.f32 %v7372_v52, %v242_v37  ;;  %v4499_v50 = vld [vmem:[%s4912_s4 + $0x260] sm:$0xfc]  ;;  %v4505_v49 = vld [vmem:[%s4912_s4 + $0x290] sm:$0x3] }
 0x182   : > { %v3982_v44 = vrot.slane %v3754_v9, 2  ;;  %v578_v30 = vmul.f32 %v7371_v15, %v451_v8  ;;  %v584_v4 = vmul.f32 %v7371_v15, %v457_v55  ;;  %v3983_v39 = vrot.slane %v3760_v61, 2 }
 0x183   : > { %4155 = vst [vmem:[%s5107_s3 + $0x100] sm:$0xff] %v4107_v31  ;;  %v2239_v2 = vadd.f32 %v2115_v45, %v1676_v24  ;;  %v1142_v10 = vmul.f32 %v7403_v16, %v1015_v25  ;;  %v1148_v40 = vmul.f32 %v7403_v16, %v1021_v63  ;;  %v3421_v46 = vsel %vm706_vm0, %v3419_v21, %v3420_v14  ;;  %v4647_v21 = vld [vmem:[%s4912_s4 + $0x2c0] sm:$0xfe]  ;;  %v4653_v63 = vld [vmem:[%s4912_s4 + $0x2f0] sm:$0x1] }
 0x184   : > { %v809_v53 = vrot.slane %v578_v30, 1  ;;  %v810_v0 = vrot.slane %v584_v4, 1  ;;  %v1629_v17 = vmul.f32 %v6360_v34, %v7404_v5  ;;  %v1886_v45 = vmul.f32 %v4401_v59, %v7376_v20  ;;  %v4751_v30 = vld [vmem:[%s4912_s4 + $0x2f0] sm:$0x3] }
 0x185   : > { %v2802_v37 = vadd.f32 %v2678_v1, %v2239_v2  ;;  %v1373_v8 = vrot.slane %v1142_v10, 2  ;;  %v1374_v55 = vrot.slane %v1148_v40, 2  ;;  %v1892_v61 = vmul.f32 %v4407_v26, %v7376_v20  ;;  %v4745_v1 = vld [vmem:[%s4912_s4 + $0x2c0] sm:$0xfc] }
 0x186   : > { %v811_v9 = vsel %vm706_vm0, %v809_v53, %v810_v0  ;;  %v2449_v25 = vmul.f32 %v4499_v50, %v7377_v13  ;;  %v2455_v14 = vmul.f32 %v4505_v49, %v7377_v13  ;;  %v2116_v10 = vrot.slane %v1886_v45, 1  ;;  %v6600_v49 = vld [vmem:[%s4912_s4 + $0x2c0] sm:$0xff]  ;;  %v452_v53 = vld [vmem:[%s4912_s4 + $0x208] sm:$0xfe] }
 0x187   : > { %v2982_v31 = vadd.f32 %v2934_v23, %v2802_v37  ;;  %v933_v34 = vadd.f32 %v811_v9, %v321_v56  ;;  %v1375_v24 = vsel %vm1270_vm1, %v1373_v8, %v1374_v55  ;;  %v3984_v4 = vsel %vm1270_vm1, %v3982_v44, %v3983_v39  ;;  %v7489_v37 = vld [vmem:[#allocation35_spill] sm:$0xff]  ;;  %v458_v55 = vld [vmem:[%s4912_s4 + $0x238] sm:$0x1] }
 0x188   : > { %v2117_v59 = vrot.slane %v1892_v61, 1  ;;  %v2679_v26 = vrot.slane %v2449_v25, 2  ;;  %v2680_v2 = vrot.slane %v2455_v14, 2  ;;  %v3192_v56 = vmul.f32 %v4647_v21, %v7432_v7  ;;  %v243_v8 = vld [vmem:[%s4912_s4 + $0x208] sm:$0xff]  ;;  %v1022_v21 = vld [vmem:[%s4912_s4 + $0x238] sm:$0x3] }
 0x189   : > { %v3545_v40 = vadd.f32 %v3421_v46, %v2982_v31  ;;  %v1497_v50 = vadd.f32 %v1375_v24, %v933_v34  ;;  %v3198_v23 = vmul.f32 %v4653_v63, %v7432_v7  ;;  %v2935_v44 = vmul.f32 %v6600_v49, %v7489_v37  ;;  %v1016_v45 = vld [vmem:[%s4912_s4 + $0x208] sm:$0xfc] }
 0x18a   : > { %v2118_v0 = vsel %vm706_vm0, %v2116_v10, %v2117_v59  ;;  %v3755_v39 = vmul.f32 %v4745_v1, %v7461_v57  ;;  %v3761_v46 = vmul.f32 %v4751_v30, %v7461_v57  ;;  %v3422_v25 = vrot.slane %v3192_v56, 1  ;;  %v4402_v10 = vld [vmem:[%s4912_s4 + $0x268] sm:$0xfe] }
 0x18b   : > { %v4108_v9 = vadd.f32 %v3984_v4, %v3545_v40  ;;  %v1677_v61 = vadd.f32 %v1629_v17, %v1497_v50  ;;  %v3423_v14 = vrot.slane %v3198_v23, 1  ;;  %v2681_v63 = vsel %vm1270_vm1, %v2679_v26, %v2680_v2  ;;  %v4408_v17 = vld [vmem:[%s4912_s4 + $0x298] sm:$0x1]  ;;  %v4500_v40 = vld [vmem:[%s4912_s4 + $0x268] sm:$0xfc] }
 0x18c   : > { %v3985_v31 = vrot.slane %v3755_v39, 2  ;;  %v3986_v34 = vrot.slane %v3761_v46, 2  ;;  %v579_v24 = vmul.f32 %v5383_v38, %v452_v53  ;;  %v322_v30 = vmul.f32 %v5379_v12, %v243_v8  ;;  %v4506_v50 = vld [vmem:[%s4912_s4 + $0x298] sm:$0x3] }
 0x18d   : > { %4156 = vst [vmem:[%s5107_s3 + $0x108] sm:$0xff] %v4108_v9  ;;  %v2240_v1 = vadd.f32 %v2118_v0, %v1677_v61  ;;  %v585_v59 = vmul.f32 %v5383_v38, %v458_v55  ;;  %v1143_v4 = vmul.f32 %v5389_v54, %v1016_v45  ;;  %v3424_v26 = vsel %vm706_vm0, %v3422_v25, %v3423_v14  ;;  %v7490_v45 = vld [vmem:[#allocation41_spill] sm:$0xff]  ;;  %v4648_v25 = vld [vmem:[%s4912_s4 + $0x2c8] sm:$0xfe] }
 0x18e   : > { %v3987_v2 = vsel %vm1270_vm1, %v3985_v31, %v3986_v34  ;;  %v812_v56 = vrot.slane %v579_v24, 1  ;;  %v1149_v23 = vmul.f32 %v5389_v54, %v1022_v21  ;;  %v1887_v46 = vmul.f32 %v4402_v10, %v7462_v51  ;;  %v4654_v14 = vld [vmem:[%s4912_s4 + $0x2f8] sm:$0x1]  ;;  %v7491_v34 = vld [vmem:[#allocation39_spill] sm:$0xff] }
 0x18f   : > { %v2803_v53 = vadd.f32 %v2681_v63, %v2240_v1  ;;  %v813_v0 = vrot.slane %v585_v59, 1  ;;  %v1376_v39 = vrot.slane %v1143_v4, 2  ;;  %v1893_v55 = vmul.f32 %v4408_v17, %v7462_v51  ;;  %v7492_v63 = vld [vmem:[#allocation15_spill] sm:$0xff]  ;;  %v4752_v10 = vld [vmem:[%s4912_s4 + $0x2f8] sm:$0x3]  ;;  %v7495_v51 = vld [vmem:[#allocation42_spill] sm:$0xff] }
 0x190   : > { %v1377_v8 = vrot.slane %v1149_v23, 2  ;;  %v2450_v9 = vmul.f32 %v4500_v40, %v7490_v45  ;;  %v2456_v61 = vmul.f32 %v4506_v50, %v7490_v45  ;;  %v1630_v24 = vmul.f32 %v7492_v63, %v7491_v34  ;;  %v4746_v59 = vld [vmem:[%s4912_s4 + $0x2c8] sm:$0xfc] }
 0x191   : > { %v2983_v31 = vadd.f32 %v2935_v44, %v2803_v53  ;;  %v814_v21 = vsel %vm706_vm0, %v812_v56, %v813_v0  ;;  %v2119_v1 = vrot.slane %v1887_v46, 1  ;;  %v2120_v40 = vrot.slane %v1893_v55, 1  ;;  %v6640_v44 = vld [vmem:[%s4912_s4 + $0x2c8] sm:$0xff]  ;;  %v7494_v56 = vld [vmem:[#allocation44_spill] sm:$0xff]  ;;  %v244_v46 = vld [vmem:[%s4912_s4 + $0x240] sm:$0xff] }
 0x192   : > { %v934_v4 = vadd.f32 %v814_v21, %v322_v30  ;;  %v1378_v17 = vsel %vm1270_vm1, %v1376_v39, %v1377_v8  ;;  %v2682_v50 = vrot.slane %v2450_v9, 2  ;;  %v2683_v45 = vrot.slane %v2456_v61, 2  ;;  %7493 = vst [vmem:[#allocation31_spill] sm:$0xff] %v6640_v44  ;;  %v7496_v21 = vld [vmem:[#allocation45_spill] sm:$0xff]  ;;  %v465_v55 = vld [vmem:[%s4912_s4 + $0x270] sm:$0x1] }
 0x193   : > { %v3546_v23 = vadd.f32 %v3424_v26, %v2983_v31  ;;  %v3193_v53 = vmul.f32 %v4648_v25, %v7494_v56  ;;  %v3199_v0 = vmul.f32 %v4654_v14, %v7494_v56  ;;  %v2936_v30 = vmul.f32 %v6640_v44, %v7495_v51  ;;  %v459_v26 = vld [vmem:[%s4912_s4 + $0x240] sm:$0xfe] }
 0x194   : > { %v1498_v63 = vadd.f32 %v1378_v17, %v934_v4  ;;  %v3756_v39 = vmul.f32 %v4746_v59, %v7496_v21  ;;  %v3762_v8 = vmul.f32 %v4752_v10, %v7496_v21  ;;  %v1023_v9 = vld [vmem:[%s4912_s4 + $0x240] sm:$0xfc]  ;;  %v2121_v25 = vsel %vm706_vm0, %v2119_v1, %v2120_v40  ;;  %v1029_v4 = vld [vmem:[%s4912_s4 + $0x270] sm:$0x3] }
 0x195   : > { %v4109_v61 = vadd.f32 %v3987_v2, %v3546_v23  ;;  %v3425_v14 = vrot.slane %v3193_v53, 1  ;;  %v3426_v31 = vrot.slane %v3199_v0, 1  ;;  %v2684_v51 = vsel %vm1270_vm1, %v2682_v50, %v2683_v45  ;;  %v4409_v59 = vld [vmem:[%s4912_s4 + $0x2a0] sm:$0xfe]  ;;  %v4415_v1 = vld [vmem:[%s4912_s4 + $0x2d0] sm:$0x1] }
 0x196   : > { %v1678_v17 = vadd.f32 %v1630_v24, %v1498_v63  ;;  %v3988_v56 = vrot.slane %v3756_v39, 2  ;;  %v3989_v44 = vrot.slane %v3762_v8, 2  ;;  %v323_v10 = vmul.f32 %v7382_v6, %v244_v46  ;;  %v4507_v40 = vld [vmem:[%s4912_s4 + $0x2a0] sm:$0xfc]  ;;  %v4513_v0 = vld [vmem:[%s4912_s4 + $0x2d0] sm:$0x3] }
 0x197   : > { %4157 = vst [vmem:[%s5107_s3 + $0x110] sm:$0xff] %v4109_v61  ;;  %v586_v21 = vmul.f32 %v4920_v18, %v459_v26  ;;  %v592_v2 = vmul.f32 %v4920_v18, %v465_v55  ;;  %v1150_v23 = vmul.f32 %v4924_v19, %v1023_v9  ;;  %v3427_v53 = vsel %vm706_vm0, %v3425_v14, %v3426_v31  ;;  %v4661_v14 = vld [vmem:[%s4912_s4 + $0x330] sm:$0x1] }
 0x198   : > { %v2241_v24 = vadd.f32 %v2121_v25, %v1678_v17  ;;  %v3990_v45 = vsel %vm1270_vm1, %v3988_v56, %v3989_v44  ;;  %v1156_v50 = vmul.f32 %v4924_v19, %v1029_v4  ;;  %v1894_v8 = vmul.f32 %v4409_v59, %v4969_v41  ;;  %v4655_v25 = vld [vmem:[%s4912_s4 + $0x300] sm:$0xfe] }
 0x199   : > { %v815_v46 = vrot.slane %v586_v21, 1  ;;  %v816_v63 = vrot.slane %v592_v2, 1  ;;  %v1379_v39 = vrot.slane %v1150_v23, 2  ;;  %v1900_v9 = vmul.f32 %v4415_v1, %v4969_v41  ;;  %v4753_v4 = vld [vmem:[%s4912_s4 + $0x300] sm:$0xfc] }
 0x19a   : > { %v2804_v26 = vadd.f32 %v2684_v51, %v2241_v24  ;;  %v1380_v55 = vrot.slane %v1156_v50, 2  ;;  %v2457_v61 = vmul.f32 %v4507_v40, %v5014_v3  ;;  %v1631_v56 = vmul.f32 %v6440_v11, %v4958_v35  ;;  %v4759_v23 = vld [vmem:[%s4912_s4 + $0x330] sm:$0x3]  ;;  %v6680_v24 = vld [vmem:[%s4912_s4 + $0x300] sm:$0xff] }
 0x19b   : > { %v817_v44 = vsel %vm706_vm0, %v815_v46, %v816_v63  ;;  %v2122_v21 = vrot.slane %v1894_v8, 1  ;;  %v2463_v31 = vmul.f32 %v4513_v0, %v5014_v3  ;;  %v2123_v2 = vrot.slane %v1900_v9, 1  ;;  %v245_v63 = vld [vmem:[%s4912_s4 + $0x248] sm:$0xff]  ;;  %v466_v8 = vld [vmem:[%s4912_s4 + $0x278] sm:$0x1] }
 0x19c   : > { %v2984_v51 = vadd.f32 %v2936_v30, %v2804_v26  ;;  %v935_v17 = vadd.f32 %v817_v44, %v323_v10  ;;  %v1381_v59 = vsel %vm1270_vm1, %v1379_v39, %v1380_v55  ;;  %v2685_v1 = vrot.slane %v2457_v61, 2  ;;  %v460_v39 = vld [vmem:[%s4912_s4 + $0x248] sm:$0xfe] }
 0x19d   : > { %v2686_v40 = vrot.slane %v2463_v31, 2  ;;  %v3200_v11 = vmul.f32 %v4655_v25, %v5062_v43  ;;  %v3206_v50 = vmul.f32 %v4661_v14, %v5062_v43  ;;  %v2937_v30 = vmul.f32 %v6680_v24, %v5045_v33  ;;  %v1024_v25 = vld [vmem:[%s4912_s4 + $0x248] sm:$0xfc] }
 0x19e   : > { %v3547_v0 = vadd.f32 %v3427_v53, %v2984_v51  ;;  %v1499_v46 = vadd.f32 %v1381_v59, %v935_v17  ;;  %v3763_v10 = vmul.f32 %v4753_v4, %v5082_v62  ;;  %v2124_v26 = vsel %vm706_vm0, %v2122_v21, %v2123_v2  ;;  %v1030_v53 = vld [vmem:[%s4912_s4 + $0x278] sm:$0x3]  ;;  %v4410_v51 = vld [vmem:[%s4912_s4 + $0x2a8] sm:$0xfe] }
 0x19f   : > { %v3428_v55 = vrot.slane %v3200_v11, 1  ;;  %v3429_v9 = vrot.slane %v3206_v50, 1  ;;  %v3769_v61 = vmul.f32 %v4759_v23, %v5082_v62  ;;  %v2687_v31 = vsel %vm1270_vm1, %v2685_v1, %v2686_v40  ;;  %v4416_v11 = vld [vmem:[%s4912_s4 + $0x2d8] sm:$0x1]  ;;  %v4508_v1 = vld [vmem:[%s4912_s4 + $0x2a8] sm:$0xfc] }
 0x1a0   : > { %v4110_v14 = vadd.f32 %v3990_v45, %v3547_v0  ;;  %v1679_v44 = vadd.f32 %v1631_v56, %v1499_v46  ;;  %v3991_v4 = vrot.slane %v3763_v10, 2  ;;  %v324_v59 = vmul.f32 %v4941_v27, %v245_v63  ;;  %v4514_v40 = vld [vmem:[%s4912_s4 + $0x2d8] sm:$0x3] }
 0x1a1   : > { %v3430_v17 = vsel %vm706_vm0, %v3428_v55, %v3429_v9  ;;  %v587_v21 = vmul.f32 %v4945_v28, %v460_v39  ;;  %v593_v2 = vmul.f32 %v4945_v28, %v466_v8  ;;  %v3992_v50 = vrot.slane %v3769_v61, 2  ;;  %v4656_v9 = vld [vmem:[%s4912_s4 + $0x308] sm:$0xfe] }
 0x1a2   : > { %4158 = vst [vmem:[%s5107_s3 + $0x118] sm:$0xff] %v4110_v14  ;;  %v2242_v23 = vadd.f32 %v2124_v26, %v1679_v44  ;;  %v1151_v45 = vmul.f32 %v4949_v29, %v1024_v25  ;;  %v1157_v56 = vmul.f32 %v4949_v29, %v1030_v53  ;;  %v1632_v10 = vmul.f32 %v6480_v32, %v4973_v42  ;;  %v7497_v53 = vld [vmem:[#allocation4_spill] sm:$0xff]  ;;  %v7502_v42 = vld [vmem:[#allocation5_spill] sm:$0xff] }
 0x1a3   : > { %v818_v0 = vrot.slane %v587_v21, 1  ;;  %v819_v46 = vrot.slane %v593_v2, 1  ;;  %v1895_v63 = vmul.f32 %v4410_v51, %v4982_v47  ;;  %v1901_v55 = vmul.f32 %v4416_v11, %v4982_v47  ;;  %v4662_v21 = vld [vmem:[%s4912_s4 + $0x338] sm:$0x1] }
 0x1a4   : > { %v2805_v39 = vadd.f32 %v2687_v31, %v2242_v23  ;;  %v1382_v8 = vrot.slane %v1151_v45, 2  ;;  %v1383_v26 = vrot.slane %v1157_v56, 2  ;;  %v2458_v14 = vmul.f32 %v4508_v1, %v7497_v53  ;;  %v4754_v23 = vld [vmem:[%s4912_s4 + $0x308] sm:$0xfc]  ;;  %v4760_v11 = vld [vmem:[%s4912_s4 + $0x338] sm:$0x3] }
 0x1a5   : > { %v820_v61 = vsel %vm706_vm0, %v818_v0, %v819_v46  ;;  %v2125_v25 = vrot.slane %v1895_v63, 1  ;;  %v2464_v44 = vmul.f32 %v4514_v40, %v7497_v53  ;;  %v2126_v2 = vrot.slane %v1901_v55, 1  ;;  %v6720_v1 = vld [vmem:[%s4912_s4 + $0x308] sm:$0xff]  ;;  %v461_v55 = vld [vmem:[%s4912_s4 + $0x250] sm:$0xfe] }
 0x1a6   : > { %v2985_v32 = vadd.f32 %v2937_v30, %v2805_v39  ;;  %v936_v51 = vadd.f32 %v820_v61, %v324_v59  ;;  %v1384_v31 = vsel %vm1270_vm1, %v1382_v8, %v1383_v26  ;;  %v3993_v45 = vsel %vm1270_vm1, %v3991_v4, %v3992_v50  ;;  %7498 = vst [vmem:[#allocation25_spill] sm:$0xff] %v6720_v1  ;;  %v7499_v40 = vld [vmem:[#allocation7_spill] sm:$0xff]  ;;  %v7500_v39 = vld [vmem:[#allocation6_spill] sm:$0xff]  ;;  %v246_v26 = vld [vmem:[%s4912_s4 + $0x250] sm:$0xff] }
 0x1a7   : > { %v2688_v56 = vrot.slane %v2458_v14, 2  ;;  %v2689_v0 = vrot.slane %v2464_v44, 2  ;;  %v3201_v46 = vmul.f32 %v4656_v9, %v7499_v40  ;;  %v2938_v59 = vmul.f32 %v6720_v1, %v7500_v39  ;;  %v467_v61 = vld [vmem:[%s4912_s4 + $0x280] sm:$0x1]  ;;  %v7501_v14 = vld [vmem:[#allocation8_spill] sm:$0xff] }
 0x1a8   : > { %v3548_v63 = vadd.f32 %v3430_v17, %v2985_v32  ;;  %v1500_v30 = vadd.f32 %v1384_v31, %v936_v51  ;;  %v3207_v8 = vmul.f32 %v4662_v21, %v7499_v40  ;;  %v2127_v4 = vsel %vm706_vm0, %v2125_v25, %v2126_v2  ;;  %v1025_v17 = vld [vmem:[%s4912_s4 + $0x250] sm:$0xfc]  ;;  %v1031_v32 = vld [vmem:[%s4912_s4 + $0x280] sm:$0x3] }
 0x1a9   : > { %v3431_v50 = vrot.slane %v3201_v46, 1  ;;  %v3764_v44 = vmul.f32 %v4754_v23, %v7501_v14  ;;  %v3770_v9 = vmul.f32 %v4760_v11, %v7501_v14  ;;  %v2690_v21 = vsel %vm1270_vm1, %v2688_v56, %v2689_v0  ;;  %v4411_v46 = vld [vmem:[%s4912_s4 + $0x2b0] sm:$0xfe]  ;;  %v4417_v23 = vld [vmem:[%s4912_s4 + $0x2e0] sm:$0x1] }
 0x1aa   : > { %v4111_v51 = vadd.f32 %v3993_v45, %v3548_v63  ;;  %v1680_v31 = vadd.f32 %v1632_v10, %v1500_v30  ;;  %v3432_v39 = vrot.slane %v3207_v8, 1  ;;  %v325_v1 = vmul.f32 %v5003_v60, %v246_v26  ;;  %v4509_v45 = vld [vmem:[%s4912_s4 + $0x2b0] sm:$0xfc]  ;;  %v4515_v56 = vld [vmem:[%s4912_s4 + $0x2e0] sm:$0x3]  ;;  %v7504_v26 = vld [vmem:[#allocation21_spill] sm:$0xff] }
 0x1ab   : > { %v3994_v40 = vrot.slane %v3764_v44, 2  ;;  %v588_v25 = vmul.f32 %v7502_v42, %v461_v55  ;;  %v594_v2 = vmul.f32 %v7502_v42, %v467_v61  ;;  %v3995_v14 = vrot.slane %v3770_v9, 2  ;;  %v7503_v8 = vld [vmem:[#allocation10_spill] sm:$0xff]  ;;  %v7505_v9 = vld [vmem:[#allocation11_spill] sm:$0xff] }
 0x1ac   : > { %4159 = vst [vmem:[%s5107_s3 + $0x120] sm:$0xff] %v4111_v51  ;;  %v2243_v11 = vadd.f32 %v2127_v4, %v1680_v31  ;;  %v1152_v53 = vmul.f32 %v7472_v36, %v1025_v17  ;;  %v1158_v10 = vmul.f32 %v7472_v36, %v1031_v32  ;;  %v3433_v0 = vsel %vm706_vm0, %v3431_v50, %v3432_v39  ;;  %v7506_v31 = vld [vmem:[#allocation12_spill] sm:$0xff] }
 0x1ad   : > { %v821_v63 = vrot.slane %v588_v25, 1  ;;  %v822_v30 = vrot.slane %v594_v2, 1  ;;  %v1633_v55 = vmul.f32 %v7504_v26, %v7503_v8  ;;  %v1896_v17 = vmul.f32 %v4411_v46, %v7505_v9  ;;  %v4657_v50 = vld [vmem:[%s4912_s4 + $0x310] sm:$0xfe]  ;;  %v4663_v25 = vld [vmem:[%s4912_s4 + $0x340] sm:$0x1] }
 0x1ae   : > { %v2806_v61 = vadd.f32 %v2690_v21, %v2243_v11  ;;  %v1385_v4 = vrot.slane %v1152_v53, 2  ;;  %v1386_v44 = vrot.slane %v1158_v10, 2  ;;  %v1902_v32 = vmul.f32 %v4417_v23, %v7505_v9  ;;  %v4755_v11 = vld [vmem:[%s4912_s4 + $0x310] sm:$0xfc]  ;;  %v4761_v46 = vld [vmem:[%s4912_s4 + $0x340] sm:$0x3] }
 0x1af   : > { %v823_v51 = vsel %vm706_vm0, %v821_v63, %v822_v30  ;;  %v2459_v36 = vmul.f32 %v4509_v45, %v7506_v31  ;;  %v2465_v39 = vmul.f32 %v4515_v56, %v7506_v31  ;;  %v2128_v53 = vrot.slane %v1896_v17, 1  ;;  %v6760_v8 = vld [vmem:[%s4912_s4 + $0x310] sm:$0xff]  ;;  %v7509_v17 = vld [vmem:[#allocation13_spill] sm:$0xff] }
 0x1b0   : > { %v2986_v2 = vadd.f32 %v2938_v59, %v2806_v61  ;;  %v937_v26 = vadd.f32 %v823_v51, %v325_v1  ;;  %v1387_v21 = vsel %vm1270_vm1, %v1385_v4, %v1386_v44  ;;  %v3996_v10 = vsel %vm1270_vm1, %v3994_v40, %v3995_v14  ;;  %7507 = vst [vmem:[#allocation29_spill] sm:$0xff] %v6760_v8  ;;  %v7508_v59 = vld [vmem:[#allocation14_spill] sm:$0xff]  ;;  %v462_v4 = vld [vmem:[%s4912_s4 + $0x258] sm:$0xfe]  ;;  %v468_v51 = vld [vmem:[%s4912_s4 + $0x288] sm:$0x1] }
 0x1b1   : > { %v2129_v23 = vrot.slane %v1902_v32, 1  ;;  %v2691_v45 = vrot.slane %v2459_v36, 2  ;;  %v2692_v63 = vrot.slane %v2465_v39, 2  ;;  %v3202_v1 = vmul.f32 %v4657_v50, %v7508_v59  ;;  %v1026_v32 = vld [vmem:[%s4912_s4 + $0x258] sm:$0xfc] }
 0x1b2   : > { %v3549_v30 = vadd.f32 %v3433_v0, %v2986_v2  ;;  %v1501_v56 = vadd.f32 %v1387_v21, %v937_v26  ;;  %v3208_v61 = vmul.f32 %v4663_v25, %v7508_v59  ;;  %v2939_v40 = vmul.f32 %v6760_v8, %v7509_v17  ;;  %v247_v0 = vld [vmem:[%s4912_s4 + $0x258] sm:$0xff]  ;;  %v1032_v26 = vld [vmem:[%s4912_s4 + $0x288] sm:$0x3] }
 0x1b3   : > { %v2130_v44 = vsel %vm706_vm0, %v2128_v53, %v2129_v23  ;;  %v3765_v36 = vmul.f32 %v4755_v11, %v7480_v58  ;;  %v3771_v14 = vmul.f32 %v4761_v46, %v7480_v58  ;;  %v3434_v25 = vrot.slane %v3202_v1, 1  ;;  %v4412_v11 = vld [vmem:[%s4912_s4 + $0x2b8] sm:$0xfe]  ;;  %v4516_v1 = vld [vmem:[%s4912_s4 + $0x2e8] sm:$0x3] }
 0x1b4   : > { %v4112_v39 = vadd.f32 %v3996_v10, %v3549_v30  ;;  %v1681_v50 = vadd.f32 %v1633_v55, %v1501_v56  ;;  %v3435_v2 = vrot.slane %v3208_v61, 1  ;;  %v2693_v21 = vsel %vm1270_vm1, %v2691_v45, %v2692_v63  ;;  %v7510_v58 = vld [vmem:[#allocation17_spill] sm:$0xff]  ;;  %v7511_v10 = vld [vmem:[#allocation19_spill] sm:$0xff] }
 0x1b5   : > { %v3997_v53 = vrot.slane %v3765_v36, 2  ;;  %v3998_v23 = vrot.slane %v3771_v14, 2  ;;  %v589_v17 = vmul.f32 %v7451_v22, %v462_v4  ;;  %v326_v59 = vmul.f32 %v7510_v58, %v247_v0  ;;  %v4418_v55 = vld [vmem:[%s4912_s4 + $0x2e8] sm:$0x1]  ;;  %v4510_v56 = vld [vmem:[%s4912_s4 + $0x2b8] sm:$0xfc] }
 0x1b6   : > { %4160 = vst [vmem:[%s5107_s3 + $0x128] sm:$0xff] %v4112_v39  ;;  %v2244_v46 = vadd.f32 %v2130_v44, %v1681_v50  ;;  %v595_v8 = vmul.f32 %v7451_v22, %v468_v51  ;;  %v1153_v30 = vmul.f32 %v7511_v10, %v1026_v32  ;;  %v3436_v45 = vsel %vm706_vm0, %v3434_v25, %v3435_v2  ;;  %v7512_v39 = vld [vmem:[#allocation23_spill] sm:$0xff]  ;;  %v4658_v2 = vld [vmem:[%s4912_s4 + $0x318] sm:$0xfe] }
 0x1b7   : > { %v3999_v63 = vsel %vm1270_vm1, %v3997_v53, %v3998_v23  ;;  %v824_v61 = vrot.slane %v589_v17, 1  ;;  %v1159_v4 = vmul.f32 %v7511_v10, %v1032_v26  ;;  %v1897_v0 = vmul.f32 %v4412_v11, %v7483_v48  ;;  %v4664_v53 = vld [vmem:[%s4912_s4 + $0x348] sm:$0x1]  ;;  %v7513_v23 = vld [vmem:[#allocation20_spill] sm:$0xff] }
 0x1b8   : > { %v2807_v44 = vadd.f32 %v2693_v21, %v2244_v46  ;;  %v825_v36 = vrot.slane %v595_v8, 1  ;;  %v1388_v14 = vrot.slane %v1153_v30, 2  ;;  %v1903_v32 = vmul.f32 %v4418_v55, %v7483_v48  ;;  %v7514_v21 = vld [vmem:[#allocation30_spill] sm:$0xff]  ;;  %v4756_v30 = vld [vmem:[%s4912_s4 + $0x318] sm:$0xfc] }
 0x1b9   : > { %v1389_v51 = vrot.slane %v1159_v4, 2  ;;  %v2460_v50 = vmul.f32 %v4510_v56, %v7512_v39  ;;  %v2466_v25 = vmul.f32 %v4516_v1, %v7512_v39  ;;  %v1634_v8 = vmul.f32 %v7514_v21, %v7513_v23  ;;  %v4762_v11 = vld [vmem:[%s4912_s4 + $0x348] sm:$0x3]  ;;  %v7517_v23 = vld [vmem:[#allocation24_spill] sm:$0xff] }
 0x1ba   : > { %v2987_v17 = vadd.f32 %v2939_v40, %v2807_v44  ;;  %v826_v26 = vsel %vm706_vm0, %v824_v61, %v825_v36  ;;  %v2131_v46 = vrot.slane %v1897_v0, 1  ;;  %v2132_v4 = vrot.slane %v1903_v32, 1  ;;  %v6800_v40 = vld [vmem:[%s4912_s4 + $0x318] sm:$0xff]  ;;  %v7516_v61 = vld [vmem:[#allocation26_spill] sm:$0xff]  ;;  %v469_v32 = vld [vmem:[%s4912_s4 + $0x290] sm:$0x1] }
 0x1bb   : > { %v938_v55 = vadd.f32 %v826_v26, %v326_v59  ;;  %v1390_v56 = vsel %vm1270_vm1, %v1388_v14, %v1389_v51  ;;  %v2694_v1 = vrot.slane %v2460_v50, 2  ;;  %v2695_v48 = vrot.slane %v2466_v25, 2  ;;  %7515 = vst [vmem:[#allocation36_spill] sm:$0xff] %v6800_v40  ;;  %v248_v0 = vld [vmem:[%s4912_s4 + $0x260] sm:$0xff]  ;;  %v7518_v26 = vld [vmem:[#allocation27_spill] sm:$0xff] }
 0x1bc   : > { %v3550_v39 = vadd.f32 %v3436_v45, %v2987_v17  ;;  %v3203_v44 = vmul.f32 %v4658_v2, %v7516_v61  ;;  %v3209_v36 = vmul.f32 %v4664_v53, %v7516_v61  ;;  %v2940_v59 = vmul.f32 %v6800_v40, %v7517_v23  ;;  %v463_v45 = vld [vmem:[%s4912_s4 + $0x260] sm:$0xfe] }
 0x1bd   : > { %v1502_v21 = vadd.f32 %v1390_v56, %v938_v55  ;;  %v3766_v14 = vmul.f32 %v4756_v30, %v7518_v26  ;;  %v3772_v51 = vmul.f32 %v4762_v11, %v7518_v26  ;;  %v1027_v50 = vld [vmem:[%s4912_s4 + $0x260] sm:$0xfc]  ;;  %v2133_v2 = vsel %vm706_vm0, %v2131_v46, %v2132_v4  ;;  %v1033_v55 = vld [vmem:[%s4912_s4 + $0x290] sm:$0x3] }
 0x1be   : > { %v4113_v25 = vadd.f32 %v3999_v63, %v3550_v39  ;;  %v3437_v53 = vrot.slane %v3203_v44, 1  ;;  %v3438_v17 = vrot.slane %v3209_v36, 1  ;;  %v2696_v23 = vsel %vm1270_vm1, %v2694_v1, %v2695_v48  ;;  %v4413_v30 = vld [vmem:[%s4912_s4 + $0x2c0] sm:$0xfe]  ;;  %v4419_v46 = vld [vmem:[%s4912_s4 + $0x2f0] sm:$0x1] }
 0x1bf   : > { %v1682_v56 = vadd.f32 %v1634_v8, %v1502_v21  ;;  %v4000_v61 = vrot.slane %v3766_v14, 2  ;;  %v4001_v40 = vrot.slane %v3772_v51, 2  ;;  %v327_v11 = vmul.f32 %v7372_v52, %v248_v0  ;;  %v4511_v4 = vld [vmem:[%s4912_s4 + $0x2c0] sm:$0xfc]  ;;  %v4517_v36 = vld [vmem:[%s4912_s4 + $0x2f0] sm:$0x3] }
 0x1c0   : > { %4161 = vst [vmem:[%s5107_s3 + $0x130] sm:$0xff] %v4113_v25  ;;  %v590_v26 = vmul.f32 %v7371_v15, %v463_v45  ;;  %v596_v63 = vmul.f32 %v7371_v15, %v469_v32  ;;  %v1154_v39 = vmul.f32 %v7403_v16, %v1027_v50  ;;  %v3439_v44 = vsel %vm706_vm0, %v3437_v53, %v3438_v17  ;;  %v4665_v53 = vld [vmem:[%s4912_s4 + $0x350] sm:$0x1] }
 0x1c1   : > { %v2245_v8 = vadd.f32 %v2133_v2, %v1682_v56  ;;  %v4002_v48 = vsel %vm1270_vm1, %v4000_v61, %v4001_v40  ;;  %v1160_v1 = vmul.f32 %v7403_v16, %v1033_v55  ;;  %v1898_v51 = vmul.f32 %v4413_v30, %v7376_v20  ;;  %v4659_v2 = vld [vmem:[%s4912_s4 + $0x320] sm:$0xfe] }
 0x1c2   : > { %v827_v0 = vrot.slane %v590_v26, 1  ;;  %v828_v21 = vrot.slane %v596_v63, 1  ;;  %v1391_v14 = vrot.slane %v1154_v39, 2  ;;  %v1904_v50 = vmul.f32 %v4419_v46, %v7376_v20  ;;  %v4757_v55 = vld [vmem:[%s4912_s4 + $0x320] sm:$0xfc] }
 0x1c3   : > { %v2808_v45 = vadd.f32 %v2696_v23, %v2245_v8  ;;  %v1392_v32 = vrot.slane %v1160_v1, 2  ;;  %v2461_v25 = vmul.f32 %v4511_v4, %v7377_v13  ;;  %v1635_v61 = vmul.f32 %v6600_v49, %v7404_v5  ;;  %v4763_v39 = vld [vmem:[%s4912_s4 + $0x350] sm:$0x3]  ;;  %v6840_v8 = vld [vmem:[%s4912_s4 + $0x320] sm:$0xff] }
 0x1c4   : > { %v829_v40 = vsel %vm706_vm0, %v827_v0, %v828_v21  ;;  %v2134_v26 = vrot.slane %v1898_v51, 1  ;;  %v2467_v17 = vmul.f32 %v4517_v36, %v7377_v13  ;;  %v2135_v63 = vrot.slane %v1904_v50, 1  ;;  %v249_v21 = vld [vmem:[%s4912_s4 + $0x268] sm:$0xff]  ;;  %v470_v51 = vld [vmem:[%s4912_s4 + $0x298] sm:$0x1] }
 0x1c5   : > { %v2988_v23 = vadd.f32 %v2940_v59, %v2808_v45  ;;  %v939_v56 = vadd.f32 %v829_v40, %v327_v11  ;;  %v1393_v30 = vsel %vm1270_vm1, %v1391_v14, %v1392_v32  ;;  %v2697_v46 = vrot.slane %v2461_v25, 2  ;;  %v464_v14 = vld [vmem:[%s4912_s4 + $0x268] sm:$0xfe] }
 0x1c6   : > { %v2698_v4 = vrot.slane %v2467_v17, 2  ;;  %v3204_v49 = vmul.f32 %v4659_v2, %v7432_v7  ;;  %v3210_v1 = vmul.f32 %v4665_v53, %v7432_v7  ;;  %v2941_v59 = vmul.f32 %v6840_v8, %v7489_v37  ;;  %v1028_v2 = vld [vmem:[%s4912_s4 + $0x268] sm:$0xfc] }
 0x1c7   : > { %v3551_v36 = vadd.f32 %v3439_v44, %v2988_v23  ;;  %v1503_v0 = vadd.f32 %v1393_v30, %v939_v56  ;;  %v3767_v11 = vmul.f32 %v4757_v55, %v7461_v57  ;;  %v2136_v45 = vsel %vm706_vm0, %v2134_v26, %v2135_v63  ;;  %v1034_v44 = vld [vmem:[%s4912_s4 + $0x298] sm:$0x3]  ;;  %v4414_v23 = vld [vmem:[%s4912_s4 + $0x2c8] sm:$0xfe] }
 0x1c8   : > { %v3440_v32 = vrot.slane %v3204_v49, 1  ;;  %v3441_v50 = vrot.slane %v3210_v1, 1  ;;  %v3773_v25 = vmul.f32 %v4763_v39, %v7461_v57  ;;  %v2699_v17 = vsel %vm1270_vm1, %v2697_v46, %v2698_v4  ;;  %v4420_v49 = vld [vmem:[%s4912_s4 + $0x2f8] sm:$0x1]  ;;  %v4512_v46 = vld [vmem:[%s4912_s4 + $0x2c8] sm:$0xfc] }
 0x1c9   : > { %v4114_v53 = vadd.f32 %v4002_v48, %v3551_v36  ;;  %v1683_v40 = vadd.f32 %v1635_v61, %v1503_v0  ;;  %v4003_v55 = vrot.slane %v3767_v11, 2  ;;  %v328_v30 = vmul.f32 %v5379_v12, %v249_v21  ;;  %v4518_v4 = vld [vmem:[%s4912_s4 + $0x2f8] sm:$0x3]  ;;  %v7519_v11 = vld [vmem:[#allocation31_spill] sm:$0xff] }
 0x1ca   : > { %v3442_v56 = vsel %vm706_vm0, %v3440_v32, %v3441_v50  ;;  %v591_v26 = vmul.f32 %v5383_v38, %v464_v14  ;;  %v597_v63 = vmul.f32 %v5383_v38, %v470_v51  ;;  %v4004_v1 = vrot.slane %v3773_v25, 2  ;;  %v7520_v14 = vld [vmem:[#allocation40_spill] sm:$0xff] }
 0x1cb   : > { %4162 = vst [vmem:[%s5107_s3 + $0x138] sm:$0xff] %v4114_v53  ;;  %v2246_v39 = vadd.f32 %v2136_v45, %v1683_v40  ;;  %v1155_v48 = vmul.f32 %v5389_v54, %v1028_v2  ;;  %v1161_v61 = vmul.f32 %v5389_v54, %v1034_v44  ;;  %v1636_v21 = vmul.f32 %v7519_v11, %v7491_v34  ;;  %v4660_v2 = vld [vmem:[%s4912_s4 + $0x328] sm:$0xfe]  ;;  %v7521_v40 = vld [vmem:[#allocation41_spill] sm:$0xff] }
 0x1cc   : > { %v830_v36 = vrot.slane %v591_v26, 1  ;;  %v831_v0 = vrot.slane %v597_v63, 1  ;;  %v1899_v51 = vmul.f32 %v4414_v23, %v7520_v14  ;;  %v1905_v25 = vmul.f32 %v4420_v49, %v7520_v14  ;;  %v4666_v54 = vld [vmem:[%s4912_s4 + $0x358] sm:$0x1] }
 0x1cd   : > { %v2809_v32 = vadd.f32 %v2699_v17, %v2246_v39  ;;  %v1394_v50 = vrot.slane %v1155_v48, 2  ;;  %v1395_v45 = vrot.slane %v1161_v61, 2  ;;  %v2462_v26 = vmul.f32 %v4512_v46, %v7521_v40  ;;  %v4758_v48 = vld [vmem:[%s4912_s4 + $0x328] sm:$0xfc]  ;;  %v4764_v49 = vld [vmem:[%s4912_s4 + $0x358] sm:$0x3] }
 0x1ce   : > { %v832_v44 = vsel %vm706_vm0, %v830_v36, %v831_v0  ;;  %v2137_v53 = vrot.slane %v1899_v51, 1  ;;  %v2468_v63 = vmul.f32 %v4518_v4, %v7521_v40  ;;  %v2138_v39 = vrot.slane %v1905_v25, 1  ;;  %v6880_v46 = vld [vmem:[%s4912_s4 + $0x328] sm:$0xff]  ;;  %v7523_v4 = vld [vmem:[#allocation44_spill] sm:$0xff]  ;;  %v471_v25 = vld [vmem:[%s4912_s4 + $0x2a0] sm:$0xfe] }
 0x1cf   : > { %v2989_v11 = vadd.f32 %v2941_v59, %v2809_v32  ;;  %v940_v23 = vadd.f32 %v832_v44, %v328_v30  ;;  %v1396_v17 = vsel %vm1270_vm1, %v1394_v50, %v1395_v45  ;;  %v4005_v61 = vsel %vm1270_vm1, %v4003_v55, %v4004_v1  ;;  %7522 = vst [vmem:[#allocation28_spill] sm:$0xff] %v6880_v46  ;;  %v7524_v32 = vld [vmem:[#allocation42_spill] sm:$0xff]  ;;  %v477_v44 = vld [vmem:[%s4912_s4 + $0x2d0] sm:$0x1] }
 0x1d0   : > { %v2700_v36 = vrot.slane %v2462_v26, 2  ;;  %v2701_v0 = vrot.slane %v2468_v63, 2  ;;  %v3205_v51 = vmul.f32 %v4660_v2, %v7523_v4  ;;  %v2942_v30 = vmul.f32 %v6880_v46, %v7524_v32  ;;  %v250_v45 = vld [vmem:[%s4912_s4 + $0x2a0] sm:$0xff]  ;;  %v7525_v26 = vld [vmem:[#allocation45_spill] sm:$0xff] }
 0x1d1   : > { %v3552_v34 = vadd.f32 %v3442_v56, %v2989_v11  ;;  %v1504_v59 = vadd.f32 %v1396_v17, %v940_v23  ;;  %v3211_v50 = vmul.f32 %v4666_v54, %v7523_v4  ;;  %v2139_v55 = vsel %vm706_vm0, %v2137_v53, %v2138_v39  ;;  %v1035_v56 = vld [vmem:[%s4912_s4 + $0x2a0] sm:$0xfc]  ;;  %v1041_v11 = vld [vmem:[%s4912_s4 + $0x2d0] sm:$0x3] }
 0x1d2   : > { %v3443_v1 = vrot.slane %v3205_v51, 1  ;;  %v3768_v63 = vmul.f32 %v4758_v48, %v7525_v26  ;;  %v3774_v2 = vmul.f32 %v4764_v49, %v7525_v26  ;;  %v2702_v54 = vsel %vm1270_vm1, %v2700_v36, %v2701_v0  ;;  %v4421_v51 = vld [vmem:[%s4912_s4 + $0x300] sm:$0xfe]  ;;  %v4427_v48 = vld [vmem:[%s4912_s4 + $0x330] sm:$0x1] }
 0x1d3   : > { %v4115_v23 = vadd.f32 %v4005_v61, %v3552_v34  ;;  %v1684_v17 = vadd.f32 %v1636_v21, %v1504_v59  ;;  %v3444_v32 = vrot.slane %v3211_v50, 1  ;;  %v329_v46 = vmul.f32 %v7382_v6, %v250_v45  ;;  %v4519_v21 = vld [vmem:[%s4912_s4 + $0x300] sm:$0xfc]  ;;  %v4525_v61 = vld [vmem:[%s4912_s4 + $0x330] sm:$0x3] }
 0x1d4   : > { %v4006_v4 = vrot.slane %v3768_v63, 2  ;;  %v598_v53 = vmul.f32 %v4920_v18, %v471_v25  ;;  %v604_v39 = vmul.f32 %v4920_v18, %v477_v44  ;;  %v4007_v26 = vrot.slane %v3774_v2, 2  ;;  %v4673_v63 = vld [vmem:[%s4912_s4 + $0x390] sm:$0x1] }
 0x1d5   : > { %4163 = vst [vmem:[%s5107_s3 + $0x140] sm:$0xff] %v4115_v23  ;;  %v2247_v49 = vadd.f32 %v2139_v55, %v1684_v17  ;;  %v1162_v40 = vmul.f32 %v4924_v19, %v1035_v56  ;;  %v1168_v34 = vmul.f32 %v4924_v19, %v1041_v11  ;;  %v3445_v36 = vsel %vm706_vm0, %v3443_v1, %v3444_v32  ;;  %v4667_v1 = vld [vmem:[%s4912_s4 + $0x360] sm:$0xfe]  ;;  %v4771_v23 = vld [vmem:[%s4912_s4 + $0x390] sm:$0x3] }
 0x1d6   : > { %v833_v6 = vrot.slane %v598_v53, 1  ;;  %v834_v0 = vrot.slane %v604_v39, 1  ;;  %v1637_v18 = vmul.f32 %v6680_v24, %v4958_v35  ;;  %v1906_v25 = vmul.f32 %v4421_v51, %v4969_v41  ;;  %v4765_v11 = vld [vmem:[%s4912_s4 + $0x360] sm:$0xfc]  ;;  %v472_v51 = vld [vmem:[%s4912_s4 + $0x2a8] sm:$0xfe] }
 0x1d7   : > { %v2810_v59 = vadd.f32 %v2702_v54, %v2247_v49  ;;  %v1397_v50 = vrot.slane %v1162_v40, 2  ;;  %v1398_v45 = vrot.slane %v1168_v34, 2  ;;  %v1912_v44 = vmul.f32 %v4427_v48, %v4969_v41  ;;  %v4575_v40 = vld [vmem:[%s4912_s4 + $0x360] sm:$0xff] }
 0x1d8   : > { %v835_v19 = vsel %vm706_vm0, %v833_v6, %v834_v0  ;;  %v2469_v55 = vmul.f32 %v4519_v21, %v5014_v3  ;;  %v2475_v32 = vmul.f32 %v4525_v61, %v5014_v3  ;;  %v2140_v56 = vrot.slane %v1906_v25, 1  ;;  %v478_v21 = vld [vmem:[%s4912_s4 + $0x2d8] sm:$0x1]  ;;  %v1036_v61 = vld [vmem:[%s4912_s4 + $0x2a8] sm:$0xfc] }
 0x1d9   : > { %v2990_v2 = vadd.f32 %v2942_v30, %v2810_v59  ;;  %v941_v35 = vadd.f32 %v835_v19, %v329_v46  ;;  %v1399_v24 = vsel %vm1270_vm1, %v1397_v50, %v1398_v45  ;;  %v4008_v41 = vsel %vm1270_vm1, %v4006_v4, %v4007_v26  ;;  %v251_v26 = vld [vmem:[%s4912_s4 + $0x2a8] sm:$0xff]  ;;  %v1042_v59 = vld [vmem:[%s4912_s4 + $0x2d8] sm:$0x3] }
 0x1da   : > { %v2141_v17 = vrot.slane %v1912_v44, 1  ;;  %v2703_v54 = vrot.slane %v2469_v55, 2  ;;  %v2704_v53 = vrot.slane %v2475_v32, 2  ;;  %v3212_v30 = vmul.f32 %v4667_v1, %v5062_v43  ;;  %v4422_v19 = vld [vmem:[%s4912_s4 + $0x308] sm:$0xfe] }
 0x1db   : > { %v3553_v3 = vadd.f32 %v3445_v36, %v2990_v2  ;;  %v1505_v39 = vadd.f32 %v1399_v24, %v941_v35  ;;  %v3218_v46 = vmul.f32 %v4673_v63, %v5062_v43  ;;  %v2943_v49 = vmul.f32 %v4575_v40, %v5045_v33  ;;  %v4520_v1 = vld [vmem:[%s4912_s4 + $0x308] sm:$0xfc]  ;;  %v4526_v63 = vld [vmem:[%s4912_s4 + $0x338] sm:$0x3] }
 0x1dc   : > { %v2142_v48 = vsel %vm706_vm0, %v2140_v56, %v2141_v17  ;;  %v3775_v34 = vmul.f32 %v4765_v11, %v5082_v62  ;;  %v3781_v4 = vmul.f32 %v4771_v23, %v5082_v62  ;;  %v3446_v43 = vrot.slane %v3212_v30, 1  ;;  %v7526_v17 = vld [vmem:[#allocation4_spill] sm:$0xff] }
 0x1dd   : > { %v4116_v36 = vadd.f32 %v4008_v41, %v3553_v3  ;;  %v1685_v6 = vadd.f32 %v1637_v18, %v1505_v39  ;;  %v3447_v0 = vrot.slane %v3218_v46, 1  ;;  %v2705_v50 = vsel %vm1270_vm1, %v2703_v54, %v2704_v53  ;;  %v4428_v18 = vld [vmem:[%s4912_s4 + $0x338] sm:$0x1]  ;;  %v4668_v3 = vld [vmem:[%s4912_s4 + $0x368] sm:$0xfe] }
 0x1de   : > { %v4009_v45 = vrot.slane %v3775_v34, 2  ;;  %v4010_v33 = vrot.slane %v3781_v4, 2  ;;  %v599_v25 = vmul.f32 %v4945_v28, %v472_v51  ;;  %v330_v44 = vmul.f32 %v4941_v27, %v251_v26  ;;  %v4674_v39 = vld [vmem:[%s4912_s4 + $0x398] sm:$0x1]  ;;  %v7527_v46 = vld [vmem:[#allocation3_spill] sm:$0xff] }
 0x1df   : > { %4164 = vst [vmem:[%s5107_s3 + $0x148] sm:$0xff] %v4116_v36  ;;  %v2248_v62 = vadd.f32 %v2142_v48, %v1685_v6  ;;  %v605_v55 = vmul.f32 %v4945_v28, %v478_v21  ;;  %v1163_v32 = vmul.f32 %v4949_v29, %v1036_v61  ;;  %v3448_v2 = vsel %vm706_vm0, %v3446_v43, %v3447_v0  ;;  %v7528_v51 = vld [vmem:[#allocation25_spill] sm:$0xff]  ;;  %v4576_v4 = vld [vmem:[%s4912_s4 + $0x368] sm:$0xff] }
 0x1e0   : > { %v4011_v35 = vsel %vm1270_vm1, %v4009_v45, %v4010_v33  ;;  %v836_v24 = vrot.slane %v599_v25, 1  ;;  %v1169_v56 = vmul.f32 %v4949_v29, %v1042_v59  ;;  %v1907_v11 = vmul.f32 %v4422_v19, %v4982_v47  ;;  %v4766_v26 = vld [vmem:[%s4912_s4 + $0x368] sm:$0xfc]  ;;  %v4772_v21 = vld [vmem:[%s4912_s4 + $0x398] sm:$0x3]  ;;  %v252_v45 = vld [vmem:[%s4912_s4 + $0x2b0] sm:$0xff] }
 0x1e1   : > { %v2811_v40 = vadd.f32 %v2705_v50, %v2248_v62  ;;  %v837_v27 = vrot.slane %v605_v55, 1  ;;  %v1400_v28 = vrot.slane %v1163_v32, 2  ;;  %v1913_v41 = vmul.f32 %v4428_v18, %v4982_v47  ;;  %v7529_v0 = vld [vmem:[#allocation7_spill] sm:$0xff]  ;;  %v7530_v25 = vld [vmem:[#allocation6_spill] sm:$0xff]  ;;  %v7531_v62 = vld [vmem:[#allocation8_spill] sm:$0xff] }
 0x1e2   : > { %v1401_v23 = vrot.slane %v1169_v56, 2  ;;  %v2470_v54 = vmul.f32 %v4520_v1, %v7526_v17  ;;  %v2476_v53 = vmul.f32 %v4526_v63, %v7526_v17  ;;  %v1638_v48 = vmul.f32 %v7528_v51, %v7527_v46  ;;  %v473_v32 = vld [vmem:[%s4912_s4 + $0x2b0] sm:$0xfe]  ;;  %v479_v18 = vld [vmem:[%s4912_s4 + $0x2e0] sm:$0x1] }
 0x1e3   : > { %v2991_v30 = vadd.f32 %v2943_v49, %v2811_v40  ;;  %v838_v29 = vsel %vm706_vm0, %v836_v24, %v837_v27  ;;  %v2143_v34 = vrot.slane %v1907_v11, 1  ;;  %v2144_v36 = vrot.slane %v1913_v41, 1  ;;  %v1037_v1 = vld [vmem:[%s4912_s4 + $0x2b0] sm:$0xfc]  ;;  %v1043_v40 = vld [vmem:[%s4912_s4 + $0x2e0] sm:$0x3] }
 0x1e4   : > { %v942_v47 = vadd.f32 %v838_v29, %v330_v44  ;;  %v1402_v61 = vsel %vm1270_vm1, %v1400_v28, %v1401_v23  ;;  %v2706_v6 = vrot.slane %v2470_v54, 2  ;;  %v2707_v49 = vrot.slane %v2476_v53, 2  ;;  %v4423_v41 = vld [vmem:[%s4912_s4 + $0x310] sm:$0xfe]  ;;  %v7532_v53 = vld [vmem:[#allocation9_spill] sm:$0xff] }
 0x1e5   : > { %v3554_v43 = vadd.f32 %v3448_v2, %v2991_v30  ;;  %v3213_v59 = vmul.f32 %v4668_v3, %v7529_v0  ;;  %v3219_v50 = vmul.f32 %v4674_v39, %v7529_v0  ;;  %v2944_v19 = vmul.f32 %v4576_v4, %v7530_v25  ;;  %v4429_v39 = vld [vmem:[%s4912_s4 + $0x340] sm:$0x1]  ;;  %v4521_v30 = vld [vmem:[%s4912_s4 + $0x310] sm:$0xfc] }
 0x1e6   : > { %v1506_v33 = vadd.f32 %v1402_v61, %v942_v47  ;;  %v3776_v55 = vmul.f32 %v4766_v26, %v7531_v62  ;;  %v3782_v44 = vmul.f32 %v4772_v21, %v7531_v62  ;;  %v2145_v2 = vsel %vm706_vm0, %v2143_v34, %v2144_v36  ;;  %v4527_v34 = vld [vmem:[%s4912_s4 + $0x340] sm:$0x3]  ;;  %v4577_v25 = vld [vmem:[%s4912_s4 + $0x370] sm:$0xff] }
 0x1e7   : > { %v4117_v63 = vadd.f32 %v4011_v35, %v3554_v43  ;;  %v3449_v24 = vrot.slane %v3213_v59, 1  ;;  %v3450_v56 = vrot.slane %v3219_v50, 1  ;;  %v2708_v28 = vsel %vm1270_vm1, %v2706_v6, %v2707_v49  ;;  %v4669_v6 = vld [vmem:[%s4912_s4 + $0x370] sm:$0xfe]  ;;  %v4675_v43 = vld [vmem:[%s4912_s4 + $0x3a0] sm:$0x1] }
 0x1e8   : > { %v1686_v27 = vadd.f32 %v1638_v48, %v1506_v33  ;;  %v4012_v11 = vrot.slane %v3776_v55, 2  ;;  %v4013_v23 = vrot.slane %v3782_v44, 2  ;;  %v331_v17 = vmul.f32 %v5003_v60, %v252_v45  ;;  %v7533_v0 = vld [vmem:[#allocation10_spill] sm:$0xff]  ;;  %v7534_v59 = vld [vmem:[#allocation29_spill] sm:$0xff]  ;;  %v4767_v62 = vld [vmem:[%s4912_s4 + $0x370] sm:$0xfc] }
 0x1e9   : > { %4165 = vst [vmem:[%s5107_s3 + $0x150] sm:$0xff] %v4117_v63  ;;  %v600_v54 = vmul.f32 %v7502_v42, %v473_v32  ;;  %v606_v35 = vmul.f32 %v7502_v42, %v479_v18  ;;  %v1164_v3 = vmul.f32 %v7532_v53, %v1037_v1  ;;  %v3451_v46 = vsel %vm706_vm0, %v3449_v24, %v3450_v56  ;;  %v4773_v18 = vld [vmem:[%s4912_s4 + $0x3a0] sm:$0x3] }
 0x1ea   : > { %v2249_v29 = vadd.f32 %v2145_v2, %v1686_v27  ;;  %v4014_v51 = vsel %vm1270_vm1, %v4012_v11, %v4013_v23  ;;  %v1170_v48 = vmul.f32 %v7532_v53, %v1043_v40  ;;  %v1908_v42 = vmul.f32 %v4423_v41, %v7505_v9  ;;  %v7535_v2 = vld [vmem:[#allocation14_spill] sm:$0xff]  ;;  %v7536_v27 = vld [vmem:[#allocation13_spill] sm:$0xff]  ;;  %v7537_v11 = vld [vmem:[#allocation16_spill] sm:$0xff] }
 0x1eb   : > { %v839_v60 = vrot.slane %v600_v54, 1  ;;  %v840_v4 = vrot.slane %v606_v35, 1  ;;  %v1403_v26 = vrot.slane %v1164_v3, 2  ;;  %v1914_v61 = vmul.f32 %v4429_v39, %v7505_v9  ;;  %v253_v23 = vld [vmem:[%s4912_s4 + $0x2b8] sm:$0xff] }
 0x1ec   : > { %v2812_v21 = vadd.f32 %v2708_v28, %v2249_v29  ;;  %v1404_v47 = vrot.slane %v1170_v48, 2  ;;  %v2471_v36 = vmul.f32 %v4521_v30, %v7506_v31  ;;  %v1639_v50 = vmul.f32 %v7534_v59, %v7533_v0  ;;  %v474_v41 = vld [vmem:[%s4912_s4 + $0x2b8] sm:$0xfe]  ;;  %v1044_v30 = vld [vmem:[%s4912_s4 + $0x2e8] sm:$0x3] }
 0x1ed   : > { %v841_v49 = vsel %vm706_vm0, %v839_v60, %v840_v4  ;;  %v2146_v45 = vrot.slane %v1908_v42, 1  ;;  %v2477_v33 = vmul.f32 %v4527_v34, %v7506_v31  ;;  %v2147_v32 = vrot.slane %v1914_v61, 1  ;;  %v1038_v39 = vld [vmem:[%s4912_s4 + $0x2b8] sm:$0xfc] }
 0x1ee   : > { %v2992_v55 = vadd.f32 %v2944_v19, %v2812_v21  ;;  %v943_v44 = vadd.f32 %v841_v49, %v331_v17  ;;  %v1405_v9 = vsel %vm1270_vm1, %v1403_v26, %v1404_v47  ;;  %v2709_v1 = vrot.slane %v2471_v36, 2  ;;  %v480_v17 = vld [vmem:[%s4912_s4 + $0x2e8] sm:$0x1]  ;;  %v4424_v60 = vld [vmem:[%s4912_s4 + $0x318] sm:$0xfe] }
 0x1ef   : > { %v2710_v63 = vrot.slane %v2477_v33, 2  ;;  %v3214_v24 = vmul.f32 %v4669_v6, %v7535_v2  ;;  %v3220_v56 = vmul.f32 %v4675_v43, %v7535_v2  ;;  %v2945_v28 = vmul.f32 %v4577_v25, %v7536_v27  ;;  %v4430_v47 = vld [vmem:[%s4912_s4 + $0x348] sm:$0x1]  ;;  %v4522_v43 = vld [vmem:[%s4912_s4 + $0x318] sm:$0xfc]  ;;  %v7540_v33 = vld [vmem:[#allocation22_spill] sm:$0xff] }
 0x1f0   : > { %v3555_v31 = vadd.f32 %v3451_v46, %v2992_v55  ;;  %v1507_v40 = vadd.f32 %v1405_v9, %v943_v44  ;;  %v3777_v19 = vmul.f32 %v4767_v62, %v7537_v11  ;;  %v2148_v54 = vsel %vm706_vm0, %v2146_v45, %v2147_v32  ;;  %v4528_v49 = vld [vmem:[%s4912_s4 + $0x348] sm:$0x3]  ;;  %v4670_v9 = vld [vmem:[%s4912_s4 + $0x378] sm:$0xfe] }
 0x1f1   : > { %v3452_v35 = vrot.slane %v3214_v24, 1  ;;  %v3453_v53 = vrot.slane %v3220_v56, 1  ;;  %v3783_v3 = vmul.f32 %v4773_v18, %v7537_v11  ;;  %v2711_v48 = vsel %vm1270_vm1, %v2709_v1, %v2710_v63  ;;  %v7541_v18 = vld [vmem:[#allocation23_spill] sm:$0xff]  ;;  %v4578_v2 = vld [vmem:[%s4912_s4 + $0x378] sm:$0xff] }
 0x1f2   : > { %v4118_v29 = vadd.f32 %v4014_v51, %v3555_v31  ;;  %v1687_v46 = vadd.f32 %v1639_v50, %v1507_v40  ;;  %v4015_v34 = vrot.slane %v3777_v19, 2  ;;  %v332_v26 = vmul.f32 %v7510_v58, %v253_v23  ;;  %v7538_v58 = vld [vmem:[#allocation20_spill] sm:$0xff]  ;;  %v4676_v24 = vld [vmem:[%s4912_s4 + $0x3a8] sm:$0x1]  ;;  %v4768_v11 = vld [vmem:[%s4912_s4 + $0x378] sm:$0xfc] }
 0x1f3   : > { %v3454_v4 = vsel %vm706_vm0, %v3452_v35, %v3453_v53  ;;  %v601_v42 = vmul.f32 %v7451_v22, %v474_v41  ;;  %v607_v21 = vmul.f32 %v7451_v22, %v480_v17  ;;  %v4016_v36 = vrot.slane %v3783_v3, 2  ;;  %v7539_v50 = vld [vmem:[#allocation36_spill] sm:$0xff]  ;;  %v4774_v19 = vld [vmem:[%s4912_s4 + $0x3a8] sm:$0x3] }
 0x1f4   : > { %4166 = vst [vmem:[%s5107_s3 + $0x158] sm:$0xff] %v4118_v29  ;;  %v2250_v61 = vadd.f32 %v2148_v54, %v1687_v46  ;;  %v1165_v51 = vmul.f32 %v7511_v10, %v1038_v39  ;;  %v1171_v6 = vmul.f32 %v7511_v10, %v1044_v30  ;;  %v1640_v45 = vmul.f32 %v7539_v50, %v7538_v58  ;;  %v7542_v54 = vld [vmem:[#allocation26_spill] sm:$0xff]  ;;  %v7543_v39 = vld [vmem:[#allocation24_spill] sm:$0xff] }
 0x1f5   : > { %v842_v0 = vrot.slane %v601_v42, 1  ;;  %v843_v59 = vrot.slane %v607_v21, 1  ;;  %v1909_v22 = vmul.f32 %v4424_v60, %v7540_v33  ;;  %v1915_v44 = vmul.f32 %v4430_v47, %v7540_v33  ;;  %v254_v29 = vld [vmem:[%s4912_s4 + $0x2c0] sm:$0xff]  ;;  %v4431_v50 = vld [vmem:[%s4912_s4 + $0x350] sm:$0x1] }
 0x1f6   : > { %v2813_v25 = vadd.f32 %v2711_v48, %v2250_v61  ;;  %v1406_v62 = vrot.slane %v1165_v51, 2  ;;  %v1407_v55 = vrot.slane %v1171_v6, 2  ;;  %v2472_v1 = vmul.f32 %v4522_v43, %v7541_v18  ;;  %v475_v46 = vld [vmem:[%s4912_s4 + $0x2c0] sm:$0xfe]  ;;  %v481_v48 = vld [vmem:[%s4912_s4 + $0x2f0] sm:$0x1] }
 0x1f7   : > { %v844_v10 = vsel %vm706_vm0, %v842_v0, %v843_v59  ;;  %v2149_v32 = vrot.slane %v1909_v22, 1  ;;  %v2478_v63 = vmul.f32 %v4528_v49, %v7541_v18  ;;  %v2150_v27 = vrot.slane %v1915_v44, 1  ;;  %v1039_v47 = vld [vmem:[%s4912_s4 + $0x2c0] sm:$0xfc] }
 0x1f8   : > { %v2993_v56 = vadd.f32 %v2945_v28, %v2813_v25  ;;  %v944_v31 = vadd.f32 %v844_v10, %v332_v26  ;;  %v1408_v40 = vsel %vm1270_vm1, %v1406_v62, %v1407_v55  ;;  %v4017_v23 = vsel %vm1270_vm1, %v4015_v34, %v4016_v36  ;;  %v7544_v26 = vld [vmem:[#allocation27_spill] sm:$0xff]  ;;  %v4425_v58 = vld [vmem:[%s4912_s4 + $0x320] sm:$0xfe]  ;;  %v4529_v55 = vld [vmem:[%s4912_s4 + $0x350] sm:$0x3] }
 0x1f9   : > { %v2712_v41 = vrot.slane %v2472_v1, 2  ;;  %v2713_v17 = vrot.slane %v2478_v63, 2  ;;  %v3215_v35 = vmul.f32 %v4670_v9, %v7542_v54  ;;  %v2946_v30 = vmul.f32 %v4578_v2, %v7543_v39  ;;  %v4523_v62 = vld [vmem:[%s4912_s4 + $0x320] sm:$0xfc]  ;;  %v476_v39 = vld [vmem:[%s4912_s4 + $0x2c8] sm:$0xfe] }
 0x1fa   : > { %v3556_v53 = vadd.f32 %v3454_v4, %v2993_v56  ;;  %v1508_v3 = vadd.f32 %v1408_v40, %v944_v31  ;;  %v3221_v28 = vmul.f32 %v4676_v24, %v7542_v54  ;;  %v2151_v60 = vsel %vm706_vm0, %v2149_v32, %v2150_v27  ;;  %v1045_v4 = vld [vmem:[%s4912_s4 + $0x2f0] sm:$0x3]  ;;  %v4671_v56 = vld [vmem:[%s4912_s4 + $0x380] sm:$0xfe] }
 0x1fb   : > { %v3455_v34 = vrot.slane %v3215_v35, 1  ;;  %v3778_v42 = vmul.f32 %v4768_v11, %v7544_v26  ;;  %v3784_v21 = vmul.f32 %v4774_v19, %v7544_v26  ;;  %v2714_v51 = vsel %vm1270_vm1, %v2712_v41, %v2713_v17  ;;  %v4677_v31 = vld [vmem:[%s4912_s4 + $0x3b0] sm:$0x1]  ;;  %v4579_v11 = vld [vmem:[%s4912_s4 + $0x380] sm:$0xff] }
 0x1fc   : > { %v4119_v61 = vadd.f32 %v4017_v23, %v3556_v53  ;;  %v1688_v36 = vadd.f32 %v1640_v45, %v1508_v3  ;;  %v3456_v6 = vrot.slane %v3221_v28, 1  ;;  %v333_v49 = vmul.f32 %v7372_v52, %v254_v29  ;;  %v4769_v19 = vld [vmem:[%s4912_s4 + $0x380] sm:$0xfc]  ;;  %v4775_v23 = vld [vmem:[%s4912_s4 + $0x3b0] sm:$0x3] }
 0x1fd   : > { %v4018_v43 = vrot.slane %v3778_v42, 2  ;;  %v602_v0 = vmul.f32 %v7371_v15, %v475_v46  ;;  %v608_v59 = vmul.f32 %v7371_v15, %v481_v48  ;;  %v4019_v22 = vrot.slane %v3784_v21, 2  ;;  %v255_v48 = vld [vmem:[%s4912_s4 + $0x2c8] sm:$0xff] }
 0x1fe   : > { %4167 = vst [vmem:[%s5107_s3 + $0x160] sm:$0xff] %v4119_v61  ;;  %v2251_v33 = vadd.f32 %v2151_v60, %v1688_v36  ;;  %v1166_v25 = vmul.f32 %v7403_v16, %v1039_v47  ;;  %v1172_v45 = vmul.f32 %v7403_v16, %v1045_v4  ;;  %v3457_v44 = vsel %vm706_vm0, %v3455_v34, %v3456_v6  ;;  %v482_v60 = vld [vmem:[%s4912_s4 + $0x2f8] sm:$0x1]  ;;  %v1040_v34 = vld [vmem:[%s4912_s4 + $0x2c8] sm:$0xfc] }
 0x1ff   : > { %v845_v52 = vrot.slane %v602_v0, 1  ;;  %v846_v9 = vrot.slane %v608_v59, 1  ;;  %v1641_v15 = vmul.f32 %v6840_v8, %v7404_v5  ;;  %v1910_v1 = vmul.f32 %v4425_v58, %v7376_v20  ;;  %v1046_v47 = vld [vmem:[%s4912_s4 + $0x2f8] sm:$0x3]  ;;  %v4524_v58 = vld [vmem:[%s4912_s4 + $0x328] sm:$0xfc] }
 0x200   : > { %v2814_v10 = vadd.f32 %v2714_v51, %v2251_v33  ;;  %v1409_v32 = vrot.slane %v1166_v25, 2  ;;  %v1410_v18 = vrot.slane %v1172_v45, 2  ;;  %v1916_v63 = vmul.f32 %v4431_v50, %v7376_v20  ;;  %v4426_v51 = vld [vmem:[%s4912_s4 + $0x328] sm:$0xfe]  ;;  %v4432_v59 = vld [vmem:[%s4912_s4 + $0x358] sm:$0x1] }
 0x201   : > { %v847_v16 = vsel %vm706_vm0, %v845_v52, %v846_v9  ;;  %v2473_v2 = vmul.f32 %v4523_v62, %v7377_v13  ;;  %v2479_v24 = vmul.f32 %v4529_v55, %v7377_v13  ;;  %v2152_v27 = vrot.slane %v1910_v1, 1  ;;  %v4530_v50 = vld [vmem:[%s4912_s4 + $0x358] sm:$0x3] }
 0x202   : > { %v2994_v40 = vadd.f32 %v2946_v30, %v2814_v10  ;;  %v945_v5 = vadd.f32 %v847_v16, %v333_v49  ;;  %v1411_v8 = vsel %vm1270_vm1, %v1409_v32, %v1410_v18  ;;  %v4020_v20 = vsel %vm1270_vm1, %v4018_v43, %v4019_v22  ;;  %v7545_v49 = vld [vmem:[#allocation38_spill] sm:$0xff]  ;;  %v7546_v9 = vld [vmem:[#allocation41_spill] sm:$0xff]  ;;  %v4672_v32 = vld [vmem:[%s4912_s4 + $0x388] sm:$0xfe] }
 0x203   : > { %v2153_v41 = vrot.slane %v1916_v63, 1  ;;  %v2715_v17 = vrot.slane %v2473_v2, 2  ;;  %v2716_v54 = vrot.slane %v2479_v24, 2  ;;  %v3216_v53 = vmul.f32 %v4671_v56, %v7432_v7  ;;  %v4678_v18 = vld [vmem:[%s4912_s4 + $0x3b8] sm:$0x1]  ;;  %v7547_v63 = vld [vmem:[#allocation39_spill] sm:$0xff] }
 0x204   : > { %v3557_v13 = vadd.f32 %v3457_v44, %v2994_v40  ;;  %v1509_v35 = vadd.f32 %v1411_v8, %v945_v5  ;;  %v3222_v3 = vmul.f32 %v4677_v31, %v7432_v7  ;;  %v2947_v28 = vmul.f32 %v4579_v11, %v7489_v37  ;;  %v7548_v2 = vld [vmem:[#allocation28_spill] sm:$0xff]  ;;  %v4770_v8 = vld [vmem:[%s4912_s4 + $0x388] sm:$0xfc] }
 0x205   : > { %v2154_v30 = vsel %vm706_vm0, %v2152_v27, %v2153_v41  ;;  %v3779_v29 = vmul.f32 %v4769_v19, %v7461_v57  ;;  %v3785_v46 = vmul.f32 %v4775_v23, %v7461_v57  ;;  %v3458_v7 = vrot.slane %v3216_v53, 1  ;;  %v4776_v27 = vld [vmem:[%s4912_s4 + $0x3b8] sm:$0x3]  ;;  %v7549_v23 = vld [vmem:[#allocation44_spill] sm:$0xff] }
 0x206   : > { %v4120_v26 = vadd.f32 %v4020_v20, %v3557_v13  ;;  %v1689_v42 = vadd.f32 %v1641_v15, %v1509_v35  ;;  %v3459_v21 = vrot.slane %v3222_v3, 1  ;;  %v2717_v4 = vsel %vm1270_vm1, %v2715_v17, %v2716_v54  ;;  %v4580_v35 = vld [vmem:[%s4912_s4 + $0x388] sm:$0xff]  ;;  %v7550_v53 = vld [vmem:[#allocation45_spill] sm:$0xff] }
 0x207   : > { %v4021_v61 = vrot.slane %v3779_v29, 2  ;;  %v4022_v37 = vrot.slane %v3785_v46, 2  ;;  %v603_v36 = vmul.f32 %v5383_v38, %v476_v39  ;;  %v334_v6 = vmul.f32 %v5379_v12, %v255_v48 }
 0x208   : > { %4168 = vst [vmem:[%s5107_s3 + $0x168] sm:$0xff] %v4120_v26  ;;  %v2252_v57 = vadd.f32 %v2154_v30, %v1689_v42  ;;  %v609_v43 = vmul.f32 %v5383_v38, %v482_v60  ;;  %v1167_v0 = vmul.f32 %v7545_v49, %v1040_v34  ;;  %v3460_v33 = vsel %vm706_vm0, %v3458_v7, %v3459_v21  ;;  %v7551_v60 = vld [vmem:[#allocation42_spill] sm:$0xff] }
 0x209   : > { %v4023_v22 = vsel %vm1270_vm1, %v4021_v61, %v4022_v37  ;;  %v848_v25 = vrot.slane %v603_v36, 1  ;;  %v1173_v45 = vmul.f32 %v7545_v49, %v1046_v47  ;;  %v1911_v12 = vmul.f32 %v4426_v51, %v7520_v14 }
 0x20a   : > { %v2815_v62 = vadd.f32 %v2717_v4, %v2252_v57  ;;  %v849_v55 = vrot.slane %v609_v43, 1  ;;  %v1412_v44 = vrot.slane %v1167_v0, 2  ;;  %v1917_v52 = vmul.f32 %v4432_v59, %v7520_v14 }
 0x20b   : > { %v1413_v38 = vrot.slane %v1173_v45, 2  ;;  %v2474_v15 = vmul.f32 %v4524_v58, %v7546_v9  ;;  %v2480_v10 = vmul.f32 %v4530_v50, %v7546_v9  ;;  %v1642_v24 = vmul.f32 %v7548_v2, %v7547_v63 }
 0x20c   : > { %v2995_v1 = vadd.f32 %v2947_v28, %v2815_v62  ;;  %v850_v16 = vsel %vm706_vm0, %v848_v25, %v849_v55  ;;  %v2155_v56 = vrot.slane %v1911_v12, 1  ;;  %v2156_v5 = vrot.slane %v1917_v52, 1 }
 0x20d   : > { %v946_v31 = vadd.f32 %v850_v16, %v334_v6  ;;  %v1414_v40 = vsel %vm1270_vm1, %v1412_v44, %v1413_v38  ;;  %v2718_v14 = vrot.slane %v2474_v15, 2  ;;  %v2719_v19 = vrot.slane %v2480_v10, 2 }
 0x20e   : > { %v3558_v11 = vadd.f32 %v3460_v33, %v2995_v1  ;;  %v3217_v20 = vmul.f32 %v4672_v32, %v7549_v23  ;;  %v3223_v41 = vmul.f32 %v4678_v18, %v7549_v23  ;;  %v2157_v13 = vsel %vm706_vm0, %v2155_v56, %v2156_v5 }
 0x20f   : > { %v1510_v17 = vadd.f32 %v1414_v40, %v946_v31  ;;  %v3780_v3 = vmul.f32 %v4770_v8, %v7550_v53  ;;  %v3786_v39 = vmul.f32 %v4776_v27, %v7550_v53  ;;  %v2720_v28 = vsel %vm1270_vm1, %v2718_v14, %v2719_v19 }
 0x210   : > { %v4121_v54 = vadd.f32 %v4023_v22, %v3558_v11  ;;  %v3461_v29 = vrot.slane %v3217_v20, 1  ;;  %v3462_v46 = vrot.slane %v3223_v41, 1  ;;  %v2948_v34 = vmul.f32 %v4580_v35, %v7551_v60 }
 0x211   : > { %v1690_v30 = vadd.f32 %v1642_v24, %v1510_v17  ;;  %v4024_v26 = vrot.slane %v3780_v3, 2  ;;  %v4025_v42 = vrot.slane %v3786_v39, 2 }
 0x212   : > { %4169 = vst [vmem:[%s5107_s3 + $0x170] sm:$0xff] %v4121_v54  ;;  %v3463_v21 = vsel %vm706_vm0, %v3461_v29, %v3462_v46 }
 0x213   : > { %v2253_v48 = vadd.f32 %v2157_v13, %v1690_v30  ;;  %v4026_v4 = vsel %vm1270_vm1, %v4024_v26, %v4025_v42 }
 0x215   : > { %v2816_v7 = vadd.f32 %v2720_v28, %v2253_v48 }
 0x217   : > { %v2996_v47 = vadd.f32 %v2948_v34, %v2816_v7 }
 0x219   : > { %v3559_v61 = vadd.f32 %v3463_v21, %v2996_v47 }
 0x21b   : > { %v4122_v37 = vadd.f32 %v4026_v4, %v3559_v61 }
 0x21d   : > { %4170 = vst [vmem:[%s5107_s3 + $0x178] sm:$0xff] %v4122_v37 }
 0x21e PF: > { %s12_s11 = sadd.s32 1, %s4827_s11   ;;  %s7552_s9 = smov %s4823_s10 }
 0x21f   : > { %p9_p5 = scmp.ge.s32.totalorder %s12_s11, 4   ;;  %s7553_s10 = smov %s7555_s12 }
 0x221   :  { %11 = sbr.rel (!%p9_p5) target bundleno = 2 (0x2), region = 71 }

</bundles_post_ra>
